<compile_context>
chip_gen: v7x
topology: tpu7x:2x2x1
jax: 0.10.0
libtpu: 0.0.40
codegen_flags: <defaults>
</compile_context>

<pallas_src>
import functools

import jax
import jax.numpy as jnp
from jax.experimental import pallas as pl
from jax.experimental.pallas import tpu as pltpu

LANE = 128      # TPU vreg lane width
SUBLANE = 8


def _round_up(x, m):
    return ((x + m - 1) // m) * m


# ----------------------------------------------------------------------------
# Pallas kernel: act(a @ w + b)   -- a: (tm, K), w: (K, Np), b: (1, Np)
# ----------------------------------------------------------------------------
def _mm_bias_act_kernel(a_ref, w_ref, b_ref, o_ref, *, act):
    acc = jnp.dot(a_ref[...], w_ref[...], preferred_element_type=jnp.float32)
    acc = acc + b_ref[...]                       # (1, Np) broadcasts over (tm, Np)
    if act == "relu":
        acc = jnp.maximum(acc, 0.0)
    elif act == "sigmoid":
        # numerically stable sigmoid (single exp; no overflow for large |x|)
        z = jnp.exp(-jnp.abs(acc))
        acc = jnp.where(acc >= 0.0, 1.0, z) / (1.0 + z)
    o_ref[...] = acc.astype(o_ref.dtype)


def _choose_tm(M):
    """Per-layer row tile: single block for small M; otherwise an even number of
    ~1K-row blocks (even grid -> both v7x TensorCores get work)."""
    if M <= 512:
        return _round_up(M, SUBLANE)
    n_blocks = max(2, 2 * pl.cdiv(M, 2048))
    return _round_up(pl.cdiv(M, n_blocks), SUBLANE)


def matmul_bias_act(a, w, b, act):
    """a: (M, K), w: (K, N), b: (N,) -> act(a @ w + b), computed in Pallas."""
    M, K = a.shape
    K2, N = w.shape
    assert K == K2, (K, K2)

    # Lane-dense output: pad output channels to a full 128-lane vreg width.
    Np = _round_up(N, LANE)
    if Np > N:
        w = jnp.pad(w, ((0, 0), (0, Np - N)))
        b = jnp.pad(b, (0, Np - N))
    b2 = b.reshape(1, Np).astype(jnp.float32)

    tm = _choose_tm(M)
    Mp = _round_up(M, tm)
    a_p = a if Mp == M else jnp.pad(a, ((0, Mp - M), (0, 0)))

    out = pl.pallas_call(
        functools.partial(_mm_bias_act_kernel, act=act),
        out_shape=jax.ShapeDtypeStruct((Mp, Np), jnp.float32),
        grid=(Mp // tm,),
        in_specs=[
            pl.BlockSpec((tm, K), lambda i: (i, 0)),    # patch rows (tiled over grid)
            pl.BlockSpec((K, Np), lambda i: (0, 0)),    # full weight (resident)
            pl.BlockSpec((1, Np), lambda i: (0, 0)),    # bias
        ],
        out_specs=pl.BlockSpec((tm, Np), lambda i: (i, 0)),
        compiler_params=pltpu.CompilerParams(dimension_semantics=("parallel",)),
    )(a_p, w, b2)
    return out[:M, :N]


# ----------------------------------------------------------------------------
# im2col in NHWC (strided slices + minor-dim concat; K pad folded into the concat)
# ----------------------------------------------------------------------------
def _im2col_nhwc(x, kh, kw, stride, OH, OW, Kp):
    N, H, W_, C = x.shape
    cols = []
    for dy in range(kh):
        for dx in range(kw):
            cols.append(x[:, dy:dy + stride * (OH - 1) + 1:stride,
                            dx:dx + stride * (OW - 1) + 1:stride, :])
    K = kh * kw * C
    if Kp > K:
        cols.append(jnp.zeros((N, OH, OW, Kp - K), x.dtype))
    return jnp.concatenate(cols, axis=-1).reshape(N * OH * OW, Kp)


def conv2d_nhwc(x, w, b, stride, act):
    """PyTorch-style Conv2d (padding=0) on NHWC input. w: (Cout, Cin, kh, kw)."""
    N, H, W_, C = x.shape
    Cout, Cin, kh, kw = w.shape
    assert C == Cin, (C, Cin)
    OH = (H - kh) // stride + 1
    OW = (W_ - kw) // stride + 1
    K = kh * kw * Cin
    Kp = _round_up(K, LANE) if K > LANE else K        # 128-align K only when cheap
    patches = _im2col_nhwc(x, kh, kw, stride, OH, OW, Kp)
    w_mat = jnp.transpose(w, (2, 3, 1, 0)).reshape(K, Cout)   # (ky, kx, ci) order
    if Kp > K:
        w_mat = jnp.pad(w_mat, ((0, Kp - K), (0, 0)))
    out = matmul_bias_act(patches, w_mat, b, act)     # (N*OH*OW, Cout)
    return out.reshape(N, OH, OW, Cout)


# ----------------------------------------------------------------------------
# ConvTranspose2d via sub-pixel decomposition (one stride-1 conv + depth-to-space)
# ----------------------------------------------------------------------------
def _subpixel_axis(k, s):
    """For each output phase r in [0, s): taps of the equivalent stride-1 conv.
    Returns (Fmax, win, placed) with placed[r] = [(window_pos, orig_kernel_idx), ...]."""
    info = []
    for r in range(s):
        dy0 = (k - 1 - r) % s
        taps = list(range(dy0, k, s))          # nonzero taps of the dilated conv
        F = (k - 1 - r) // s                   # left reach (in input pixels)
        info.append((F, taps))
    Fmax = max(F for F, _ in info)
    win = max((Fmax - F) + len(taps) for F, taps in info)
    placed = []
    for F, taps in info:
        off = Fmax - F
        placed.append([(off + t, k - 1 - dy) for t, dy in enumerate(taps)])
    return Fmax, win, placed


def _phase_kernel(w, placed_h, placed_w, win):
    """w: (Cin, Cout, k, k) ConvTranspose2d weight -> phase conv kernel (Cout, Cin, win, win)."""
    Cin, Cout, k, _ = w.shape
    kys = [ki for _, ki in placed_h]
    kxs = [ki for _, ki in placed_w]
    oy = placed_h[0][0]
    ox = placed_w[0][0]
    sub = jnp.take(jnp.take(w, jnp.array(kys), axis=2), jnp.array(kxs), axis=3)
    sub = jnp.transpose(sub, (1, 0, 2, 3))             # (Cout, Cin, Ty, Tx)
    full = jnp.zeros((Cout, Cin, win, win), w.dtype)
    return full.at[:, :, oy:oy + len(kys), ox:ox + len(kxs)].set(sub)


def conv_transpose2d_nhwc(x, w, b, stride, act):
    """PyTorch-style ConvTranspose2d (padding=0) on NHWC input. w: (Cin, Cout, k, k)."""
    N, H, W_, Cin = x.shape
    Cin_w, Cout, k, _ = w.shape
    assert Cin == Cin_w, (Cin, Cin_w)
    s = stride
    OH = (H - 1) * s + k
    OW = (W_ - 1) * s + k

    Fmax, win, placed = _subpixel_axis(k, s)
    Qh = pl.cdiv(OH, s)
    Qw = pl.cdiv(OW, s)
    pad_h = (Fmax, Qh + win - 1 - Fmax - H)
    pad_w = (Fmax, Qw + win - 1 - Fmax - W_)
    xp = jnp.pad(x, ((0, 0), pad_h, pad_w, (0, 0)))

    # Pack all s*s phase sub-kernels as extra output channels of one stride-1 conv.
    w_big = jnp.concatenate(
        [_phase_kernel(w, placed[rh], placed[rw], win)
         for rh in range(s) for rw in range(s)], axis=0)   # (s*s*Cout, Cin, win, win)
    b_big = jnp.tile(b, s * s)

    y = conv2d_nhwc(xp, w_big, b_big, 1, act)              # (N, Qh, Qw, s*s*Cout)

    # depth-to-space: channel block (rh, rw) -> output pixel (s*qh+rh, s*qw+rw), then crop.
    y = y.reshape(N, Qh, Qw, s, s, Cout)
    y = jnp.transpose(y, (0, 1, 3, 2, 4, 5)).reshape(N, Qh * s, Qw * s, Cout)
    return y[:, :OH, :OW, :]


# ----------------------------------------------------------------------------
# Autoencoder parameters + forward
# ----------------------------------------------------------------------------
ENC_CFG = [  # (cin (None -> io_size), cout, k, stride, act)   -- Conv2d
    (None, 8, 4, 2, "relu"),
    (8, 8, 5, 2, "relu"),
    (8, 16, 5, 3, "relu"),
    (16, 32, 7, 1, "none"),
]
DEC_CFG = [  # (cin, cout, k, stride, act)                     -- ConvTranspose2d
    (32, 16, 7, 1, "relu"),
    (16, 8, 5, 3, "relu"),
    (8, 8, 5, 2, "relu"),
    (8, 1, 4, 2, "sigmoid"),
]


def init_params(key, io_size):
    enc, dec = [], []
    for (cin, cout, k, _, _) in ENC_CFG:
        cin = io_size if cin is None else cin
        key, k_w, k_b = jax.random.split(key, 3)
        scale = 1.0 / float(cin * k * k) ** 0.5
        enc.append((jax.random.normal(k_w, (cout, cin, k, k), jnp.float32) * scale,
                    jax.random.normal(k_b, (cout,), jnp.float32) * scale))
    for (cin, cout, k, _, _) in DEC_CFG:
        key, k_w, k_b = jax.random.split(key, 3)
        scale = 1.0 / float(cin * k * k) ** 0.5
        dec.append((jax.random.normal(k_w, (cin, cout, k, k), jnp.float32) * scale,
                    jax.random.normal(k_b, (cout,), jnp.float32) * scale))
    return {"enc": enc, "dec": dec}


@jax.jit
def autoencoder_forward(params, x):
    """x: NCHW float32 (PyTorch layout)."""
    h = jnp.transpose(x, (0, 2, 3, 1))                 # NCHW -> NHWC (internal layout)
    for (w, b), (_, _, _, s, act) in zip(params["enc"], ENC_CFG):
        h = conv2d_nhwc(h, w, b, s, act)
    for (w, b), (_, _, _, s, act) in zip(params["dec"], DEC_CFG):
        h = conv_transpose2d_nhwc(h, w, b, s, act)
    return jnp.transpose(h, (0, 3, 1, 2))              # NHWC -> NCHW


# ----------------------------------------------------------------------------
# Pure-JAX reference (lax convs) for correctness checking
# ----------------------------------------------------------------------------
def _ref_forward(params, x):
    dn = ("NCHW", "OIHW", "NCHW")
    h = x
    for (w, b), (_, _, _, s, act) in zip(params["enc"], ENC_CFG):
        h = jax.lax.conv_general_dilated(h, w, (s, s), "VALID", dimension_numbers=dn)
        h = h + b[None, :, None, None]
        if act == "relu":
            h = jnp.maximum(h, 0.0)
    for (w, b), (_, _, k, s, act) in zip(params["dec"], DEC_CFG):
        w_eq = jnp.flip(w, axis=(2, 3)).transpose(1, 0, 2, 3)
        h = jax.lax.conv_general_dilated(
            h, w_eq, (1, 1), [(k - 1, k - 1), (k - 1, k - 1)],
            lhs_dilation=(s, s), dimension_numbers=dn)
        h = h + b[None, :, None, None]
        if act == "relu":
            h = jnp.maximum(h, 0.0)
        elif act == "sigmoid":
            h = jax.nn.sigmoid(h)
    return h


# ----------------------------------------------------------------------------
if __name__ == "__main__":
    # 100x100 is the smallest spatial size the encoder's strided convs admit
    # (100 -> 49 -> 23 -> 7 -> 1; decoder reconstructs 1 -> 7 -> 23 -> 49 -> 100).
    io_size = 1
    batch = 2
    key = jax.random.PRNGKey(0)
    k_x, k_p = jax.random.split(key)
    x = jax.random.uniform(k_x, (batch, io_size, 100, 100), jnp.float32)
    params = init_params(k_p, io_size)

    y = jax.block_until_ready(autoencoder_forward(params, x))
    assert y.shape == (batch, 1, 100, 100), y.shape

    y_ref = jax.block_until_ready(_ref_forward(params, x))
    max_err = float(jnp.max(jnp.abs(y - y_ref)))
    assert jnp.allclose(y, y_ref, atol=1e-3, rtol=1e-3), max_err

    print("KERNEL_OK")
</pallas_src>

<mosaic_0001>
module attributes {stable_mosaic.version = 11 : i64} {
  func.func @_mm_bias_act_kernel(%arg0: i32, %arg1: memref<808x16xf32, #tpu.memory_space<vmem>>, %arg2: memref<16x128xf32, #tpu.memory_space<vmem>>, %arg3: memref<1x128xf32, #tpu.memory_space<vmem>>, %arg4: memref<808x128xf32, #tpu.memory_space<vmem>>) attributes {dimension_semantics = [#tpu.dimension_semantics<parallel>], iteration_bounds = array<i64: 6>, scalar_prefetch = 0 : i64, scratch_operands = 0 : i64, tpu.core_type = #tpu.core_type<tc>, window_params = [{transform_indices = @transform_0, window_bounds = array<i64: 808, 16>}, {pipeline_mode = #tpu.pipeline_mode<synchronous>, transform_indices = @transform_1, window_bounds = array<i64: 16, 128>}, {pipeline_mode = #tpu.pipeline_mode<synchronous>, transform_indices = @transform_2, window_bounds = array<i64: 1, 128>}, {transform_indices = @transform_3, window_bounds = array<i64: 808, 128>}]} {
    %c0 = arith.constant 0 : index
    %c0_0 = arith.constant 0 : index
    %0 = vector.load %arg1[%c0, %c0_0] : memref<808x16xf32, #tpu.memory_space<vmem>>, vector<808x16xf32>
    %c0_1 = arith.constant 0 : index
    %c0_2 = arith.constant 0 : index
    %1 = vector.load %arg2[%c0_1, %c0_2] : memref<16x128xf32, #tpu.memory_space<vmem>>, vector<16x128xf32>
    %cst = arith.constant dense<0.000000e+00> : vector<808x128xf32>
    %2 = tpu.matmul %0, %1, %cst {dimension_numbers = #tpu.dot_dimension_numbers<[1], [0], [0], [1], [0, 0, 1, 1], [], []>} : vector<808x16xf32>, vector<16x128xf32>, vector<808x128xf32> -> vector<808x128xf32>
    %c0_3 = arith.constant 0 : index
    %c0_4 = arith.constant 0 : index
    %3 = vector.load %arg3[%c0_3, %c0_4] : memref<1x128xf32, #tpu.memory_space<vmem>>, vector<1x128xf32>
    %4 = vector.broadcast %3 : vector<1x128xf32> to vector<808x128xf32>
    %5 = arith.addf %2, %4 : vector<808x128xf32>
    %cst_5 = arith.constant 0.000000e+00 : f32
    %6 = vector.broadcast %cst_5 : f32 to vector<808x128xf32>
    %7 = arith.maximumf %5, %6 : vector<808x128xf32>
    %c0_6 = arith.constant 0 : index
    %c0_7 = arith.constant 0 : index
    %8 = vector.load %arg4[%c0_6, %c0_7] : memref<808x128xf32, #tpu.memory_space<vmem>>, vector<808x128xf32>
    tpu.vector_store %arg4[%c0_6, %c0_7], %7 {strides = array<i32>} : memref<808x128xf32, #tpu.memory_space<vmem>>, vector<808x128xf32>,
    return
  }
  func.func @transform_0(%arg0: i32) -> (i32, i32) {
    %c0_i32 = arith.constant 0 : i32
    %c0_i32_0 = arith.constant 0 : i32
    return %arg0, %c0_i32 : i32, i32
  }
  func.func @transform_1(%arg0: i32) -> (i32, i32) {
    %c0_i32 = arith.constant 0 : i32
    %c0_i32_0 = arith.constant 0 : i32
    %c0_i32_1 = arith.constant 0 : i32
    return %c0_i32, %c0_i32_0 : i32, i32
  }
  func.func @transform_2(%arg0: i32) -> (i32, i32) {
    %c0_i32 = arith.constant 0 : i32
    %c0_i32_0 = arith.constant 0 : i32
    %c0_i32_1 = arith.constant 0 : i32
    return %c0_i32, %c0_i32_0 : i32, i32
  }
  func.func @transform_3(%arg0: i32) -> (i32, i32) {
    %c0_i32 = arith.constant 0 : i32
    %c0_i32_0 = arith.constant 0 : i32
    return %arg0, %c0_i32 : i32, i32
  }
}

module attributes {stable_mosaic.version = 11 : i64} {
  func.func @_mm_bias_act_kernel(%arg0: i32, %arg1: memref<536x256xf32, #tpu.memory_space<vmem>>, %arg2: memref<256x128xf32, #tpu.memory_space<vmem>>, %arg3: memref<1x128xf32, #tpu.memory_space<vmem>>, %arg4: memref<536x128xf32, #tpu.memory_space<vmem>>) attributes {dimension_semantics = [#tpu.dimension_semantics<parallel>], iteration_bounds = array<i64: 2>, scalar_prefetch = 0 : i64, scratch_operands = 0 : i64, tpu.core_type = #tpu.core_type<tc>, window_params = [{transform_indices = @transform_0, window_bounds = array<i64: 536, 256>}, {pipeline_mode = #tpu.pipeline_mode<synchronous>, transform_indices = @transform_1, window_bounds = array<i64: 256, 128>}, {pipeline_mode = #tpu.pipeline_mode<synchronous>, transform_indices = @transform_2, window_bounds = array<i64: 1, 128>}, {transform_indices = @transform_3, window_bounds = array<i64: 536, 128>}]} {
    %c0 = arith.constant 0 : index
    %c0_0 = arith.constant 0 : index
    %0 = vector.load %arg1[%c0, %c0_0] : memref<536x256xf32, #tpu.memory_space<vmem>>, vector<536x256xf32>
    %c0_1 = arith.constant 0 : index
    %c0_2 = arith.constant 0 : index
    %1 = vector.load %arg2[%c0_1, %c0_2] : memref<256x128xf32, #tpu.memory_space<vmem>>, vector<256x128xf32>
    %cst = arith.constant dense<0.000000e+00> : vector<536x128xf32>
    %2 = tpu.matmul %0, %1, %cst {dimension_numbers = #tpu.dot_dimension_numbers<[1], [0], [0], [1], [0, 0, 1, 1], [], []>} : vector<536x256xf32>, vector<256x128xf32>, vector<536x128xf32> -> vector<536x128xf32>
    %c0_3 = arith.constant 0 : index
    %c0_4 = arith.constant 0 : index
    %3 = vector.load %arg3[%c0_3, %c0_4] : memref<1x128xf32, #tpu.memory_space<vmem>>, vector<1x128xf32>
    %4 = vector.broadcast %3 : vector<1x128xf32> to vector<536x128xf32>
    %5 = arith.addf %2, %4 : vector<536x128xf32>
    %cst_5 = arith.constant 0.000000e+00 : f32
    %6 = vector.broadcast %cst_5 : f32 to vector<536x128xf32>
    %7 = arith.maximumf %5, %6 : vector<536x128xf32>
    %c0_6 = arith.constant 0 : index
    %c0_7 = arith.constant 0 : index
    %8 = vector.load %arg4[%c0_6, %c0_7] : memref<536x128xf32, #tpu.memory_space<vmem>>, vector<536x128xf32>
    tpu.vector_store %arg4[%c0_6, %c0_7], %7 {strides = array<i32>} : memref<536x128xf32, #tpu.memory_space<vmem>>, vector<536x128xf32>,
    return
  }
  func.func @transform_0(%arg0: i32) -> (i32, i32) {
    %c0_i32 = arith.constant 0 : i32
    %c0_i32_0 = arith.constant 0 : i32
    return %arg0, %c0_i32 : i32, i32
  }
  func.func @transform_1(%arg0: i32) -> (i32, i32) {
    %c0_i32 = arith.constant 0 : i32
    %c0_i32_0 = arith.constant 0 : i32
    %c0_i32_1 = arith.constant 0 : i32
    return %c0_i32, %c0_i32_0 : i32, i32
  }
  func.func @transform_2(%arg0: i32) -> (i32, i32) {
    %c0_i32 = arith.constant 0 : i32
    %c0_i32_0 = arith.constant 0 : i32
    %c0_i32_1 = arith.constant 0 : i32
    return %c0_i32, %c0_i32_0 : i32, i32
  }
  func.func @transform_3(%arg0: i32) -> (i32, i32) {
    %c0_i32 = arith.constant 0 : i32
    %c0_i32_0 = arith.constant 0 : i32
    return %arg0, %c0_i32 : i32, i32
  }
}

module attributes {stable_mosaic.version = 11 : i64} {
  func.func @_mm_bias_act_kernel(%arg0: i32, %arg1: memref<104x256xf32, #tpu.memory_space<vmem>>, %arg2: memref<256x128xf32, #tpu.memory_space<vmem>>, %arg3: memref<1x128xf32, #tpu.memory_space<vmem>>, %arg4: memref<104x128xf32, #tpu.memory_space<vmem>>) attributes {dimension_semantics = [#tpu.dimension_semantics<parallel>], iteration_bounds = array<i64: 1>, scalar_prefetch = 0 : i64, scratch_operands = 0 : i64, tpu.core_type = #tpu.core_type<tc>, window_params = [{transform_indices = @transform_0, window_bounds = array<i64: 104, 256>}, {pipeline_mode = #tpu.pipeline_mode<synchronous>, transform_indices = @transform_1, window_bounds = array<i64: 256, 128>}, {pipeline_mode = #tpu.pipeline_mode<synchronous>, transform_indices = @transform_2, window_bounds = array<i64: 1, 128>}, {transform_indices = @transform_3, window_bounds = array<i64: 104, 128>}]} {
    %c0 = arith.constant 0 : index
    %c0_0 = arith.constant 0 : index
    %0 = vector.load %arg1[%c0, %c0_0] : memref<104x256xf32, #tpu.memory_space<vmem>>, vector<104x256xf32>
    %c0_1 = arith.constant 0 : index
    %c0_2 = arith.constant 0 : index
    %1 = vector.load %arg2[%c0_1, %c0_2] : memref<256x128xf32, #tpu.memory_space<vmem>>, vector<256x128xf32>
    %cst = arith.constant dense<0.000000e+00> : vector<104x128xf32>
    %2 = tpu.matmul %0, %1, %cst {dimension_numbers = #tpu.dot_dimension_numbers<[1], [0], [0], [1], [0, 0, 1, 1], [], []>} : vector<104x256xf32>, vector<256x128xf32>, vector<104x128xf32> -> vector<104x128xf32>
    %c0_3 = arith.constant 0 : index
    %c0_4 = arith.constant 0 : index
    %3 = vector.load %arg3[%c0_3, %c0_4] : memref<1x128xf32, #tpu.memory_space<vmem>>, vector<1x128xf32>
    %4 = vector.broadcast %3 : vector<1x128xf32> to vector<104x128xf32>
    %5 = arith.addf %2, %4 : vector<104x128xf32>
    %cst_5 = arith.constant 0.000000e+00 : f32
    %6 = vector.broadcast %cst_5 : f32 to vector<104x128xf32>
    %7 = arith.maximumf %5, %6 : vector<104x128xf32>
    %c0_6 = arith.constant 0 : index
    %c0_7 = arith.constant 0 : index
    %8 = vector.load %arg4[%c0_6, %c0_7] : memref<104x128xf32, #tpu.memory_space<vmem>>, vector<104x128xf32>
    tpu.vector_store %arg4[%c0_6, %c0_7], %7 {strides = array<i32>} : memref<104x128xf32, #tpu.memory_space<vmem>>, vector<104x128xf32>,
    return
  }
  func.func @transform_0(%arg0: i32) -> (i32, i32) {
    %c0_i32 = arith.constant 0 : i32
    %c0_i32_0 = arith.constant 0 : i32
    return %arg0, %c0_i32 : i32, i32
  }
  func.func @transform_1(%arg0: i32) -> (i32, i32) {
    %c0_i32 = arith.constant 0 : i32
    %c0_i32_0 = arith.constant 0 : i32
    %c0_i32_1 = arith.constant 0 : i32
    return %c0_i32, %c0_i32_0 : i32, i32
  }
  func.func @transform_2(%arg0: i32) -> (i32, i32) {
    %c0_i32 = arith.constant 0 : i32
    %c0_i32_0 = arith.constant 0 : i32
    %c0_i32_1 = arith.constant 0 : i32
    return %c0_i32, %c0_i32_0 : i32, i32
  }
  func.func @transform_3(%arg0: i32) -> (i32, i32) {
    %c0_i32 = arith.constant 0 : i32
    %c0_i32_0 = arith.constant 0 : i32
    return %arg0, %c0_i32 : i32, i32
  }
}

module attributes {stable_mosaic.version = 11 : i64} {
  func.func @_mm_bias_act_kernel(%arg0: i32, %arg1: memref<8x896xf32, #tpu.memory_space<vmem>>, %arg2: memref<896x128xf32, #tpu.memory_space<vmem>>, %arg3: memref<1x128xf32, #tpu.memory_space<vmem>>, %arg4: memref<8x128xf32, #tpu.memory_space<vmem>>) attributes {dimension_semantics = [#tpu.dimension_semantics<parallel>], iteration_bounds = array<i64: 1>, scalar_prefetch = 0 : i64, scratch_operands = 0 : i64, tpu.core_type = #tpu.core_type<tc>, window_params = [{transform_indices = @transform_0, window_bounds = array<i64: 8, 896>}, {pipeline_mode = #tpu.pipeline_mode<synchronous>, transform_indices = @transform_1, window_bounds = array<i64: 896, 128>}, {pipeline_mode = #tpu.pipeline_mode<synchronous>, transform_indices = @transform_2, window_bounds = array<i64: 1, 128>}, {transform_indices = @transform_3, window_bounds = array<i64: 8, 128>}]} {
    %c0 = arith.constant 0 : index
    %c0_0 = arith.constant 0 : index
    %0 = vector.load %arg1[%c0, %c0_0] : memref<8x896xf32, #tpu.memory_space<vmem>>, vector<8x896xf32>
    %c0_1 = arith.constant 0 : index
    %c0_2 = arith.constant 0 : index
    %1 = vector.load %arg2[%c0_1, %c0_2] : memref<896x128xf32, #tpu.memory_space<vmem>>, vector<896x128xf32>
    %cst = arith.constant dense<0.000000e+00> : vector<8x128xf32>
    %2 = tpu.matmul %0, %1, %cst {dimension_numbers = #tpu.dot_dimension_numbers<[1], [0], [0], [1], [0, 0, 1, 1], [], []>} : vector<8x896xf32>, vector<896x128xf32>, vector<8x128xf32> -> vector<8x128xf32>
    %c0_3 = arith.constant 0 : index
    %c0_4 = arith.constant 0 : index
    %3 = vector.load %arg3[%c0_3, %c0_4] : memref<1x128xf32, #tpu.memory_space<vmem>>, vector<1x128xf32>
    %4 = vector.broadcast %3 : vector<1x128xf32> to vector<8x128xf32>
    %5 = arith.addf %2, %4 : vector<8x128xf32>
    %c0_5 = arith.constant 0 : index
    %c0_6 = arith.constant 0 : index
    %6 = vector.load %arg4[%c0_5, %c0_6] : memref<8x128xf32, #tpu.memory_space<vmem>>, vector<8x128xf32>
    tpu.vector_store %arg4[%c0_5, %c0_6], %5 {strides = array<i32>} : memref<8x128xf32, #tpu.memory_space<vmem>>, vector<8x128xf32>,
    return
  }
  func.func @transform_0(%arg0: i32) -> (i32, i32) {
    %c0_i32 = arith.constant 0 : i32
    %c0_i32_0 = arith.constant 0 : i32
    return %arg0, %c0_i32 : i32, i32
  }
  func.func @transform_1(%arg0: i32) -> (i32, i32) {
    %c0_i32 = arith.constant 0 : i32
    %c0_i32_0 = arith.constant 0 : i32
    %c0_i32_1 = arith.constant 0 : i32
    return %c0_i32, %c0_i32_0 : i32, i32
  }
  func.func @transform_2(%arg0: i32) -> (i32, i32) {
    %c0_i32 = arith.constant 0 : i32
    %c0_i32_0 = arith.constant 0 : i32
    %c0_i32_1 = arith.constant 0 : i32
    return %c0_i32, %c0_i32_0 : i32, i32
  }
  func.func @transform_3(%arg0: i32) -> (i32, i32) {
    %c0_i32 = arith.constant 0 : i32
    %c0_i32_0 = arith.constant 0 : i32
    return %arg0, %c0_i32 : i32, i32
  }
}

module attributes {stable_mosaic.version = 11 : i64} {
  func.func @_mm_bias_act_kernel(%arg0: i32, %arg1: memref<104x1664xf32, #tpu.memory_space<vmem>>, %arg2: memref<1664x128xf32, #tpu.memory_space<vmem>>, %arg3: memref<1x128xf32, #tpu.memory_space<vmem>>, %arg4: memref<104x128xf32, #tpu.memory_space<vmem>>) attributes {dimension_semantics = [#tpu.dimension_semantics<parallel>], iteration_bounds = array<i64: 1>, scalar_prefetch = 0 : i64, scratch_operands = 0 : i64, tpu.core_type = #tpu.core_type<tc>, window_params = [{transform_indices = @transform_0, window_bounds = array<i64: 104, 1664>}, {pipeline_mode = #tpu.pipeline_mode<synchronous>, transform_indices = @transform_1, window_bounds = array<i64: 1664, 128>}, {pipeline_mode = #tpu.pipeline_mode<synchronous>, transform_indices = @transform_2, window_bounds = array<i64: 1, 128>}, {transform_indices = @transform_3, window_bounds = array<i64: 104, 128>}]} {
    %c0 = arith.constant 0 : index
    %c0_0 = arith.constant 0 : index
    %0 = vector.load %arg1[%c0, %c0_0] : memref<104x1664xf32, #tpu.memory_space<vmem>>, vector<104x1664xf32>
    %c0_1 = arith.constant 0 : index
    %c0_2 = arith.constant 0 : index
    %1 = vector.load %arg2[%c0_1, %c0_2] : memref<1664x128xf32, #tpu.memory_space<vmem>>, vector<1664x128xf32>
    %cst = arith.constant dense<0.000000e+00> : vector<104x128xf32>
    %2 = tpu.matmul %0, %1, %cst {dimension_numbers = #tpu.dot_dimension_numbers<[1], [0], [0], [1], [0, 0, 1, 1], [], []>} : vector<104x1664xf32>, vector<1664x128xf32>, vector<104x128xf32> -> vector<104x128xf32>
    %c0_3 = arith.constant 0 : index
    %c0_4 = arith.constant 0 : index
    %3 = vector.load %arg3[%c0_3, %c0_4] : memref<1x128xf32, #tpu.memory_space<vmem>>, vector<1x128xf32>
    %4 = vector.broadcast %3 : vector<1x128xf32> to vector<104x128xf32>
    %5 = arith.addf %2, %4 : vector<104x128xf32>
    %cst_5 = arith.constant 0.000000e+00 : f32
    %6 = vector.broadcast %cst_5 : f32 to vector<104x128xf32>
    %7 = arith.maximumf %5, %6 : vector<104x128xf32>
    %c0_6 = arith.constant 0 : index
    %c0_7 = arith.constant 0 : index
    %8 = vector.load %arg4[%c0_6, %c0_7] : memref<104x128xf32, #tpu.memory_space<vmem>>, vector<104x128xf32>
    tpu.vector_store %arg4[%c0_6, %c0_7], %7 {strides = array<i32>} : memref<104x128xf32, #tpu.memory_space<vmem>>, vector<104x128xf32>,
    return
  }
  func.func @transform_0(%arg0: i32) -> (i32, i32) {
    %c0_i32 = arith.constant 0 : i32
    %c0_i32_0 = arith.constant 0 : i32
    return %arg0, %c0_i32 : i32, i32
  }
  func.func @transform_1(%arg0: i32) -> (i32, i32) {
    %c0_i32 = arith.constant 0 : i32
    %c0_i32_0 = arith.constant 0 : i32
    %c0_i32_1 = arith.constant 0 : i32
    return %c0_i32, %c0_i32_0 : i32, i32
  }
  func.func @transform_2(%arg0: i32) -> (i32, i32) {
    %c0_i32 = arith.constant 0 : i32
    %c0_i32_0 = arith.constant 0 : i32
    %c0_i32_1 = arith.constant 0 : i32
    return %c0_i32, %c0_i32_0 : i32, i32
  }
  func.func @transform_3(%arg0: i32) -> (i32, i32) {
    %c0_i32 = arith.constant 0 : i32
    %c0_i32_0 = arith.constant 0 : i32
    return %arg0, %c0_i32 : i32, i32
  }
}

module attributes {stable_mosaic.version = 11 : i64} {
  func.func @_mm_bias_act_kernel(%arg0: i32, %arg1: memref<128x64xf32, #tpu.memory_space<vmem>>, %arg2: memref<64x128xf32, #tpu.memory_space<vmem>>, %arg3: memref<1x128xf32, #tpu.memory_space<vmem>>, %arg4: memref<128x128xf32, #tpu.memory_space<vmem>>) attributes {dimension_semantics = [#tpu.dimension_semantics<parallel>], iteration_bounds = array<i64: 1>, scalar_prefetch = 0 : i64, scratch_operands = 0 : i64, tpu.core_type = #tpu.core_type<tc>, window_params = [{transform_indices = @transform_0, window_bounds = array<i64: 128, 64>}, {pipeline_mode = #tpu.pipeline_mode<synchronous>, transform_indices = @transform_1, window_bounds = array<i64: 64, 128>}, {pipeline_mode = #tpu.pipeline_mode<synchronous>, transform_indices = @transform_2, window_bounds = array<i64: 1, 128>}, {transform_indices = @transform_3, window_bounds = array<i64: 128, 128>}]} {
    %c0 = arith.constant 0 : index
    %c0_0 = arith.constant 0 : index
    %0 = vector.load %arg1[%c0, %c0_0] : memref<128x64xf32, #tpu.memory_space<vmem>>, vector<128x64xf32>
    %c0_1 = arith.constant 0 : index
    %c0_2 = arith.constant 0 : index
    %1 = vector.load %arg2[%c0_1, %c0_2] : memref<64x128xf32, #tpu.memory_space<vmem>>, vector<64x128xf32>
    %cst = arith.constant dense<0.000000e+00> : vector<128x128xf32>
    %2 = tpu.matmul %0, %1, %cst {dimension_numbers = #tpu.dot_dimension_numbers<[1], [0], [0], [1], [0, 0, 1, 1], [], []>} : vector<128x64xf32>, vector<64x128xf32>, vector<128x128xf32> -> vector<128x128xf32>
    %c0_3 = arith.constant 0 : index
    %c0_4 = arith.constant 0 : index
    %3 = vector.load %arg3[%c0_3, %c0_4] : memref<1x128xf32, #tpu.memory_space<vmem>>, vector<1x128xf32>
    %4 = vector.broadcast %3 : vector<1x128xf32> to vector<128x128xf32>
    %5 = arith.addf %2, %4 : vector<128x128xf32>
    %cst_5 = arith.constant 0.000000e+00 : f32
    %6 = vector.broadcast %cst_5 : f32 to vector<128x128xf32>
    %7 = arith.maximumf %5, %6 : vector<128x128xf32>
    %c0_6 = arith.constant 0 : index
    %c0_7 = arith.constant 0 : index
    %8 = vector.load %arg4[%c0_6, %c0_7] : memref<128x128xf32, #tpu.memory_space<vmem>>, vector<128x128xf32>
    tpu.vector_store %arg4[%c0_6, %c0_7], %7 {strides = array<i32>} : memref<128x128xf32, #tpu.memory_space<vmem>>, vector<128x128xf32>,
    return
  }
  func.func @transform_0(%arg0: i32) -> (i32, i32) {
    %c0_i32 = arith.constant 0 : i32
    %c0_i32_0 = arith.constant 0 : i32
    return %arg0, %c0_i32 : i32, i32
  }
  func.func @transform_1(%arg0: i32) -> (i32, i32) {
    %c0_i32 = arith.constant 0 : i32
    %c0_i32_0 = arith.constant 0 : i32
    %c0_i32_1 = arith.constant 0 : i32
    return %c0_i32, %c0_i32_0 : i32, i32
  }
  func.func @transform_2(%arg0: i32) -> (i32, i32) {
    %c0_i32 = arith.constant 0 : i32
    %c0_i32_0 = arith.constant 0 : i32
    %c0_i32_1 = arith.constant 0 : i32
    return %c0_i32, %c0_i32_0 : i32, i32
  }
  func.func @transform_3(%arg0: i32) -> (i32, i32) {
    %c0_i32 = arith.constant 0 : i32
    %c0_i32_0 = arith.constant 0 : i32
    return %arg0, %c0_i32 : i32, i32
  }
}

module attributes {stable_mosaic.version = 11 : i64} {
  func.func @_mm_bias_act_kernel(%arg0: i32, %arg1: memref<632x72xf32, #tpu.memory_space<vmem>>, %arg2: memref<72x128xf32, #tpu.memory_space<vmem>>, %arg3: memref<1x128xf32, #tpu.memory_space<vmem>>, %arg4: memref<632x128xf32, #tpu.memory_space<vmem>>) attributes {dimension_semantics = [#tpu.dimension_semantics<parallel>], iteration_bounds = array<i64: 2>, scalar_prefetch = 0 : i64, scratch_operands = 0 : i64, tpu.core_type = #tpu.core_type<tc>, window_params = [{transform_indices = @transform_0, window_bounds = array<i64: 632, 72>}, {pipeline_mode = #tpu.pipeline_mode<synchronous>, transform_indices = @transform_1, window_bounds = array<i64: 72, 128>}, {pipeline_mode = #tpu.pipeline_mode<synchronous>, transform_indices = @transform_2, window_bounds = array<i64: 1, 128>}, {transform_indices = @transform_3, window_bounds = array<i64: 632, 128>}]} {
    %c0 = arith.constant 0 : index
    %c0_0 = arith.constant 0 : index
    %0 = vector.load %arg1[%c0, %c0_0] : memref<632x72xf32, #tpu.memory_space<vmem>>, vector<632x72xf32>
    %c0_1 = arith.constant 0 : index
    %c0_2 = arith.constant 0 : index
    %1 = vector.load %arg2[%c0_1, %c0_2] : memref<72x128xf32, #tpu.memory_space<vmem>>, vector<72x128xf32>
    %cst = arith.constant dense<0.000000e+00> : vector<632x128xf32>
    %2 = tpu.matmul %0, %1, %cst {dimension_numbers = #tpu.dot_dimension_numbers<[1], [0], [0], [1], [0, 0, 1, 1], [], []>} : vector<632x72xf32>, vector<72x128xf32>, vector<632x128xf32> -> vector<632x128xf32>
    %c0_3 = arith.constant 0 : index
    %c0_4 = arith.constant 0 : index
    %3 = vector.load %arg3[%c0_3, %c0_4] : memref<1x128xf32, #tpu.memory_space<vmem>>, vector<1x128xf32>
    %4 = vector.broadcast %3 : vector<1x128xf32> to vector<632x128xf32>
    %5 = arith.addf %2, %4 : vector<632x128xf32>
    %cst_5 = arith.constant 0.000000e+00 : f32
    %6 = vector.broadcast %cst_5 : f32 to vector<632x128xf32>
    %7 = arith.maximumf %5, %6 : vector<632x128xf32>
    %c0_6 = arith.constant 0 : index
    %c0_7 = arith.constant 0 : index
    %8 = vector.load %arg4[%c0_6, %c0_7] : memref<632x128xf32, #tpu.memory_space<vmem>>, vector<632x128xf32>
    tpu.vector_store %arg4[%c0_6, %c0_7], %7 {strides = array<i32>} : memref<632x128xf32, #tpu.memory_space<vmem>>, vector<632x128xf32>,
    return
  }
  func.func @transform_0(%arg0: i32) -> (i32, i32) {
    %c0_i32 = arith.constant 0 : i32
    %c0_i32_0 = arith.constant 0 : i32
    return %arg0, %c0_i32 : i32, i32
  }
  func.func @transform_1(%arg0: i32) -> (i32, i32) {
    %c0_i32 = arith.constant 0 : i32
    %c0_i32_0 = arith.constant 0 : i32
    %c0_i32_1 = arith.constant 0 : i32
    return %c0_i32, %c0_i32_0 : i32, i32
  }
  func.func @transform_2(%arg0: i32) -> (i32, i32) {
    %c0_i32 = arith.constant 0 : i32
    %c0_i32_0 = arith.constant 0 : i32
    %c0_i32_1 = arith.constant 0 : i32
    return %c0_i32, %c0_i32_0 : i32, i32
  }
  func.func @transform_3(%arg0: i32) -> (i32, i32) {
    %c0_i32 = arith.constant 0 : i32
    %c0_i32_0 = arith.constant 0 : i32
    return %arg0, %c0_i32 : i32, i32
  }
}

module attributes {stable_mosaic.version = 11 : i64} {
  func.func @_mm_bias_act_kernel(%arg0: i32, %arg1: memref<840x32xf32, #tpu.memory_space<vmem>>, %arg2: memref<32x128xf32, #tpu.memory_space<vmem>>, %arg3: memref<1x128xf32, #tpu.memory_space<vmem>>, %arg4: memref<840x128xf32, #tpu.memory_space<vmem>>) attributes {dimension_semantics = [#tpu.dimension_semantics<parallel>], iteration_bounds = array<i64: 6>, scalar_prefetch = 0 : i64, scratch_operands = 0 : i64, tpu.core_type = #tpu.core_type<tc>, window_params = [{transform_indices = @transform_0, window_bounds = array<i64: 840, 32>}, {pipeline_mode = #tpu.pipeline_mode<synchronous>, transform_indices = @transform_1, window_bounds = array<i64: 32, 128>}, {pipeline_mode = #tpu.pipeline_mode<synchronous>, transform_indices = @transform_2, window_bounds = array<i64: 1, 128>}, {transform_indices = @transform_3, window_bounds = array<i64: 840, 128>}]} {
    %c0 = arith.constant 0 : index
    %c0_0 = arith.constant 0 : index
    %0 = vector.load %arg1[%c0, %c0_0] : memref<840x32xf32, #tpu.memory_space<vmem>>, vector<840x32xf32>
    %c0_1 = arith.constant 0 : index
    %c0_2 = arith.constant 0 : index
    %1 = vector.load %arg2[%c0_1, %c0_2] : memref<32x128xf32, #tpu.memory_space<vmem>>, vector<32x128xf32>
    %cst = arith.constant dense<0.000000e+00> : vector<840x128xf32>
    %2 = tpu.matmul %0, %1, %cst {dimension_numbers = #tpu.dot_dimension_numbers<[1], [0], [0], [1], [0, 0, 1, 1], [], []>} : vector<840x32xf32>, vector<32x128xf32>, vector<840x128xf32> -> vector<840x128xf32>
    %c0_3 = arith.constant 0 : index
    %c0_4 = arith.constant 0 : index
    %3 = vector.load %arg3[%c0_3, %c0_4] : memref<1x128xf32, #tpu.memory_space<vmem>>, vector<1x128xf32>
    %4 = vector.broadcast %3 : vector<1x128xf32> to vector<840x128xf32>
    %5 = arith.addf %2, %4 : vector<840x128xf32>
    %6 = math.absf %5 : vector<840x128xf32>
    %cst_5 = arith.constant 0.000000e+00 : f32
    %7 = vector.broadcast %cst_5 : f32 to vector<840x128xf32>
    %8 = arith.subf %7, %6 : vector<840x128xf32>
    %9 = math.exp %8 : vector<840x128xf32>
    %cst_6 = arith.constant 0.000000e+00 : f32
    %10 = vector.broadcast %cst_6 : f32 to vector<840x128xf32>
    %11 = arith.cmpf oge, %5, %10 : vector<840x128xf32>
    %cst_7 = arith.constant 1.000000e+00 : f32
    %12 = vector.broadcast %cst_7 : f32 to vector<840x128xf32>
    %13 = arith.select %11, %12, %9 : vector<840x128xi1>, vector<840x128xf32>
    %cst_8 = arith.constant 1.000000e+00 : f32
    %14 = vector.broadcast %cst_8 : f32 to vector<840x128xf32>
    %15 = arith.addf %14, %9 : vector<840x128xf32>
    %16 = arith.divf %13, %15 : vector<840x128xf32>
    %c0_9 = arith.constant 0 : index
    %c0_10 = arith.constant 0 : index
    %17 = vector.load %arg4[%c0_9, %c0_10] : memref<840x128xf32, #tpu.memory_space<vmem>>, vector<840x128xf32>
    tpu.vector_store %arg4[%c0_9, %c0_10], %16 {strides = array<i32>} : memref<840x128xf32, #tpu.memory_space<vmem>>, vector<840x128xf32>,
    return
  }
  func.func @transform_0(%arg0: i32) -> (i32, i32) {
    %c0_i32 = arith.constant 0 : i32
    %c0_i32_0 = arith.constant 0 : i32
    return %arg0, %c0_i32 : i32, i32
  }
  func.func @transform_1(%arg0: i32) -> (i32, i32) {
    %c0_i32 = arith.constant 0 : i32
    %c0_i32_0 = arith.constant 0 : i32
    %c0_i32_1 = arith.constant 0 : i32
    return %c0_i32, %c0_i32_0 : i32, i32
  }
  func.func @transform_2(%arg0: i32) -> (i32, i32) {
    %c0_i32 = arith.constant 0 : i32
    %c0_i32_0 = arith.constant 0 : i32
    %c0_i32_1 = arith.constant 0 : i32
    return %c0_i32, %c0_i32_0 : i32, i32
  }
  func.func @transform_3(%arg0: i32) -> (i32, i32) {
    %c0_i32 = arith.constant 0 : i32
    %c0_i32_0 = arith.constant 0 : i32
    return %arg0, %c0_i32 : i32, i32
  }
}

</mosaic_0001>

<bundles_post_ra>
// kernel: autoencoder_forward.8
= control target key start
LH: loop header
LB: loop body
LE: loop exit
PB: predicated region body
PF: predicated region fallthrough
CT: control target
= control target key end

     0   :  { %s1984_s12 = smov 0   ;;  %s2629_s0 = inlined_call_operand.vmem [shape: f32[4848,16], index: 0, kind: input, shape index: {}]   ;;  %s2630_s1 = inlined_call_operand.vmem [shape: f32[16,128], index: 1, kind: input, shape index: {}]   ;;  %s2631_s2 = inlined_call_operand.vmem [shape: f32[1,128], index: 2, kind: input, shape index: {}]   ;;  %s2632_s3 = inlined_call_operand.vmem [shape: f32[4848,128], index: 3, kind: output, shape index: {}]  }
   0x1 LB: > { %s1416_s13 = sadd.s32 4294967295, %s1959_s12   ;;  %p1420_p0 = scmp.ge.s32.totalorder %s1959_s12, 1  ;;  %s1959_s12 = sphi %s1984_s12, %s13_s12  }
   0x2   : > { %p138_p1 = scmp.lt.s32.totalorder %s1959_s12, 7 }
   0x4   : > { %p139_p2 = pnand %p1420_p0, %p138_p1 }
   0x5   : > { %v275_v0 = vld [vmem:[%s2630_s1] sm:$0xff] (!%p139_p2)  ;;  %v276_v1 = vld [vmem:[%s2630_s1 + $0x8] sm:$0xff] (!%p139_p2)  ;;  %s162_s18 = smul.u32 (!%p139_p2), 101, %s1416_s13  ;;  %v1961_v2 = vmov (!%p139_p2), 0.0|0.0   ;;  %vm1962_vm0 = vmmov (!%p139_p2), 0   ;;  %v1963_v4 = vmov (!%p139_p2), 0.0  }
   0x6   : > { %142 = sbr.rel (%p139_p2) target bundleno = 434 (0x1b2), region = 32  ;;  %1937 = vmatprep.subr.bf16.mxu0 (!%p139_p2), %v1961_v2  ;;  %v1938_v3 = vpack.c.bf16 (!%p139_p2), %v276_v1, %v275_v0  ;;  %1940 = vmatprep.subr.bf16.mxu1 (!%p139_p2), %v1961_v2  ;;  %vm284_vm1 = vcmask (!%p139_p2), 130048  }
   0x7   : > { %1634 = vmatprep.mubr.msk.f32.mxu0 (!%p139_p2), %vm1962_vm0, %v1963_v4  ;;  %p163_p3 = scmp.lt.s32.totalorder (!%p139_p2), %s162_s18, 605  ;;  %1787 = vmatprep.mubr.msk.f32.mxu1 (!%p139_p2), %vm1962_vm0, %v1963_v4 }
   0x8   : > { %1939 = vmatpush3.bf16.msra.mxu0 (!%p139_p2), %v1938_v3  ;;  %1941 = vmatpush3.bf16.msra.mxu1 (!%p139_p2), %v1938_v3 }
   0xd   : > { %s2634_s18 = smov (!%p163_p3, %s162_s18), 605 }
   0xe   : > { %s1421_s19 = sshll.u32 %s2634_s18, 3 }
   0xf   : > { %s2010_s22 = scalar_lea.vmem %s2629_s0, %s1421_s19  ;;  %s2424_s27 = scalar_lea.vmem %s2632_s3, %s1421_s19 }
  0x10   : > { %v174_v5 = vld [vmem:[%s2010_s22] sm:$0xff]  ;;  %v225_v6 = vld [vmem:[%s2010_s22 + $0x198] sm:$0xff]  ;;  %v175_v7 = vld [vmem:[%s2010_s22 + $0x8] sm:$0xff] }
  0x11   : > { %1635 = vmatmul.mubr.msk.f32.vlgmr.msra.gmra.mrb[0].mxu0 %vm284_vm1, %v174_v5  ;;  %1788 = vmatmul.mubr.msk.f32.vlgmr.msra.gmra.mrb[0].mxu1 %vm284_vm1, %v225_v6  ;;  %v226_v8 = vld [vmem:[%s2010_s22 + $0x1a0] sm:$0xff]  ;;  %v176_v9 = vld [vmem:[%s2010_s22 + $0x10] sm:$0xff]  ;;  %v227_v10 = vld [vmem:[%s2010_s22 + $0x1a8] sm:$0xff] }
  0x12   : > { %1637 = vmatprep.mubr.msk.f32.mxu0 %vm1962_vm0, %v1963_v4  ;;  %1790 = vmatprep.mubr.msk.f32.mxu1 %vm1962_vm0, %v1963_v4  ;;  %v177_v11 = vld [vmem:[%s2010_s22 + $0x18] sm:$0xff]  ;;  %v228_v12 = vld [vmem:[%s2010_s22 + $0x1b0] sm:$0xff]  ;;  %v178_v13 = vld [vmem:[%s2010_s22 + $0x20] sm:$0xff] }
  0x13   : > { %v229_v14 = vld [vmem:[%s2010_s22 + $0x1b8] sm:$0xff]  ;;  %v179_v15 = vld [vmem:[%s2010_s22 + $0x28] sm:$0xff]  ;;  %v230_v16 = vld [vmem:[%s2010_s22 + $0x1c0] sm:$0xff] }
  0x14   : > { %v180_v17 = vld [vmem:[%s2010_s22 + $0x30] sm:$0xff]  ;;  %v231_v18 = vld [vmem:[%s2010_s22 + $0x1c8] sm:$0xff]  ;;  %v181_v19 = vld [vmem:[%s2010_s22 + $0x38] sm:$0xff] }
  0x15   : > { %1638 = vmatmul.mubr.msk.f32.gmra.mrb[2].mxu0 %vm284_vm1, %v175_v7  ;;  %1791 = vmatmul.mubr.msk.f32.gmra.mrb[2].mxu1 %vm284_vm1, %v226_v8  ;;  %v232_v20 = vld [vmem:[%s2010_s22 + $0x1d0] sm:$0xff]  ;;  %v182_v21 = vld [vmem:[%s2010_s22 + $0x40] sm:$0xff]  ;;  %v233_v22 = vld [vmem:[%s2010_s22 + $0x1d8] sm:$0xff] }
  0x16   : > { %1640 = vmatprep.mubr.msk.f32.mxu0 %vm1962_vm0, %v1963_v4  ;;  %1793 = vmatprep.mubr.msk.f32.mxu1 %vm1962_vm0, %v1963_v4  ;;  %v183_v23 = vld [vmem:[%s2010_s22 + $0x48] sm:$0xff]  ;;  %v234_v24 = vld [vmem:[%s2010_s22 + $0x1e0] sm:$0xff]  ;;  %v184_v25 = vld [vmem:[%s2010_s22 + $0x50] sm:$0xff] }
  0x17   : > { %v235_v26 = vld [vmem:[%s2010_s22 + $0x1e8] sm:$0xff]  ;;  %v185_v27 = vld [vmem:[%s2010_s22 + $0x58] sm:$0xff]  ;;  %v236_v28 = vld [vmem:[%s2010_s22 + $0x1f0] sm:$0xff] }
  0x18   : > { %v186_v29 = vld [vmem:[%s2010_s22 + $0x60] sm:$0xff]  ;;  %v237_v30 = vld [vmem:[%s2010_s22 + $0x1f8] sm:$0xff]  ;;  %v187_v31 = vld [vmem:[%s2010_s22 + $0x68] sm:$0xff] }
  0x19   : > { %1641 = vmatmul.mubr.msk.f32.gmra.mrb[4].mxu0 %vm284_vm1, %v176_v9  ;;  %1794 = vmatmul.mubr.msk.f32.gmra.mrb[4].mxu1 %vm284_vm1, %v227_v10  ;;  %v238_v32 = vld [vmem:[%s2010_s22 + $0x200] sm:$0xff]  ;;  %v188_v33 = vld [vmem:[%s2010_s22 + $0x70] sm:$0xff]  ;;  %v239_v34 = vld [vmem:[%s2010_s22 + $0x208] sm:$0xff] }
  0x1a   : > { %1643 = vmatprep.mubr.msk.f32.mxu0 %vm1962_vm0, %v1963_v4  ;;  %1796 = vmatprep.mubr.msk.f32.mxu1 %vm1962_vm0, %v1963_v4  ;;  %v189_v35 = vld [vmem:[%s2010_s22 + $0x78] sm:$0xff]  ;;  %v240_v36 = vld [vmem:[%s2010_s22 + $0x210] sm:$0xff]  ;;  %v190_v37 = vld [vmem:[%s2010_s22 + $0x80] sm:$0xff] }
  0x1b   : > { %v241_v38 = vld [vmem:[%s2010_s22 + $0x218] sm:$0xff]  ;;  %v191_v39 = vld [vmem:[%s2010_s22 + $0x88] sm:$0xff]  ;;  %v242_v40 = vld [vmem:[%s2010_s22 + $0x220] sm:$0xff] }
  0x1c   : > { %v192_v41 = vld [vmem:[%s2010_s22 + $0x90] sm:$0xff]  ;;  %v243_v42 = vld [vmem:[%s2010_s22 + $0x228] sm:$0xff]  ;;  %v193_v43 = vld [vmem:[%s2010_s22 + $0x98] sm:$0xff] }
  0x1d   : > { %1644 = vmatmul.mubr.msk.f32.gmra.mrb[6].mxu0 %vm284_vm1, %v177_v11  ;;  %1797 = vmatmul.mubr.msk.f32.gmra.mrb[6].mxu1 %vm284_vm1, %v228_v12  ;;  %v244_v44 = vld [vmem:[%s2010_s22 + $0x230] sm:$0xff]  ;;  %v194_v45 = vld [vmem:[%s2010_s22 + $0xa0] sm:$0xff]  ;;  %v245_v46 = vld [vmem:[%s2010_s22 + $0x238] sm:$0xff] }
  0x1e   : > { %1646 = vmatprep.mubr.msk.f32.mxu0 %vm1962_vm0, %v1963_v4  ;;  %1799 = vmatprep.mubr.msk.f32.mxu1 %vm1962_vm0, %v1963_v4  ;;  %v195_v47 = vld [vmem:[%s2010_s22 + $0xa8] sm:$0xff]  ;;  %v246_v48 = vld [vmem:[%s2010_s22 + $0x240] sm:$0xff]  ;;  %v196_v49 = vld [vmem:[%s2010_s22 + $0xb0] sm:$0xff] }
  0x1f   : > { %v247_v50 = vld [vmem:[%s2010_s22 + $0x248] sm:$0xff]  ;;  %v197_v51 = vld [vmem:[%s2010_s22 + $0xb8] sm:$0xff]  ;;  %v248_v52 = vld [vmem:[%s2010_s22 + $0x250] sm:$0xff] }
  0x20   : > { %v198_v53 = vld [vmem:[%s2010_s22 + $0xc0] sm:$0xff]  ;;  %v249_v54 = vld [vmem:[%s2010_s22 + $0x258] sm:$0xff]  ;;  %v199_v55 = vld [vmem:[%s2010_s22 + $0xc8] sm:$0xff] }
  0x21   : > { %1647 = vmatmul.mubr.msk.f32.gmra.mrb[8].mxu0 %vm284_vm1, %v178_v13  ;;  %1800 = vmatmul.mubr.msk.f32.gmra.mrb[8].mxu1 %vm284_vm1, %v229_v14  ;;  %v250_v56 = vld [vmem:[%s2010_s22 + $0x260] sm:$0xff]  ;;  %v200_v57 = vld [vmem:[%s2010_s22 + $0xd0] sm:$0xff]  ;;  %v251_v58 = vld [vmem:[%s2010_s22 + $0x268] sm:$0xff] }
  0x22   : > { %1649 = vmatprep.mubr.msk.f32.mxu0 %vm1962_vm0, %v1963_v4  ;;  %1802 = vmatprep.mubr.msk.f32.mxu1 %vm1962_vm0, %v1963_v4  ;;  %v201_v59 = vld [vmem:[%s2010_s22 + $0xd8] sm:$0xff]  ;;  %v252_v60 = vld [vmem:[%s2010_s22 + $0x270] sm:$0xff]  ;;  %v202_v61 = vld [vmem:[%s2010_s22 + $0xe0] sm:$0xff] }
  0x23   : > { %v253_v62 = vld [vmem:[%s2010_s22 + $0x278] sm:$0xff]  ;;  %v203_v63 = vld [vmem:[%s2010_s22 + $0xe8] sm:$0xff]  ;;  %v254_v0 = vld [vmem:[%s2010_s22 + $0x280] sm:$0xff] }
  0x24   : > { %v204_v1 = vld [vmem:[%s2010_s22 + $0xf0] sm:$0xff]  ;;  %v255_v2 = vld [vmem:[%s2010_s22 + $0x288] sm:$0xff]  ;;  %v205_v3 = vld [vmem:[%s2010_s22 + $0xf8] sm:$0xff] }
  0x25   : > { %1650 = vmatmul.mubr.msk.f32.gmra.mrb[10].mxu0 %vm284_vm1, %v179_v15  ;;  %1803 = vmatmul.mubr.msk.f32.gmra.mrb[10].mxu1 %vm284_vm1, %v230_v16  ;;  %v256_v5 = vld [vmem:[%s2010_s22 + $0x290] sm:$0xff]  ;;  %v206_v6 = vld [vmem:[%s2010_s22 + $0x100] sm:$0xff]  ;;  %v257_v7 = vld [vmem:[%s2010_s22 + $0x298] sm:$0xff] }
  0x26   : > { %1652 = vmatprep.mubr.msk.f32.mxu0 %vm1962_vm0, %v1963_v4  ;;  %1805 = vmatprep.mubr.msk.f32.mxu1 %vm1962_vm0, %v1963_v4  ;;  %v207_v8 = vld [vmem:[%s2010_s22 + $0x108] sm:$0xff]  ;;  %v258_v9 = vld [vmem:[%s2010_s22 + $0x2a0] sm:$0xff]  ;;  %v208_v10 = vld [vmem:[%s2010_s22 + $0x110] sm:$0xff] }
  0x27   : > { %v259_v11 = vld [vmem:[%s2010_s22 + $0x2a8] sm:$0xff]  ;;  %v209_v12 = vld [vmem:[%s2010_s22 + $0x118] sm:$0xff]  ;;  %v260_v13 = vld [vmem:[%s2010_s22 + $0x2b0] sm:$0xff] }
  0x28   : > { %v210_v14 = vld [vmem:[%s2010_s22 + $0x120] sm:$0xff]  ;;  %v261_v15 = vld [vmem:[%s2010_s22 + $0x2b8] sm:$0xff]  ;;  %v211_v16 = vld [vmem:[%s2010_s22 + $0x128] sm:$0xff] }
  0x29   : > { %1653 = vmatmul.mubr.msk.f32.gmra.mrb[12].mxu0 %vm284_vm1, %v180_v17  ;;  %1806 = vmatmul.mubr.msk.f32.gmra.mrb[12].mxu1 %vm284_vm1, %v231_v18  ;;  %v262_v17 = vld [vmem:[%s2010_s22 + $0x2c0] sm:$0xff]  ;;  %v212_v18 = vld [vmem:[%s2010_s22 + $0x130] sm:$0xff] }
  0x2a   : > { %1655 = vmatprep.mubr.msk.f32.mxu0 %vm1962_vm0, %v1963_v4  ;;  %1808 = vmatprep.mubr.msk.f32.mxu1 %vm1962_vm0, %v1963_v4 }
  0x2d   : > { %1656 = vmatmul.mubr.msk.f32.gmra.mrb[14].mxu0 %vm284_vm1, %v181_v19  ;;  %1809 = vmatmul.mubr.msk.f32.gmra.mrb[14].mxu1 %vm284_vm1, %v232_v20  ;;  %v263_v19 = vld [vmem:[%s2010_s22 + $0x2c8] sm:$0xff]  ;;  %v213_v20 = vld [vmem:[%s2010_s22 + $0x138] sm:$0xff] }
  0x2e   : > { %1658 = vmatprep.mubr.msk.f32.mxu0 %vm1962_vm0, %v1963_v4  ;;  %1811 = vmatprep.mubr.msk.f32.mxu1 %vm1962_vm0, %v1963_v4 }
  0x31   : > { %1659 = vmatmul.mubr.msk.f32.gmra.mrb[16].mxu0 %vm284_vm1, %v182_v21  ;;  %1812 = vmatmul.mubr.msk.f32.gmra.mrb[16].mxu1 %vm284_vm1, %v233_v22  ;;  %v264_v21 = vld [vmem:[%s2010_s22 + $0x2d0] sm:$0xff]  ;;  %v214_v22 = vld [vmem:[%s2010_s22 + $0x140] sm:$0xff] }
  0x32   : > { %1661 = vmatprep.mubr.msk.f32.mxu0 %vm1962_vm0, %v1963_v4  ;;  %1814 = vmatprep.mubr.msk.f32.mxu1 %vm1962_vm0, %v1963_v4 }
  0x35   : > { %1662 = vmatmul.mubr.msk.f32.gmra.mrb[18].mxu0 %vm284_vm1, %v183_v23  ;;  %1815 = vmatmul.mubr.msk.f32.gmra.mrb[18].mxu1 %vm284_vm1, %v234_v24  ;;  %v265_v23 = vld [vmem:[%s2010_s22 + $0x2d8] sm:$0xff]  ;;  %v215_v24 = vld [vmem:[%s2010_s22 + $0x148] sm:$0xff] }
  0x36   : > { %1664 = vmatprep.mubr.msk.f32.mxu0 %vm1962_vm0, %v1963_v4  ;;  %1817 = vmatprep.mubr.msk.f32.mxu1 %vm1962_vm0, %v1963_v4 }
  0x39   : > { %1665 = vmatmul.mubr.msk.f32.gmra.mrb[20].mxu0 %vm284_vm1, %v184_v25  ;;  %1818 = vmatmul.mubr.msk.f32.gmra.mrb[20].mxu1 %vm284_vm1, %v235_v26  ;;  %v266_v25 = vld [vmem:[%s2010_s22 + $0x2e0] sm:$0xff]  ;;  %v216_v26 = vld [vmem:[%s2010_s22 + $0x150] sm:$0xff] }
  0x3a   : > { %1667 = vmatprep.mubr.msk.f32.mxu0 %vm1962_vm0, %v1963_v4  ;;  %1820 = vmatprep.mubr.msk.f32.mxu1 %vm1962_vm0, %v1963_v4 }
  0x3d   : > { %1668 = vmatmul.mubr.msk.f32.gmra.mrb[22].mxu0 %vm284_vm1, %v185_v27  ;;  %1821 = vmatmul.mubr.msk.f32.gmra.mrb[22].mxu1 %vm284_vm1, %v236_v28  ;;  %v267_v27 = vld [vmem:[%s2010_s22 + $0x2e8] sm:$0xff]  ;;  %v217_v28 = vld [vmem:[%s2010_s22 + $0x158] sm:$0xff] }
  0x3e   : > { %1670 = vmatprep.mubr.msk.f32.mxu0 %vm1962_vm0, %v1963_v4  ;;  %1823 = vmatprep.mubr.msk.f32.mxu1 %vm1962_vm0, %v1963_v4 }
  0x41   : > { %1671 = vmatmul.mubr.msk.f32.gmra.mrb[24].mxu0 %vm284_vm1, %v186_v29  ;;  %1824 = vmatmul.mubr.msk.f32.gmra.mrb[24].mxu1 %vm284_vm1, %v237_v30  ;;  %v268_v29 = vld [vmem:[%s2010_s22 + $0x2f0] sm:$0xff]  ;;  %v218_v30 = vld [vmem:[%s2010_s22 + $0x160] sm:$0xff] }
  0x42   : > { %1673 = vmatprep.mubr.msk.f32.mxu0 %vm1962_vm0, %v1963_v4  ;;  %1826 = vmatprep.mubr.msk.f32.mxu1 %vm1962_vm0, %v1963_v4 }
  0x45   : > { %1674 = vmatmul.mubr.msk.f32.gmra.mrb[26].mxu0 %vm284_vm1, %v187_v31  ;;  %1827 = vmatmul.mubr.msk.f32.gmra.mrb[26].mxu1 %vm284_vm1, %v238_v32  ;;  %v269_v31 = vld [vmem:[%s2010_s22 + $0x2f8] sm:$0xff]  ;;  %v219_v32 = vld [vmem:[%s2010_s22 + $0x168] sm:$0xff] }
  0x46   : > { %1676 = vmatprep.mubr.msk.f32.mxu0 %vm1962_vm0, %v1963_v4  ;;  %1829 = vmatprep.mubr.msk.f32.mxu1 %vm1962_vm0, %v1963_v4 }
  0x49   : > { %1677 = vmatmul.mubr.msk.f32.gmra.mrb[28].mxu0 %vm284_vm1, %v188_v33  ;;  %1830 = vmatmul.mubr.msk.f32.gmra.mrb[28].mxu1 %vm284_vm1, %v239_v34  ;;  %v270_v33 = vld [vmem:[%s2010_s22 + $0x300] sm:$0xff]  ;;  %v220_v34 = vld [vmem:[%s2010_s22 + $0x170] sm:$0xff] }
  0x4a   : > { %1679 = vmatprep.mubr.msk.f32.mxu0 %vm1962_vm0, %v1963_v4  ;;  %1832 = vmatprep.mubr.msk.f32.mxu1 %vm1962_vm0, %v1963_v4 }
  0x4d   : > { %1680 = vmatmul.mubr.msk.f32.gmra.mrb[30].mxu0 %vm284_vm1, %v189_v35  ;;  %1833 = vmatmul.mubr.msk.f32.gmra.mrb[30].mxu1 %vm284_vm1, %v240_v36  ;;  %v271_v35 = vld [vmem:[%s2010_s22 + $0x308] sm:$0xff]  ;;  %v221_v36 = vld [vmem:[%s2010_s22 + $0x178] sm:$0xff] }
  0x4e   : > { %1682 = vmatprep.mubr.msk.f32.mxu0 %vm1962_vm0, %v1963_v4  ;;  %1835 = vmatprep.mubr.msk.f32.mxu1 %vm1962_vm0, %v1963_v4 }
  0x51   : > { %1683 = vmatmul.mubr.msk.f32.gmra.mrb[32].mxu0 %vm284_vm1, %v190_v37  ;;  %1836 = vmatmul.mubr.msk.f32.gmra.mrb[32].mxu1 %vm284_vm1, %v241_v38  ;;  %v272_v37 = vld [vmem:[%s2010_s22 + $0x310] sm:$0xff]  ;;  %v222_v38 = vld [vmem:[%s2010_s22 + $0x180] sm:$0xff] }
  0x52   : > { %1685 = vmatprep.mubr.msk.f32.mxu0 %vm1962_vm0, %v1963_v4  ;;  %1838 = vmatprep.mubr.msk.f32.mxu1 %vm1962_vm0, %v1963_v4 }
  0x55   : > { %1686 = vmatmul.mubr.msk.f32.gmra.mrb[34].mxu0 %vm284_vm1, %v191_v39  ;;  %1839 = vmatmul.mubr.msk.f32.gmra.mrb[34].mxu1 %vm284_vm1, %v242_v40  ;;  %v273_v39 = vld [vmem:[%s2010_s22 + $0x318] sm:$0xff]  ;;  %v223_v40 = vld [vmem:[%s2010_s22 + $0x188] sm:$0xff] }
  0x56   : > { %1688 = vmatprep.mubr.msk.f32.mxu0 %vm1962_vm0, %v1963_v4  ;;  %1841 = vmatprep.mubr.msk.f32.mxu1 %vm1962_vm0, %v1963_v4 }
  0x59   : > { %1689 = vmatmul.mubr.msk.f32.gmra.mrb[36].mxu0 %vm284_vm1, %v192_v41  ;;  %1842 = vmatmul.mubr.msk.f32.gmra.mrb[36].mxu1 %vm284_vm1, %v243_v42  ;;  %v274_v41 = vld [vmem:[%s2010_s22 + $0x320] sm:$0xff]  ;;  %v224_v42 = vld [vmem:[%s2010_s22 + $0x190] sm:$0xff] }
  0x5a   : > { %1691 = vmatprep.mubr.msk.f32.mxu0 %vm1962_vm0, %v1963_v4  ;;  %1844 = vmatprep.mubr.msk.f32.mxu1 %vm1962_vm0, %v1963_v4 }
  0x5d   : > { %1692 = vmatmul.mubr.msk.f32.gmra.mrb[38].mxu0 %vm284_vm1, %v193_v43  ;;  %1845 = vmatmul.mubr.msk.f32.gmra.mrb[38].mxu1 %vm284_vm1, %v244_v44  ;;  %v2415_v43 = vld [vmem:[%s2631_s2] ss:$0 sm:$0xff] }
  0x5e   : > { %1694 = vmatprep.mubr.msk.f32.mxu0 %vm1962_vm0, %v1963_v4  ;;  %1847 = vmatprep.mubr.msk.f32.mxu1 %vm1962_vm0, %v1963_v4 }
  0x61   : > { %1695 = vmatmul.mubr.msk.f32.gmra.mrb[40].mxu0 %vm284_vm1, %v194_v45  ;;  %1848 = vmatmul.mubr.msk.f32.gmra.mrb[40].mxu1 %vm284_vm1, %v245_v46 }
  0x62   : > { %1697 = vmatprep.mubr.msk.f32.mxu0 %vm1962_vm0, %v1963_v4  ;;  %1850 = vmatprep.mubr.msk.f32.mxu1 %vm1962_vm0, %v1963_v4 }
  0x65   : > { %1698 = vmatmul.mubr.msk.f32.gmra.mrb[42].mxu0 %vm284_vm1, %v195_v47  ;;  %1851 = vmatmul.mubr.msk.f32.gmra.mrb[42].mxu1 %vm284_vm1, %v246_v48 }
  0x66   : > { %1700 = vmatprep.mubr.msk.f32.mxu0 %vm1962_vm0, %v1963_v4  ;;  %1853 = vmatprep.mubr.msk.f32.mxu1 %vm1962_vm0, %v1963_v4 }
  0x69   : > { %1701 = vmatmul.mubr.msk.f32.gmra.mrb[44].mxu0 %vm284_vm1, %v196_v49  ;;  %1854 = vmatmul.mubr.msk.f32.gmra.mrb[44].mxu1 %vm284_vm1, %v247_v50 }
  0x6a   : > { %1703 = vmatprep.mubr.msk.f32.mxu0 %vm1962_vm0, %v1963_v4  ;;  %1856 = vmatprep.mubr.msk.f32.mxu1 %vm1962_vm0, %v1963_v4 }
  0x6d   : > { %1704 = vmatmul.mubr.msk.f32.gmra.mrb[46].mxu0 %vm284_vm1, %v197_v51  ;;  %1857 = vmatmul.mubr.msk.f32.gmra.mrb[46].mxu1 %vm284_vm1, %v248_v52 }
  0x6e   : > { %1706 = vmatprep.mubr.msk.f32.mxu0 %vm1962_vm0, %v1963_v4  ;;  %1859 = vmatprep.mubr.msk.f32.mxu1 %vm1962_vm0, %v1963_v4 }
  0x71   : > { %1707 = vmatmul.mubr.msk.f32.gmra.mrb[48].mxu0 %vm284_vm1, %v198_v53  ;;  %1860 = vmatmul.mubr.msk.f32.gmra.mrb[48].mxu1 %vm284_vm1, %v249_v54 }
  0x72   : > { %1709 = vmatprep.mubr.msk.f32.mxu0 %vm1962_vm0, %v1963_v4  ;;  %1862 = vmatprep.mubr.msk.f32.mxu1 %vm1962_vm0, %v1963_v4 }
  0x75   : > { %1710 = vmatmul.mubr.msk.f32.gmra.mrb[50].mxu0 %vm284_vm1, %v199_v55  ;;  %1863 = vmatmul.mubr.msk.f32.gmra.mrb[50].mxu1 %vm284_vm1, %v250_v56 }
  0x76   : > { %1712 = vmatprep.mubr.msk.f32.mxu0 %vm1962_vm0, %v1963_v4  ;;  %1865 = vmatprep.mubr.msk.f32.mxu1 %vm1962_vm0, %v1963_v4 }
  0x79   : > { %1713 = vmatmul.mubr.msk.f32.gmra.mrb[52].mxu0 %vm284_vm1, %v200_v57  ;;  %1866 = vmatmul.mubr.msk.f32.gmra.mrb[52].mxu1 %vm284_vm1, %v251_v58 }
  0x7a   : > { %1715 = vmatprep.mubr.msk.f32.mxu0 %vm1962_vm0, %v1963_v4  ;;  %1868 = vmatprep.mubr.msk.f32.mxu1 %vm1962_vm0, %v1963_v4 }
  0x7d   : > { %1716 = vmatmul.mubr.msk.f32.gmra.mrb[54].mxu0 %vm284_vm1, %v201_v59  ;;  %1869 = vmatmul.mubr.msk.f32.gmra.mrb[54].mxu1 %vm284_vm1, %v252_v60 }
  0x7e   : > { %1718 = vmatprep.mubr.msk.f32.mxu0 %vm1962_vm0, %v1963_v4  ;;  %1871 = vmatprep.mubr.msk.f32.mxu1 %vm1962_vm0, %v1963_v4 }
  0x81   : > { %1719 = vmatmul.mubr.msk.f32.gmra.mrb[56].mxu0 %vm284_vm1, %v202_v61  ;;  %1872 = vmatmul.mubr.msk.f32.gmra.mrb[56].mxu1 %vm284_vm1, %v253_v62 }
  0x82   : > { %1721 = vmatprep.mubr.msk.f32.mxu0 %vm1962_vm0, %v1963_v4  ;;  %1874 = vmatprep.mubr.msk.f32.mxu1 %vm1962_vm0, %v1963_v4 }
  0x85   : > { %1722 = vmatmul.mubr.msk.f32.gmra.mrb[58].mxu0 %vm284_vm1, %v203_v63  ;;  %1875 = vmatmul.mubr.msk.f32.gmra.mrb[58].mxu1 %vm284_vm1, %v254_v0 }
  0x86   : > { %1724 = vmatprep.mubr.msk.f32.mxu0 %vm1962_vm0, %v1963_v4  ;;  %1877 = vmatprep.mubr.msk.f32.mxu1 %vm1962_vm0, %v1963_v4 }
  0x89   : > { %1725 = vmatmul.mubr.msk.f32.gmra.mrb[60].mxu0 %vm284_vm1, %v204_v1  ;;  %1878 = vmatmul.mubr.msk.f32.gmra.mrb[60].mxu1 %vm284_vm1, %v255_v2 }
  0x8a   : > { %1727 = vmatprep.mubr.msk.f32.mxu0 %vm1962_vm0, %v1963_v4  ;;  %1880 = vmatprep.mubr.msk.f32.mxu1 %vm1962_vm0, %v1963_v4 }
  0x8d   : > { %1728 = vmatmul.mubr.msk.f32.gmra.mrb[62].mxu0 %vm284_vm1, %v205_v3  ;;  %1881 = vmatmul.mubr.msk.f32.gmra.mrb[62].mxu1 %vm284_vm1, %v256_v5 }
  0x8e   : > { %1730 = vmatprep.mubr.msk.f32.mxu0 %vm1962_vm0, %v1963_v4  ;;  %1883 = vmatprep.mubr.msk.f32.mxu1 %vm1962_vm0, %v1963_v4 }
  0x91   : > { %1731 = vmatmul.mubr.msk.f32.gmra.mrb[64].mxu0 %vm284_vm1, %v206_v6  ;;  %1884 = vmatmul.mubr.msk.f32.gmra.mrb[64].mxu1 %vm284_vm1, %v257_v7 }
  0x92   : > { %1733 = vmatprep.mubr.msk.f32.mxu0 %vm1962_vm0, %v1963_v4  ;;  %1886 = vmatprep.mubr.msk.f32.mxu1 %vm1962_vm0, %v1963_v4 }
  0x95   : > { %1734 = vmatmul.mubr.msk.f32.gmra.mrb[66].mxu0 %vm284_vm1, %v207_v8  ;;  %1887 = vmatmul.mubr.msk.f32.gmra.mrb[66].mxu1 %vm284_vm1, %v258_v9 }
  0x96   : > { %1736 = vmatprep.mubr.msk.f32.mxu0 %vm1962_vm0, %v1963_v4  ;;  %1889 = vmatprep.mubr.msk.f32.mxu1 %vm1962_vm0, %v1963_v4 }
  0x99   : > { %1737 = vmatmul.mubr.msk.f32.gmra.mrb[68].mxu0 %vm284_vm1, %v208_v10  ;;  %1890 = vmatmul.mubr.msk.f32.gmra.mrb[68].mxu1 %vm284_vm1, %v259_v11 }
  0x9a   : > { %1739 = vmatprep.mubr.msk.f32.mxu0 %vm1962_vm0, %v1963_v4  ;;  %1892 = vmatprep.mubr.msk.f32.mxu1 %vm1962_vm0, %v1963_v4 }
  0x9d   : > { %1740 = vmatmul.mubr.msk.f32.gmra.mrb[70].mxu0 %vm284_vm1, %v209_v12  ;;  %1893 = vmatmul.mubr.msk.f32.gmra.mrb[70].mxu1 %vm284_vm1, %v260_v13 }
  0x9e   : > { %1742 = vmatprep.mubr.msk.f32.mxu0 %vm1962_vm0, %v1963_v4  ;;  %1895 = vmatprep.mubr.msk.f32.mxu1 %vm1962_vm0, %v1963_v4 }
  0xa1   : > { %1743 = vmatmul.mubr.msk.f32.gmra.mrb[72].mxu0 %vm284_vm1, %v210_v14  ;;  %1896 = vmatmul.mubr.msk.f32.gmra.mrb[72].mxu1 %vm284_vm1, %v261_v15 }
  0xa2   : > { %1745 = vmatprep.mubr.msk.f32.mxu0 %vm1962_vm0, %v1963_v4  ;;  %1898 = vmatprep.mubr.msk.f32.mxu1 %vm1962_vm0, %v1963_v4 }
  0xa5   : > { %1746 = vmatmul.mubr.msk.f32.gmra.mrb[74].mxu0 %vm284_vm1, %v211_v16  ;;  %1899 = vmatmul.mubr.msk.f32.gmra.mrb[74].mxu1 %vm284_vm1, %v262_v17 }
  0xa6   : > { %1748 = vmatprep.mubr.msk.f32.mxu0 %vm1962_vm0, %v1963_v4  ;;  %1901 = vmatprep.mubr.msk.f32.mxu1 %vm1962_vm0, %v1963_v4 }
  0xa9   : > { %1749 = vmatmul.mubr.msk.f32.gmra.mrb[76].mxu0 %vm284_vm1, %v212_v18  ;;  %1902 = vmatmul.mubr.msk.f32.gmra.mrb[76].mxu1 %vm284_vm1, %v263_v19 }
  0xaa   : > { %1751 = vmatprep.mubr.msk.f32.mxu0 %vm1962_vm0, %v1963_v4  ;;  %1904 = vmatprep.mubr.msk.f32.mxu1 %vm1962_vm0, %v1963_v4 }
  0xad   : > { %1752 = vmatmul.mubr.msk.f32.gmra.mrb[78].mxu0 %vm284_vm1, %v213_v20  ;;  %1905 = vmatmul.mubr.msk.f32.gmra.mrb[78].mxu1 %vm284_vm1, %v264_v21 }
  0xae   : > { %1754 = vmatprep.mubr.msk.f32.mxu0 %vm1962_vm0, %v1963_v4  ;;  %1907 = vmatprep.mubr.msk.f32.mxu1 %vm1962_vm0, %v1963_v4 }
  0xb1   : > { %1755 = vmatmul.mubr.msk.f32.gmra.mrb[80].mxu0 %vm284_vm1, %v214_v22  ;;  %1908 = vmatmul.mubr.msk.f32.gmra.mrb[80].mxu1 %vm284_vm1, %v265_v23 }
  0xb2   : > { %1757 = vmatprep.mubr.msk.f32.mxu0 %vm1962_vm0, %v1963_v4  ;;  %1910 = vmatprep.mubr.msk.f32.mxu1 %vm1962_vm0, %v1963_v4 }
  0xb5   : > { %1758 = vmatmul.mubr.msk.f32.gmra.mrb[82].mxu0 %vm284_vm1, %v215_v24  ;;  %1911 = vmatmul.mubr.msk.f32.gmra.mrb[82].mxu1 %vm284_vm1, %v266_v25 }
  0xb6   : > { %1760 = vmatprep.mubr.msk.f32.mxu0 %vm1962_vm0, %v1963_v4  ;;  %1913 = vmatprep.mubr.msk.f32.mxu1 %vm1962_vm0, %v1963_v4 }
  0xb9   : > { %1761 = vmatmul.mubr.msk.f32.gmra.mrb[84].mxu0 %vm284_vm1, %v216_v26  ;;  %1914 = vmatmul.mubr.msk.f32.gmra.mrb[84].mxu1 %vm284_vm1, %v267_v27 }
  0xba   : > { %1763 = vmatprep.mubr.msk.f32.mxu0 %vm1962_vm0, %v1963_v4  ;;  %1916 = vmatprep.mubr.msk.f32.mxu1 %vm1962_vm0, %v1963_v4 }
  0xbd   : > { %1764 = vmatmul.mubr.msk.f32.gmra.mrb[86].mxu0 %vm284_vm1, %v217_v28  ;;  %1917 = vmatmul.mubr.msk.f32.gmra.mrb[86].mxu1 %vm284_vm1, %v268_v29 }
  0xbe   : > { %1766 = vmatprep.mubr.msk.f32.mxu0 %vm1962_vm0, %v1963_v4  ;;  %1919 = vmatprep.mubr.msk.f32.mxu1 %vm1962_vm0, %v1963_v4 }
  0xc1   : > { %1767 = vmatmul.mubr.msk.f32.gmra.mrb[88].mxu0 %vm284_vm1, %v218_v30  ;;  %1920 = vmatmul.mubr.msk.f32.gmra.mrb[88].mxu1 %vm284_vm1, %v269_v31 }
  0xc2   : > { %1769 = vmatprep.mubr.msk.f32.mxu0 %vm1962_vm0, %v1963_v4  ;;  %1922 = vmatprep.mubr.msk.f32.mxu1 %vm1962_vm0, %v1963_v4 }
  0xc5   : > { %1770 = vmatmul.mubr.msk.f32.gmra.mrb[90].mxu0 %vm284_vm1, %v219_v32  ;;  %1923 = vmatmul.mubr.msk.f32.gmra.mrb[90].mxu1 %vm284_vm1, %v270_v33 }
  0xc6   : > { %1772 = vmatprep.mubr.msk.f32.mxu0 %vm1962_vm0, %v1963_v4  ;;  %1925 = vmatprep.mubr.msk.f32.mxu1 %vm1962_vm0, %v1963_v4 }
  0xc9   : > { %1773 = vmatmul.mubr.msk.f32.gmra.mrb[92].mxu0 %vm284_vm1, %v220_v34  ;;  %1926 = vmatmul.mubr.msk.f32.gmra.mrb[92].mxu1 %vm284_vm1, %v271_v35 }
  0xca   : > { %1775 = vmatprep.mubr.msk.f32.mxu0 %vm1962_vm0, %v1963_v4  ;;  %1928 = vmatprep.mubr.msk.f32.mxu1 %vm1962_vm0, %v1963_v4 }
  0xcd   : > { %1776 = vmatmul.mubr.msk.f32.gmra.mrb[94].mxu0 %vm284_vm1, %v221_v36  ;;  %1929 = vmatmul.mubr.msk.f32.gmra.mrb[94].mxu1 %vm284_vm1, %v272_v37 }
  0xce   : > { %1778 = vmatprep.mubr.msk.f32.mxu0 %vm1962_vm0, %v1963_v4  ;;  %1931 = vmatprep.mubr.msk.f32.mxu1 %vm1962_vm0, %v1963_v4 }
  0xd1   : > { %1779 = vmatmul.mubr.msk.f32.gmra.mrb[96].mxu0 %vm284_vm1, %v222_v38  ;;  %1932 = vmatmul.mubr.msk.f32.gmra.mrb[96].mxu1 %vm284_vm1, %v273_v39 }
  0xd2   : > { %1781 = vmatprep.mubr.msk.f32.mxu0 %vm1962_vm0, %v1963_v4  ;;  %1934 = vmatprep.mubr.msk.f32.mxu1 %vm1962_vm0, %v1963_v4 }
  0xd5   : > { %1782 = vmatmul.mubr.msk.f32.gmra.mrb[98].mxu0 %vm284_vm1, %v223_v40  ;;  %1935 = vmatmul.mubr.msk.f32.gmra.mrb[98].mxu1 %vm284_vm1, %v274_v41 }
  0xd6   : > { %1784 = vmatprep.mubr.msk.f32.mxu0 %vm1962_vm0, %v1963_v4 }
  0xd9   : > { %1785 = vmatmul.mubr.msk.f32.gmra.mrb[100].mxu0 %vm284_vm1, %v224_v42 }
  0xe4   : > { %v654_v44 = vpop.f32.mrb[0].mxu0  ;;  %v909_v45 = vpop.f32.mrb[0].mxu1 }
  0xe5   : > { %v655_v46 = vadd.f32 %v2415_v43, %v654_v44  ;;  %v1636_v47 = vpop.f32.mrb[1].mxu0  ;;  %v910_v48 = vadd.f32 %v2415_v43, %v909_v45  ;;  %v1789_v49 = vpop.f32.mrb[1].mxu1 }
  0xe7   : > { %v1158_v4 = vmax.f32 %v655_v46, 0.0  ;;  %v1209_v50 = vmax.f32 %v910_v48, 0.0 }
  0xe8   : > { %v659_v51 = vpop.f32.mrb[2].mxu0  ;;  %v914_v52 = vpop.f32.mrb[2].mxu1 }
  0xe9   : > { %1259 = vst [vmem:[%s2424_s27] sm:$0xff] %v1158_v4  ;;  %1310 = vst [vmem:[%s2424_s27 + $0x198] sm:$0xff] %v1209_v50  ;;  %v660_v53 = vadd.f32 %v2415_v43, %v659_v51  ;;  %v1639_v54 = vpop.f32.mrb[3].mxu0  ;;  %v915_v55 = vadd.f32 %v2415_v43, %v914_v52  ;;  %v1792_v56 = vpop.f32.mrb[3].mxu1 }
  0xeb   : > { %v1159_v57 = vmax.f32 %v660_v53, 0.0  ;;  %v1210_v58 = vmax.f32 %v915_v55, 0.0 }
  0xec   : > { %v664_v59 = vpop.f32.mrb[4].mxu0  ;;  %v919_v60 = vpop.f32.mrb[4].mxu1 }
  0xed   : > { %1260 = vst [vmem:[%s2424_s27 + $0x8] sm:$0xff] %v1159_v57  ;;  %1311 = vst [vmem:[%s2424_s27 + $0x1a0] sm:$0xff] %v1210_v58  ;;  %v665_v61 = vadd.f32 %v2415_v43, %v664_v59  ;;  %v1642_v62 = vpop.f32.mrb[5].mxu0  ;;  %v920_v63 = vadd.f32 %v2415_v43, %v919_v60  ;;  %v1795_v0 = vpop.f32.mrb[5].mxu1 }
  0xef   : > { %v1160_v1 = vmax.f32 %v665_v61, 0.0  ;;  %v1211_v2 = vmax.f32 %v920_v63, 0.0 }
  0xf0   : > { %v669_v3 = vpop.f32.mrb[6].mxu0  ;;  %v924_v5 = vpop.f32.mrb[6].mxu1 }
  0xf1   : > { %1261 = vst [vmem:[%s2424_s27 + $0x10] sm:$0xff] %v1160_v1  ;;  %1312 = vst [vmem:[%s2424_s27 + $0x1a8] sm:$0xff] %v1211_v2  ;;  %v670_v6 = vadd.f32 %v2415_v43, %v669_v3  ;;  %v1645_v7 = vpop.f32.mrb[7].mxu0  ;;  %v925_v8 = vadd.f32 %v2415_v43, %v924_v5  ;;  %v1798_v9 = vpop.f32.mrb[7].mxu1 }
  0xf3   : > { %v1161_v10 = vmax.f32 %v670_v6, 0.0  ;;  %v1212_v11 = vmax.f32 %v925_v8, 0.0 }
  0xf4   : > { %v674_v12 = vpop.f32.mrb[8].mxu0  ;;  %v929_v13 = vpop.f32.mrb[8].mxu1 }
  0xf5   : > { %1262 = vst [vmem:[%s2424_s27 + $0x18] sm:$0xff] %v1161_v10  ;;  %1313 = vst [vmem:[%s2424_s27 + $0x1b0] sm:$0xff] %v1212_v11  ;;  %v675_v14 = vadd.f32 %v2415_v43, %v674_v12  ;;  %v1648_v15 = vpop.f32.mrb[9].mxu0  ;;  %v930_v16 = vadd.f32 %v2415_v43, %v929_v13  ;;  %v1801_v17 = vpop.f32.mrb[9].mxu1 }
  0xf7   : > { %v1162_v18 = vmax.f32 %v675_v14, 0.0  ;;  %v1213_v19 = vmax.f32 %v930_v16, 0.0 }
  0xf8   : > { %v679_v20 = vpop.f32.mrb[10].mxu0  ;;  %v934_v21 = vpop.f32.mrb[10].mxu1 }
  0xf9   : > { %1263 = vst [vmem:[%s2424_s27 + $0x20] sm:$0xff] %v1162_v18  ;;  %1314 = vst [vmem:[%s2424_s27 + $0x1b8] sm:$0xff] %v1213_v19  ;;  %v680_v22 = vadd.f32 %v2415_v43, %v679_v20  ;;  %v1651_v23 = vpop.f32.mrb[11].mxu0  ;;  %v935_v24 = vadd.f32 %v2415_v43, %v934_v21  ;;  %v1804_v25 = vpop.f32.mrb[11].mxu1 }
  0xfb   : > { %v1163_v26 = vmax.f32 %v680_v22, 0.0  ;;  %v1214_v27 = vmax.f32 %v935_v24, 0.0 }
  0xfc   : > { %v684_v28 = vpop.f32.mrb[12].mxu0  ;;  %v939_v29 = vpop.f32.mrb[12].mxu1 }
  0xfd   : > { %1264 = vst [vmem:[%s2424_s27 + $0x28] sm:$0xff] %v1163_v26  ;;  %1315 = vst [vmem:[%s2424_s27 + $0x1c0] sm:$0xff] %v1214_v27  ;;  %v685_v30 = vadd.f32 %v2415_v43, %v684_v28  ;;  %v1654_v31 = vpop.f32.mrb[13].mxu0  ;;  %v940_v32 = vadd.f32 %v2415_v43, %v939_v29  ;;  %v1807_v33 = vpop.f32.mrb[13].mxu1 }
  0xff   : > { %v1164_v34 = vmax.f32 %v685_v30, 0.0  ;;  %v1215_v35 = vmax.f32 %v940_v32, 0.0 }
 0x100   : > { %v689_v36 = vpop.f32.mrb[14].mxu0  ;;  %v944_v37 = vpop.f32.mrb[14].mxu1 }
 0x101   : > { %1265 = vst [vmem:[%s2424_s27 + $0x30] sm:$0xff] %v1164_v34  ;;  %1316 = vst [vmem:[%s2424_s27 + $0x1c8] sm:$0xff] %v1215_v35  ;;  %v690_v38 = vadd.f32 %v2415_v43, %v689_v36  ;;  %v1657_v39 = vpop.f32.mrb[15].mxu0  ;;  %v945_v40 = vadd.f32 %v2415_v43, %v944_v37  ;;  %v1810_v41 = vpop.f32.mrb[15].mxu1 }
 0x103   : > { %v1165_v42 = vmax.f32 %v690_v38, 0.0  ;;  %v1216_v44 = vmax.f32 %v945_v40, 0.0 }
 0x104   : > { %v694_v45 = vpop.f32.mrb[16].mxu0  ;;  %v949_v46 = vpop.f32.mrb[16].mxu1 }
 0x105   : > { %1266 = vst [vmem:[%s2424_s27 + $0x38] sm:$0xff] %v1165_v42  ;;  %1317 = vst [vmem:[%s2424_s27 + $0x1d0] sm:$0xff] %v1216_v44  ;;  %v695_v47 = vadd.f32 %v2415_v43, %v694_v45  ;;  %v1660_v48 = vpop.f32.mrb[17].mxu0  ;;  %v950_v49 = vadd.f32 %v2415_v43, %v949_v46  ;;  %v1813_v4 = vpop.f32.mrb[17].mxu1 }
 0x107   : > { %v1166_v50 = vmax.f32 %v695_v47, 0.0  ;;  %v1217_v51 = vmax.f32 %v950_v49, 0.0 }
 0x108   : > { %v699_v52 = vpop.f32.mrb[18].mxu0  ;;  %v954_v53 = vpop.f32.mrb[18].mxu1 }
 0x109   : > { %1267 = vst [vmem:[%s2424_s27 + $0x40] sm:$0xff] %v1166_v50  ;;  %1318 = vst [vmem:[%s2424_s27 + $0x1d8] sm:$0xff] %v1217_v51  ;;  %v700_v54 = vadd.f32 %v2415_v43, %v699_v52  ;;  %v1663_v55 = vpop.f32.mrb[19].mxu0  ;;  %v955_v56 = vadd.f32 %v2415_v43, %v954_v53  ;;  %v1816_v57 = vpop.f32.mrb[19].mxu1 }
 0x10b   : > { %v1167_v58 = vmax.f32 %v700_v54, 0.0  ;;  %v1218_v59 = vmax.f32 %v955_v56, 0.0 }
 0x10c   : > { %v704_v60 = vpop.f32.mrb[20].mxu0  ;;  %v959_v61 = vpop.f32.mrb[20].mxu1 }
 0x10d   : > { %1268 = vst [vmem:[%s2424_s27 + $0x48] sm:$0xff] %v1167_v58  ;;  %1319 = vst [vmem:[%s2424_s27 + $0x1e0] sm:$0xff] %v1218_v59  ;;  %v705_v62 = vadd.f32 %v2415_v43, %v704_v60  ;;  %v1666_v63 = vpop.f32.mrb[21].mxu0  ;;  %v960_v0 = vadd.f32 %v2415_v43, %v959_v61  ;;  %v1819_v1 = vpop.f32.mrb[21].mxu1 }
 0x10f   : > { %v1168_v2 = vmax.f32 %v705_v62, 0.0  ;;  %v1219_v3 = vmax.f32 %v960_v0, 0.0 }
 0x110   : > { %v709_v5 = vpop.f32.mrb[22].mxu0  ;;  %v964_v6 = vpop.f32.mrb[22].mxu1 }
 0x111   : > { %1269 = vst [vmem:[%s2424_s27 + $0x50] sm:$0xff] %v1168_v2  ;;  %1320 = vst [vmem:[%s2424_s27 + $0x1e8] sm:$0xff] %v1219_v3  ;;  %v710_v7 = vadd.f32 %v2415_v43, %v709_v5  ;;  %v1669_v8 = vpop.f32.mrb[23].mxu0  ;;  %v965_v9 = vadd.f32 %v2415_v43, %v964_v6  ;;  %v1822_v10 = vpop.f32.mrb[23].mxu1 }
 0x113   : > { %v1169_v11 = vmax.f32 %v710_v7, 0.0  ;;  %v1220_v12 = vmax.f32 %v965_v9, 0.0 }
 0x114   : > { %v714_v13 = vpop.f32.mrb[24].mxu0  ;;  %v969_v14 = vpop.f32.mrb[24].mxu1 }
 0x115   : > { %1270 = vst [vmem:[%s2424_s27 + $0x58] sm:$0xff] %v1169_v11  ;;  %1321 = vst [vmem:[%s2424_s27 + $0x1f0] sm:$0xff] %v1220_v12  ;;  %v715_v15 = vadd.f32 %v2415_v43, %v714_v13  ;;  %v1672_v16 = vpop.f32.mrb[25].mxu0  ;;  %v970_v17 = vadd.f32 %v2415_v43, %v969_v14  ;;  %v1825_v18 = vpop.f32.mrb[25].mxu1 }
 0x117   : > { %v1170_v19 = vmax.f32 %v715_v15, 0.0  ;;  %v1221_v20 = vmax.f32 %v970_v17, 0.0 }
 0x118   : > { %v719_v21 = vpop.f32.mrb[26].mxu0  ;;  %v974_v22 = vpop.f32.mrb[26].mxu1 }
 0x119   : > { %1271 = vst [vmem:[%s2424_s27 + $0x60] sm:$0xff] %v1170_v19  ;;  %1322 = vst [vmem:[%s2424_s27 + $0x1f8] sm:$0xff] %v1221_v20  ;;  %v720_v23 = vadd.f32 %v2415_v43, %v719_v21  ;;  %v1675_v24 = vpop.f32.mrb[27].mxu0  ;;  %v975_v25 = vadd.f32 %v2415_v43, %v974_v22  ;;  %v1828_v26 = vpop.f32.mrb[27].mxu1 }
 0x11b   : > { %v1171_v27 = vmax.f32 %v720_v23, 0.0  ;;  %v1222_v28 = vmax.f32 %v975_v25, 0.0 }
 0x11c   : > { %v724_v29 = vpop.f32.mrb[28].mxu0  ;;  %v979_v30 = vpop.f32.mrb[28].mxu1 }
 0x11d   : > { %1272 = vst [vmem:[%s2424_s27 + $0x68] sm:$0xff] %v1171_v27  ;;  %1323 = vst [vmem:[%s2424_s27 + $0x200] sm:$0xff] %v1222_v28  ;;  %v725_v31 = vadd.f32 %v2415_v43, %v724_v29  ;;  %v1678_v32 = vpop.f32.mrb[29].mxu0  ;;  %v980_v33 = vadd.f32 %v2415_v43, %v979_v30  ;;  %v1831_v34 = vpop.f32.mrb[29].mxu1 }
 0x11f   : > { %v1172_v35 = vmax.f32 %v725_v31, 0.0  ;;  %v1223_v36 = vmax.f32 %v980_v33, 0.0 }
 0x120   : > { %v729_v37 = vpop.f32.mrb[30].mxu0  ;;  %v984_v38 = vpop.f32.mrb[30].mxu1 }
 0x121   : > { %1273 = vst [vmem:[%s2424_s27 + $0x70] sm:$0xff] %v1172_v35  ;;  %1324 = vst [vmem:[%s2424_s27 + $0x208] sm:$0xff] %v1223_v36  ;;  %v730_v39 = vadd.f32 %v2415_v43, %v729_v37  ;;  %v1681_v40 = vpop.f32.mrb[31].mxu0  ;;  %v985_v41 = vadd.f32 %v2415_v43, %v984_v38  ;;  %v1834_v42 = vpop.f32.mrb[31].mxu1 }
 0x123   : > { %v1173_v44 = vmax.f32 %v730_v39, 0.0  ;;  %v1224_v45 = vmax.f32 %v985_v41, 0.0 }
 0x124   : > { %v734_v46 = vpop.f32.mrb[32].mxu0  ;;  %v989_v47 = vpop.f32.mrb[32].mxu1 }
 0x125   : > { %1274 = vst [vmem:[%s2424_s27 + $0x78] sm:$0xff] %v1173_v44  ;;  %1325 = vst [vmem:[%s2424_s27 + $0x210] sm:$0xff] %v1224_v45  ;;  %v735_v48 = vadd.f32 %v2415_v43, %v734_v46  ;;  %v1684_v49 = vpop.f32.mrb[33].mxu0  ;;  %v990_v4 = vadd.f32 %v2415_v43, %v989_v47  ;;  %v1837_v50 = vpop.f32.mrb[33].mxu1 }
 0x127   : > { %v1174_v51 = vmax.f32 %v735_v48, 0.0  ;;  %v1225_v52 = vmax.f32 %v990_v4, 0.0 }
 0x128   : > { %v739_v53 = vpop.f32.mrb[34].mxu0  ;;  %v994_v54 = vpop.f32.mrb[34].mxu1 }
 0x129   : > { %1275 = vst [vmem:[%s2424_s27 + $0x80] sm:$0xff] %v1174_v51  ;;  %1326 = vst [vmem:[%s2424_s27 + $0x218] sm:$0xff] %v1225_v52  ;;  %v740_v55 = vadd.f32 %v2415_v43, %v739_v53  ;;  %v1687_v56 = vpop.f32.mrb[35].mxu0  ;;  %v995_v57 = vadd.f32 %v2415_v43, %v994_v54  ;;  %v1840_v58 = vpop.f32.mrb[35].mxu1 }
 0x12b   : > { %v1175_v59 = vmax.f32 %v740_v55, 0.0  ;;  %v1226_v60 = vmax.f32 %v995_v57, 0.0 }
 0x12c   : > { %v744_v61 = vpop.f32.mrb[36].mxu0  ;;  %v999_v62 = vpop.f32.mrb[36].mxu1 }
 0x12d   : > { %1276 = vst [vmem:[%s2424_s27 + $0x88] sm:$0xff] %v1175_v59  ;;  %1327 = vst [vmem:[%s2424_s27 + $0x220] sm:$0xff] %v1226_v60  ;;  %v745_v63 = vadd.f32 %v2415_v43, %v744_v61  ;;  %v1690_v0 = vpop.f32.mrb[37].mxu0  ;;  %v1000_v1 = vadd.f32 %v2415_v43, %v999_v62  ;;  %v1843_v2 = vpop.f32.mrb[37].mxu1 }
 0x12f   : > { %v1176_v3 = vmax.f32 %v745_v63, 0.0  ;;  %v1227_v5 = vmax.f32 %v1000_v1, 0.0 }
 0x130   : > { %v749_v6 = vpop.f32.mrb[38].mxu0  ;;  %v1004_v7 = vpop.f32.mrb[38].mxu1 }
 0x131   : > { %1277 = vst [vmem:[%s2424_s27 + $0x90] sm:$0xff] %v1176_v3  ;;  %1328 = vst [vmem:[%s2424_s27 + $0x228] sm:$0xff] %v1227_v5  ;;  %v750_v8 = vadd.f32 %v2415_v43, %v749_v6  ;;  %v1693_v9 = vpop.f32.mrb[39].mxu0  ;;  %v1005_v10 = vadd.f32 %v2415_v43, %v1004_v7  ;;  %v1846_v11 = vpop.f32.mrb[39].mxu1 }
 0x133   : > { %v1177_v12 = vmax.f32 %v750_v8, 0.0  ;;  %v1228_v13 = vmax.f32 %v1005_v10, 0.0 }
 0x134   : > { %v754_v14 = vpop.f32.mrb[40].mxu0  ;;  %v1009_v15 = vpop.f32.mrb[40].mxu1 }
 0x135   : > { %1278 = vst [vmem:[%s2424_s27 + $0x98] sm:$0xff] %v1177_v12  ;;  %1329 = vst [vmem:[%s2424_s27 + $0x230] sm:$0xff] %v1228_v13  ;;  %v755_v16 = vadd.f32 %v2415_v43, %v754_v14  ;;  %v1696_v17 = vpop.f32.mrb[41].mxu0  ;;  %v1010_v18 = vadd.f32 %v2415_v43, %v1009_v15  ;;  %v1849_v19 = vpop.f32.mrb[41].mxu1 }
 0x137   : > { %v1178_v20 = vmax.f32 %v755_v16, 0.0  ;;  %v1229_v21 = vmax.f32 %v1010_v18, 0.0 }
 0x138   : > { %v759_v22 = vpop.f32.mrb[42].mxu0  ;;  %v1014_v23 = vpop.f32.mrb[42].mxu1 }
 0x139   : > { %1279 = vst [vmem:[%s2424_s27 + $0xa0] sm:$0xff] %v1178_v20  ;;  %1330 = vst [vmem:[%s2424_s27 + $0x238] sm:$0xff] %v1229_v21  ;;  %v760_v24 = vadd.f32 %v2415_v43, %v759_v22  ;;  %v1699_v25 = vpop.f32.mrb[43].mxu0  ;;  %v1015_v26 = vadd.f32 %v2415_v43, %v1014_v23  ;;  %v1852_v27 = vpop.f32.mrb[43].mxu1 }
 0x13b   : > { %v1179_v28 = vmax.f32 %v760_v24, 0.0  ;;  %v1230_v29 = vmax.f32 %v1015_v26, 0.0 }
 0x13c   : > { %v764_v30 = vpop.f32.mrb[44].mxu0  ;;  %v1019_v31 = vpop.f32.mrb[44].mxu1 }
 0x13d   : > { %1280 = vst [vmem:[%s2424_s27 + $0xa8] sm:$0xff] %v1179_v28  ;;  %1331 = vst [vmem:[%s2424_s27 + $0x240] sm:$0xff] %v1230_v29  ;;  %v765_v32 = vadd.f32 %v2415_v43, %v764_v30  ;;  %v1702_v33 = vpop.f32.mrb[45].mxu0  ;;  %v1020_v34 = vadd.f32 %v2415_v43, %v1019_v31  ;;  %v1855_v35 = vpop.f32.mrb[45].mxu1 }
 0x13f   : > { %v1180_v36 = vmax.f32 %v765_v32, 0.0  ;;  %v1231_v37 = vmax.f32 %v1020_v34, 0.0 }
 0x140   : > { %v769_v38 = vpop.f32.mrb[46].mxu0  ;;  %v1024_v39 = vpop.f32.mrb[46].mxu1 }
 0x141   : > { %1281 = vst [vmem:[%s2424_s27 + $0xb0] sm:$0xff] %v1180_v36  ;;  %1332 = vst [vmem:[%s2424_s27 + $0x248] sm:$0xff] %v1231_v37  ;;  %v770_v40 = vadd.f32 %v2415_v43, %v769_v38  ;;  %v1705_v41 = vpop.f32.mrb[47].mxu0  ;;  %v1025_v42 = vadd.f32 %v2415_v43, %v1024_v39  ;;  %v1858_v44 = vpop.f32.mrb[47].mxu1 }
 0x143   : > { %v1181_v45 = vmax.f32 %v770_v40, 0.0  ;;  %v1232_v46 = vmax.f32 %v1025_v42, 0.0 }
 0x144   : > { %v774_v47 = vpop.f32.mrb[48].mxu0  ;;  %v1029_v48 = vpop.f32.mrb[48].mxu1 }
 0x145   : > { %1282 = vst [vmem:[%s2424_s27 + $0xb8] sm:$0xff] %v1181_v45  ;;  %1333 = vst [vmem:[%s2424_s27 + $0x250] sm:$0xff] %v1232_v46  ;;  %v775_v49 = vadd.f32 %v2415_v43, %v774_v47  ;;  %v1708_v4 = vpop.f32.mrb[49].mxu0  ;;  %v1030_v50 = vadd.f32 %v2415_v43, %v1029_v48  ;;  %v1861_v51 = vpop.f32.mrb[49].mxu1 }
 0x147   : > { %v1182_v52 = vmax.f32 %v775_v49, 0.0  ;;  %v1233_v53 = vmax.f32 %v1030_v50, 0.0 }
 0x148   : > { %v779_v54 = vpop.f32.mrb[50].mxu0  ;;  %v1034_v55 = vpop.f32.mrb[50].mxu1 }
 0x149   : > { %1283 = vst [vmem:[%s2424_s27 + $0xc0] sm:$0xff] %v1182_v52  ;;  %1334 = vst [vmem:[%s2424_s27 + $0x258] sm:$0xff] %v1233_v53  ;;  %v780_v56 = vadd.f32 %v2415_v43, %v779_v54  ;;  %v1711_v57 = vpop.f32.mrb[51].mxu0  ;;  %v1035_v58 = vadd.f32 %v2415_v43, %v1034_v55  ;;  %v1864_v59 = vpop.f32.mrb[51].mxu1 }
 0x14b   : > { %v1183_v60 = vmax.f32 %v780_v56, 0.0  ;;  %v1234_v61 = vmax.f32 %v1035_v58, 0.0 }
 0x14c   : > { %v784_v62 = vpop.f32.mrb[52].mxu0  ;;  %v1039_v63 = vpop.f32.mrb[52].mxu1 }
 0x14d   : > { %1284 = vst [vmem:[%s2424_s27 + $0xc8] sm:$0xff] %v1183_v60  ;;  %1335 = vst [vmem:[%s2424_s27 + $0x260] sm:$0xff] %v1234_v61  ;;  %v785_v0 = vadd.f32 %v2415_v43, %v784_v62  ;;  %v1714_v1 = vpop.f32.mrb[53].mxu0  ;;  %v1040_v2 = vadd.f32 %v2415_v43, %v1039_v63  ;;  %v1867_v3 = vpop.f32.mrb[53].mxu1 }
 0x14f   : > { %v1184_v5 = vmax.f32 %v785_v0, 0.0  ;;  %v1235_v6 = vmax.f32 %v1040_v2, 0.0 }
 0x150   : > { %v789_v7 = vpop.f32.mrb[54].mxu0  ;;  %v1044_v8 = vpop.f32.mrb[54].mxu1 }
 0x151   : > { %1285 = vst [vmem:[%s2424_s27 + $0xd0] sm:$0xff] %v1184_v5  ;;  %1336 = vst [vmem:[%s2424_s27 + $0x268] sm:$0xff] %v1235_v6  ;;  %v790_v9 = vadd.f32 %v2415_v43, %v789_v7  ;;  %v1717_v10 = vpop.f32.mrb[55].mxu0  ;;  %v1045_v11 = vadd.f32 %v2415_v43, %v1044_v8  ;;  %v1870_v12 = vpop.f32.mrb[55].mxu1 }
 0x153   : > { %v1185_v13 = vmax.f32 %v790_v9, 0.0  ;;  %v1236_v14 = vmax.f32 %v1045_v11, 0.0 }
 0x154   : > { %v794_v15 = vpop.f32.mrb[56].mxu0  ;;  %v1049_v16 = vpop.f32.mrb[56].mxu1 }
 0x155   : > { %1286 = vst [vmem:[%s2424_s27 + $0xd8] sm:$0xff] %v1185_v13  ;;  %1337 = vst [vmem:[%s2424_s27 + $0x270] sm:$0xff] %v1236_v14  ;;  %v795_v17 = vadd.f32 %v2415_v43, %v794_v15  ;;  %v1720_v18 = vpop.f32.mrb[57].mxu0  ;;  %v1050_v19 = vadd.f32 %v2415_v43, %v1049_v16  ;;  %v1873_v20 = vpop.f32.mrb[57].mxu1 }
 0x157   : > { %v1186_v21 = vmax.f32 %v795_v17, 0.0  ;;  %v1237_v22 = vmax.f32 %v1050_v19, 0.0 }
 0x158   : > { %v799_v23 = vpop.f32.mrb[58].mxu0  ;;  %v1054_v24 = vpop.f32.mrb[58].mxu1 }
 0x159   : > { %1287 = vst [vmem:[%s2424_s27 + $0xe0] sm:$0xff] %v1186_v21  ;;  %1338 = vst [vmem:[%s2424_s27 + $0x278] sm:$0xff] %v1237_v22  ;;  %v800_v25 = vadd.f32 %v2415_v43, %v799_v23  ;;  %v1723_v26 = vpop.f32.mrb[59].mxu0  ;;  %v1055_v27 = vadd.f32 %v2415_v43, %v1054_v24  ;;  %v1876_v28 = vpop.f32.mrb[59].mxu1 }
 0x15b   : > { %v1187_v29 = vmax.f32 %v800_v25, 0.0  ;;  %v1238_v30 = vmax.f32 %v1055_v27, 0.0 }
 0x15c   : > { %v804_v31 = vpop.f32.mrb[60].mxu0  ;;  %v1059_v32 = vpop.f32.mrb[60].mxu1 }
 0x15d   : > { %1288 = vst [vmem:[%s2424_s27 + $0xe8] sm:$0xff] %v1187_v29  ;;  %1339 = vst [vmem:[%s2424_s27 + $0x280] sm:$0xff] %v1238_v30  ;;  %v805_v33 = vadd.f32 %v2415_v43, %v804_v31  ;;  %v1726_v34 = vpop.f32.mrb[61].mxu0  ;;  %v1060_v35 = vadd.f32 %v2415_v43, %v1059_v32  ;;  %v1879_v36 = vpop.f32.mrb[61].mxu1 }
 0x15f   : > { %v1188_v37 = vmax.f32 %v805_v33, 0.0  ;;  %v1239_v38 = vmax.f32 %v1060_v35, 0.0 }
 0x160   : > { %v809_v39 = vpop.f32.mrb[62].mxu0  ;;  %v1064_v40 = vpop.f32.mrb[62].mxu1 }
 0x161   : > { %1289 = vst [vmem:[%s2424_s27 + $0xf0] sm:$0xff] %v1188_v37  ;;  %1340 = vst [vmem:[%s2424_s27 + $0x288] sm:$0xff] %v1239_v38  ;;  %v810_v41 = vadd.f32 %v2415_v43, %v809_v39  ;;  %v1729_v42 = vpop.f32.mrb[63].mxu0  ;;  %v1065_v44 = vadd.f32 %v2415_v43, %v1064_v40  ;;  %v1882_v45 = vpop.f32.mrb[63].mxu1 }
 0x163   : > { %v1189_v46 = vmax.f32 %v810_v41, 0.0  ;;  %v1240_v47 = vmax.f32 %v1065_v44, 0.0 }
 0x164   : > { %v814_v48 = vpop.f32.mrb[64].mxu0  ;;  %v1069_v49 = vpop.f32.mrb[64].mxu1 }
 0x165   : > { %1290 = vst [vmem:[%s2424_s27 + $0xf8] sm:$0xff] %v1189_v46  ;;  %1341 = vst [vmem:[%s2424_s27 + $0x290] sm:$0xff] %v1240_v47  ;;  %v815_v4 = vadd.f32 %v2415_v43, %v814_v48  ;;  %v1732_v50 = vpop.f32.mrb[65].mxu0  ;;  %v1070_v51 = vadd.f32 %v2415_v43, %v1069_v49  ;;  %v1885_v52 = vpop.f32.mrb[65].mxu1 }
 0x167   : > { %v1190_v53 = vmax.f32 %v815_v4, 0.0  ;;  %v1241_v54 = vmax.f32 %v1070_v51, 0.0 }
 0x168   : > { %v819_v55 = vpop.f32.mrb[66].mxu0  ;;  %v1074_v56 = vpop.f32.mrb[66].mxu1 }
 0x169   : > { %1291 = vst [vmem:[%s2424_s27 + $0x100] sm:$0xff] %v1190_v53  ;;  %1342 = vst [vmem:[%s2424_s27 + $0x298] sm:$0xff] %v1241_v54  ;;  %v820_v57 = vadd.f32 %v2415_v43, %v819_v55  ;;  %v1735_v58 = vpop.f32.mrb[67].mxu0  ;;  %v1075_v59 = vadd.f32 %v2415_v43, %v1074_v56  ;;  %v1888_v60 = vpop.f32.mrb[67].mxu1 }
 0x16b   : > { %v1191_v61 = vmax.f32 %v820_v57, 0.0  ;;  %v1242_v62 = vmax.f32 %v1075_v59, 0.0 }
 0x16c   : > { %v824_v63 = vpop.f32.mrb[68].mxu0  ;;  %v1079_v0 = vpop.f32.mrb[68].mxu1 }
 0x16d   : > { %1292 = vst [vmem:[%s2424_s27 + $0x108] sm:$0xff] %v1191_v61  ;;  %1343 = vst [vmem:[%s2424_s27 + $0x2a0] sm:$0xff] %v1242_v62  ;;  %v825_v1 = vadd.f32 %v2415_v43, %v824_v63  ;;  %v1738_v2 = vpop.f32.mrb[69].mxu0  ;;  %v1080_v3 = vadd.f32 %v2415_v43, %v1079_v0  ;;  %v1891_v5 = vpop.f32.mrb[69].mxu1 }
 0x16f   : > { %v1192_v6 = vmax.f32 %v825_v1, 0.0  ;;  %v1243_v7 = vmax.f32 %v1080_v3, 0.0 }
 0x170   : > { %v829_v8 = vpop.f32.mrb[70].mxu0  ;;  %v1084_v9 = vpop.f32.mrb[70].mxu1 }
 0x171   : > { %1293 = vst [vmem:[%s2424_s27 + $0x110] sm:$0xff] %v1192_v6  ;;  %1344 = vst [vmem:[%s2424_s27 + $0x2a8] sm:$0xff] %v1243_v7  ;;  %v830_v10 = vadd.f32 %v2415_v43, %v829_v8  ;;  %v1741_v11 = vpop.f32.mrb[71].mxu0  ;;  %v1085_v12 = vadd.f32 %v2415_v43, %v1084_v9  ;;  %v1894_v13 = vpop.f32.mrb[71].mxu1 }
 0x173   : > { %v1193_v14 = vmax.f32 %v830_v10, 0.0  ;;  %v1244_v15 = vmax.f32 %v1085_v12, 0.0 }
 0x174   : > { %v834_v16 = vpop.f32.mrb[72].mxu0  ;;  %v1089_v17 = vpop.f32.mrb[72].mxu1 }
 0x175   : > { %1294 = vst [vmem:[%s2424_s27 + $0x118] sm:$0xff] %v1193_v14  ;;  %1345 = vst [vmem:[%s2424_s27 + $0x2b0] sm:$0xff] %v1244_v15  ;;  %v835_v18 = vadd.f32 %v2415_v43, %v834_v16  ;;  %v1744_v19 = vpop.f32.mrb[73].mxu0  ;;  %v1090_v20 = vadd.f32 %v2415_v43, %v1089_v17  ;;  %v1897_v21 = vpop.f32.mrb[73].mxu1 }
 0x177   : > { %v1194_v22 = vmax.f32 %v835_v18, 0.0  ;;  %v1245_v23 = vmax.f32 %v1090_v20, 0.0 }
 0x178   : > { %v839_v24 = vpop.f32.mrb[74].mxu0  ;;  %v1094_v25 = vpop.f32.mrb[74].mxu1 }
 0x179   : > { %1295 = vst [vmem:[%s2424_s27 + $0x120] sm:$0xff] %v1194_v22  ;;  %1346 = vst [vmem:[%s2424_s27 + $0x2b8] sm:$0xff] %v1245_v23  ;;  %v840_v26 = vadd.f32 %v2415_v43, %v839_v24  ;;  %v1747_v27 = vpop.f32.mrb[75].mxu0  ;;  %v1095_v28 = vadd.f32 %v2415_v43, %v1094_v25  ;;  %v1900_v29 = vpop.f32.mrb[75].mxu1 }
 0x17b   : > { %v1195_v30 = vmax.f32 %v840_v26, 0.0  ;;  %v1246_v31 = vmax.f32 %v1095_v28, 0.0 }
 0x17c   : > { %v844_v32 = vpop.f32.mrb[76].mxu0  ;;  %v1099_v33 = vpop.f32.mrb[76].mxu1 }
 0x17d   : > { %1296 = vst [vmem:[%s2424_s27 + $0x128] sm:$0xff] %v1195_v30  ;;  %1347 = vst [vmem:[%s2424_s27 + $0x2c0] sm:$0xff] %v1246_v31  ;;  %v845_v34 = vadd.f32 %v2415_v43, %v844_v32  ;;  %v1750_v35 = vpop.f32.mrb[77].mxu0  ;;  %v1100_v36 = vadd.f32 %v2415_v43, %v1099_v33  ;;  %v1903_v37 = vpop.f32.mrb[77].mxu1 }
 0x17f   : > { %v1196_v38 = vmax.f32 %v845_v34, 0.0  ;;  %v1247_v39 = vmax.f32 %v1100_v36, 0.0 }
 0x180   : > { %v849_v40 = vpop.f32.mrb[78].mxu0  ;;  %v1104_v41 = vpop.f32.mrb[78].mxu1 }
 0x181   : > { %1297 = vst [vmem:[%s2424_s27 + $0x130] sm:$0xff] %v1196_v38  ;;  %1348 = vst [vmem:[%s2424_s27 + $0x2c8] sm:$0xff] %v1247_v39  ;;  %v850_v42 = vadd.f32 %v2415_v43, %v849_v40  ;;  %v1753_v44 = vpop.f32.mrb[79].mxu0  ;;  %v1105_v45 = vadd.f32 %v2415_v43, %v1104_v41  ;;  %v1906_v46 = vpop.f32.mrb[79].mxu1 }
 0x183   : > { %v1197_v47 = vmax.f32 %v850_v42, 0.0  ;;  %v1248_v48 = vmax.f32 %v1105_v45, 0.0 }
 0x184   : > { %v854_v49 = vpop.f32.mrb[80].mxu0  ;;  %v1109_v4 = vpop.f32.mrb[80].mxu1 }
 0x185   : > { %1298 = vst [vmem:[%s2424_s27 + $0x138] sm:$0xff] %v1197_v47  ;;  %1349 = vst [vmem:[%s2424_s27 + $0x2d0] sm:$0xff] %v1248_v48  ;;  %v855_v50 = vadd.f32 %v2415_v43, %v854_v49  ;;  %v1756_v51 = vpop.f32.mrb[81].mxu0  ;;  %v1110_v52 = vadd.f32 %v2415_v43, %v1109_v4  ;;  %v1909_v53 = vpop.f32.mrb[81].mxu1 }
 0x187   : > { %v1198_v54 = vmax.f32 %v855_v50, 0.0  ;;  %v1249_v55 = vmax.f32 %v1110_v52, 0.0 }
 0x188   : > { %v859_v56 = vpop.f32.mrb[82].mxu0  ;;  %v1114_v57 = vpop.f32.mrb[82].mxu1 }
 0x189   : > { %1299 = vst [vmem:[%s2424_s27 + $0x140] sm:$0xff] %v1198_v54  ;;  %1350 = vst [vmem:[%s2424_s27 + $0x2d8] sm:$0xff] %v1249_v55  ;;  %v860_v58 = vadd.f32 %v2415_v43, %v859_v56  ;;  %v1759_v59 = vpop.f32.mrb[83].mxu0  ;;  %v1115_v60 = vadd.f32 %v2415_v43, %v1114_v57  ;;  %v1912_v61 = vpop.f32.mrb[83].mxu1 }
 0x18b   : > { %v1199_v62 = vmax.f32 %v860_v58, 0.0  ;;  %v1250_v63 = vmax.f32 %v1115_v60, 0.0 }
 0x18c   : > { %v864_v0 = vpop.f32.mrb[84].mxu0  ;;  %v1119_v1 = vpop.f32.mrb[84].mxu1 }
 0x18d   : > { %1300 = vst [vmem:[%s2424_s27 + $0x148] sm:$0xff] %v1199_v62  ;;  %1351 = vst [vmem:[%s2424_s27 + $0x2e0] sm:$0xff] %v1250_v63  ;;  %v865_v2 = vadd.f32 %v2415_v43, %v864_v0  ;;  %v1762_v3 = vpop.f32.mrb[85].mxu0  ;;  %v1120_v5 = vadd.f32 %v2415_v43, %v1119_v1  ;;  %v1915_v6 = vpop.f32.mrb[85].mxu1 }
 0x18f   : > { %v1200_v7 = vmax.f32 %v865_v2, 0.0  ;;  %v1251_v8 = vmax.f32 %v1120_v5, 0.0 }
 0x190   : > { %v869_v9 = vpop.f32.mrb[86].mxu0  ;;  %v1124_v10 = vpop.f32.mrb[86].mxu1 }
 0x191   : > { %1301 = vst [vmem:[%s2424_s27 + $0x150] sm:$0xff] %v1200_v7  ;;  %1352 = vst [vmem:[%s2424_s27 + $0x2e8] sm:$0xff] %v1251_v8  ;;  %v870_v11 = vadd.f32 %v2415_v43, %v869_v9  ;;  %v1765_v12 = vpop.f32.mrb[87].mxu0  ;;  %v1125_v13 = vadd.f32 %v2415_v43, %v1124_v10  ;;  %v1918_v14 = vpop.f32.mrb[87].mxu1 }
 0x193   : > { %v1201_v15 = vmax.f32 %v870_v11, 0.0  ;;  %v1252_v16 = vmax.f32 %v1125_v13, 0.0 }
 0x194   : > { %v874_v17 = vpop.f32.mrb[88].mxu0  ;;  %v1129_v18 = vpop.f32.mrb[88].mxu1 }
 0x195   : > { %1302 = vst [vmem:[%s2424_s27 + $0x158] sm:$0xff] %v1201_v15  ;;  %1353 = vst [vmem:[%s2424_s27 + $0x2f0] sm:$0xff] %v1252_v16  ;;  %v875_v19 = vadd.f32 %v2415_v43, %v874_v17  ;;  %v1768_v20 = vpop.f32.mrb[89].mxu0  ;;  %v1130_v21 = vadd.f32 %v2415_v43, %v1129_v18  ;;  %v1921_v22 = vpop.f32.mrb[89].mxu1 }
 0x197   : > { %v1202_v23 = vmax.f32 %v875_v19, 0.0  ;;  %v1253_v24 = vmax.f32 %v1130_v21, 0.0 }
 0x198   : > { %v879_v25 = vpop.f32.mrb[90].mxu0  ;;  %v1134_v26 = vpop.f32.mrb[90].mxu1 }
 0x199   : > { %1303 = vst [vmem:[%s2424_s27 + $0x160] sm:$0xff] %v1202_v23  ;;  %1354 = vst [vmem:[%s2424_s27 + $0x2f8] sm:$0xff] %v1253_v24  ;;  %v880_v27 = vadd.f32 %v2415_v43, %v879_v25  ;;  %v1771_v28 = vpop.f32.mrb[91].mxu0  ;;  %v1135_v29 = vadd.f32 %v2415_v43, %v1134_v26  ;;  %v1924_v30 = vpop.f32.mrb[91].mxu1 }
 0x19b   : > { %v1203_v31 = vmax.f32 %v880_v27, 0.0  ;;  %v1254_v32 = vmax.f32 %v1135_v29, 0.0 }
 0x19c   : > { %v884_v33 = vpop.f32.mrb[92].mxu0  ;;  %v1139_v34 = vpop.f32.mrb[92].mxu1 }
 0x19d   : > { %1304 = vst [vmem:[%s2424_s27 + $0x168] sm:$0xff] %v1203_v31  ;;  %1355 = vst [vmem:[%s2424_s27 + $0x300] sm:$0xff] %v1254_v32  ;;  %v885_v35 = vadd.f32 %v2415_v43, %v884_v33  ;;  %v1774_v36 = vpop.f32.mrb[93].mxu0  ;;  %v1140_v37 = vadd.f32 %v2415_v43, %v1139_v34  ;;  %v1927_v38 = vpop.f32.mrb[93].mxu1 }
 0x19f   : > { %v1204_v39 = vmax.f32 %v885_v35, 0.0  ;;  %v1255_v40 = vmax.f32 %v1140_v37, 0.0 }
 0x1a0   : > { %v889_v41 = vpop.f32.mrb[94].mxu0  ;;  %v1144_v42 = vpop.f32.mrb[94].mxu1 }
 0x1a1   : > { %1305 = vst [vmem:[%s2424_s27 + $0x170] sm:$0xff] %v1204_v39  ;;  %1356 = vst [vmem:[%s2424_s27 + $0x308] sm:$0xff] %v1255_v40  ;;  %v890_v44 = vadd.f32 %v2415_v43, %v889_v41  ;;  %v1777_v45 = vpop.f32.mrb[95].mxu0  ;;  %v1145_v46 = vadd.f32 %v2415_v43, %v1144_v42  ;;  %v1930_v47 = vpop.f32.mrb[95].mxu1 }
 0x1a3   : > { %v1205_v48 = vmax.f32 %v890_v44, 0.0  ;;  %v1256_v49 = vmax.f32 %v1145_v46, 0.0 }
 0x1a4   : > { %v894_v4 = vpop.f32.mrb[96].mxu0  ;;  %v1149_v50 = vpop.f32.mrb[96].mxu1 }
 0x1a5   : > { %1306 = vst [vmem:[%s2424_s27 + $0x178] sm:$0xff] %v1205_v48  ;;  %1357 = vst [vmem:[%s2424_s27 + $0x310] sm:$0xff] %v1256_v49  ;;  %v895_v51 = vadd.f32 %v2415_v43, %v894_v4  ;;  %v1780_v52 = vpop.f32.mrb[97].mxu0  ;;  %v1150_v53 = vadd.f32 %v2415_v43, %v1149_v50  ;;  %v1933_v54 = vpop.f32.mrb[97].mxu1 }
 0x1a7   : > { %v1206_v55 = vmax.f32 %v895_v51, 0.0  ;;  %v1257_v56 = vmax.f32 %v1150_v53, 0.0 }
 0x1a8   : > { %v899_v57 = vpop.f32.mrb[98].mxu0  ;;  %v1154_v58 = vpop.f32.mrb[98].mxu1 }
 0x1a9   : > { %1307 = vst [vmem:[%s2424_s27 + $0x180] sm:$0xff] %v1206_v55  ;;  %1358 = vst [vmem:[%s2424_s27 + $0x318] sm:$0xff] %v1257_v56  ;;  %v900_v59 = vadd.f32 %v2415_v43, %v899_v57  ;;  %v1783_v60 = vpop.f32.mrb[99].mxu0  ;;  %v1155_v61 = vadd.f32 %v2415_v43, %v1154_v58  ;;  %v1936_v62 = vpop.f32.mrb[99].mxu1 }
 0x1ab   : > { %v1207_v63 = vmax.f32 %v900_v59, 0.0  ;;  %v1258_v0 = vmax.f32 %v1155_v61, 0.0 }
 0x1ac   : > { %v904_v1 = vpop.f32.mrb[100].mxu0 }
 0x1ad   : > { %1308 = vst [vmem:[%s2424_s27 + $0x188] sm:$0xff] %v1207_v63  ;;  %1359 = vst [vmem:[%s2424_s27 + $0x320] sm:$0xff] %v1258_v0  ;;  %v905_v2 = vadd.f32 %v2415_v43, %v904_v1  ;;  %v1786_v3 = vpop.f32.mrb[101].mxu0 }
 0x1af   : > { %v1208_v5 = vmax.f32 %v905_v2, 0.0 }
 0x1b1   : > { %1309 = vst [vmem:[%s2424_s27 + $0x190] sm:$0xff] %v1208_v5 }
 0x1b2 PF: > { %s13_s12 = sadd.s32 1, %s1959_s12  }
 0x1b3   : > { %p10_p4 = scmp.ge.s32.totalorder %s13_s12, 8  }
 0x1b5   :  { %12 = sbr.rel (!%p10_p4) target bundleno = 1 (0x1), region = 62 }

// kernel: autoencoder_forward.9
= control target key start
LH: loop header
LB: loop body
LE: loop exit
PB: predicated region body
PF: predicated region fallthrough
CT: control target
= control target key end

     0   :  { %s1070_s12 = smov 0   ;;  %s1496_s0 = inlined_call_operand.vmem [shape: f32[1072,256], index: 0, kind: input, shape index: {}]   ;;  %s1497_s1 = inlined_call_operand.vmem [shape: f32[256,128], index: 1, kind: input, shape index: {}]   ;;  %s1498_s2 = inlined_call_operand.vmem [shape: f32[1,128], index: 2, kind: input, shape index: {}]   ;;  %s1499_s3 = inlined_call_operand.vmem [shape: f32[1072,128], index: 3, kind: output, shape index: {}]  }
   0x1 LB: > { %s940_s13 = sadd.s32 4294967295, %s1047_s12   ;;  %p944_p0 = scmp.ge.s32.totalorder %s1047_s12, 1  ;;  %s1047_s12 = sphi %s1070_s12, %s13_s12  }
   0x2   : > { %p139_p1 = scmp.lt.s32.totalorder %s1047_s12, 3 }
   0x4   : > { %p140_p2 = pnand %p944_p0, %p139_p1 }
   0x5   : > { %v311_v0 = vld [vmem:[%s1497_s1] sm:$0xff] (!%p140_p2)  ;;  %v312_v1 = vld [vmem:[%s1497_s1 + $0x8] sm:$0xff] (!%p140_p2)  ;;  %v313_v2 = vld [vmem:[%s1497_s1 + $0x10] sm:$0xff] (!%p140_p2)  ;;  %s164_s20 = smul.u32 (!%p140_p2), 67, %s940_s13  ;;  %v1049_v3 = vmov (!%p140_p2), 0.0|0.0  }
   0x6   : > { %143 = sbr.rel (%p140_p2) target bundleno = 420 (0x1a4), region = 32  ;;  %952 = vmatprep.subr.bf16.mxu0 (!%p140_p2), %v1049_v3  ;;  %v953_v4 = vpack.c.bf16 (!%p140_p2), %v312_v1, %v311_v0  ;;  %1000 = vmatprep.subr.bf16.mxu1 (!%p140_p2), %v1049_v3  ;;  %v314_v5 = vld [vmem:[%s1497_s1 + $0x18] sm:$0xff] (!%p140_p2)  ;;  %v315_v7 = vld [vmem:[%s1497_s1 + $0x20] sm:$0xff] (!%p140_p2)  ;;  %v316_v8 = vld [vmem:[%s1497_s1 + $0x28] sm:$0xff] (!%p140_p2) }
   0x7   : > { %p165_p3 = scmp.lt.s32.totalorder (!%p140_p2), %s164_s20, 133  ;;  %v956_v6 = vpack.c.bf16 (!%p140_p2), %v314_v5, %v313_v2  ;;  %v959_v9 = vpack.c.bf16 (!%p140_p2), %v316_v8, %v315_v7  ;;  %v317_v10 = vld [vmem:[%s1497_s1 + $0x30] sm:$0xff] (!%p140_p2)  ;;  %v318_v11 = vld [vmem:[%s1497_s1 + $0x38] sm:$0xff] (!%p140_p2)  ;;  %v319_v15 = vld [vmem:[%s1497_s1 + $0x40] sm:$0xff] (!%p140_p2) }
   0x8   : > { %954 = vmatpush1.bf16.msra.mxu0 (!%p140_p2), %v953_v4  ;;  %1016 = vmatpush1.bf16.msra.mxu1 (!%p140_p2), %v953_v4  ;;  %v962_v13 = vpack.c.bf16 (!%p140_p2), %v318_v11, %v317_v10  ;;  %v320_v16 = vld [vmem:[%s1497_s1 + $0x48] sm:$0xff] (!%p140_p2)  ;;  %v321_v18 = vld [vmem:[%s1497_s1 + $0x50] sm:$0xff] (!%p140_p2)  ;;  %v322_v19 = vld [vmem:[%s1497_s1 + $0x58] sm:$0xff] (!%p140_p2) }
   0x9   : > { %955 = vmatprep.subr.bf16.mxu0 (!%p140_p2), %v1049_v3  ;;  %1001 = vmatprep.subr.bf16.mxu1 (!%p140_p2), %v1049_v3  ;;  %v965_v17 = vpack.c.bf16 (!%p140_p2), %v320_v16, %v319_v15  ;;  %v968_v20 = vpack.c.bf16 (!%p140_p2), %v322_v19, %v321_v18  ;;  %v323_v21 = vld [vmem:[%s1497_s1 + $0x60] sm:$0xff] (!%p140_p2)  ;;  %v324_v22 = vld [vmem:[%s1497_s1 + $0x68] sm:$0xff] (!%p140_p2)  ;;  %v325_v24 = vld [vmem:[%s1497_s1 + $0x70] sm:$0xff] (!%p140_p2) }
   0xa   : > { %v971_v23 = vpack.c.bf16 (!%p140_p2), %v324_v22, %v323_v21  ;;  %v326_v25 = vld [vmem:[%s1497_s1 + $0x78] sm:$0xff] (!%p140_p2)  ;;  %v327_v27 = vld [vmem:[%s1497_s1 + $0x80] sm:$0xff] (!%p140_p2)  ;;  %v328_v28 = vld [vmem:[%s1497_s1 + $0x88] sm:$0xff] (!%p140_p2) }
   0xb   : > { %v974_v26 = vpack.c.bf16 (!%p140_p2), %v326_v25, %v325_v24  ;;  %v977_v29 = vpack.c.bf16 (!%p140_p2), %v328_v28, %v327_v27  ;;  %v329_v30 = vld [vmem:[%s1497_s1 + $0x90] sm:$0xff] (!%p140_p2)  ;;  %v330_v31 = vld [vmem:[%s1497_s1 + $0x98] sm:$0xff] (!%p140_p2)  ;;  %v331_v33 = vld [vmem:[%s1497_s1 + $0xa0] sm:$0xff] (!%p140_p2) }
   0xc   : > { %957 = vmatpush1.bf16.msra.mxu0 (!%p140_p2), %v956_v6  ;;  %1017 = vmatpush1.bf16.msra.mxu1 (!%p140_p2), %v956_v6  ;;  %v980_v32 = vpack.c.bf16 (!%p140_p2), %v330_v31, %v329_v30  ;;  %v332_v34 = vld [vmem:[%s1497_s1 + $0xa8] sm:$0xff] (!%p140_p2)  ;;  %v333_v36 = vld [vmem:[%s1497_s1 + $0xb0] sm:$0xff] (!%p140_p2)  ;;  %v334_v37 = vld [vmem:[%s1497_s1 + $0xb8] sm:$0xff] (!%p140_p2) }
   0xd   : > { %s1501_s20 = smov (!%p165_p3, %s164_s20), 133  ;;  %958 = vmatprep.subr.bf16.mxu0 %v1049_v3  ;;  %1002 = vmatprep.subr.bf16.mxu1 %v1049_v3  ;;  %v983_v35 = vpack.c.bf16 %v332_v34, %v331_v33  ;;  %v986_v38 = vpack.c.bf16 %v334_v37, %v333_v36  ;;  %v335_v39 = vld [vmem:[%s1497_s1 + $0xc0] sm:$0xff]  ;;  %v336_v40 = vld [vmem:[%s1497_s1 + $0xc8] sm:$0xff]  ;;  %v337_v42 = vld [vmem:[%s1497_s1 + $0xd0] sm:$0xff] }
   0xe   : > { %s951_s27 = sshll.u32 %s1501_s20, 4  ;;  %v989_v41 = vpack.c.bf16 %v336_v40, %v335_v39  ;;  %v338_v43 = vld [vmem:[%s1497_s1 + $0xd8] sm:$0xff]  ;;  %v339_v45 = vld [vmem:[%s1497_s1 + $0xe0] sm:$0xff]  ;;  %v340_v46 = vld [vmem:[%s1497_s1 + $0xe8] sm:$0xff]  ;;  %s947_s10 = sshll.u32 %s1501_s20, 3 }
   0xf   : > { %s1106_s30 = scalar_lea.vmem %s1496_s0, %s951_s27  ;;  %v992_v44 = vpack.c.bf16 %v338_v43, %v337_v42  ;;  %v995_v47 = vpack.c.bf16 %v340_v46, %v339_v45  ;;  %v341_v48 = vld [vmem:[%s1497_s1 + $0xf0] sm:$0xff]  ;;  %v342_v49 = vld [vmem:[%s1497_s1 + $0xf8] sm:$0xff]  ;;  %s1359_s14 = scalar_lea.vmem %s1499_s3, %s947_s10 }
  0x10   : > { %v178_v12 = vld [vmem:[%s1106_s30 + $0x8] sm:$0xff]  ;;  %960 = vmatpush1.bf16.msra.mxu0 %v959_v9  ;;  %1018 = vmatpush1.bf16.msra.mxu1 %v959_v9  ;;  %v998_v50 = vpack.c.bf16 %v342_v49, %v341_v48  ;;  %v177_v51 = vld [vmem:[%s1106_s30] sm:$0xff]  ;;  %v180_v53 = vld [vmem:[%s1106_s30 + $0x18] sm:$0xff] }
  0x11   : > { %v246_v14 = vld [vmem:[%s1106_s30 + $0x228] sm:$0xff]  ;;  %961 = vmatprep.subr.bf16.mxu0 %v1049_v3  ;;  %1003 = vmatprep.subr.bf16.mxu1 %v1049_v3  ;;  %v245_v52 = vld [vmem:[%s1106_s30 + $0x220] sm:$0xff]  ;;  %v248_v54 = vld [vmem:[%s1106_s30 + $0x238] sm:$0xff] }
  0x12   : > { %414 = vmatprep.mubr.f32.mxu0 %v178_v12  ;;  %584 = vmatprep.mubr.f32.mxu1 %v246_v14  ;;  %v179_v55 = vld [vmem:[%s1106_s30 + $0x10] sm:$0xff]  ;;  %v182_v57 = vld [vmem:[%s1106_s30 + $0x28] sm:$0xff]  ;;  %v181_v59 = vld [vmem:[%s1106_s30 + $0x20] sm:$0xff] }
  0x13   : > { %v247_v56 = vld [vmem:[%s1106_s30 + $0x230] sm:$0xff]  ;;  %v250_v58 = vld [vmem:[%s1106_s30 + $0x248] sm:$0xff]  ;;  %v249_v60 = vld [vmem:[%s1106_s30 + $0x240] sm:$0xff] }
  0x14   : > { %963 = vmatpush1.bf16.msra.mxu0 %v962_v13  ;;  %1019 = vmatpush1.bf16.msra.mxu1 %v962_v13  ;;  %v184_v61 = vld [vmem:[%s1106_s30 + $0x38] sm:$0xff]  ;;  %v183_v63 = vld [vmem:[%s1106_s30 + $0x30] sm:$0xff]  ;;  %v186_v1 = vld [vmem:[%s1106_s30 + $0x48] sm:$0xff] }
  0x15   : > { %964 = vmatprep.subr.bf16.mxu0 %v1049_v3  ;;  %1004 = vmatprep.subr.bf16.mxu1 %v1049_v3  ;;  %v252_v62 = vld [vmem:[%s1106_s30 + $0x258] sm:$0xff]  ;;  %v251_v0 = vld [vmem:[%s1106_s30 + $0x250] sm:$0xff]  ;;  %v254_v2 = vld [vmem:[%s1106_s30 + $0x268] sm:$0xff] }
  0x16   : > { %v253_v4 = vld [vmem:[%s1106_s30 + $0x260] sm:$0xff]  ;;  %v188_v5 = vld [vmem:[%s1106_s30 + $0x58] sm:$0xff]  ;;  %v187_v7 = vld [vmem:[%s1106_s30 + $0x50] sm:$0xff] }
  0x17   : > { %v256_v6 = vld [vmem:[%s1106_s30 + $0x278] sm:$0xff]  ;;  %v255_v8 = vld [vmem:[%s1106_s30 + $0x270] sm:$0xff]  ;;  %v190_v9 = vld [vmem:[%s1106_s30 + $0x68] sm:$0xff] }
  0x18   : > { %966 = vmatpush1.bf16.msra.mxu0 %v965_v17  ;;  %1020 = vmatpush1.bf16.msra.mxu1 %v965_v17  ;;  %v258_v10 = vld [vmem:[%s1106_s30 + $0x288] sm:$0xff]  ;;  %v189_v11 = vld [vmem:[%s1106_s30 + $0x60] sm:$0xff]  ;;  %v192_v13 = vld [vmem:[%s1106_s30 + $0x78] sm:$0xff] }
  0x19   : > { %967 = vmatprep.subr.bf16.mxu0 %v1049_v3  ;;  %1005 = vmatprep.subr.bf16.mxu1 %v1049_v3  ;;  %v257_v12 = vld [vmem:[%s1106_s30 + $0x280] sm:$0xff]  ;;  %v260_v14 = vld [vmem:[%s1106_s30 + $0x298] sm:$0xff]  ;;  %v191_v15 = vld [vmem:[%s1106_s30 + $0x70] sm:$0xff] }
  0x1a   : > { %v259_v16 = vld [vmem:[%s1106_s30 + $0x290] sm:$0xff]  ;;  %v194_v17 = vld [vmem:[%s1106_s30 + $0x88] sm:$0xff]  ;;  %v193_v19 = vld [vmem:[%s1106_s30 + $0x80] sm:$0xff] }
  0x1b   : > { %v262_v18 = vld [vmem:[%s1106_s30 + $0x2a8] sm:$0xff]  ;;  %v196_v21 = vld [vmem:[%s1106_s30 + $0x98] sm:$0xff]  ;;  %v263_v24 = vld [vmem:[%s1106_s30 + $0x2b0] sm:$0xff] }
  0x1c   : > { %969 = vmatpush1.bf16.msra.mxu0 %v968_v20  ;;  %1021 = vmatpush1.bf16.msra.mxu1 %v968_v20  ;;  %v261_v20 = vld [vmem:[%s1106_s30 + $0x2a0] sm:$0xff]  ;;  %v264_v22 = vld [vmem:[%s1106_s30 + $0x2b8] sm:$0xff]  ;;  %v198_v25 = vld [vmem:[%s1106_s30 + $0xa8] sm:$0xff] }
  0x1d   : > { %970 = vmatprep.subr.bf16.mxu0 %v1049_v3  ;;  %1006 = vmatprep.subr.bf16.mxu1 %v1049_v3  ;;  %v197_v27 = vld [vmem:[%s1106_s30 + $0xa0] sm:$0xff]  ;;  %v268_v30 = vld [vmem:[%s1106_s30 + $0x2d8] sm:$0xff]  ;;  %v199_v31 = vld [vmem:[%s1106_s30 + $0xb0] sm:$0xff] }
  0x1e   : > { %v265_v28 = vld [vmem:[%s1106_s30 + $0x2c0] sm:$0xff]  ;;  %v202_v33 = vld [vmem:[%s1106_s30 + $0xc8] sm:$0xff]  ;;  %v204_v37 = vld [vmem:[%s1106_s30 + $0xd8] sm:$0xff] }
  0x1f   : > { %v270_v34 = vld [vmem:[%s1106_s30 + $0x2e8] sm:$0xff]  ;;  %v269_v36 = vld [vmem:[%s1106_s30 + $0x2e0] sm:$0xff]  ;;  %v203_v39 = vld [vmem:[%s1106_s30 + $0xd0] sm:$0xff] }
  0x20   : > { %972 = vmatpush1.bf16.msra.mxu0 %v971_v23  ;;  %1022 = vmatpush1.bf16.msra.mxu1 %v971_v23  ;;  %v195_v23 = vld [vmem:[%s1106_s30 + $0x90] sm:$0xff]  ;;  %v274_v42 = vld [vmem:[%s1106_s30 + $0x308] sm:$0xff]  ;;  %v205_v43 = vld [vmem:[%s1106_s30 + $0xe0] sm:$0xff] }
  0x21   : > { %973 = vmatprep.subr.bf16.mxu0 %v1049_v3  ;;  %1007 = vmatprep.subr.bf16.mxu1 %v1049_v3  ;;  %v271_v40 = vld [vmem:[%s1106_s30 + $0x2f0] sm:$0xff]  ;;  %v208_v45 = vld [vmem:[%s1106_s30 + $0xf8] sm:$0xff]  ;;  %v210_v49 = vld [vmem:[%s1106_s30 + $0x108] sm:$0xff] }
  0x22   : > { %v276_v46 = vld [vmem:[%s1106_s30 + $0x318] sm:$0xff]  ;;  %v275_v48 = vld [vmem:[%s1106_s30 + $0x310] sm:$0xff] }
  0x24   : > { %975 = vmatpush1.bf16.msra.mxu0 %v974_v26  ;;  %1023 = vmatpush1.bf16.msra.mxu1 %v974_v26  ;;  %v266_v26 = vld [vmem:[%s1106_s30 + $0x2c8] sm:$0xff] }
  0x25   : > { %976 = vmatprep.subr.bf16.mxu0 %v1049_v3  ;;  %1008 = vmatprep.subr.bf16.mxu1 %v1049_v3 }
  0x28   : > { %978 = vmatpush1.bf16.msra.mxu0 %v977_v29  ;;  %1024 = vmatpush1.bf16.msra.mxu1 %v977_v29  ;;  %v200_v29 = vld [vmem:[%s1106_s30 + $0xb8] sm:$0xff] }
  0x29   : > { %979 = vmatprep.subr.bf16.mxu0 %v1049_v3  ;;  %1009 = vmatprep.subr.bf16.mxu1 %v1049_v3 }
  0x2c   : > { %981 = vmatpush1.bf16.msra.mxu0 %v980_v32  ;;  %1025 = vmatpush1.bf16.msra.mxu1 %v980_v32  ;;  %v267_v32 = vld [vmem:[%s1106_s30 + $0x2d0] sm:$0xff] }
  0x2d   : > { %982 = vmatprep.subr.bf16.mxu0 %v1049_v3  ;;  %1010 = vmatprep.subr.bf16.mxu1 %v1049_v3 }
  0x30   : > { %984 = vmatpush1.bf16.msra.mxu0 %v983_v35  ;;  %1026 = vmatpush1.bf16.msra.mxu1 %v983_v35  ;;  %v201_v35 = vld [vmem:[%s1106_s30 + $0xc0] sm:$0xff] }
  0x31   : > { %985 = vmatprep.subr.bf16.mxu0 %v1049_v3  ;;  %1011 = vmatprep.subr.bf16.mxu1 %v1049_v3 }
  0x34   : > { %987 = vmatpush1.bf16.msra.mxu0 %v986_v38  ;;  %1027 = vmatpush1.bf16.msra.mxu1 %v986_v38  ;;  %v272_v38 = vld [vmem:[%s1106_s30 + $0x2f8] sm:$0xff] }
  0x35   : > { %988 = vmatprep.subr.bf16.mxu0 %v1049_v3  ;;  %1012 = vmatprep.subr.bf16.mxu1 %v1049_v3 }
  0x38   : > { %990 = vmatpush1.bf16.msra.mxu0 %v989_v41  ;;  %1028 = vmatpush1.bf16.msra.mxu1 %v989_v41  ;;  %v206_v41 = vld [vmem:[%s1106_s30 + $0xe8] sm:$0xff] }
  0x39   : > { %991 = vmatprep.subr.bf16.mxu0 %v1049_v3  ;;  %1013 = vmatprep.subr.bf16.mxu1 %v1049_v3 }
  0x3c   : > { %993 = vmatpush1.bf16.msra.mxu0 %v992_v44  ;;  %1029 = vmatpush1.bf16.msra.mxu1 %v992_v44  ;;  %v273_v44 = vld [vmem:[%s1106_s30 + $0x300] sm:$0xff] }
  0x3d   : > { %994 = vmatprep.subr.bf16.mxu0 %v1049_v3  ;;  %1014 = vmatprep.subr.bf16.mxu1 %v1049_v3 }
  0x40   : > { %996 = vmatpush1.bf16.msra.mxu0 %v995_v47  ;;  %1030 = vmatpush1.bf16.msra.mxu1 %v995_v47  ;;  %v207_v47 = vld [vmem:[%s1106_s30 + $0xf0] sm:$0xff] }
  0x41   : > { %997 = vmatprep.subr.bf16.mxu0 %v1049_v3  ;;  %1015 = vmatprep.subr.bf16.mxu1 %v1049_v3  ;;  %v185_v3 = vld [vmem:[%s1106_s30 + $0x40] sm:$0xff] }
  0x44   : > { %999 = vmatpush1.bf16.msra.mxu0 %v998_v50  ;;  %1031 = vmatpush1.bf16.msra.mxu1 %v998_v50  ;;  %v278_v50 = vld [vmem:[%s1106_s30 + $0x328] sm:$0xff] }
  0x47   : > { %415 = vmatmul.mubr.f32.vlgmr.msra.gmra.mrb[0].mxu0 %v177_v51  ;;  %585 = vmatmul.mubr.f32.vlgmr.msra.gmra.mrb[0].mxu1 %v245_v52  ;;  %v209_v51 = vld [vmem:[%s1106_s30 + $0x100] sm:$0xff] }
  0x48   : > { %419 = vmatprep.mubr.f32.mxu0 %v180_v53  ;;  %589 = vmatprep.mubr.f32.mxu1 %v248_v54  ;;  %v277_v52 = vld [vmem:[%s1106_s30 + $0x320] sm:$0xff]  ;;  %v212_v53 = vld [vmem:[%s1106_s30 + $0x118] sm:$0xff] }
  0x49   : > { %v280_v54 = vld [vmem:[%s1106_s30 + $0x338] sm:$0xff] }
  0x4b   : > { %420 = vmatmul.mubr.f32.gmra.mrb[2].mxu0 %v179_v55  ;;  %590 = vmatmul.mubr.f32.gmra.mrb[2].mxu1 %v247_v56  ;;  %v211_v55 = vld [vmem:[%s1106_s30 + $0x110] sm:$0xff] }
  0x4c   : > { %424 = vmatprep.mubr.f32.mxu0 %v182_v57  ;;  %594 = vmatprep.mubr.f32.mxu1 %v250_v58  ;;  %v279_v56 = vld [vmem:[%s1106_s30 + $0x330] sm:$0xff]  ;;  %v214_v57 = vld [vmem:[%s1106_s30 + $0x128] sm:$0xff] }
  0x4d   : > { %v282_v58 = vld [vmem:[%s1106_s30 + $0x348] sm:$0xff] }
  0x4f   : > { %425 = vmatmul.mubr.f32.gmra.mrb[4].mxu0 %v181_v59  ;;  %595 = vmatmul.mubr.f32.gmra.mrb[4].mxu1 %v249_v60  ;;  %v213_v59 = vld [vmem:[%s1106_s30 + $0x120] sm:$0xff] }
  0x50   : > { %429 = vmatprep.mubr.f32.mxu0 %v184_v61  ;;  %599 = vmatprep.mubr.f32.mxu1 %v252_v62  ;;  %v281_v60 = vld [vmem:[%s1106_s30 + $0x340] sm:$0xff]  ;;  %v216_v61 = vld [vmem:[%s1106_s30 + $0x138] sm:$0xff] }
  0x51   : > { %v284_v62 = vld [vmem:[%s1106_s30 + $0x358] sm:$0xff] }
  0x53   : > { %430 = vmatmul.mubr.f32.gmra.mrb[6].mxu0 %v183_v63  ;;  %600 = vmatmul.mubr.f32.gmra.mrb[6].mxu1 %v251_v0  ;;  %v215_v63 = vld [vmem:[%s1106_s30 + $0x130] sm:$0xff] }
  0x54   : > { %434 = vmatprep.mubr.f32.mxu0 %v186_v1  ;;  %604 = vmatprep.mubr.f32.mxu1 %v254_v2  ;;  %v283_v0 = vld [vmem:[%s1106_s30 + $0x350] sm:$0xff]  ;;  %v218_v1 = vld [vmem:[%s1106_s30 + $0x148] sm:$0xff] }
  0x55   : > { %v286_v2 = vld [vmem:[%s1106_s30 + $0x368] sm:$0xff] }
  0x57   : > { %435 = vmatmul.mubr.f32.gmra.mrb[8].mxu0 %v185_v3  ;;  %605 = vmatmul.mubr.f32.gmra.mrb[8].mxu1 %v253_v4  ;;  %v217_v3 = vld [vmem:[%s1106_s30 + $0x140] sm:$0xff] }
  0x58   : > { %439 = vmatprep.mubr.f32.mxu0 %v188_v5  ;;  %609 = vmatprep.mubr.f32.mxu1 %v256_v6  ;;  %v285_v4 = vld [vmem:[%s1106_s30 + $0x360] sm:$0xff]  ;;  %v220_v5 = vld [vmem:[%s1106_s30 + $0x158] sm:$0xff] }
  0x59   : > { %v288_v6 = vld [vmem:[%s1106_s30 + $0x378] sm:$0xff] }
  0x5b   : > { %440 = vmatmul.mubr.f32.gmra.mrb[10].mxu0 %v187_v7  ;;  %610 = vmatmul.mubr.f32.gmra.mrb[10].mxu1 %v255_v8  ;;  %v219_v7 = vld [vmem:[%s1106_s30 + $0x150] sm:$0xff] }
  0x5c   : > { %444 = vmatprep.mubr.f32.mxu0 %v190_v9  ;;  %614 = vmatprep.mubr.f32.mxu1 %v258_v10  ;;  %v287_v8 = vld [vmem:[%s1106_s30 + $0x370] sm:$0xff]  ;;  %v222_v9 = vld [vmem:[%s1106_s30 + $0x168] sm:$0xff] }
  0x5d   : > { %v290_v10 = vld [vmem:[%s1106_s30 + $0x388] sm:$0xff] }
  0x5f   : > { %445 = vmatmul.mubr.f32.gmra.mrb[12].mxu0 %v189_v11  ;;  %615 = vmatmul.mubr.f32.gmra.mrb[12].mxu1 %v257_v12  ;;  %v221_v11 = vld [vmem:[%s1106_s30 + $0x160] sm:$0xff] }
  0x60   : > { %449 = vmatprep.mubr.f32.mxu0 %v192_v13  ;;  %619 = vmatprep.mubr.f32.mxu1 %v260_v14  ;;  %v289_v12 = vld [vmem:[%s1106_s30 + $0x380] sm:$0xff]  ;;  %v224_v13 = vld [vmem:[%s1106_s30 + $0x178] sm:$0xff] }
  0x61   : > { %v292_v14 = vld [vmem:[%s1106_s30 + $0x398] sm:$0xff] }
  0x63   : > { %450 = vmatmul.mubr.f32.gmra.mrb[14].mxu0 %v191_v15  ;;  %620 = vmatmul.mubr.f32.gmra.mrb[14].mxu1 %v259_v16  ;;  %v223_v15 = vld [vmem:[%s1106_s30 + $0x170] sm:$0xff] }
  0x64   : > { %454 = vmatprep.mubr.f32.mxu0 %v194_v17  ;;  %624 = vmatprep.mubr.f32.mxu1 %v262_v18  ;;  %v291_v16 = vld [vmem:[%s1106_s30 + $0x390] sm:$0xff]  ;;  %v226_v17 = vld [vmem:[%s1106_s30 + $0x188] sm:$0xff] }
  0x65   : > { %v294_v18 = vld [vmem:[%s1106_s30 + $0x3a8] sm:$0xff] }
  0x67   : > { %455 = vmatmul.mubr.f32.gmra.mrb[16].mxu0 %v193_v19  ;;  %625 = vmatmul.mubr.f32.gmra.mrb[16].mxu1 %v261_v20  ;;  %v225_v19 = vld [vmem:[%s1106_s30 + $0x180] sm:$0xff] }
  0x68   : > { %459 = vmatprep.mubr.f32.mxu0 %v196_v21  ;;  %629 = vmatprep.mubr.f32.mxu1 %v264_v22  ;;  %v293_v20 = vld [vmem:[%s1106_s30 + $0x3a0] sm:$0xff]  ;;  %v228_v21 = vld [vmem:[%s1106_s30 + $0x198] sm:$0xff] }
  0x69   : > { %v296_v22 = vld [vmem:[%s1106_s30 + $0x3b8] sm:$0xff] }
  0x6b   : > { %460 = vmatmul.mubr.f32.gmra.mrb[18].mxu0 %v195_v23  ;;  %630 = vmatmul.mubr.f32.gmra.mrb[18].mxu1 %v263_v24  ;;  %v227_v23 = vld [vmem:[%s1106_s30 + $0x190] sm:$0xff] }
  0x6c   : > { %464 = vmatprep.mubr.f32.mxu0 %v198_v25  ;;  %634 = vmatprep.mubr.f32.mxu1 %v266_v26  ;;  %v295_v24 = vld [vmem:[%s1106_s30 + $0x3b0] sm:$0xff]  ;;  %v230_v25 = vld [vmem:[%s1106_s30 + $0x1a8] sm:$0xff] }
  0x6d   : > { %v298_v26 = vld [vmem:[%s1106_s30 + $0x3c8] sm:$0xff] }
  0x6f   : > { %465 = vmatmul.mubr.f32.gmra.mrb[20].mxu0 %v197_v27  ;;  %635 = vmatmul.mubr.f32.gmra.mrb[20].mxu1 %v265_v28  ;;  %v229_v27 = vld [vmem:[%s1106_s30 + $0x1a0] sm:$0xff] }
  0x70   : > { %469 = vmatprep.mubr.f32.mxu0 %v200_v29  ;;  %639 = vmatprep.mubr.f32.mxu1 %v268_v30  ;;  %v297_v28 = vld [vmem:[%s1106_s30 + $0x3c0] sm:$0xff]  ;;  %v232_v29 = vld [vmem:[%s1106_s30 + $0x1b8] sm:$0xff] }
  0x71   : > { %v300_v30 = vld [vmem:[%s1106_s30 + $0x3d8] sm:$0xff] }
  0x73   : > { %470 = vmatmul.mubr.f32.gmra.mrb[22].mxu0 %v199_v31  ;;  %640 = vmatmul.mubr.f32.gmra.mrb[22].mxu1 %v267_v32  ;;  %v231_v31 = vld [vmem:[%s1106_s30 + $0x1b0] sm:$0xff] }
  0x74   : > { %474 = vmatprep.mubr.f32.mxu0 %v202_v33  ;;  %644 = vmatprep.mubr.f32.mxu1 %v270_v34  ;;  %v299_v32 = vld [vmem:[%s1106_s30 + $0x3d0] sm:$0xff]  ;;  %v234_v33 = vld [vmem:[%s1106_s30 + $0x1c8] sm:$0xff] }
  0x75   : > { %v302_v34 = vld [vmem:[%s1106_s30 + $0x3e8] sm:$0xff] }
  0x77   : > { %475 = vmatmul.mubr.f32.gmra.mrb[24].mxu0 %v201_v35  ;;  %645 = vmatmul.mubr.f32.gmra.mrb[24].mxu1 %v269_v36  ;;  %v233_v35 = vld [vmem:[%s1106_s30 + $0x1c0] sm:$0xff] }
  0x78   : > { %479 = vmatprep.mubr.f32.mxu0 %v204_v37  ;;  %649 = vmatprep.mubr.f32.mxu1 %v272_v38  ;;  %v301_v36 = vld [vmem:[%s1106_s30 + $0x3e0] sm:$0xff]  ;;  %v236_v37 = vld [vmem:[%s1106_s30 + $0x1d8] sm:$0xff] }
  0x79   : > { %v304_v38 = vld [vmem:[%s1106_s30 + $0x3f8] sm:$0xff] }
  0x7b   : > { %480 = vmatmul.mubr.f32.gmra.mrb[26].mxu0 %v203_v39  ;;  %650 = vmatmul.mubr.f32.gmra.mrb[26].mxu1 %v271_v40  ;;  %v235_v39 = vld [vmem:[%s1106_s30 + $0x1d0] sm:$0xff] }
  0x7c   : > { %484 = vmatprep.mubr.f32.mxu0 %v206_v41  ;;  %654 = vmatprep.mubr.f32.mxu1 %v274_v42  ;;  %v303_v40 = vld [vmem:[%s1106_s30 + $0x3f0] sm:$0xff]  ;;  %v238_v41 = vld [vmem:[%s1106_s30 + $0x1e8] sm:$0xff] }
  0x7d   : > { %v306_v42 = vld [vmem:[%s1106_s30 + $0x408] sm:$0xff] }
  0x7f   : > { %485 = vmatmul.mubr.f32.gmra.mrb[28].mxu0 %v205_v43  ;;  %655 = vmatmul.mubr.f32.gmra.mrb[28].mxu1 %v273_v44  ;;  %v237_v43 = vld [vmem:[%s1106_s30 + $0x1e0] sm:$0xff] }
  0x80   : > { %489 = vmatprep.mubr.f32.mxu0 %v208_v45  ;;  %659 = vmatprep.mubr.f32.mxu1 %v276_v46  ;;  %v305_v44 = vld [vmem:[%s1106_s30 + $0x400] sm:$0xff]  ;;  %v240_v45 = vld [vmem:[%s1106_s30 + $0x1f8] sm:$0xff] }
  0x81   : > { %v308_v46 = vld [vmem:[%s1106_s30 + $0x418] sm:$0xff] }
  0x83   : > { %490 = vmatmul.mubr.f32.gmra.mrb[30].mxu0 %v207_v47  ;;  %660 = vmatmul.mubr.f32.gmra.mrb[30].mxu1 %v275_v48  ;;  %v239_v47 = vld [vmem:[%s1106_s30 + $0x1f0] sm:$0xff] }
  0x84   : > { %494 = vmatprep.mubr.f32.mxu0 %v210_v49  ;;  %664 = vmatprep.mubr.f32.mxu1 %v278_v50  ;;  %v307_v48 = vld [vmem:[%s1106_s30 + $0x410] sm:$0xff]  ;;  %v242_v49 = vld [vmem:[%s1106_s30 + $0x208] sm:$0xff] }
  0x85   : > { %v310_v50 = vld [vmem:[%s1106_s30 + $0x428] sm:$0xff] }
  0x87   : > { %495 = vmatmul.mubr.f32.gmra.mrb[32].mxu0 %v209_v51  ;;  %665 = vmatmul.mubr.f32.gmra.mrb[32].mxu1 %v277_v52  ;;  %v241_v51 = vld [vmem:[%s1106_s30 + $0x200] sm:$0xff] }
  0x88   : > { %499 = vmatprep.mubr.f32.mxu0 %v212_v53  ;;  %669 = vmatprep.mubr.f32.mxu1 %v280_v54  ;;  %v309_v52 = vld [vmem:[%s1106_s30 + $0x420] sm:$0xff]  ;;  %v244_v53 = vld [vmem:[%s1106_s30 + $0x218] sm:$0xff]  ;;  %v243_v54 = vld [vmem:[%s1106_s30 + $0x210] sm:$0xff] }
  0x8b   : > { %500 = vmatmul.mubr.f32.gmra.mrb[34].mxu0 %v211_v55  ;;  %670 = vmatmul.mubr.f32.gmra.mrb[34].mxu1 %v279_v56  ;;  %v1351_v55 = vld [vmem:[%s1498_s2] ss:$0 sm:$0xff] }
  0x8c   : > { %504 = vmatprep.mubr.f32.mxu0 %v214_v57  ;;  %674 = vmatprep.mubr.f32.mxu1 %v282_v58 }
  0x8f   : > { %505 = vmatmul.mubr.f32.gmra.mrb[36].mxu0 %v213_v59  ;;  %675 = vmatmul.mubr.f32.gmra.mrb[36].mxu1 %v281_v60 }
  0x90   : > { %509 = vmatprep.mubr.f32.mxu0 %v216_v61  ;;  %679 = vmatprep.mubr.f32.mxu1 %v284_v62 }
  0x93   : > { %510 = vmatmul.mubr.f32.gmra.mrb[38].mxu0 %v215_v63  ;;  %680 = vmatmul.mubr.f32.gmra.mrb[38].mxu1 %v283_v0 }
  0x94   : > { %514 = vmatprep.mubr.f32.mxu0 %v218_v1  ;;  %684 = vmatprep.mubr.f32.mxu1 %v286_v2 }
  0x97   : > { %515 = vmatmul.mubr.f32.gmra.mrb[40].mxu0 %v217_v3  ;;  %685 = vmatmul.mubr.f32.gmra.mrb[40].mxu1 %v285_v4 }
  0x98   : > { %519 = vmatprep.mubr.f32.mxu0 %v220_v5  ;;  %689 = vmatprep.mubr.f32.mxu1 %v288_v6 }
  0x9b   : > { %520 = vmatmul.mubr.f32.gmra.mrb[42].mxu0 %v219_v7  ;;  %690 = vmatmul.mubr.f32.gmra.mrb[42].mxu1 %v287_v8 }
  0x9c   : > { %524 = vmatprep.mubr.f32.mxu0 %v222_v9  ;;  %694 = vmatprep.mubr.f32.mxu1 %v290_v10 }
  0x9f   : > { %525 = vmatmul.mubr.f32.gmra.mrb[44].mxu0 %v221_v11  ;;  %695 = vmatmul.mubr.f32.gmra.mrb[44].mxu1 %v289_v12 }
  0xa0   : > { %529 = vmatprep.mubr.f32.mxu0 %v224_v13  ;;  %699 = vmatprep.mubr.f32.mxu1 %v292_v14 }
  0xa3   : > { %530 = vmatmul.mubr.f32.gmra.mrb[46].mxu0 %v223_v15  ;;  %700 = vmatmul.mubr.f32.gmra.mrb[46].mxu1 %v291_v16 }
  0xa4   : > { %534 = vmatprep.mubr.f32.mxu0 %v226_v17  ;;  %704 = vmatprep.mubr.f32.mxu1 %v294_v18 }
  0xa7   : > { %535 = vmatmul.mubr.f32.gmra.mrb[48].mxu0 %v225_v19  ;;  %705 = vmatmul.mubr.f32.gmra.mrb[48].mxu1 %v293_v20 }
  0xa8   : > { %539 = vmatprep.mubr.f32.mxu0 %v228_v21  ;;  %709 = vmatprep.mubr.f32.mxu1 %v296_v22 }
  0xab   : > { %540 = vmatmul.mubr.f32.gmra.mrb[50].mxu0 %v227_v23  ;;  %710 = vmatmul.mubr.f32.gmra.mrb[50].mxu1 %v295_v24 }
  0xac   : > { %544 = vmatprep.mubr.f32.mxu0 %v230_v25  ;;  %714 = vmatprep.mubr.f32.mxu1 %v298_v26 }
  0xaf   : > { %545 = vmatmul.mubr.f32.gmra.mrb[52].mxu0 %v229_v27  ;;  %715 = vmatmul.mubr.f32.gmra.mrb[52].mxu1 %v297_v28 }
  0xb0   : > { %549 = vmatprep.mubr.f32.mxu0 %v232_v29  ;;  %719 = vmatprep.mubr.f32.mxu1 %v300_v30 }
  0xb3   : > { %550 = vmatmul.mubr.f32.gmra.mrb[54].mxu0 %v231_v31  ;;  %720 = vmatmul.mubr.f32.gmra.mrb[54].mxu1 %v299_v32 }
  0xb4   : > { %554 = vmatprep.mubr.f32.mxu0 %v234_v33  ;;  %724 = vmatprep.mubr.f32.mxu1 %v302_v34 }
  0xb7   : > { %555 = vmatmul.mubr.f32.gmra.mrb[56].mxu0 %v233_v35  ;;  %725 = vmatmul.mubr.f32.gmra.mrb[56].mxu1 %v301_v36 }
  0xb8   : > { %559 = vmatprep.mubr.f32.mxu0 %v236_v37  ;;  %729 = vmatprep.mubr.f32.mxu1 %v304_v38 }
  0xbb   : > { %560 = vmatmul.mubr.f32.gmra.mrb[58].mxu0 %v235_v39  ;;  %730 = vmatmul.mubr.f32.gmra.mrb[58].mxu1 %v303_v40 }
  0xbc   : > { %564 = vmatprep.mubr.f32.mxu0 %v238_v41  ;;  %734 = vmatprep.mubr.f32.mxu1 %v306_v42 }
  0xbf   : > { %565 = vmatmul.mubr.f32.gmra.mrb[60].mxu0 %v237_v43  ;;  %735 = vmatmul.mubr.f32.gmra.mrb[60].mxu1 %v305_v44 }
  0xc0   : > { %569 = vmatprep.mubr.f32.mxu0 %v240_v45  ;;  %739 = vmatprep.mubr.f32.mxu1 %v308_v46 }
  0xc3   : > { %570 = vmatmul.mubr.f32.gmra.mrb[62].mxu0 %v239_v47  ;;  %740 = vmatmul.mubr.f32.gmra.mrb[62].mxu1 %v307_v48 }
  0xc4   : > { %574 = vmatprep.mubr.f32.mxu0 %v242_v49  ;;  %744 = vmatprep.mubr.f32.mxu1 %v310_v50 }
  0xc7   : > { %575 = vmatmul.mubr.f32.gmra.mrb[64].mxu0 %v241_v51  ;;  %745 = vmatmul.mubr.f32.gmra.mrb[64].mxu1 %v309_v52 }
  0xc8   : > { %579 = vmatprep.mubr.f32.mxu0 %v244_v53 }
  0xcb   : > { %580 = vmatmul.mubr.f32.gmra.mrb[66].mxu0 %v243_v54 }
 0x11a   : > { %v416_v56 = vpop.f32.mrb[0].mxu0  ;;  %v586_v57 = vpop.f32.mrb[0].mxu1 }
 0x11b   : > { %v417_v58 = vadd.f32 %v1351_v55, %v416_v56  ;;  %v418_v59 = vpop.f32.mrb[1].mxu0  ;;  %v587_v60 = vadd.f32 %v1351_v55, %v586_v57  ;;  %v588_v61 = vpop.f32.mrb[1].mxu1 }
 0x11d   : > { %v750_v62 = vmax.f32 %v417_v58, 0.0  ;;  %v784_v63 = vmax.f32 %v587_v60, 0.0 }
 0x11e   : > { %v421_v0 = vpop.f32.mrb[2].mxu0  ;;  %v591_v1 = vpop.f32.mrb[2].mxu1 }
 0x11f   : > { %817 = vst [vmem:[%s1359_s14] sm:$0xff] %v750_v62  ;;  %851 = vst [vmem:[%s1359_s14 + $0x110] sm:$0xff] %v784_v63  ;;  %v422_v2 = vadd.f32 %v1351_v55, %v421_v0  ;;  %v423_v3 = vpop.f32.mrb[3].mxu0  ;;  %v592_v4 = vadd.f32 %v1351_v55, %v591_v1  ;;  %v593_v5 = vpop.f32.mrb[3].mxu1 }
 0x121   : > { %v751_v6 = vmax.f32 %v422_v2, 0.0  ;;  %v785_v7 = vmax.f32 %v592_v4, 0.0 }
 0x122   : > { %v426_v8 = vpop.f32.mrb[4].mxu0  ;;  %v596_v9 = vpop.f32.mrb[4].mxu1 }
 0x123   : > { %818 = vst [vmem:[%s1359_s14 + $0x8] sm:$0xff] %v751_v6  ;;  %852 = vst [vmem:[%s1359_s14 + $0x118] sm:$0xff] %v785_v7  ;;  %v427_v10 = vadd.f32 %v1351_v55, %v426_v8  ;;  %v428_v11 = vpop.f32.mrb[5].mxu0  ;;  %v597_v12 = vadd.f32 %v1351_v55, %v596_v9  ;;  %v598_v13 = vpop.f32.mrb[5].mxu1 }
 0x125   : > { %v752_v14 = vmax.f32 %v427_v10, 0.0  ;;  %v786_v15 = vmax.f32 %v597_v12, 0.0 }
 0x126   : > { %v431_v16 = vpop.f32.mrb[6].mxu0  ;;  %v601_v17 = vpop.f32.mrb[6].mxu1 }
 0x127   : > { %819 = vst [vmem:[%s1359_s14 + $0x10] sm:$0xff] %v752_v14  ;;  %853 = vst [vmem:[%s1359_s14 + $0x120] sm:$0xff] %v786_v15  ;;  %v432_v18 = vadd.f32 %v1351_v55, %v431_v16  ;;  %v433_v19 = vpop.f32.mrb[7].mxu0  ;;  %v602_v20 = vadd.f32 %v1351_v55, %v601_v17  ;;  %v603_v21 = vpop.f32.mrb[7].mxu1 }
 0x129   : > { %v753_v22 = vmax.f32 %v432_v18, 0.0  ;;  %v787_v23 = vmax.f32 %v602_v20, 0.0 }
 0x12a   : > { %v436_v24 = vpop.f32.mrb[8].mxu0  ;;  %v606_v25 = vpop.f32.mrb[8].mxu1 }
 0x12b   : > { %820 = vst [vmem:[%s1359_s14 + $0x18] sm:$0xff] %v753_v22  ;;  %854 = vst [vmem:[%s1359_s14 + $0x128] sm:$0xff] %v787_v23  ;;  %v437_v26 = vadd.f32 %v1351_v55, %v436_v24  ;;  %v438_v27 = vpop.f32.mrb[9].mxu0  ;;  %v607_v28 = vadd.f32 %v1351_v55, %v606_v25  ;;  %v608_v29 = vpop.f32.mrb[9].mxu1 }
 0x12d   : > { %v754_v30 = vmax.f32 %v437_v26, 0.0  ;;  %v788_v31 = vmax.f32 %v607_v28, 0.0 }
 0x12e   : > { %v441_v32 = vpop.f32.mrb[10].mxu0  ;;  %v611_v33 = vpop.f32.mrb[10].mxu1 }
 0x12f   : > { %821 = vst [vmem:[%s1359_s14 + $0x20] sm:$0xff] %v754_v30  ;;  %855 = vst [vmem:[%s1359_s14 + $0x130] sm:$0xff] %v788_v31  ;;  %v442_v34 = vadd.f32 %v1351_v55, %v441_v32  ;;  %v443_v35 = vpop.f32.mrb[11].mxu0  ;;  %v612_v36 = vadd.f32 %v1351_v55, %v611_v33  ;;  %v613_v37 = vpop.f32.mrb[11].mxu1 }
 0x131   : > { %v755_v38 = vmax.f32 %v442_v34, 0.0  ;;  %v789_v39 = vmax.f32 %v612_v36, 0.0 }
 0x132   : > { %v446_v40 = vpop.f32.mrb[12].mxu0  ;;  %v616_v41 = vpop.f32.mrb[12].mxu1 }
 0x133   : > { %822 = vst [vmem:[%s1359_s14 + $0x28] sm:$0xff] %v755_v38  ;;  %856 = vst [vmem:[%s1359_s14 + $0x138] sm:$0xff] %v789_v39  ;;  %v447_v42 = vadd.f32 %v1351_v55, %v446_v40  ;;  %v448_v43 = vpop.f32.mrb[13].mxu0  ;;  %v617_v44 = vadd.f32 %v1351_v55, %v616_v41  ;;  %v618_v45 = vpop.f32.mrb[13].mxu1 }
 0x135   : > { %v756_v46 = vmax.f32 %v447_v42, 0.0  ;;  %v790_v47 = vmax.f32 %v617_v44, 0.0 }
 0x136   : > { %v451_v48 = vpop.f32.mrb[14].mxu0  ;;  %v621_v49 = vpop.f32.mrb[14].mxu1 }
 0x137   : > { %823 = vst [vmem:[%s1359_s14 + $0x30] sm:$0xff] %v756_v46  ;;  %857 = vst [vmem:[%s1359_s14 + $0x140] sm:$0xff] %v790_v47  ;;  %v452_v50 = vadd.f32 %v1351_v55, %v451_v48  ;;  %v453_v51 = vpop.f32.mrb[15].mxu0  ;;  %v622_v52 = vadd.f32 %v1351_v55, %v621_v49  ;;  %v623_v53 = vpop.f32.mrb[15].mxu1 }
 0x139   : > { %v757_v54 = vmax.f32 %v452_v50, 0.0  ;;  %v791_v56 = vmax.f32 %v622_v52, 0.0 }
 0x13a   : > { %v456_v57 = vpop.f32.mrb[16].mxu0  ;;  %v626_v58 = vpop.f32.mrb[16].mxu1 }
 0x13b   : > { %824 = vst [vmem:[%s1359_s14 + $0x38] sm:$0xff] %v757_v54  ;;  %858 = vst [vmem:[%s1359_s14 + $0x148] sm:$0xff] %v791_v56  ;;  %v457_v59 = vadd.f32 %v1351_v55, %v456_v57  ;;  %v458_v60 = vpop.f32.mrb[17].mxu0  ;;  %v627_v61 = vadd.f32 %v1351_v55, %v626_v58  ;;  %v628_v62 = vpop.f32.mrb[17].mxu1 }
 0x13d   : > { %v758_v63 = vmax.f32 %v457_v59, 0.0  ;;  %v792_v0 = vmax.f32 %v627_v61, 0.0 }
 0x13e   : > { %v461_v1 = vpop.f32.mrb[18].mxu0  ;;  %v631_v2 = vpop.f32.mrb[18].mxu1 }
 0x13f   : > { %825 = vst [vmem:[%s1359_s14 + $0x40] sm:$0xff] %v758_v63  ;;  %859 = vst [vmem:[%s1359_s14 + $0x150] sm:$0xff] %v792_v0  ;;  %v462_v3 = vadd.f32 %v1351_v55, %v461_v1  ;;  %v463_v4 = vpop.f32.mrb[19].mxu0  ;;  %v632_v5 = vadd.f32 %v1351_v55, %v631_v2  ;;  %v633_v6 = vpop.f32.mrb[19].mxu1 }
 0x141   : > { %v759_v7 = vmax.f32 %v462_v3, 0.0  ;;  %v793_v8 = vmax.f32 %v632_v5, 0.0 }
 0x142   : > { %v466_v9 = vpop.f32.mrb[20].mxu0  ;;  %v636_v10 = vpop.f32.mrb[20].mxu1 }
 0x143   : > { %826 = vst [vmem:[%s1359_s14 + $0x48] sm:$0xff] %v759_v7  ;;  %860 = vst [vmem:[%s1359_s14 + $0x158] sm:$0xff] %v793_v8  ;;  %v467_v11 = vadd.f32 %v1351_v55, %v466_v9  ;;  %v468_v12 = vpop.f32.mrb[21].mxu0  ;;  %v637_v13 = vadd.f32 %v1351_v55, %v636_v10  ;;  %v638_v14 = vpop.f32.mrb[21].mxu1 }
 0x145   : > { %v760_v15 = vmax.f32 %v467_v11, 0.0  ;;  %v794_v16 = vmax.f32 %v637_v13, 0.0 }
 0x146   : > { %v471_v17 = vpop.f32.mrb[22].mxu0  ;;  %v641_v18 = vpop.f32.mrb[22].mxu1 }
 0x147   : > { %827 = vst [vmem:[%s1359_s14 + $0x50] sm:$0xff] %v760_v15  ;;  %861 = vst [vmem:[%s1359_s14 + $0x160] sm:$0xff] %v794_v16  ;;  %v472_v19 = vadd.f32 %v1351_v55, %v471_v17  ;;  %v473_v20 = vpop.f32.mrb[23].mxu0  ;;  %v642_v21 = vadd.f32 %v1351_v55, %v641_v18  ;;  %v643_v22 = vpop.f32.mrb[23].mxu1 }
 0x149   : > { %v761_v23 = vmax.f32 %v472_v19, 0.0  ;;  %v795_v24 = vmax.f32 %v642_v21, 0.0 }
 0x14a   : > { %v476_v25 = vpop.f32.mrb[24].mxu0  ;;  %v646_v26 = vpop.f32.mrb[24].mxu1 }
 0x14b   : > { %828 = vst [vmem:[%s1359_s14 + $0x58] sm:$0xff] %v761_v23  ;;  %862 = vst [vmem:[%s1359_s14 + $0x168] sm:$0xff] %v795_v24  ;;  %v477_v27 = vadd.f32 %v1351_v55, %v476_v25  ;;  %v478_v28 = vpop.f32.mrb[25].mxu0  ;;  %v647_v29 = vadd.f32 %v1351_v55, %v646_v26  ;;  %v648_v30 = vpop.f32.mrb[25].mxu1 }
 0x14d   : > { %v762_v31 = vmax.f32 %v477_v27, 0.0  ;;  %v796_v32 = vmax.f32 %v647_v29, 0.0 }
 0x14e   : > { %v481_v33 = vpop.f32.mrb[26].mxu0  ;;  %v651_v34 = vpop.f32.mrb[26].mxu1 }
 0x14f   : > { %829 = vst [vmem:[%s1359_s14 + $0x60] sm:$0xff] %v762_v31  ;;  %863 = vst [vmem:[%s1359_s14 + $0x170] sm:$0xff] %v796_v32  ;;  %v482_v35 = vadd.f32 %v1351_v55, %v481_v33  ;;  %v483_v36 = vpop.f32.mrb[27].mxu0  ;;  %v652_v37 = vadd.f32 %v1351_v55, %v651_v34  ;;  %v653_v38 = vpop.f32.mrb[27].mxu1 }
 0x151   : > { %v763_v39 = vmax.f32 %v482_v35, 0.0  ;;  %v797_v40 = vmax.f32 %v652_v37, 0.0 }
 0x152   : > { %v486_v41 = vpop.f32.mrb[28].mxu0  ;;  %v656_v42 = vpop.f32.mrb[28].mxu1 }
 0x153   : > { %830 = vst [vmem:[%s1359_s14 + $0x68] sm:$0xff] %v763_v39  ;;  %864 = vst [vmem:[%s1359_s14 + $0x178] sm:$0xff] %v797_v40  ;;  %v487_v43 = vadd.f32 %v1351_v55, %v486_v41  ;;  %v488_v44 = vpop.f32.mrb[29].mxu0  ;;  %v657_v45 = vadd.f32 %v1351_v55, %v656_v42  ;;  %v658_v46 = vpop.f32.mrb[29].mxu1 }
 0x155   : > { %v764_v47 = vmax.f32 %v487_v43, 0.0  ;;  %v798_v48 = vmax.f32 %v657_v45, 0.0 }
 0x156   : > { %v491_v49 = vpop.f32.mrb[30].mxu0  ;;  %v661_v50 = vpop.f32.mrb[30].mxu1 }
 0x157   : > { %831 = vst [vmem:[%s1359_s14 + $0x70] sm:$0xff] %v764_v47  ;;  %865 = vst [vmem:[%s1359_s14 + $0x180] sm:$0xff] %v798_v48  ;;  %v492_v51 = vadd.f32 %v1351_v55, %v491_v49  ;;  %v493_v52 = vpop.f32.mrb[31].mxu0  ;;  %v662_v53 = vadd.f32 %v1351_v55, %v661_v50  ;;  %v663_v54 = vpop.f32.mrb[31].mxu1 }
 0x159   : > { %v765_v56 = vmax.f32 %v492_v51, 0.0  ;;  %v799_v57 = vmax.f32 %v662_v53, 0.0 }
 0x15a   : > { %v496_v58 = vpop.f32.mrb[32].mxu0  ;;  %v666_v59 = vpop.f32.mrb[32].mxu1 }
 0x15b   : > { %832 = vst [vmem:[%s1359_s14 + $0x78] sm:$0xff] %v765_v56  ;;  %866 = vst [vmem:[%s1359_s14 + $0x188] sm:$0xff] %v799_v57  ;;  %v497_v60 = vadd.f32 %v1351_v55, %v496_v58  ;;  %v498_v61 = vpop.f32.mrb[33].mxu0  ;;  %v667_v62 = vadd.f32 %v1351_v55, %v666_v59  ;;  %v668_v63 = vpop.f32.mrb[33].mxu1 }
 0x15d   : > { %v766_v0 = vmax.f32 %v497_v60, 0.0  ;;  %v800_v1 = vmax.f32 %v667_v62, 0.0 }
 0x15e   : > { %v501_v2 = vpop.f32.mrb[34].mxu0  ;;  %v671_v3 = vpop.f32.mrb[34].mxu1 }
 0x15f   : > { %833 = vst [vmem:[%s1359_s14 + $0x80] sm:$0xff] %v766_v0  ;;  %867 = vst [vmem:[%s1359_s14 + $0x190] sm:$0xff] %v800_v1  ;;  %v502_v4 = vadd.f32 %v1351_v55, %v501_v2  ;;  %v503_v5 = vpop.f32.mrb[35].mxu0  ;;  %v672_v6 = vadd.f32 %v1351_v55, %v671_v3  ;;  %v673_v7 = vpop.f32.mrb[35].mxu1 }
 0x161   : > { %v767_v8 = vmax.f32 %v502_v4, 0.0  ;;  %v801_v9 = vmax.f32 %v672_v6, 0.0 }
 0x162   : > { %v506_v10 = vpop.f32.mrb[36].mxu0  ;;  %v676_v11 = vpop.f32.mrb[36].mxu1 }
 0x163   : > { %834 = vst [vmem:[%s1359_s14 + $0x88] sm:$0xff] %v767_v8  ;;  %868 = vst [vmem:[%s1359_s14 + $0x198] sm:$0xff] %v801_v9  ;;  %v507_v12 = vadd.f32 %v1351_v55, %v506_v10  ;;  %v508_v13 = vpop.f32.mrb[37].mxu0  ;;  %v677_v14 = vadd.f32 %v1351_v55, %v676_v11  ;;  %v678_v15 = vpop.f32.mrb[37].mxu1 }
 0x165   : > { %v768_v16 = vmax.f32 %v507_v12, 0.0  ;;  %v802_v17 = vmax.f32 %v677_v14, 0.0 }
 0x166   : > { %v511_v18 = vpop.f32.mrb[38].mxu0  ;;  %v681_v19 = vpop.f32.mrb[38].mxu1 }
 0x167   : > { %835 = vst [vmem:[%s1359_s14 + $0x90] sm:$0xff] %v768_v16  ;;  %869 = vst [vmem:[%s1359_s14 + $0x1a0] sm:$0xff] %v802_v17  ;;  %v512_v20 = vadd.f32 %v1351_v55, %v511_v18  ;;  %v513_v21 = vpop.f32.mrb[39].mxu0  ;;  %v682_v22 = vadd.f32 %v1351_v55, %v681_v19  ;;  %v683_v23 = vpop.f32.mrb[39].mxu1 }
 0x169   : > { %v769_v24 = vmax.f32 %v512_v20, 0.0  ;;  %v803_v25 = vmax.f32 %v682_v22, 0.0 }
 0x16a   : > { %v516_v26 = vpop.f32.mrb[40].mxu0  ;;  %v686_v27 = vpop.f32.mrb[40].mxu1 }
 0x16b   : > { %836 = vst [vmem:[%s1359_s14 + $0x98] sm:$0xff] %v769_v24  ;;  %870 = vst [vmem:[%s1359_s14 + $0x1a8] sm:$0xff] %v803_v25  ;;  %v517_v28 = vadd.f32 %v1351_v55, %v516_v26  ;;  %v518_v29 = vpop.f32.mrb[41].mxu0  ;;  %v687_v30 = vadd.f32 %v1351_v55, %v686_v27  ;;  %v688_v31 = vpop.f32.mrb[41].mxu1 }
 0x16d   : > { %v770_v32 = vmax.f32 %v517_v28, 0.0  ;;  %v804_v33 = vmax.f32 %v687_v30, 0.0 }
 0x16e   : > { %v521_v34 = vpop.f32.mrb[42].mxu0  ;;  %v691_v35 = vpop.f32.mrb[42].mxu1 }
 0x16f   : > { %837 = vst [vmem:[%s1359_s14 + $0xa0] sm:$0xff] %v770_v32  ;;  %871 = vst [vmem:[%s1359_s14 + $0x1b0] sm:$0xff] %v804_v33  ;;  %v522_v36 = vadd.f32 %v1351_v55, %v521_v34  ;;  %v523_v37 = vpop.f32.mrb[43].mxu0  ;;  %v692_v38 = vadd.f32 %v1351_v55, %v691_v35  ;;  %v693_v39 = vpop.f32.mrb[43].mxu1 }
 0x171   : > { %v771_v40 = vmax.f32 %v522_v36, 0.0  ;;  %v805_v41 = vmax.f32 %v692_v38, 0.0 }
 0x172   : > { %v526_v42 = vpop.f32.mrb[44].mxu0  ;;  %v696_v43 = vpop.f32.mrb[44].mxu1 }
 0x173   : > { %838 = vst [vmem:[%s1359_s14 + $0xa8] sm:$0xff] %v771_v40  ;;  %872 = vst [vmem:[%s1359_s14 + $0x1b8] sm:$0xff] %v805_v41  ;;  %v527_v44 = vadd.f32 %v1351_v55, %v526_v42  ;;  %v528_v45 = vpop.f32.mrb[45].mxu0  ;;  %v697_v46 = vadd.f32 %v1351_v55, %v696_v43  ;;  %v698_v47 = vpop.f32.mrb[45].mxu1 }
 0x175   : > { %v772_v48 = vmax.f32 %v527_v44, 0.0  ;;  %v806_v49 = vmax.f32 %v697_v46, 0.0 }
 0x176   : > { %v531_v50 = vpop.f32.mrb[46].mxu0  ;;  %v701_v51 = vpop.f32.mrb[46].mxu1 }
 0x177   : > { %839 = vst [vmem:[%s1359_s14 + $0xb0] sm:$0xff] %v772_v48  ;;  %873 = vst [vmem:[%s1359_s14 + $0x1c0] sm:$0xff] %v806_v49  ;;  %v532_v52 = vadd.f32 %v1351_v55, %v531_v50  ;;  %v533_v53 = vpop.f32.mrb[47].mxu0  ;;  %v702_v54 = vadd.f32 %v1351_v55, %v701_v51  ;;  %v703_v56 = vpop.f32.mrb[47].mxu1 }
 0x179   : > { %v773_v57 = vmax.f32 %v532_v52, 0.0  ;;  %v807_v58 = vmax.f32 %v702_v54, 0.0 }
 0x17a   : > { %v536_v59 = vpop.f32.mrb[48].mxu0  ;;  %v706_v60 = vpop.f32.mrb[48].mxu1 }
 0x17b   : > { %840 = vst [vmem:[%s1359_s14 + $0xb8] sm:$0xff] %v773_v57  ;;  %874 = vst [vmem:[%s1359_s14 + $0x1c8] sm:$0xff] %v807_v58  ;;  %v537_v61 = vadd.f32 %v1351_v55, %v536_v59  ;;  %v538_v62 = vpop.f32.mrb[49].mxu0  ;;  %v707_v63 = vadd.f32 %v1351_v55, %v706_v60  ;;  %v708_v0 = vpop.f32.mrb[49].mxu1 }
 0x17d   : > { %v774_v1 = vmax.f32 %v537_v61, 0.0  ;;  %v808_v2 = vmax.f32 %v707_v63, 0.0 }
 0x17e   : > { %v541_v3 = vpop.f32.mrb[50].mxu0  ;;  %v711_v4 = vpop.f32.mrb[50].mxu1 }
 0x17f   : > { %841 = vst [vmem:[%s1359_s14 + $0xc0] sm:$0xff] %v774_v1  ;;  %875 = vst [vmem:[%s1359_s14 + $0x1d0] sm:$0xff] %v808_v2  ;;  %v542_v5 = vadd.f32 %v1351_v55, %v541_v3  ;;  %v543_v6 = vpop.f32.mrb[51].mxu0  ;;  %v712_v7 = vadd.f32 %v1351_v55, %v711_v4  ;;  %v713_v8 = vpop.f32.mrb[51].mxu1 }
 0x181   : > { %v775_v9 = vmax.f32 %v542_v5, 0.0  ;;  %v809_v10 = vmax.f32 %v712_v7, 0.0 }
 0x182   : > { %v546_v11 = vpop.f32.mrb[52].mxu0  ;;  %v716_v12 = vpop.f32.mrb[52].mxu1 }
 0x183   : > { %842 = vst [vmem:[%s1359_s14 + $0xc8] sm:$0xff] %v775_v9  ;;  %876 = vst [vmem:[%s1359_s14 + $0x1d8] sm:$0xff] %v809_v10  ;;  %v547_v13 = vadd.f32 %v1351_v55, %v546_v11  ;;  %v548_v14 = vpop.f32.mrb[53].mxu0  ;;  %v717_v15 = vadd.f32 %v1351_v55, %v716_v12  ;;  %v718_v16 = vpop.f32.mrb[53].mxu1 }
 0x185   : > { %v776_v17 = vmax.f32 %v547_v13, 0.0  ;;  %v810_v18 = vmax.f32 %v717_v15, 0.0 }
 0x186   : > { %v551_v19 = vpop.f32.mrb[54].mxu0  ;;  %v721_v20 = vpop.f32.mrb[54].mxu1 }
 0x187   : > { %843 = vst [vmem:[%s1359_s14 + $0xd0] sm:$0xff] %v776_v17  ;;  %877 = vst [vmem:[%s1359_s14 + $0x1e0] sm:$0xff] %v810_v18  ;;  %v552_v21 = vadd.f32 %v1351_v55, %v551_v19  ;;  %v553_v22 = vpop.f32.mrb[55].mxu0  ;;  %v722_v23 = vadd.f32 %v1351_v55, %v721_v20  ;;  %v723_v24 = vpop.f32.mrb[55].mxu1 }
 0x189   : > { %v777_v25 = vmax.f32 %v552_v21, 0.0  ;;  %v811_v26 = vmax.f32 %v722_v23, 0.0 }
 0x18a   : > { %v556_v27 = vpop.f32.mrb[56].mxu0  ;;  %v726_v28 = vpop.f32.mrb[56].mxu1 }
 0x18b   : > { %844 = vst [vmem:[%s1359_s14 + $0xd8] sm:$0xff] %v777_v25  ;;  %878 = vst [vmem:[%s1359_s14 + $0x1e8] sm:$0xff] %v811_v26  ;;  %v557_v29 = vadd.f32 %v1351_v55, %v556_v27  ;;  %v558_v30 = vpop.f32.mrb[57].mxu0  ;;  %v727_v31 = vadd.f32 %v1351_v55, %v726_v28  ;;  %v728_v32 = vpop.f32.mrb[57].mxu1 }
 0x18d   : > { %v778_v33 = vmax.f32 %v557_v29, 0.0  ;;  %v812_v34 = vmax.f32 %v727_v31, 0.0 }
 0x18e   : > { %v561_v35 = vpop.f32.mrb[58].mxu0  ;;  %v731_v36 = vpop.f32.mrb[58].mxu1 }
 0x18f   : > { %845 = vst [vmem:[%s1359_s14 + $0xe0] sm:$0xff] %v778_v33  ;;  %879 = vst [vmem:[%s1359_s14 + $0x1f0] sm:$0xff] %v812_v34  ;;  %v562_v37 = vadd.f32 %v1351_v55, %v561_v35  ;;  %v563_v38 = vpop.f32.mrb[59].mxu0  ;;  %v732_v39 = vadd.f32 %v1351_v55, %v731_v36  ;;  %v733_v40 = vpop.f32.mrb[59].mxu1 }
 0x191   : > { %v779_v41 = vmax.f32 %v562_v37, 0.0  ;;  %v813_v42 = vmax.f32 %v732_v39, 0.0 }
 0x192   : > { %v566_v43 = vpop.f32.mrb[60].mxu0  ;;  %v736_v44 = vpop.f32.mrb[60].mxu1 }
 0x193   : > { %846 = vst [vmem:[%s1359_s14 + $0xe8] sm:$0xff] %v779_v41  ;;  %880 = vst [vmem:[%s1359_s14 + $0x1f8] sm:$0xff] %v813_v42  ;;  %v567_v45 = vadd.f32 %v1351_v55, %v566_v43  ;;  %v568_v46 = vpop.f32.mrb[61].mxu0  ;;  %v737_v47 = vadd.f32 %v1351_v55, %v736_v44  ;;  %v738_v48 = vpop.f32.mrb[61].mxu1 }
 0x195   : > { %v780_v49 = vmax.f32 %v567_v45, 0.0  ;;  %v814_v50 = vmax.f32 %v737_v47, 0.0 }
 0x196   : > { %v571_v51 = vpop.f32.mrb[62].mxu0  ;;  %v741_v52 = vpop.f32.mrb[62].mxu1 }
 0x197   : > { %847 = vst [vmem:[%s1359_s14 + $0xf0] sm:$0xff] %v780_v49  ;;  %881 = vst [vmem:[%s1359_s14 + $0x200] sm:$0xff] %v814_v50  ;;  %v572_v53 = vadd.f32 %v1351_v55, %v571_v51  ;;  %v573_v54 = vpop.f32.mrb[63].mxu0  ;;  %v742_v56 = vadd.f32 %v1351_v55, %v741_v52  ;;  %v743_v57 = vpop.f32.mrb[63].mxu1 }
 0x199   : > { %v781_v58 = vmax.f32 %v572_v53, 0.0  ;;  %v815_v59 = vmax.f32 %v742_v56, 0.0 }
 0x19a   : > { %v576_v60 = vpop.f32.mrb[64].mxu0  ;;  %v746_v61 = vpop.f32.mrb[64].mxu1 }
 0x19b   : > { %848 = vst [vmem:[%s1359_s14 + $0xf8] sm:$0xff] %v781_v58  ;;  %882 = vst [vmem:[%s1359_s14 + $0x208] sm:$0xff] %v815_v59  ;;  %v577_v62 = vadd.f32 %v1351_v55, %v576_v60  ;;  %v578_v63 = vpop.f32.mrb[65].mxu0  ;;  %v747_v0 = vadd.f32 %v1351_v55, %v746_v61  ;;  %v748_v1 = vpop.f32.mrb[65].mxu1 }
 0x19d   : > { %v782_v2 = vmax.f32 %v577_v62, 0.0  ;;  %v816_v3 = vmax.f32 %v747_v0, 0.0 }
 0x19e   : > { %v581_v4 = vpop.f32.mrb[66].mxu0 }
 0x19f   : > { %849 = vst [vmem:[%s1359_s14 + $0x100] sm:$0xff] %v782_v2  ;;  %883 = vst [vmem:[%s1359_s14 + $0x210] sm:$0xff] %v816_v3  ;;  %v582_v5 = vadd.f32 %v1351_v55, %v581_v4  ;;  %v583_v6 = vpop.f32.mrb[67].mxu0 }
 0x1a1   : > { %v783_v7 = vmax.f32 %v582_v5, 0.0 }
 0x1a3   : > { %850 = vst [vmem:[%s1359_s14 + $0x108] sm:$0xff] %v783_v7 }
 0x1a4 PF: > { %s13_s12 = sadd.s32 1, %s1047_s12  }
 0x1a5   : > { %p10_p4 = scmp.ge.s32.totalorder %s13_s12, 4  }
 0x1a7   :  { %12 = sbr.rel (!%p10_p4) target bundleno = 1 (0x1), region = 62 }

// kernel: autoencoder_forward.10
= control target key start
LH: loop header
LB: loop body
LE: loop exit
PB: predicated region body
PF: predicated region fallthrough
CT: control target
= control target key end

     0   :  { %s610_s1 = inlined_call_operand.vmem [shape: f32[256,128], index: 1, kind: input, shape index: {}]   ;;  %s611_s0 = inlined_call_operand.vmem [shape: f32[104,256], index: 0, kind: input, shape index: {}]   ;;  %s612_s2 = inlined_call_operand.vmem [shape: f32[1,128], index: 2, kind: input, shape index: {}]   ;;  %s613_s3 = inlined_call_operand.vmem [shape: f32[104,128], index: 3, kind: output, shape index: {}]  }
   0x1   :  { %v56_v0 = vld [vmem:[%s610_s1 + $0x80] sm:$0xff]  ;;  %v57_v1 = vld [vmem:[%s610_s1 + $0x88] sm:$0xff]  ;;  %v58_v5 = vld [vmem:[%s610_s1 + $0x90] sm:$0xff] }
   0x2   :  { %v40_v2 = vld [vmem:[%s610_s1] sm:$0xff]  ;;  %v311_v3 = vpack.c.bf16 %v57_v1, %v56_v0  ;;  %v41_v4 = vld [vmem:[%s610_s1 + $0x8] sm:$0xff]  ;;  %v59_v6 = vld [vmem:[%s610_s1 + $0x98] sm:$0xff] }
   0x3   :  { %v313_v7 = vpack.c.bf16 %v41_v4, %v40_v2  ;;  %v315_v8 = vpack.c.bf16 %v59_v6, %v58_v5  ;;  %v42_v9 = vld [vmem:[%s610_s1 + $0x10] sm:$0xff]  ;;  %v43_v10 = vld [vmem:[%s610_s1 + $0x18] sm:$0xff]  ;;  %v60_v11 = vld [vmem:[%s610_s1 + $0xa0] sm:$0xff] }
   0x4   :  { %312 = vmatprep.subr.bf16.mxu0 %v311_v3  ;;  %343 = vmatprep.subr.bf16.mxu1 %v311_v3  ;;  %v61_v12 = vld [vmem:[%s610_s1 + $0xa8] sm:$0xff]  ;;  %v317_v13 = vpack.c.bf16 %v43_v10, %v42_v9  ;;  %v44_v15 = vld [vmem:[%s610_s1 + $0x20] sm:$0xff]  ;;  %v62_v17 = vld [vmem:[%s610_s1 + $0xb0] sm:$0xff] }
   0x5   :  { %314 = vmatpush3.bf16.msra.mxu0 %v313_v7  ;;  %351 = vmatpush3.bf16.msra.mxu1 %v313_v7  ;;  %v319_v14 = vpack.c.bf16 %v61_v12, %v60_v11  ;;  %v45_v16 = vld [vmem:[%s610_s1 + $0x28] sm:$0xff]  ;;  %v63_v18 = vld [vmem:[%s610_s1 + $0xb8] sm:$0xff]  ;;  %v46_v21 = vld [vmem:[%s610_s1 + $0x30] sm:$0xff] }
   0x6   :  { %316 = vmatprep.subr.bf16.mxu0 %v315_v8  ;;  %344 = vmatprep.subr.bf16.mxu1 %v315_v8  ;;  %v321_v19 = vpack.c.bf16 %v45_v16, %v44_v15  ;;  %v323_v20 = vpack.c.bf16 %v63_v18, %v62_v17  ;;  %v47_v22 = vld [vmem:[%s610_s1 + $0x38] sm:$0xff]  ;;  %v64_v23 = vld [vmem:[%s610_s1 + $0xc0] sm:$0xff]  ;;  %v65_v24 = vld [vmem:[%s610_s1 + $0xc8] sm:$0xff] }
   0x7   :  { %v15_v25 = vld [vmem:[%s611_s0 + $0x8] sm:$0xff]  ;;  %v29_v26 = vld [vmem:[%s611_s0 + $0x78] sm:$0xff]  ;;  %v325_v27 = vpack.c.bf16 %v47_v22, %v46_v21  ;;  %v327_v28 = vpack.c.bf16 %v65_v24, %v64_v23  ;;  %v48_v29 = vld [vmem:[%s610_s1 + $0x40] sm:$0xff] }
   0x8   :  { %143 = vmatprep.mubr.f32.mxu0 %v15_v25  ;;  %v49_v30 = vld [vmem:[%s610_s1 + $0x48] sm:$0xff]  ;;  %v66_v31 = vld [vmem:[%s610_s1 + $0xd0] sm:$0xff]  ;;  %v67_v32 = vld [vmem:[%s610_s1 + $0xd8] sm:$0xff]  ;;  %178 = vmatprep.mubr.f32.mxu1 %v29_v26 }
   0x9   :  { %318 = vmatpush3.bf16.msra.mxu0 %v317_v13  ;;  %352 = vmatpush3.bf16.msra.mxu1 %v317_v13  ;;  %v329_v33 = vpack.c.bf16 %v49_v30, %v48_v29  ;;  %v331_v34 = vpack.c.bf16 %v67_v32, %v66_v31  ;;  %v50_v35 = vld [vmem:[%s610_s1 + $0x50] sm:$0xff]  ;;  %v51_v36 = vld [vmem:[%s610_s1 + $0x58] sm:$0xff]  ;;  %v68_v37 = vld [vmem:[%s610_s1 + $0xe0] sm:$0xff] }
   0xa   :  { %320 = vmatprep.subr.bf16.mxu0 %v319_v14  ;;  %345 = vmatprep.subr.bf16.mxu1 %v319_v14  ;;  %v69_v38 = vld [vmem:[%s610_s1 + $0xe8] sm:$0xff]  ;;  %v333_v39 = vpack.c.bf16 %v51_v36, %v50_v35  ;;  %v52_v41 = vld [vmem:[%s610_s1 + $0x60] sm:$0xff]  ;;  %v70_v43 = vld [vmem:[%s610_s1 + $0xf0] sm:$0xff] }
   0xb   :  { %v335_v40 = vpack.c.bf16 %v69_v38, %v68_v37  ;;  %v53_v42 = vld [vmem:[%s610_s1 + $0x68] sm:$0xff]  ;;  %v71_v44 = vld [vmem:[%s610_s1 + $0xf8] sm:$0xff]  ;;  %v54_v47 = vld [vmem:[%s610_s1 + $0x70] sm:$0xff] }
   0xc   :  { %v337_v45 = vpack.c.bf16 %v53_v42, %v52_v41  ;;  %v339_v46 = vpack.c.bf16 %v71_v44, %v70_v43  ;;  %v55_v48 = vld [vmem:[%s610_s1 + $0x78] sm:$0xff]  ;;  %v14_v50 = vld [vmem:[%s611_s0] sm:$0xff]  ;;  %v28_v51 = vld [vmem:[%s611_s0 + $0x70] sm:$0xff] }
   0xd   :  { %322 = vmatpush3.bf16.msra.mxu0 %v321_v19  ;;  %353 = vmatpush3.bf16.msra.mxu1 %v321_v19  ;;  %v341_v49 = vpack.c.bf16 %v55_v48, %v54_v47  ;;  %v17_v52 = vld [vmem:[%s611_s0 + $0x18] sm:$0xff]  ;;  %v31_v53 = vld [vmem:[%s611_s0 + $0x88] sm:$0xff]  ;;  %v16_v54 = vld [vmem:[%s611_s0 + $0x10] sm:$0xff] }
   0xe   :  { %324 = vmatprep.subr.bf16.mxu0 %v323_v20  ;;  %346 = vmatprep.subr.bf16.mxu1 %v323_v20  ;;  %v30_v55 = vld [vmem:[%s611_s0 + $0x80] sm:$0xff]  ;;  %v19_v56 = vld [vmem:[%s611_s0 + $0x28] sm:$0xff]  ;;  %v33_v57 = vld [vmem:[%s611_s0 + $0x98] sm:$0xff] }
   0xf   :  { %v18_v58 = vld [vmem:[%s611_s0 + $0x20] sm:$0xff]  ;;  %v32_v59 = vld [vmem:[%s611_s0 + $0x90] sm:$0xff]  ;;  %v21_v60 = vld [vmem:[%s611_s0 + $0x38] sm:$0xff] }
  0x10   :  { %v35_v61 = vld [vmem:[%s611_s0 + $0xa8] sm:$0xff]  ;;  %v20_v62 = vld [vmem:[%s611_s0 + $0x30] sm:$0xff]  ;;  %v34_v63 = vld [vmem:[%s611_s0 + $0xa0] sm:$0xff] }
  0x11   :  { %326 = vmatpush3.bf16.msra.mxu0 %v325_v27  ;;  %354 = vmatpush3.bf16.msra.mxu1 %v325_v27  ;;  %v23_v0 = vld [vmem:[%s611_s0 + $0x48] sm:$0xff]  ;;  %v37_v1 = vld [vmem:[%s611_s0 + $0xb8] sm:$0xff]  ;;  %v22_v2 = vld [vmem:[%s611_s0 + $0x40] sm:$0xff] }
  0x12   :  { %328 = vmatprep.subr.bf16.mxu0 %v327_v28  ;;  %347 = vmatprep.subr.bf16.mxu1 %v327_v28  ;;  %v36_v3 = vld [vmem:[%s611_s0 + $0xb0] sm:$0xff]  ;;  %v25_v4 = vld [vmem:[%s611_s0 + $0x58] sm:$0xff]  ;;  %v39_v5 = vld [vmem:[%s611_s0 + $0xc8] sm:$0xff] }
  0x13   :  { %v24_v6 = vld [vmem:[%s611_s0 + $0x50] sm:$0xff]  ;;  %v38_v7 = vld [vmem:[%s611_s0 + $0xc0] sm:$0xff]  ;;  %v27_v8 = vld [vmem:[%s611_s0 + $0x68] sm:$0xff] }
  0x14   :  { %v26_v9 = vld [vmem:[%s611_s0 + $0x60] sm:$0xff] }
  0x15   :  { %330 = vmatpush3.bf16.msra.mxu0 %v329_v33  ;;  %355 = vmatpush3.bf16.msra.mxu1 %v329_v33  ;;  %v556_v12 = vld [vmem:[%s612_s2] ss:$0 sm:$0xff] }
  0x16   :  { %332 = vmatprep.subr.bf16.mxu0 %v331_v34  ;;  %348 = vmatprep.subr.bf16.mxu1 %v331_v34 }
  0x19   :  { %334 = vmatpush3.bf16.msra.mxu0 %v333_v39  ;;  %356 = vmatpush3.bf16.msra.mxu1 %v333_v39 }
  0x1a   :  { %336 = vmatprep.subr.bf16.mxu0 %v335_v40  ;;  %349 = vmatprep.subr.bf16.mxu1 %v335_v40 }
  0x1d   :  { %338 = vmatpush3.bf16.msra.mxu0 %v337_v45  ;;  %357 = vmatpush3.bf16.msra.mxu1 %v337_v45 }
  0x1e   :  { %340 = vmatprep.subr.bf16.mxu0 %v339_v46  ;;  %350 = vmatprep.subr.bf16.mxu1 %v339_v46 }
  0x21   :  { %342 = vmatpush3.bf16.msra.mxu0 %v341_v49  ;;  %358 = vmatpush3.bf16.msra.mxu1 %v341_v49 }
  0x24   :  { %144 = vmatmul.mubr.f32.vlgmr.msra.gmra.mrb[0].mxu0 %v14_v50  ;;  %179 = vmatmul.mubr.f32.vlgmr.msra.gmra.mrb[0].mxu1 %v28_v51 }
  0x25   :  { %148 = vmatprep.mubr.f32.mxu0 %v17_v52  ;;  %183 = vmatprep.mubr.f32.mxu1 %v31_v53 }
  0x28   :  { %149 = vmatmul.mubr.f32.gmra.mrb[2].mxu0 %v16_v54  ;;  %184 = vmatmul.mubr.f32.gmra.mrb[2].mxu1 %v30_v55 }
  0x29   :  { %153 = vmatprep.mubr.f32.mxu0 %v19_v56  ;;  %188 = vmatprep.mubr.f32.mxu1 %v33_v57 }
  0x2c   :  { %154 = vmatmul.mubr.f32.gmra.mrb[4].mxu0 %v18_v58  ;;  %189 = vmatmul.mubr.f32.gmra.mrb[4].mxu1 %v32_v59 }
  0x2d   :  { %158 = vmatprep.mubr.f32.mxu0 %v21_v60  ;;  %193 = vmatprep.mubr.f32.mxu1 %v35_v61 }
  0x30   :  { %159 = vmatmul.mubr.f32.gmra.mrb[6].mxu0 %v20_v62  ;;  %194 = vmatmul.mubr.f32.gmra.mrb[6].mxu1 %v34_v63 }
  0x31   :  { %163 = vmatprep.mubr.f32.mxu0 %v23_v0  ;;  %198 = vmatprep.mubr.f32.mxu1 %v37_v1 }
  0x34   :  { %164 = vmatmul.mubr.f32.gmra.mrb[8].mxu0 %v22_v2  ;;  %199 = vmatmul.mubr.f32.gmra.mrb[8].mxu1 %v36_v3 }
  0x35   :  { %168 = vmatprep.mubr.f32.mxu0 %v25_v4  ;;  %203 = vmatprep.mubr.f32.mxu1 %v39_v5 }
  0x38   :  { %169 = vmatmul.mubr.f32.gmra.mrb[10].mxu0 %v24_v6  ;;  %204 = vmatmul.mubr.f32.gmra.mrb[10].mxu1 %v38_v7 }
  0x39   :  { %173 = vmatprep.mubr.f32.mxu0 %v27_v8 }
  0x3c   :  { %174 = vmatmul.mubr.f32.gmra.mrb[12].mxu0 %v26_v9 }
  0xf7   :  { %v272_v10 = vpop.f32.mrb[0].mxu0  ;;  %v293_v11 = vpop.f32.mrb[0].mxu1 }
  0xf8   :  { %v273_v13 = vpop.f32.mrb[1].mxu0  ;;  %v294_v14 = vpop.f32.mrb[1].mxu1 }
  0xf9   :  { %v274_v15 = vadd.f32 %v273_v13, %v272_v10  ;;  %v295_v16 = vadd.f32 %v294_v14, %v293_v11 }
  0xfb   :  { %v146_v17 = vadd.f32 %v274_v15, %v556_v12  ;;  %v275_v18 = vpop.f32.mrb[2].mxu0  ;;  %v181_v19 = vadd.f32 %v295_v16, %v556_v12  ;;  %v296_v20 = vpop.f32.mrb[2].mxu1 }
  0xfc   :  { %v276_v21 = vpop.f32.mrb[3].mxu0  ;;  %v297_v22 = vpop.f32.mrb[3].mxu1 }
  0xfd   :  { %v209_v23 = vmax.f32 %v146_v17, 0.0  ;;  %v216_v24 = vmax.f32 %v181_v19, 0.0  ;;  %v277_v25 = vadd.f32 %v276_v21, %v275_v18  ;;  %v298_v26 = vadd.f32 %v297_v22, %v296_v20 }
  0xff   :  { %222 = vst [vmem:[%s613_s3] sm:$0xff] %v209_v23  ;;  %229 = vst [vmem:[%s613_s3 + $0x38] sm:$0xff] %v216_v24  ;;  %v151_v27 = vadd.f32 %v277_v25, %v556_v12  ;;  %v278_v28 = vpop.f32.mrb[4].mxu0  ;;  %v186_v29 = vadd.f32 %v298_v26, %v556_v12  ;;  %v299_v30 = vpop.f32.mrb[4].mxu1 }
 0x100   :  { %v279_v31 = vpop.f32.mrb[5].mxu0  ;;  %v300_v32 = vpop.f32.mrb[5].mxu1 }
 0x101   :  { %v210_v33 = vmax.f32 %v151_v27, 0.0  ;;  %v217_v34 = vmax.f32 %v186_v29, 0.0  ;;  %v280_v35 = vadd.f32 %v279_v31, %v278_v28  ;;  %v301_v36 = vadd.f32 %v300_v32, %v299_v30 }
 0x103   :  { %223 = vst [vmem:[%s613_s3 + $0x8] sm:$0xff] %v210_v33  ;;  %230 = vst [vmem:[%s613_s3 + $0x40] sm:$0xff] %v217_v34  ;;  %v156_v37 = vadd.f32 %v280_v35, %v556_v12  ;;  %v281_v38 = vpop.f32.mrb[6].mxu0  ;;  %v191_v39 = vadd.f32 %v301_v36, %v556_v12  ;;  %v302_v40 = vpop.f32.mrb[6].mxu1 }
 0x104   :  { %v282_v41 = vpop.f32.mrb[7].mxu0  ;;  %v303_v42 = vpop.f32.mrb[7].mxu1 }
 0x105   :  { %v211_v43 = vmax.f32 %v156_v37, 0.0  ;;  %v218_v44 = vmax.f32 %v191_v39, 0.0  ;;  %v283_v45 = vadd.f32 %v282_v41, %v281_v38  ;;  %v304_v46 = vadd.f32 %v303_v42, %v302_v40 }
 0x107   :  { %224 = vst [vmem:[%s613_s3 + $0x10] sm:$0xff] %v211_v43  ;;  %231 = vst [vmem:[%s613_s3 + $0x48] sm:$0xff] %v218_v44  ;;  %v161_v47 = vadd.f32 %v283_v45, %v556_v12  ;;  %v284_v48 = vpop.f32.mrb[8].mxu0  ;;  %v196_v49 = vadd.f32 %v304_v46, %v556_v12  ;;  %v305_v50 = vpop.f32.mrb[8].mxu1 }
 0x108   :  { %v285_v51 = vpop.f32.mrb[9].mxu0  ;;  %v306_v52 = vpop.f32.mrb[9].mxu1 }
 0x109   :  { %v212_v53 = vmax.f32 %v161_v47, 0.0  ;;  %v219_v54 = vmax.f32 %v196_v49, 0.0  ;;  %v286_v55 = vadd.f32 %v285_v51, %v284_v48  ;;  %v307_v56 = vadd.f32 %v306_v52, %v305_v50 }
 0x10b   :  { %225 = vst [vmem:[%s613_s3 + $0x18] sm:$0xff] %v212_v53  ;;  %232 = vst [vmem:[%s613_s3 + $0x50] sm:$0xff] %v219_v54  ;;  %v166_v57 = vadd.f32 %v286_v55, %v556_v12  ;;  %v287_v58 = vpop.f32.mrb[10].mxu0  ;;  %v201_v59 = vadd.f32 %v307_v56, %v556_v12  ;;  %v308_v60 = vpop.f32.mrb[10].mxu1 }
 0x10c   :  { %v288_v61 = vpop.f32.mrb[11].mxu0  ;;  %v309_v62 = vpop.f32.mrb[11].mxu1 }
 0x10d   :  { %v213_v63 = vmax.f32 %v166_v57, 0.0  ;;  %v220_v0 = vmax.f32 %v201_v59, 0.0  ;;  %v289_v1 = vadd.f32 %v288_v61, %v287_v58  ;;  %v310_v2 = vadd.f32 %v309_v62, %v308_v60 }
 0x10f   :  { %226 = vst [vmem:[%s613_s3 + $0x20] sm:$0xff] %v213_v63  ;;  %233 = vst [vmem:[%s613_s3 + $0x58] sm:$0xff] %v220_v0  ;;  %v171_v3 = vadd.f32 %v289_v1, %v556_v12  ;;  %v290_v4 = vpop.f32.mrb[12].mxu0  ;;  %v206_v5 = vadd.f32 %v310_v2, %v556_v12 }
 0x110   :  { %v291_v6 = vpop.f32.mrb[13].mxu0 }
 0x111   :  { %v214_v7 = vmax.f32 %v171_v3, 0.0  ;;  %v221_v8 = vmax.f32 %v206_v5, 0.0  ;;  %v292_v9 = vadd.f32 %v291_v6, %v290_v4 }
 0x113   :  { %227 = vst [vmem:[%s613_s3 + $0x28] sm:$0xff] %v214_v7  ;;  %234 = vst [vmem:[%s613_s3 + $0x60] sm:$0xff] %v221_v8  ;;  %v176_v10 = vadd.f32 %v292_v9, %v556_v12 }
 0x115   :  { %v215_v11 = vmax.f32 %v176_v10, 0.0 }
 0x117   :  { %228 = vst [vmem:[%s613_s3 + $0x30] sm:$0xff] %v215_v11 }

// kernel: autoencoder_forward.11
= control target key start
LH: loop header
LB: loop body
LE: loop exit
PB: predicated region body
PF: predicated region fallthrough
CT: control target
= control target key end

     0   :  { %vm707_vm0 = vmmov 0   ;;  %s1100_s1 = inlined_call_operand.vmem [shape: f32[896,128], index: 1, kind: input, shape index: {}]   ;;  %s1101_s0 = inlined_call_operand.vmem [shape: f32[8,896], index: 0, kind: input, shape index: {}]   ;;  %s1102_s2 = inlined_call_operand.vmem [shape: f32[1,128], index: 2, kind: input, shape index: {}]   ;;  %s1103_s3 = inlined_call_operand.vmem [shape: f32[8,128], index: 3, kind: output, shape index: {}]  }
   0x1   :  { %v37_v0 = vld [vmem:[%s1100_s1 + $0x80] sm:$0xff]  ;;  %v38_v1 = vld [vmem:[%s1100_s1 + $0x88] sm:$0xff]  ;;  %v39_v11 = vld [vmem:[%s1100_s1 + $0x90] sm:$0xff] }
   0x2   :  { %v21_v2 = vld [vmem:[%s1100_s1] sm:$0xff]  ;;  %v583_v3 = vpack.c.bf16 %v38_v1, %v37_v0  ;;  %v22_v4 = vld [vmem:[%s1100_s1 + $0x8] sm:$0xff]  ;;  %v40_v13 = vld [vmem:[%s1100_s1 + $0x98] sm:$0xff] }
   0x3   :  { %v69_v5 = vld [vmem:[%s1100_s1 + $0x180] sm:$0xff]  ;;  %v70_v6 = vld [vmem:[%s1100_s1 + $0x188] sm:$0xff]  ;;  %v585_v7 = vpack.c.bf16 %v22_v4, %v21_v2  ;;  %v23_v14 = vld [vmem:[%s1100_s1 + $0x10] sm:$0xff]  ;;  %v587_v16 = vpack.c.bf16 %v40_v13, %v39_v11 }
   0x4   :  { %v615_v8 = vpack.c.bf16 %v70_v6, %v69_v5  ;;  %v53_v9 = vld [vmem:[%s1100_s1 + $0x100] sm:$0xff]  ;;  %v54_v10 = vld [vmem:[%s1100_s1 + $0x108] sm:$0xff]  ;;  %584 = vmatprep.subr.bf16.mxu0 %v583_v3  ;;  %v24_v15 = vld [vmem:[%s1100_s1 + $0x18] sm:$0xff] }
   0x5   :  { %v617_v12 = vpack.c.bf16 %v54_v10, %v53_v9  ;;  %586 = vmatpush3.bf16.msra.mxu0 %v585_v7  ;;  %v589_v17 = vpack.c.bf16 %v24_v15, %v23_v14  ;;  %v71_v18 = vld [vmem:[%s1100_s1 + $0x190] sm:$0xff]  ;;  %v72_v19 = vld [vmem:[%s1100_s1 + $0x198] sm:$0xff]  ;;  %v41_v23 = vld [vmem:[%s1100_s1 + $0xa0] sm:$0xff] }
   0x6   :  { %616 = vmatprep.subr.bf16.mxu1 %v615_v8  ;;  %v55_v20 = vld [vmem:[%s1100_s1 + $0x110] sm:$0xff]  ;;  %v619_v21 = vpack.c.bf16 %v72_v19, %v71_v18  ;;  %v56_v22 = vld [vmem:[%s1100_s1 + $0x118] sm:$0xff]  ;;  %v42_v24 = vld [vmem:[%s1100_s1 + $0xa8] sm:$0xff]  ;;  %588 = vmatprep.subr.bf16.mxu0 %v587_v16 }
   0x7   :  { %618 = vmatpush3.bf16.msra.mxu1 %v617_v12  ;;  %v621_v25 = vpack.c.bf16 %v56_v22, %v55_v20  ;;  %v591_v26 = vpack.c.bf16 %v42_v24, %v41_v23  ;;  %v25_v27 = vld [vmem:[%s1100_s1 + $0x20] sm:$0xff]  ;;  %v26_v28 = vld [vmem:[%s1100_s1 + $0x28] sm:$0xff]  ;;  %v43_v35 = vld [vmem:[%s1100_s1 + $0xb0] sm:$0xff] }
   0x8   :  { %v73_v29 = vld [vmem:[%s1100_s1 + $0x1a0] sm:$0xff]  ;;  %620 = vmatprep.subr.bf16.mxu1 %v619_v21  ;;  %v74_v30 = vld [vmem:[%s1100_s1 + $0x1a8] sm:$0xff]  ;;  %v593_v33 = vpack.c.bf16 %v26_v28, %v25_v27  ;;  %v44_v36 = vld [vmem:[%s1100_s1 + $0xb8] sm:$0xff] }
   0x9   :  { %v57_v31 = vld [vmem:[%s1100_s1 + $0x120] sm:$0xff]  ;;  %v58_v32 = vld [vmem:[%s1100_s1 + $0x128] sm:$0xff]  ;;  %590 = vmatpush3.bf16.msra.mxu0 %v589_v17  ;;  %v623_v34 = vpack.c.bf16 %v74_v30, %v73_v29  ;;  %v27_v37 = vld [vmem:[%s1100_s1 + $0x30] sm:$0xff]  ;;  %v595_v39 = vpack.c.bf16 %v44_v36, %v43_v35 }
   0xa   :  { %592 = vmatprep.subr.bf16.mxu0 %v591_v26  ;;  %v625_v38 = vpack.c.bf16 %v58_v32, %v57_v31  ;;  %v28_v40 = vld [vmem:[%s1100_s1 + $0x38] sm:$0xff]  ;;  %v75_v41 = vld [vmem:[%s1100_s1 + $0x1b0] sm:$0xff]  ;;  %v45_v46 = vld [vmem:[%s1100_s1 + $0xc0] sm:$0xff] }
   0xb   :  { %622 = vmatpush3.bf16.msra.mxu1 %v621_v25  ;;  %v76_v42 = vld [vmem:[%s1100_s1 + $0x1b8] sm:$0xff]  ;;  %v59_v44 = vld [vmem:[%s1100_s1 + $0x130] sm:$0xff]  ;;  %v46_v47 = vld [vmem:[%s1100_s1 + $0xc8] sm:$0xff]  ;;  %v597_v48 = vpack.c.bf16 %v28_v40, %v27_v37 }
   0xc   :  { %624 = vmatprep.subr.bf16.mxu1 %v623_v34  ;;  %v627_v43 = vpack.c.bf16 %v76_v42, %v75_v41  ;;  %v60_v45 = vld [vmem:[%s1100_s1 + $0x138] sm:$0xff]  ;;  %v77_v49 = vld [vmem:[%s1100_s1 + $0x1c0] sm:$0xff]  ;;  %v78_v50 = vld [vmem:[%s1100_s1 + $0x1c8] sm:$0xff]  ;;  %v599_v52 = vpack.c.bf16 %v46_v47, %v45_v46 }
   0xd   :  { %594 = vmatpush3.bf16.msra.mxu0 %v593_v33  ;;  %v629_v51 = vpack.c.bf16 %v60_v45, %v59_v44  ;;  %v29_v53 = vld [vmem:[%s1100_s1 + $0x40] sm:$0xff]  ;;  %v30_v54 = vld [vmem:[%s1100_s1 + $0x48] sm:$0xff]  ;;  %v631_v56 = vpack.c.bf16 %v78_v50, %v77_v49  ;;  %v47_v58 = vld [vmem:[%s1100_s1 + $0xd0] sm:$0xff] }
   0xe   :  { %596 = vmatprep.subr.bf16.mxu0 %v595_v39  ;;  %v61_v55 = vld [vmem:[%s1100_s1 + $0x140] sm:$0xff]  ;;  %v62_v57 = vld [vmem:[%s1100_s1 + $0x148] sm:$0xff]  ;;  %v48_v59 = vld [vmem:[%s1100_s1 + $0xd8] sm:$0xff]  ;;  %v601_v62 = vpack.c.bf16 %v30_v54, %v29_v53 }
   0xf   :  { %626 = vmatpush3.bf16.msra.mxu1 %v625_v38  ;;  %v79_v60 = vld [vmem:[%s1100_s1 + $0x1d0] sm:$0xff]  ;;  %v80_v61 = vld [vmem:[%s1100_s1 + $0x1d8] sm:$0xff]  ;;  %v633_v63 = vpack.c.bf16 %v62_v57, %v61_v55  ;;  %v603_v0 = vpack.c.bf16 %v48_v59, %v47_v58  ;;  %v49_v6 = vld [vmem:[%s1100_s1 + $0xe0] sm:$0xff] }
  0x10   :  { %628 = vmatprep.subr.bf16.mxu1 %v627_v43  ;;  %v31_v1 = vld [vmem:[%s1100_s1 + $0x50] sm:$0xff]  ;;  %v32_v2 = vld [vmem:[%s1100_s1 + $0x58] sm:$0xff]  ;;  %v635_v4 = vpack.c.bf16 %v80_v61, %v79_v60  ;;  %v50_v7 = vld [vmem:[%s1100_s1 + $0xe8] sm:$0xff] }
  0x11   :  { %598 = vmatpush3.bf16.msra.mxu0 %v597_v48  ;;  %v63_v3 = vld [vmem:[%s1100_s1 + $0x150] sm:$0xff]  ;;  %v64_v5 = vld [vmem:[%s1100_s1 + $0x158] sm:$0xff]  ;;  %v81_v8 = vld [vmem:[%s1100_s1 + $0x1e0] sm:$0xff]  ;;  %v605_v10 = vpack.c.bf16 %v32_v2, %v31_v1  ;;  %v607_v14 = vpack.c.bf16 %v50_v7, %v49_v6  ;;  %v708_v1 = vmov 0.0  }
  0x12   :  { %600 = vmatprep.subr.bf16.mxu0 %v599_v52  ;;  %v82_v9 = vld [vmem:[%s1100_s1 + $0x1e8] sm:$0xff]  ;;  %v33_v11 = vld [vmem:[%s1100_s1 + $0x60] sm:$0xff]  ;;  %v637_v13 = vpack.c.bf16 %v64_v5, %v63_v3  ;;  %v51_v19 = vld [vmem:[%s1100_s1 + $0xf0] sm:$0xff] }
  0x13   :  { %630 = vmatpush3.bf16.msra.mxu1 %v629_v51  ;;  %v15_v12 = vld [vmem:[%s1101_s0 + $0x8] sm:$0xff]  ;;  %v65_v16 = vld [vmem:[%s1100_s1 + $0x160] sm:$0xff]  ;;  %v639_v18 = vpack.c.bf16 %v82_v9, %v81_v8  ;;  %v52_v20 = vld [vmem:[%s1100_s1 + $0xf8] sm:$0xff]  ;;  %v706_v51 = vmov 0.0|0.0  }
  0x14   :  { %632 = vmatprep.subr.bf16.mxu1 %v631_v56  ;;  %v34_v15 = vld [vmem:[%s1100_s1 + $0x68] sm:$0xff]  ;;  %204 = vmatprep.mubr.f32.mxu0 %v15_v12  ;;  %v17_v21 = vld [vmem:[%s1101_s0 + $0x18] sm:$0xff]  ;;  %v83_v22 = vld [vmem:[%s1100_s1 + $0x1f0] sm:$0xff]  ;;  %v611_v26 = vpack.c.bf16 %v52_v20, %v51_v19 }
  0x15   :  { %602 = vmatpush3.bf16.msra.mxu0 %v601_v62  ;;  %v66_v17 = vld [vmem:[%s1100_s1 + $0x168] sm:$0xff]  ;;  %v84_v23 = vld [vmem:[%s1100_s1 + $0x1f8] sm:$0xff]  ;;  %274 = vmatprep.mubr.f32.mxu1 %v17_v21  ;;  %v609_v24 = vpack.c.bf16 %v34_v15, %v33_v11  ;;  %v35_v27 = vld [vmem:[%s1100_s1 + $0x70] sm:$0xff] }
  0x16   :  { %604 = vmatprep.subr.bf16.mxu0 %v603_v0  ;;  %v641_v25 = vpack.c.bf16 %v66_v17, %v65_v16  ;;  %v36_v28 = vld [vmem:[%s1100_s1 + $0x78] sm:$0xff]  ;;  %v67_v29 = vld [vmem:[%s1100_s1 + $0x170] sm:$0xff]  ;;  %v643_v30 = vpack.c.bf16 %v84_v23, %v83_v22  ;;  %v101_v32 = vld [vmem:[%s1100_s1 + $0x280] sm:$0xff] }
  0x17   :  { %634 = vmatpush3.bf16.msra.mxu1 %v633_v63  ;;  %v68_v31 = vld [vmem:[%s1100_s1 + $0x178] sm:$0xff]  ;;  %v102_v33 = vld [vmem:[%s1100_s1 + $0x288] sm:$0xff]  ;;  %v613_v34 = vpack.c.bf16 %v36_v28, %v35_v27  ;;  %v85_v37 = vld [vmem:[%s1100_s1 + $0x200] sm:$0xff] }
  0x18   :  { %636 = vmatprep.subr.bf16.mxu1 %v635_v4  ;;  %v645_v35 = vpack.c.bf16 %v68_v31, %v67_v29  ;;  %v647_v36 = vpack.c.bf16 %v102_v33, %v101_v32  ;;  %v86_v38 = vld [vmem:[%s1100_s1 + $0x208] sm:$0xff]  ;;  %v103_v39 = vld [vmem:[%s1100_s1 + $0x290] sm:$0xff]  ;;  %v104_v40 = vld [vmem:[%s1100_s1 + $0x298] sm:$0xff] }
  0x19   :  { %606 = vmatpush3.bf16.msra.mxu0 %v605_v10  ;;  %v117_v41 = vld [vmem:[%s1100_s1 + $0x300] sm:$0xff]  ;;  %v118_v42 = vld [vmem:[%s1100_s1 + $0x308] sm:$0xff]  ;;  %v649_v44 = vpack.c.bf16 %v86_v38, %v85_v37  ;;  %v16_v45 = vld [vmem:[%s1101_s0 + $0x10] sm:$0xff]  ;;  %v651_v46 = vpack.c.bf16 %v104_v40, %v103_v39 }
  0x1a   :  { %608 = vmatprep.subr.bf16.mxu0 %v607_v14  ;;  %v14_v43 = vld [vmem:[%s1101_s0] sm:$0xff]  ;;  %v87_v47 = vld [vmem:[%s1100_s1 + $0x210] sm:$0xff]  ;;  %v88_v48 = vld [vmem:[%s1100_s1 + $0x218] sm:$0xff]  ;;  %v680_v49 = vpack.c.bf16 %v118_v42, %v117_v41 }
  0x1b   :  { %638 = vmatpush3.bf16.msra.mxu1 %v637_v13  ;;  %v105_v50 = vld [vmem:[%s1100_s1 + $0x2a0] sm:$0xff]  ;;  %v106_v52 = vld [vmem:[%s1100_s1 + $0x2a8] sm:$0xff]  ;;  %v119_v53 = vld [vmem:[%s1100_s1 + $0x310] sm:$0xff]  ;;  %v653_v55 = vpack.c.bf16 %v88_v48, %v87_v47 }
  0x1c   :  { %640 = vmatprep.subr.bf16.mxu1 %v639_v18  ;;  %v120_v54 = vld [vmem:[%s1100_s1 + $0x318] sm:$0xff]  ;;  %v89_v56 = vld [vmem:[%s1100_s1 + $0x220] sm:$0xff]  ;;  %v655_v57 = vpack.c.bf16 %v106_v52, %v105_v50  ;;  %v90_v58 = vld [vmem:[%s1100_s1 + $0x228] sm:$0xff] }
  0x1d   :  { %610 = vmatpush3.bf16.msra.mxu0 %v609_v24  ;;  %v683_v59 = vpack.c.bf16 %v120_v54, %v119_v53  ;;  %v107_v60 = vld [vmem:[%s1100_s1 + $0x2b0] sm:$0xff]  ;;  %v108_v61 = vld [vmem:[%s1100_s1 + $0x2b8] sm:$0xff]  ;;  %v121_v62 = vld [vmem:[%s1100_s1 + $0x320] sm:$0xff]  ;;  %v657_v2 = vpack.c.bf16 %v90_v58, %v89_v56 }
  0x1e   :  { %612 = vmatprep.subr.bf16.mxu0 %v611_v26  ;;  %v122_v63 = vld [vmem:[%s1100_s1 + $0x328] sm:$0xff]  ;;  %v659_v3 = vpack.c.bf16 %v108_v61, %v107_v60  ;;  %v91_v4 = vld [vmem:[%s1100_s1 + $0x230] sm:$0xff]  ;;  %v92_v5 = vld [vmem:[%s1100_s1 + $0x238] sm:$0xff] }
  0x1f   :  { %642 = vmatpush3.bf16.msra.mxu1 %v641_v25  ;;  %v19_v0 = vld [vmem:[%s1101_s0 + $0x28] sm:$0xff]  ;;  %v686_v6 = vpack.c.bf16 %v122_v63, %v121_v62  ;;  %v109_v7 = vld [vmem:[%s1100_s1 + $0x2c0] sm:$0xff]  ;;  %v123_v9 = vld [vmem:[%s1100_s1 + $0x330] sm:$0xff]  ;;  %v661_v11 = vpack.c.bf16 %v92_v5, %v91_v4 }
  0x20   :  { %644 = vmatprep.subr.bf16.mxu1 %v643_v30  ;;  %v110_v8 = vld [vmem:[%s1100_s1 + $0x2c8] sm:$0xff]  ;;  %v124_v10 = vld [vmem:[%s1100_s1 + $0x338] sm:$0xff]  ;;  %v93_v13 = vld [vmem:[%s1100_s1 + $0x240] sm:$0xff] }
  0x21   :  { %614 = vmatpush3.bf16.msra.mxu0 %v613_v34  ;;  %v663_v12 = vpack.c.bf16 %v110_v8, %v109_v7  ;;  %v94_v14 = vld [vmem:[%s1100_s1 + $0x248] sm:$0xff]  ;;  %v689_v15 = vpack.c.bf16 %v124_v10, %v123_v9  ;;  %v111_v16 = vld [vmem:[%s1100_s1 + $0x2d0] sm:$0xff]  ;;  %v112_v17 = vld [vmem:[%s1100_s1 + $0x2d8] sm:$0xff] }
  0x22   :  { %648 = vmatprep.subr.bf16.mxu0 %v647_v36  ;;  %v125_v18 = vld [vmem:[%s1100_s1 + $0x340] sm:$0xff]  ;;  %v126_v19 = vld [vmem:[%s1100_s1 + $0x348] sm:$0xff]  ;;  %v665_v20 = vpack.c.bf16 %v94_v14, %v93_v13  ;;  %v667_v21 = vpack.c.bf16 %v112_v17, %v111_v16  ;;  %v95_v22 = vld [vmem:[%s1100_s1 + $0x250] sm:$0xff] }
  0x23   :  { %646 = vmatpush3.bf16.msra.mxu1 %v645_v35  ;;  %v96_v23 = vld [vmem:[%s1100_s1 + $0x258] sm:$0xff]  ;;  %v692_v24 = vpack.c.bf16 %v126_v19, %v125_v18  ;;  %v113_v25 = vld [vmem:[%s1100_s1 + $0x2e0] sm:$0xff]  ;;  %v114_v26 = vld [vmem:[%s1100_s1 + $0x2e8] sm:$0xff] }
  0x24   :  { %679 = vmatprep.subr.bf16.mxu1 %v706_v51  ;;  %205 = vmatmul.mubr.f32.vlgmr.msra.gmra.mrb[0].mxu0 %v14_v43  ;;  %v127_v27 = vld [vmem:[%s1100_s1 + $0x350] sm:$0xff]  ;;  %v128_v28 = vld [vmem:[%s1100_s1 + $0x358] sm:$0xff]  ;;  %v669_v29 = vpack.c.bf16 %v96_v23, %v95_v22  ;;  %v671_v30 = vpack.c.bf16 %v114_v26, %v113_v25  ;;  %v97_v31 = vld [vmem:[%s1100_s1 + $0x260] sm:$0xff] }
  0x25   :  { %650 = vmatpush3.bf16.msra.mxu0 %v649_v44  ;;  %344 = vmatprep.mubr.f32.mxu0 %v19_v0  ;;  %v98_v32 = vld [vmem:[%s1100_s1 + $0x268] sm:$0xff]  ;;  %v695_v33 = vpack.c.bf16 %v128_v28, %v127_v27  ;;  %v115_v34 = vld [vmem:[%s1100_s1 + $0x2f0] sm:$0xff]  ;;  %v116_v35 = vld [vmem:[%s1100_s1 + $0x2f8] sm:$0xff] }
  0x26   :  { %275 = vmatmul.mubr.f32.vlgmr.msra.gmra.mrb[0].mxu1 %v16_v45  ;;  %652 = vmatprep.subr.bf16.mxu0 %v651_v46  ;;  %v129_v36 = vld [vmem:[%s1100_s1 + $0x360] sm:$0xff]  ;;  %v130_v37 = vld [vmem:[%s1100_s1 + $0x368] sm:$0xff]  ;;  %v673_v38 = vpack.c.bf16 %v98_v32, %v97_v31  ;;  %v675_v39 = vpack.c.bf16 %v116_v35, %v115_v34  ;;  %v99_v40 = vld [vmem:[%s1100_s1 + $0x270] sm:$0xff] }
  0x27   :  { %681 = vmatpush3.bf16.msra.mxu1 %v680_v49  ;;  %580 = vmatprep.mubr.msk.f32.mxu1 %vm707_vm0, %v708_v1  ;;  %v100_v41 = vld [vmem:[%s1100_s1 + $0x278] sm:$0xff]  ;;  %v698_v42 = vpack.c.bf16 %v130_v37, %v129_v36  ;;  %v131_v43 = vld [vmem:[%s1100_s1 + $0x370] sm:$0xff]  ;;  %v18_v47 = vld [vmem:[%s1101_s0 + $0x20] sm:$0xff] }
  0x28   :  { %682 = vmatprep.subr.bf16.mxu1 %v706_v51  ;;  %v132_v44 = vld [vmem:[%s1100_s1 + $0x378] sm:$0xff]  ;;  %v677_v45 = vpack.c.bf16 %v100_v41, %v99_v40  ;;  %v20_v48 = vld [vmem:[%s1101_s0 + $0x30] sm:$0xff]  ;;  %v425_v50 = vld [vmem:[%s1102_s2] ss:$0 sm:$0xff] }
  0x29   :  { %654 = vmatpush3.bf16.msra.mxu0 %v653_v55  ;;  %v701_v46 = vpack.c.bf16 %v132_v44, %v131_v43 }
  0x2a   :  { %656 = vmatprep.subr.bf16.mxu0 %v655_v57 }
  0x2b   :  { %684 = vmatpush3.bf16.msra.mxu1 %v683_v59 }
  0x2c   :  { %685 = vmatprep.subr.bf16.mxu1 %v706_v51 }
  0x2d   :  { %658 = vmatpush3.bf16.msra.mxu0 %v657_v2 }
  0x2e   :  { %660 = vmatprep.subr.bf16.mxu0 %v659_v3 }
  0x2f   :  { %687 = vmatpush3.bf16.msra.mxu1 %v686_v6 }
  0x30   :  { %688 = vmatprep.subr.bf16.mxu1 %v706_v51 }
  0x31   :  { %662 = vmatpush3.bf16.msra.mxu0 %v661_v11 }
  0x32   :  { %664 = vmatprep.subr.bf16.mxu0 %v663_v12 }
  0x33   :  { %690 = vmatpush3.bf16.msra.mxu1 %v689_v15 }
  0x34   :  { %691 = vmatprep.subr.bf16.mxu1 %v706_v51 }
  0x35   :  { %666 = vmatpush3.bf16.msra.mxu0 %v665_v20 }
  0x36   :  { %668 = vmatprep.subr.bf16.mxu0 %v667_v21 }
  0x37   :  { %693 = vmatpush3.bf16.msra.mxu1 %v692_v24 }
  0x38   :  { %694 = vmatprep.subr.bf16.mxu1 %v706_v51 }
  0x39   :  { %670 = vmatpush3.bf16.msra.mxu0 %v669_v29 }
  0x3a   :  { %672 = vmatprep.subr.bf16.mxu0 %v671_v30 }
  0x3b   :  { %696 = vmatpush3.bf16.msra.mxu1 %v695_v33 }
  0x3c   :  { %697 = vmatprep.subr.bf16.mxu1 %v706_v51 }
  0x3d   :  { %674 = vmatpush3.bf16.msra.mxu0 %v673_v38 }
  0x3e   :  { %676 = vmatprep.subr.bf16.mxu0 %v675_v39 }
  0x3f   :  { %699 = vmatpush3.bf16.msra.mxu1 %v698_v42 }
  0x40   :  { %700 = vmatprep.subr.bf16.mxu1 %v706_v51 }
  0x41   :  { %678 = vmatpush3.bf16.msra.mxu0 %v677_v45 }
  0x43   :  { %702 = vmatpush3.bf16.msra.mxu1 %v701_v46 }
  0x44   :  { %345 = vmatmul.mubr.f32.vlgmr.msra.gmra.mrb[2].mxu0 %v18_v47 }
  0x46   :  { %581 = vmatmul.mubr.f32.vlgmr.msra.gmra.mrb[2].mxu1 %v20_v48 }
  0xf7   :  { %v458_v49 = vpop.f32.mrb[0].mxu0 }
  0xf8   :  { %v459_v52 = vpop.f32.mrb[1].mxu0 }
  0xf9   :  { %v493_v53 = vpop.f32.mrb[0].mxu1  ;;  %v460_v51 = vadd.f32 %v459_v52, %v458_v49 }
  0xfa   :  { %v494_v54 = vpop.f32.mrb[1].mxu1 }
  0xfb   :  { %v495_v55 = vadd.f32 %v494_v54, %v493_v53  ;;  %v207_v56 = vadd.f32 %v460_v51, %v425_v50 }
  0xfd   :  { %v277_v57 = vadd.f32 %v495_v55, %v207_v56 }
 0x117   :  { %v528_v58 = vpop.f32.mrb[2].mxu0 }
 0x118   :  { %v529_v59 = vpop.f32.mrb[3].mxu0 }
 0x119   :  { %v416_v60 = vpop.f32.mrb[2].mxu1  ;;  %v530_v61 = vadd.f32 %v529_v59, %v528_v58 }
 0x11a   :  { %v582_v62 = vpop.f32.mrb[3].mxu1 }
 0x11b   :  { %v347_v63 = vadd.f32 %v530_v61, %v277_v57 }
 0x11d   :  { %v417_v0 = vadd.f32 %v416_v60, %v347_v63 }
 0x11f   :  { %420 = vst [vmem:[%s1103_s3] sm:$0xff] %v417_v0 }

// kernel: tile.18
= control target key start
LH: loop header
LB: loop body
LE: loop exit
PB: predicated region body
PF: predicated region fallthrough
CT: control target
= control target key end

     0   :  { %s28_s0 = inlined_call_operand.vmem [shape: f32[8], index: 0, kind: input, shape index: {}]   ;;  %s29_s1 = inlined_call_operand.vmem [shape: f32[9,8], index: 1, kind: output, shape index: {}]  }
   0x1   :  { %v4_v0 = vld [vmem:[%s28_s0] ss:$0 sm:$0xff] }
   0x2   :  { %5 = vst [vmem:[%s29_s1] sm:$0xff] %v4_v0  ;;  %8 = vst [vmem:[%s29_s1 + $0x8] sm:$0xff] %v4_v0 }

// kernel: tile.19
= control target key start
LH: loop header
LB: loop body
LE: loop exit
PB: predicated region body
PF: predicated region fallthrough
CT: control target
= control target key end

     0   :  { %s75_s10 = smov 64   ;;  %s76_s11 = smov 48   ;;  %vm3_vm0 = vcmask 64512   ;;  %vm9_vm1 = vcmask 589312   ;;  %vm15_vm2 = vcmask 523712   ;;  %vm21_vm3 = vcmask 458112   ;;  %s123_s0 = inlined_call_operand.vmem [shape: f32[9,8], index: 0, kind: input, shape index: {}]   ;;  %s124_s1 = inlined_call_operand.vmem [shape: f32[72], index: 1, kind: output, shape index: {}]  }
   0x1   :  { %v59_v0 = vld [vmem:[%s123_s0 + $0x8] sm:$0x1]   ;;  %v61_v1 = vld [vmem:[%s123_s0 + $0x6] sm:$0x1]   ;;  %v60_v2 = vld [vmem:[%s123_s0 + $0x7] sm:$0x1]  }
   0x2   :  { %7 = vrot.lane.b32.xlu0 %v59_v0, %s75_s10  ;;  %19 = vrot.lane.b32.xlu1 %v61_v1, %s76_s11  ;;  %v62_v3 = vld [vmem:[%s123_s0 + $0x5] sm:$0x1]   ;;  %v2_v4 = vld [vmem:[%s123_s0] sm:$0x1]   ;;  %s77_s18 = smov 56   ;;  %s78_s19 = smov 40  }
   0x3   :  { %4 = vst.msk [vmem:[#allocation0] sm:$0x1] %vm3_vm0, %v2_v4   ;;  %v63_v5 = vld [vmem:[%s123_s0 + $0x4] sm:$0x1]   ;;  %v64_v6 = vld [vmem:[%s123_s0 + $0x3] sm:$0x1]  }
   0x4   :  { %s79_s24 = smov 32   ;;  %s80_s25 = smov 24   ;;  %v65_v7 = vld [vmem:[%s123_s0 + $0x2] sm:$0x1]   ;;  %v66_v8 = vld [vmem:[%s123_s0 + $0x1] sm:$0x1]  }
   0x5   :  { %s81_s0 = smov 16   ;;  %s82_s30 = smov 8   ;;  %vm27_vm4 = vcmask 392512   ;;  %vm33_vm5 = vcmask 326912   ;;  %vm39_vm6 = vcmask 261312   ;;  %vm45_vm7 = vcmask 195712  }
   0x6   :  { %13 = vrot.lane.b32.xlu0 %v60_v2, %s77_s18  ;;  %25 = vrot.lane.b32.xlu1 %v62_v3, %s78_s19  ;;  %vm51_vm8 = vcmask 130112  }
   0xa   :  { %31 = vrot.lane.b32.xlu0 %v63_v5, %s79_s24  ;;  %37 = vrot.lane.b32.xlu1 %v64_v6, %s80_s25 }
   0xe   :  { %43 = vrot.lane.b32.xlu0 %v65_v7, %s81_s0  ;;  %49 = vrot.lane.b32.xlu1 %v66_v8, %s82_s30 }
  0x74   :  { %v8_v9 = vpop.permute.xlu0 %7   ;;  %v20_v10 = vpop.permute.xlu1 %19  }
  0x75   :  { %10 = vst.msk [vmem:[#allocation0] sm:$0x1] %vm9_vm1, %v8_v9  }
  0x78   :  { %v14_v11 = vpop.permute.xlu0 %13   ;;  %v26_v12 = vpop.permute.xlu1 %25  }
  0x79   :  { %16 = vst.msk [vmem:[#allocation0] sm:$0x1] %vm15_vm2, %v14_v11  }
  0x7a   :  { %22 = vst.msk [vmem:[#allocation0] sm:$0x1] %vm21_vm3, %v20_v10  }
  0x7b   :  { %28 = vst.msk [vmem:[#allocation0] sm:$0x1] %vm27_vm4, %v26_v12  }
  0x7c   :  { %v32_v13 = vpop.permute.xlu0 %31   ;;  %v38_v14 = vpop.permute.xlu1 %37  }
  0x7d   :  { %34 = vst.msk [vmem:[#allocation0] sm:$0x1] %vm33_vm5, %v32_v13  }
  0x7e   :  { %40 = vst.msk [vmem:[#allocation0] sm:$0x1] %vm39_vm6, %v38_v14  }
  0x80   :  { %v44_v15 = vpop.permute.xlu0 %43   ;;  %v50_v16 = vpop.permute.xlu1 %49  }
  0x81   :  { %46 = vst.msk [vmem:[#allocation0] sm:$0x1] %vm45_vm7, %v44_v15  }
  0x82   :  { %52 = vst.msk [vmem:[#allocation0] sm:$0x1] %vm51_vm8, %v50_v16  }
  0x89   :  { %v56_v17 = vld [vmem:[#allocation0] sm:$0x1] }
  0x8a   :  { %58 = vst [vmem:[%s124_s1] sm:$0x1] %v56_v17 }

// kernel: autoencoder_forward.12
= control target key start
LH: loop header
LB: loop body
LE: loop exit
PB: predicated region body
PF: predicated region fallthrough
CT: control target
= control target key end

     0   :  { %vm2101_vm0 = vmmov 0   ;;  %s3439_s1 = inlined_call_operand.vmem [shape: f32[1664,128], index: 1, kind: input, shape index: {}]   ;;  %s3440_s0 = inlined_call_operand.vmem [shape: f32[104,1664], index: 0, kind: input, shape index: {}]   ;;  %s3441_s2 = inlined_call_operand.vmem [shape: f32[1,128], index: 2, kind: input, shape index: {}]   ;;  %s3442_s3 = inlined_call_operand.vmem [shape: f32[104,128], index: 3, kind: output, shape index: {}]  }
   0x1   :  { %v199_v0 = vld [vmem:[%s3439_s1 + $0x80] sm:$0xff]  ;;  %v200_v1 = vld [vmem:[%s3439_s1 + $0x88] sm:$0xff]  ;;  %v201_v11 = vld [vmem:[%s3439_s1 + $0x90] sm:$0xff] }
   0x2   :  { %v231_v2 = vld [vmem:[%s3439_s1 + $0x180] sm:$0xff]  ;;  %v1865_v3 = vpack.c.bf16 %v200_v1, %v199_v0  ;;  %v232_v4 = vld [vmem:[%s3439_s1 + $0x188] sm:$0xff]  ;;  %v202_v13 = vld [vmem:[%s3439_s1 + $0x98] sm:$0xff] }
   0x3   :  { %v183_v5 = vld [vmem:[%s3439_s1] sm:$0xff]  ;;  %v184_v6 = vld [vmem:[%s3439_s1 + $0x8] sm:$0xff]  ;;  %v1897_v7 = vpack.c.bf16 %v232_v4, %v231_v2  ;;  %v233_v14 = vld [vmem:[%s3439_s1 + $0x190] sm:$0xff]  ;;  %v1869_v16 = vpack.c.bf16 %v202_v13, %v201_v11 }
   0x4   :  { %v1867_v8 = vpack.c.bf16 %v184_v6, %v183_v5  ;;  %v215_v9 = vld [vmem:[%s3439_s1 + $0x100] sm:$0xff]  ;;  %v216_v10 = vld [vmem:[%s3439_s1 + $0x108] sm:$0xff]  ;;  %1866 = vmatprep.subr.bf16.mxu0 %v1865_v3  ;;  %v234_v15 = vld [vmem:[%s3439_s1 + $0x198] sm:$0xff] }
   0x5   :  { %v1899_v12 = vpack.c.bf16 %v216_v10, %v215_v9  ;;  %1898 = vmatprep.subr.bf16.mxu1 %v1897_v7  ;;  %v1901_v17 = vpack.c.bf16 %v234_v15, %v233_v14  ;;  %v185_v18 = vld [vmem:[%s3439_s1 + $0x10] sm:$0xff]  ;;  %v186_v19 = vld [vmem:[%s3439_s1 + $0x18] sm:$0xff]  ;;  %v203_v23 = vld [vmem:[%s3439_s1 + $0xa0] sm:$0xff] }
   0x6   :  { %1868 = vmatpush3.bf16.msra.mxu0 %v1867_v8  ;;  %v217_v20 = vld [vmem:[%s3439_s1 + $0x110] sm:$0xff]  ;;  %v1871_v21 = vpack.c.bf16 %v186_v19, %v185_v18  ;;  %v218_v22 = vld [vmem:[%s3439_s1 + $0x118] sm:$0xff]  ;;  %v204_v24 = vld [vmem:[%s3439_s1 + $0xa8] sm:$0xff] }
   0x7   :  { %1900 = vmatpush3.bf16.msra.mxu1 %v1899_v12  ;;  %1870 = vmatprep.subr.bf16.mxu0 %v1869_v16  ;;  %v1903_v25 = vpack.c.bf16 %v218_v22, %v217_v20  ;;  %v1873_v26 = vpack.c.bf16 %v204_v24, %v203_v23  ;;  %v235_v27 = vld [vmem:[%s3439_s1 + $0x1a0] sm:$0xff]  ;;  %v236_v28 = vld [vmem:[%s3439_s1 + $0x1a8] sm:$0xff]  ;;  %v205_v35 = vld [vmem:[%s3439_s1 + $0xb0] sm:$0xff] }
   0x8   :  { %1902 = vmatprep.subr.bf16.mxu1 %v1901_v17  ;;  %v187_v29 = vld [vmem:[%s3439_s1 + $0x20] sm:$0xff]  ;;  %v1905_v30 = vpack.c.bf16 %v236_v28, %v235_v27  ;;  %v188_v31 = vld [vmem:[%s3439_s1 + $0x28] sm:$0xff]  ;;  %v206_v36 = vld [vmem:[%s3439_s1 + $0xb8] sm:$0xff] }
   0x9   :  { %v219_v32 = vld [vmem:[%s3439_s1 + $0x120] sm:$0xff]  ;;  %v220_v33 = vld [vmem:[%s3439_s1 + $0x128] sm:$0xff]  ;;  %v1875_v34 = vpack.c.bf16 %v188_v31, %v187_v29  ;;  %v237_v37 = vld [vmem:[%s3439_s1 + $0x1b0] sm:$0xff]  ;;  %v1877_v39 = vpack.c.bf16 %v206_v36, %v205_v35 }
   0xa   :  { %1872 = vmatpush3.bf16.msra.mxu0 %v1871_v21  ;;  %v1907_v38 = vpack.c.bf16 %v220_v33, %v219_v32  ;;  %v238_v40 = vld [vmem:[%s3439_s1 + $0x1b8] sm:$0xff]  ;;  %v189_v41 = vld [vmem:[%s3439_s1 + $0x30] sm:$0xff]  ;;  %v207_v46 = vld [vmem:[%s3439_s1 + $0xc0] sm:$0xff] }
   0xb   :  { %1904 = vmatpush3.bf16.msra.mxu1 %v1903_v25  ;;  %1874 = vmatprep.subr.bf16.mxu0 %v1873_v26  ;;  %v190_v42 = vld [vmem:[%s3439_s1 + $0x38] sm:$0xff]  ;;  %v1909_v43 = vpack.c.bf16 %v238_v40, %v237_v37  ;;  %v221_v44 = vld [vmem:[%s3439_s1 + $0x130] sm:$0xff]  ;;  %v208_v47 = vld [vmem:[%s3439_s1 + $0xc8] sm:$0xff] }
   0xc   :  { %1906 = vmatprep.subr.bf16.mxu1 %v1905_v30  ;;  %v222_v45 = vld [vmem:[%s3439_s1 + $0x138] sm:$0xff]  ;;  %v239_v48 = vld [vmem:[%s3439_s1 + $0x1c0] sm:$0xff]  ;;  %v240_v49 = vld [vmem:[%s3439_s1 + $0x1c8] sm:$0xff]  ;;  %v1879_v50 = vpack.c.bf16 %v190_v42, %v189_v41  ;;  %v1881_v52 = vpack.c.bf16 %v208_v47, %v207_v46 }
   0xd   :  { %v1911_v51 = vpack.c.bf16 %v222_v45, %v221_v44  ;;  %v191_v53 = vld [vmem:[%s3439_s1 + $0x40] sm:$0xff]  ;;  %v192_v54 = vld [vmem:[%s3439_s1 + $0x48] sm:$0xff]  ;;  %v1913_v56 = vpack.c.bf16 %v240_v49, %v239_v48  ;;  %v209_v58 = vld [vmem:[%s3439_s1 + $0xd0] sm:$0xff] }
   0xe   :  { %1876 = vmatpush3.bf16.msra.mxu0 %v1875_v34  ;;  %v223_v55 = vld [vmem:[%s3439_s1 + $0x140] sm:$0xff]  ;;  %v224_v57 = vld [vmem:[%s3439_s1 + $0x148] sm:$0xff]  ;;  %v210_v59 = vld [vmem:[%s3439_s1 + $0xd8] sm:$0xff]  ;;  %v1883_v62 = vpack.c.bf16 %v192_v54, %v191_v53 }
   0xf   :  { %1908 = vmatpush3.bf16.msra.mxu1 %v1907_v38  ;;  %1878 = vmatprep.subr.bf16.mxu0 %v1877_v39  ;;  %v241_v60 = vld [vmem:[%s3439_s1 + $0x1d0] sm:$0xff]  ;;  %v242_v61 = vld [vmem:[%s3439_s1 + $0x1d8] sm:$0xff]  ;;  %v1915_v63 = vpack.c.bf16 %v224_v57, %v223_v55  ;;  %v1885_v0 = vpack.c.bf16 %v210_v59, %v209_v58  ;;  %v211_v6 = vld [vmem:[%s3439_s1 + $0xe0] sm:$0xff] }
  0x10   :  { %1910 = vmatprep.subr.bf16.mxu1 %v1909_v43  ;;  %v193_v1 = vld [vmem:[%s3439_s1 + $0x50] sm:$0xff]  ;;  %v194_v2 = vld [vmem:[%s3439_s1 + $0x58] sm:$0xff]  ;;  %v1917_v4 = vpack.c.bf16 %v242_v61, %v241_v60  ;;  %v212_v7 = vld [vmem:[%s3439_s1 + $0xe8] sm:$0xff] }
  0x11   :  { %v225_v3 = vld [vmem:[%s3439_s1 + $0x150] sm:$0xff]  ;;  %v226_v5 = vld [vmem:[%s3439_s1 + $0x158] sm:$0xff]  ;;  %v243_v8 = vld [vmem:[%s3439_s1 + $0x1e0] sm:$0xff]  ;;  %v1887_v10 = vpack.c.bf16 %v194_v2, %v193_v1  ;;  %v1889_v14 = vpack.c.bf16 %v212_v7, %v211_v6 }
  0x12   :  { %1880 = vmatpush3.bf16.msra.mxu0 %v1879_v50  ;;  %v244_v9 = vld [vmem:[%s3439_s1 + $0x1e8] sm:$0xff]  ;;  %v195_v11 = vld [vmem:[%s3439_s1 + $0x60] sm:$0xff]  ;;  %v1919_v13 = vpack.c.bf16 %v226_v5, %v225_v3  ;;  %v17_v17 = vld [vmem:[%s3440_s0 + $0x18] sm:$0xff] }
  0x13   :  { %1912 = vmatpush3.bf16.msra.mxu1 %v1911_v51  ;;  %1882 = vmatprep.subr.bf16.mxu0 %v1881_v52  ;;  %v196_v12 = vld [vmem:[%s3439_s1 + $0x68] sm:$0xff]  ;;  %v227_v15 = vld [vmem:[%s3439_s1 + $0x160] sm:$0xff]  ;;  %v1921_v18 = vpack.c.bf16 %v244_v9, %v243_v8  ;;  %v213_v20 = vld [vmem:[%s3439_s1 + $0xf0] sm:$0xff] }
  0x14   :  { %1914 = vmatprep.subr.bf16.mxu1 %v1913_v56  ;;  %v15_v16 = vld [vmem:[%s3440_s0 + $0x8] sm:$0xff]  ;;  %v214_v21 = vld [vmem:[%s3439_s1 + $0xf8] sm:$0xff]  ;;  %v245_v22 = vld [vmem:[%s3439_s1 + $0x1f0] sm:$0xff]  ;;  %592 = vmatprep.mubr.f32.mxu1 %v17_v17  ;;  %v1891_v24 = vpack.c.bf16 %v196_v12, %v195_v11 }
  0x15   :  { %v228_v19 = vld [vmem:[%s3439_s1 + $0x168] sm:$0xff]  ;;  %462 = vmatprep.mubr.f32.mxu0 %v15_v16  ;;  %v246_v23 = vld [vmem:[%s3439_s1 + $0x1f8] sm:$0xff]  ;;  %v1893_v26 = vpack.c.bf16 %v214_v21, %v213_v20  ;;  %v197_v27 = vld [vmem:[%s3439_s1 + $0x70] sm:$0xff] }
  0x16   :  { %1884 = vmatpush3.bf16.msra.mxu0 %v1883_v62  ;;  %v1923_v25 = vpack.c.bf16 %v228_v19, %v227_v15  ;;  %v198_v28 = vld [vmem:[%s3439_s1 + $0x78] sm:$0xff]  ;;  %v229_v29 = vld [vmem:[%s3439_s1 + $0x170] sm:$0xff]  ;;  %v1925_v30 = vpack.c.bf16 %v246_v23, %v245_v22  ;;  %v263_v32 = vld [vmem:[%s3439_s1 + $0x280] sm:$0xff] }
  0x17   :  { %1916 = vmatpush3.bf16.msra.mxu1 %v1915_v63  ;;  %1886 = vmatprep.subr.bf16.mxu0 %v1885_v0  ;;  %v230_v31 = vld [vmem:[%s3439_s1 + $0x178] sm:$0xff]  ;;  %v264_v33 = vld [vmem:[%s3439_s1 + $0x288] sm:$0xff]  ;;  %v295_v34 = vld [vmem:[%s3439_s1 + $0x380] sm:$0xff]  ;;  %v1895_v36 = vpack.c.bf16 %v198_v28, %v197_v27 }
  0x18   :  { %1918 = vmatprep.subr.bf16.mxu1 %v1917_v4  ;;  %v296_v35 = vld [vmem:[%s3439_s1 + $0x388] sm:$0xff]  ;;  %v1927_v37 = vpack.c.bf16 %v230_v31, %v229_v29  ;;  %v1929_v38 = vpack.c.bf16 %v264_v33, %v263_v32  ;;  %v247_v39 = vld [vmem:[%s3439_s1 + $0x200] sm:$0xff]  ;;  %v265_v44 = vld [vmem:[%s3439_s1 + $0x290] sm:$0xff] }
  0x19   :  { %v248_v40 = vld [vmem:[%s3439_s1 + $0x208] sm:$0xff]  ;;  %v1961_v41 = vpack.c.bf16 %v296_v35, %v295_v34  ;;  %v279_v42 = vld [vmem:[%s3439_s1 + $0x300] sm:$0xff]  ;;  %v266_v45 = vld [vmem:[%s3439_s1 + $0x298] sm:$0xff] }
  0x1a   :  { %1888 = vmatpush3.bf16.msra.mxu0 %v1887_v10  ;;  %v280_v43 = vld [vmem:[%s3439_s1 + $0x308] sm:$0xff]  ;;  %v14_v46 = vld [vmem:[%s3440_s0] sm:$0xff]  ;;  %v1931_v47 = vpack.c.bf16 %v248_v40, %v247_v39  ;;  %v297_v48 = vld [vmem:[%s3439_s1 + $0x390] sm:$0xff]  ;;  %v1933_v54 = vpack.c.bf16 %v266_v45, %v265_v44 }
  0x1b   :  { %1920 = vmatpush3.bf16.msra.mxu1 %v1919_v13  ;;  %1890 = vmatprep.subr.bf16.mxu0 %v1889_v14  ;;  %v298_v49 = vld [vmem:[%s3439_s1 + $0x398] sm:$0xff]  ;;  %v16_v50 = vld [vmem:[%s3440_s0 + $0x10] sm:$0xff]  ;;  %v30_v52 = vld [vmem:[%s3440_s0 + $0x80] sm:$0xff]  ;;  %v1963_v53 = vpack.c.bf16 %v280_v43, %v279_v42 }
  0x1c   :  { %1922 = vmatprep.subr.bf16.mxu1 %v1921_v18  ;;  %v28_v51 = vld [vmem:[%s3440_s0 + $0x70] sm:$0xff]  ;;  %v250_v56 = vld [vmem:[%s3439_s1 + $0x218] sm:$0xff]  ;;  %v1965_v58 = vpack.c.bf16 %v298_v49, %v297_v48  ;;  %v267_v60 = vld [vmem:[%s3439_s1 + $0x2a0] sm:$0xff] }
  0x1d   :  { %v249_v55 = vld [vmem:[%s3439_s1 + $0x210] sm:$0xff]  ;;  %v282_v59 = vld [vmem:[%s3439_s1 + $0x318] sm:$0xff]  ;;  %v268_v61 = vld [vmem:[%s3439_s1 + $0x2a8] sm:$0xff] }
  0x1e   :  { %1892 = vmatpush3.bf16.msra.mxu0 %v1891_v24  ;;  %v281_v57 = vld [vmem:[%s3439_s1 + $0x310] sm:$0xff]  ;;  %v27_v62 = vld [vmem:[%s3440_s0 + $0x68] sm:$0xff]  ;;  %v299_v63 = vld [vmem:[%s3439_s1 + $0x3a0] sm:$0xff]  ;;  %v1935_v4 = vpack.c.bf16 %v250_v56, %v249_v55  ;;  %v1937_v6 = vpack.c.bf16 %v268_v61, %v267_v60 }
  0x1f   :  { %1924 = vmatpush3.bf16.msra.mxu1 %v1923_v25  ;;  %1894 = vmatprep.subr.bf16.mxu0 %v1893_v26  ;;  %v300_v0 = vld [vmem:[%s3439_s1 + $0x3a8] sm:$0xff]  ;;  %v29_v1 = vld [vmem:[%s3440_s0 + $0x78] sm:$0xff]  ;;  %v1967_v5 = vpack.c.bf16 %v282_v59, %v281_v57  ;;  %v251_v7 = vld [vmem:[%s3439_s1 + $0x220] sm:$0xff] }
  0x20   :  { %1926 = vmatprep.subr.bf16.mxu1 %v1925_v30  ;;  %v41_v2 = vld [vmem:[%s3440_s0 + $0xd8] sm:$0xff]  ;;  %v43_v3 = vld [vmem:[%s3440_s0 + $0xe8] sm:$0xff]  ;;  %v283_v9 = vld [vmem:[%s3439_s1 + $0x320] sm:$0xff]  ;;  %v1969_v10 = vpack.c.bf16 %v300_v0, %v299_v63 }
  0x21   :  { %v252_v8 = vld [vmem:[%s3439_s1 + $0x228] sm:$0xff]  ;;  %v269_v12 = vld [vmem:[%s3439_s1 + $0x2b0] sm:$0xff]  ;;  %v270_v13 = vld [vmem:[%s3439_s1 + $0x2b8] sm:$0xff] }
  0x22   :  { %1896 = vmatpush3.bf16.msra.mxu0 %v1895_v36  ;;  %v284_v11 = vld [vmem:[%s3439_s1 + $0x328] sm:$0xff]  ;;  %v40_v14 = vld [vmem:[%s3440_s0 + $0xd0] sm:$0xff]  ;;  %v302_v16 = vld [vmem:[%s3439_s1 + $0x3b8] sm:$0xff]  ;;  %v1939_v20 = vpack.c.bf16 %v252_v8, %v251_v7  ;;  %v1941_v22 = vpack.c.bf16 %v270_v13, %v269_v12 }
  0x23   :  { %1928 = vmatpush3.bf16.msra.mxu1 %v1927_v37  ;;  %1930 = vmatprep.subr.bf16.mxu0 %v1929_v38  ;;  %v301_v15 = vld [vmem:[%s3439_s1 + $0x3b0] sm:$0xff]  ;;  %v42_v17 = vld [vmem:[%s3440_s0 + $0xe0] sm:$0xff]  ;;  %v1971_v21 = vpack.c.bf16 %v284_v11, %v283_v9  ;;  %v254_v24 = vld [vmem:[%s3439_s1 + $0x238] sm:$0xff] }
  0x24   :  { %1962 = vmatprep.subr.bf16.mxu1 %v1961_v41  ;;  %v54_v18 = vld [vmem:[%s3440_s0 + $0x140] sm:$0xff]  ;;  %v56_v19 = vld [vmem:[%s3440_s0 + $0x150] sm:$0xff]  ;;  %v1973_v26 = vpack.c.bf16 %v302_v16, %v301_v15  ;;  %v286_v27 = vld [vmem:[%s3439_s1 + $0x338] sm:$0xff] }
  0x25   :  { %463 = vmatmul.mubr.f32.vlgmr.msra.gmra.mrb[0].mxu0 %v14_v46  ;;  %v253_v23 = vld [vmem:[%s3439_s1 + $0x230] sm:$0xff]  ;;  %v271_v28 = vld [vmem:[%s3439_s1 + $0x2c0] sm:$0xff]  ;;  %v272_v29 = vld [vmem:[%s3439_s1 + $0x2c8] sm:$0xff] }
  0x26   :  { %593 = vmatmul.mubr.f32.vlgmr.msra.gmra.mrb[0].mxu1 %v16_v50  ;;  %1932 = vmatpush3.bf16.msra.mxu0 %v1931_v47  ;;  %v285_v25 = vld [vmem:[%s3439_s1 + $0x330] sm:$0xff]  ;;  %v53_v30 = vld [vmem:[%s3440_s0 + $0x138] sm:$0xff]  ;;  %v303_v31 = vld [vmem:[%s3439_s1 + $0x3c0] sm:$0xff]  ;;  %v1943_v36 = vpack.c.bf16 %v254_v24, %v253_v23  ;;  %v1945_v38 = vpack.c.bf16 %v272_v29, %v271_v28 }
  0x27   :  { %467 = vmatprep.mubr.f32.mxu0 %v28_v51  ;;  %597 = vmatprep.mubr.f32.mxu1 %v30_v52  ;;  %v304_v32 = vld [vmem:[%s3439_s1 + $0x3c8] sm:$0xff]  ;;  %v69_v35 = vld [vmem:[%s3440_s0 + $0x1b8] sm:$0xff]  ;;  %v1975_v37 = vpack.c.bf16 %v286_v27, %v285_v25  ;;  %v255_v39 = vld [vmem:[%s3439_s1 + $0x240] sm:$0xff] }
  0x28   :  { %1964 = vmatpush3.bf16.msra.mxu1 %v1963_v53  ;;  %1934 = vmatprep.subr.bf16.mxu0 %v1933_v54  ;;  %v55_v33 = vld [vmem:[%s3440_s0 + $0x148] sm:$0xff]  ;;  %v287_v41 = vld [vmem:[%s3439_s1 + $0x340] sm:$0xff]  ;;  %v1977_v42 = vpack.c.bf16 %v304_v32, %v303_v31  ;;  %v273_v44 = vld [vmem:[%s3439_s1 + $0x2d0] sm:$0xff] }
  0x29   :  { %468 = vmatmul.mubr.f32.gmra.mrb[2].mxu0 %v27_v62  ;;  %1966 = vmatprep.subr.bf16.mxu1 %v1965_v58  ;;  %v67_v34 = vld [vmem:[%s3440_s0 + $0x1a8] sm:$0xff]  ;;  %v274_v45 = vld [vmem:[%s3439_s1 + $0x2d8] sm:$0xff]  ;;  %v66_v46 = vld [vmem:[%s3440_s0 + $0x1a0] sm:$0xff] }
  0x2a   :  { %598 = vmatmul.mubr.f32.gmra.mrb[2].mxu1 %v29_v1  ;;  %472 = vmatprep.mubr.f32.mxu0 %v41_v2  ;;  %v256_v40 = vld [vmem:[%s3439_s1 + $0x248] sm:$0xff]  ;;  %v68_v47 = vld [vmem:[%s3440_s0 + $0x1b0] sm:$0xff]  ;;  %v82_v49 = vld [vmem:[%s3440_s0 + $0x220] sm:$0xff]  ;;  %v1949_v54 = vpack.c.bf16 %v274_v45, %v273_v44 }
  0x2b   :  { %602 = vmatprep.mubr.f32.mxu1 %v43_v3  ;;  %1936 = vmatpush3.bf16.msra.mxu0 %v1935_v4  ;;  %v288_v43 = vld [vmem:[%s3439_s1 + $0x348] sm:$0xff]  ;;  %v80_v48 = vld [vmem:[%s3440_s0 + $0x210] sm:$0xff]  ;;  %v1947_v50 = vpack.c.bf16 %v256_v40, %v255_v39  ;;  %v306_v52 = vld [vmem:[%s3439_s1 + $0x3d8] sm:$0xff] }
  0x2c   :  { %1968 = vmatpush3.bf16.msra.mxu1 %v1967_v5  ;;  %1938 = vmatprep.subr.bf16.mxu0 %v1937_v6  ;;  %v305_v51 = vld [vmem:[%s3439_s1 + $0x3d0] sm:$0xff]  ;;  %v1979_v53 = vpack.c.bf16 %v288_v43, %v287_v41  ;;  %v258_v56 = vld [vmem:[%s3439_s1 + $0x258] sm:$0xff]  ;;  %v275_v60 = vld [vmem:[%s3439_s1 + $0x2e0] sm:$0xff] }
  0x2d   :  { %473 = vmatmul.mubr.f32.gmra.mrb[4].mxu0 %v40_v14  ;;  %1970 = vmatprep.subr.bf16.mxu1 %v1969_v10  ;;  %v257_v55 = vld [vmem:[%s3439_s1 + $0x250] sm:$0xff]  ;;  %v1981_v58 = vpack.c.bf16 %v306_v52, %v305_v51  ;;  %v290_v59 = vld [vmem:[%s3439_s1 + $0x358] sm:$0xff]  ;;  %v276_v61 = vld [vmem:[%s3439_s1 + $0x2e8] sm:$0xff] }
  0x2e   :  { %603 = vmatmul.mubr.f32.gmra.mrb[4].mxu1 %v42_v17  ;;  %477 = vmatprep.mubr.f32.mxu0 %v54_v18  ;;  %v289_v57 = vld [vmem:[%s3439_s1 + $0x350] sm:$0xff]  ;;  %v79_v62 = vld [vmem:[%s3440_s0 + $0x208] sm:$0xff]  ;;  %v81_v63 = vld [vmem:[%s3440_s0 + $0x218] sm:$0xff]  ;;  %v1951_v2 = vpack.c.bf16 %v258_v56, %v257_v55  ;;  %v1953_v5 = vpack.c.bf16 %v276_v61, %v275_v60 }
  0x2f   :  { %607 = vmatprep.mubr.f32.mxu1 %v56_v19  ;;  %1940 = vmatpush3.bf16.msra.mxu0 %v1939_v20  ;;  %v93_v0 = vld [vmem:[%s3440_s0 + $0x278] sm:$0xff]  ;;  %v95_v1 = vld [vmem:[%s3440_s0 + $0x288] sm:$0xff]  ;;  %v259_v3 = vld [vmem:[%s3439_s1 + $0x260] sm:$0xff]  ;;  %v1983_v4 = vpack.c.bf16 %v290_v59, %v289_v57 }
  0x30   :  { %1972 = vmatpush3.bf16.msra.mxu1 %v1971_v21  ;;  %1942 = vmatprep.subr.bf16.mxu0 %v1941_v22  ;;  %v260_v6 = vld [vmem:[%s3439_s1 + $0x268] sm:$0xff]  ;;  %v307_v7 = vld [vmem:[%s3439_s1 + $0x3e0] sm:$0xff]  ;;  %v92_v12 = vld [vmem:[%s3440_s0 + $0x270] sm:$0xff] }
  0x31   :  { %478 = vmatmul.mubr.f32.gmra.mrb[6].mxu0 %v53_v30  ;;  %1974 = vmatprep.subr.bf16.mxu1 %v1973_v26  ;;  %v308_v8 = vld [vmem:[%s3439_s1 + $0x3e8] sm:$0xff]  ;;  %v291_v10 = vld [vmem:[%s3439_s1 + $0x360] sm:$0xff]  ;;  %v277_v13 = vld [vmem:[%s3439_s1 + $0x2f0] sm:$0xff]  ;;  %v1955_v18 = vpack.c.bf16 %v260_v6, %v259_v3 }
  0x32   :  { %608 = vmatmul.mubr.f32.gmra.mrb[6].mxu1 %v55_v33  ;;  %482 = vmatprep.mubr.f32.mxu0 %v67_v34  ;;  %v1985_v9 = vpack.c.bf16 %v308_v8, %v307_v7  ;;  %v292_v11 = vld [vmem:[%s3439_s1 + $0x368] sm:$0xff]  ;;  %v278_v14 = vld [vmem:[%s3439_s1 + $0x2f8] sm:$0xff]  ;;  %v94_v15 = vld [vmem:[%s3440_s0 + $0x280] sm:$0xff] }
  0x33   :  { %612 = vmatprep.mubr.f32.mxu1 %v69_v35  ;;  %1944 = vmatpush3.bf16.msra.mxu0 %v1943_v36  ;;  %v106_v16 = vld [vmem:[%s3440_s0 + $0x2e0] sm:$0xff]  ;;  %v108_v17 = vld [vmem:[%s3440_s0 + $0x2f0] sm:$0xff]  ;;  %v1987_v19 = vpack.c.bf16 %v292_v11, %v291_v10  ;;  %v1957_v20 = vpack.c.bf16 %v278_v14, %v277_v13  ;;  %v262_v22 = vld [vmem:[%s3439_s1 + $0x278] sm:$0xff] }
  0x34   :  { %1976 = vmatpush3.bf16.msra.mxu1 %v1975_v37  ;;  %1946 = vmatprep.subr.bf16.mxu0 %v1945_v38  ;;  %v261_v21 = vld [vmem:[%s3439_s1 + $0x270] sm:$0xff]  ;;  %v310_v24 = vld [vmem:[%s3439_s1 + $0x3f8] sm:$0xff]  ;;  %v107_v28 = vld [vmem:[%s3440_s0 + $0x2e8] sm:$0xff] }
  0x35   :  { %483 = vmatmul.mubr.f32.gmra.mrb[8].mxu0 %v66_v46  ;;  %1978 = vmatprep.subr.bf16.mxu1 %v1977_v42  ;;  %v309_v23 = vld [vmem:[%s3439_s1 + $0x3f0] sm:$0xff]  ;;  %v294_v26 = vld [vmem:[%s3439_s1 + $0x378] sm:$0xff]  ;;  %v119_v30 = vld [vmem:[%s3440_s0 + $0x348] sm:$0xff]  ;;  %v1959_v31 = vpack.c.bf16 %v262_v22, %v261_v21 }
  0x36   :  { %613 = vmatmul.mubr.f32.gmra.mrb[8].mxu1 %v68_v47  ;;  %487 = vmatprep.mubr.f32.mxu0 %v80_v48  ;;  %v293_v25 = vld [vmem:[%s3439_s1 + $0x370] sm:$0xff]  ;;  %v105_v27 = vld [vmem:[%s3440_s0 + $0x2d8] sm:$0xff]  ;;  %v1989_v29 = vpack.c.bf16 %v310_v24, %v309_v23  ;;  %v327_v32 = vld [vmem:[%s3439_s1 + $0x480] sm:$0xff] }
  0x37   :  { %617 = vmatprep.mubr.f32.mxu1 %v82_v49  ;;  %1948 = vmatpush3.bf16.msra.mxu0 %v1947_v50  ;;  %v328_v33 = vld [vmem:[%s3439_s1 + $0x488] sm:$0xff]  ;;  %v121_v34 = vld [vmem:[%s3440_s0 + $0x358] sm:$0xff]  ;;  %v1991_v35 = vpack.c.bf16 %v294_v26, %v293_v25  ;;  %v118_v37 = vld [vmem:[%s3440_s0 + $0x340] sm:$0xff] }
  0x38   :  { %1980 = vmatpush3.bf16.msra.mxu1 %v1979_v53  ;;  %1950 = vmatprep.subr.bf16.mxu0 %v1949_v54  ;;  %v1993_v36 = vpack.c.bf16 %v328_v33, %v327_v32  ;;  %v359_v38 = vld [vmem:[%s3439_s1 + $0x580] sm:$0xff]  ;;  %v360_v39 = vld [vmem:[%s3439_s1 + $0x588] sm:$0xff]  ;;  %v120_v40 = vld [vmem:[%s3440_s0 + $0x350] sm:$0xff] }
  0x39   :  { %488 = vmatmul.mubr.f32.gmra.mrb[10].mxu0 %v79_v62  ;;  %1982 = vmatprep.subr.bf16.mxu1 %v1981_v58  ;;  %v132_v41 = vld [vmem:[%s3440_s0 + $0x3b0] sm:$0xff]  ;;  %v2025_v42 = vpack.c.bf16 %v360_v39, %v359_v38  ;;  %v134_v43 = vld [vmem:[%s3440_s0 + $0x3c0] sm:$0xff]  ;;  %v131_v44 = vld [vmem:[%s3440_s0 + $0x3a8] sm:$0xff] }
  0x3a   :  { %618 = vmatmul.mubr.f32.gmra.mrb[10].mxu1 %v81_v63  ;;  %492 = vmatprep.mubr.f32.mxu0 %v93_v0  ;;  %v133_v45 = vld [vmem:[%s3440_s0 + $0x3b8] sm:$0xff]  ;;  %v147_v47 = vld [vmem:[%s3440_s0 + $0x428] sm:$0xff]  ;;  %v144_v48 = vld [vmem:[%s3440_s0 + $0x410] sm:$0xff] }
  0x3b   :  { %622 = vmatprep.mubr.f32.mxu1 %v95_v1  ;;  %1952 = vmatpush3.bf16.msra.mxu0 %v1951_v2  ;;  %v145_v46 = vld [vmem:[%s3440_s0 + $0x418] sm:$0xff]  ;;  %v146_v49 = vld [vmem:[%s3440_s0 + $0x420] sm:$0xff]  ;;  %v160_v51 = vld [vmem:[%s3440_s0 + $0x490] sm:$0xff] }
  0x3c   :  { %1984 = vmatpush3.bf16.msra.mxu1 %v1983_v4  ;;  %1954 = vmatprep.subr.bf16.mxu0 %v1953_v5  ;;  %v158_v50 = vld [vmem:[%s3440_s0 + $0x480] sm:$0xff]  ;;  %v157_v52 = vld [vmem:[%s3440_s0 + $0x478] sm:$0xff]  ;;  %v159_v53 = vld [vmem:[%s3440_s0 + $0x488] sm:$0xff] }
  0x3d   :  { %493 = vmatmul.mubr.f32.gmra.mrb[12].mxu0 %v92_v12  ;;  %1986 = vmatprep.subr.bf16.mxu1 %v1985_v9  ;;  %v171_v54 = vld [vmem:[%s3440_s0 + $0x4e8] sm:$0xff]  ;;  %v173_v55 = vld [vmem:[%s3440_s0 + $0x4f8] sm:$0xff]  ;;  %v170_v56 = vld [vmem:[%s3440_s0 + $0x4e0] sm:$0xff] }
  0x3e   :  { %623 = vmatmul.mubr.f32.gmra.mrb[12].mxu1 %v94_v15  ;;  %497 = vmatprep.mubr.f32.mxu0 %v106_v16  ;;  %v172_v57 = vld [vmem:[%s3440_s0 + $0x4f0] sm:$0xff]  ;;  %v19_v58 = vld [vmem:[%s3440_s0 + $0x28] sm:$0xff]  ;;  %v311_v59 = vld [vmem:[%s3439_s1 + $0x400] sm:$0xff] }
  0x3f   :  { %627 = vmatprep.mubr.f32.mxu1 %v108_v17  ;;  %1956 = vmatpush3.bf16.msra.mxu0 %v1955_v18  ;;  %v312_v60 = vld [vmem:[%s3439_s1 + $0x408] sm:$0xff]  ;;  %v21_v61 = vld [vmem:[%s3440_s0 + $0x38] sm:$0xff]  ;;  %v343_v62 = vld [vmem:[%s3439_s1 + $0x500] sm:$0xff] }
  0x40   :  { %1988 = vmatpush3.bf16.msra.mxu1 %v1987_v19  ;;  %1958 = vmatprep.subr.bf16.mxu0 %v1957_v20  ;;  %v344_v63 = vld [vmem:[%s3439_s1 + $0x508] sm:$0xff]  ;;  %v329_v0 = vld [vmem:[%s3439_s1 + $0x490] sm:$0xff]  ;;  %v330_v1 = vld [vmem:[%s3439_s1 + $0x498] sm:$0xff]  ;;  %v1995_v3 = vpack.c.bf16 %v312_v60, %v311_v59 }
  0x41   :  { %498 = vmatmul.mubr.f32.gmra.mrb[14].mxu0 %v105_v27  ;;  %1990 = vmatprep.subr.bf16.mxu1 %v1989_v29  ;;  %v18_v2 = vld [vmem:[%s3440_s0 + $0x20] sm:$0xff]  ;;  %v361_v4 = vld [vmem:[%s3439_s1 + $0x590] sm:$0xff]  ;;  %v362_v5 = vld [vmem:[%s3439_s1 + $0x598] sm:$0xff]  ;;  %v2027_v9 = vpack.c.bf16 %v344_v63, %v343_v62  ;;  %v1997_v10 = vpack.c.bf16 %v330_v1, %v329_v0 }
  0x42   :  { %628 = vmatmul.mubr.f32.gmra.mrb[14].mxu1 %v107_v28  ;;  %502 = vmatprep.mubr.f32.mxu0 %v119_v30  ;;  %v20_v6 = vld [vmem:[%s3440_s0 + $0x30] sm:$0xff]  ;;  %v34_v8 = vld [vmem:[%s3440_s0 + $0xa0] sm:$0xff]  ;;  %v314_v12 = vld [vmem:[%s3439_s1 + $0x418] sm:$0xff]  ;;  %v2029_v14 = vpack.c.bf16 %v362_v5, %v361_v4 }
  0x43   :  { %632 = vmatprep.mubr.f32.mxu1 %v121_v34  ;;  %1960 = vmatpush3.bf16.msra.mxu0 %v1959_v31  ;;  %v32_v7 = vld [vmem:[%s3440_s0 + $0x90] sm:$0xff]  ;;  %v346_v15 = vld [vmem:[%s3439_s1 + $0x518] sm:$0xff]  ;;  %v331_v16 = vld [vmem:[%s3439_s1 + $0x4a0] sm:$0xff] }
  0x44   :  { %1992 = vmatpush3.bf16.msra.mxu1 %v1991_v35  ;;  %1994 = vmatprep.subr.bf16.mxu0 %v1993_v36  ;;  %v313_v11 = vld [vmem:[%s3439_s1 + $0x410] sm:$0xff]  ;;  %v332_v17 = vld [vmem:[%s3439_s1 + $0x4a8] sm:$0xff]  ;;  %v363_v19 = vld [vmem:[%s3439_s1 + $0x5a0] sm:$0xff] }
  0x45   :  { %503 = vmatmul.mubr.f32.gmra.mrb[16].mxu0 %v118_v37  ;;  %2026 = vmatprep.subr.bf16.mxu1 %v2025_v42  ;;  %v345_v13 = vld [vmem:[%s3439_s1 + $0x510] sm:$0xff]  ;;  %v31_v18 = vld [vmem:[%s3440_s0 + $0x88] sm:$0xff]  ;;  %v33_v21 = vld [vmem:[%s3440_s0 + $0x98] sm:$0xff]  ;;  %v1999_v24 = vpack.c.bf16 %v314_v12, %v313_v11  ;;  %v2001_v26 = vpack.c.bf16 %v332_v17, %v331_v16 }
  0x46   :  { %633 = vmatmul.mubr.f32.gmra.mrb[16].mxu1 %v120_v40  ;;  %507 = vmatprep.mubr.f32.mxu0 %v132_v41  ;;  %v364_v20 = vld [vmem:[%s3439_s1 + $0x5a8] sm:$0xff]  ;;  %v45_v22 = vld [vmem:[%s3440_s0 + $0xf8] sm:$0xff]  ;;  %v2031_v25 = vpack.c.bf16 %v346_v15, %v345_v13  ;;  %v315_v27 = vld [vmem:[%s3439_s1 + $0x420] sm:$0xff] }
  0x47   :  { %637 = vmatprep.mubr.f32.mxu1 %v134_v43  ;;  %v47_v23 = vld [vmem:[%s3440_s0 + $0x108] sm:$0xff]  ;;  %v347_v29 = vld [vmem:[%s3439_s1 + $0x520] sm:$0xff]  ;;  %v2033_v30 = vpack.c.bf16 %v364_v20, %v363_v19  ;;  %v333_v32 = vld [vmem:[%s3439_s1 + $0x4b0] sm:$0xff] }
  0x48   :  { %v316_v28 = vld [vmem:[%s3439_s1 + $0x428] sm:$0xff]  ;;  %v334_v33 = vld [vmem:[%s3439_s1 + $0x4b8] sm:$0xff]  ;;  %v44_v34 = vld [vmem:[%s3440_s0 + $0xf0] sm:$0xff] }
  0x49   :  { %508 = vmatmul.mubr.f32.gmra.mrb[18].mxu0 %v131_v44  ;;  %v348_v31 = vld [vmem:[%s3439_s1 + $0x528] sm:$0xff]  ;;  %v365_v35 = vld [vmem:[%s3439_s1 + $0x5b0] sm:$0xff]  ;;  %v366_v36 = vld [vmem:[%s3439_s1 + $0x5b8] sm:$0xff]  ;;  %v2003_v40 = vpack.c.bf16 %v316_v28, %v315_v27  ;;  %v2005_v42 = vpack.c.bf16 %v334_v33, %v333_v32 }
  0x4a   :  { %638 = vmatmul.mubr.f32.gmra.mrb[18].mxu1 %v133_v45  ;;  %512 = vmatprep.mubr.f32.mxu0 %v145_v46  ;;  %v46_v37 = vld [vmem:[%s3440_s0 + $0x100] sm:$0xff]  ;;  %v60_v39 = vld [vmem:[%s3440_s0 + $0x170] sm:$0xff]  ;;  %v2035_v41 = vpack.c.bf16 %v348_v31, %v347_v29  ;;  %v318_v44 = vld [vmem:[%s3439_s1 + $0x438] sm:$0xff]  ;;  %v2037_v46 = vpack.c.bf16 %v366_v36, %v365_v35 }
  0x4b   :  { %642 = vmatprep.mubr.f32.mxu1 %v147_v47  ;;  %v58_v38 = vld [vmem:[%s3440_s0 + $0x160] sm:$0xff]  ;;  %v317_v43 = vld [vmem:[%s3439_s1 + $0x430] sm:$0xff]  ;;  %v350_v47 = vld [vmem:[%s3439_s1 + $0x538] sm:$0xff] }
  0x4c   :  { %v349_v45 = vld [vmem:[%s3439_s1 + $0x530] sm:$0xff]  ;;  %v319_v59 = vld [vmem:[%s3439_s1 + $0x440] sm:$0xff]  ;;  %v320_v60 = vld [vmem:[%s3439_s1 + $0x448] sm:$0xff] }
  0x4d   :  { %513 = vmatmul.mubr.f32.gmra.mrb[20].mxu0 %v144_v48  ;;  %v335_v48 = vld [vmem:[%s3439_s1 + $0x4c0] sm:$0xff]  ;;  %v352_v63 = vld [vmem:[%s3439_s1 + $0x548] sm:$0xff]  ;;  %v337_v0 = vld [vmem:[%s3439_s1 + $0x4d0] sm:$0xff] }
  0x4e   :  { %643 = vmatmul.mubr.f32.gmra.mrb[20].mxu1 %v146_v49  ;;  %517 = vmatprep.mubr.f32.mxu0 %v158_v50  ;;  %v336_v49 = vld [vmem:[%s3439_s1 + $0x4c8] sm:$0xff]  ;;  %v57_v50 = vld [vmem:[%s3440_s0 + $0x158] sm:$0xff]  ;;  %v72_v5 = vld [vmem:[%s3440_s0 + $0x1d0] sm:$0xff] }
  0x4f   :  { %647 = vmatprep.mubr.f32.mxu1 %v160_v51  ;;  %v367_v51 = vld [vmem:[%s3439_s1 + $0x5c0] sm:$0xff]  ;;  %v338_v1 = vld [vmem:[%s3439_s1 + $0x4d8] sm:$0xff]  ;;  %v321_v11 = vld [vmem:[%s3439_s1 + $0x450] sm:$0xff] }
  0x50   :  { %v370_v4 = vld [vmem:[%s3439_s1 + $0x5d8] sm:$0xff]  ;;  %v353_v13 = vld [vmem:[%s3439_s1 + $0x550] sm:$0xff]  ;;  %v339_v16 = vld [vmem:[%s3439_s1 + $0x4e0] sm:$0xff] }
  0x51   :  { %518 = vmatmul.mubr.f32.gmra.mrb[22].mxu0 %v157_v52  ;;  %v368_v52 = vld [vmem:[%s3439_s1 + $0x5c8] sm:$0xff]  ;;  %v322_v12 = vld [vmem:[%s3439_s1 + $0x458] sm:$0xff]  ;;  %v371_v19 = vld [vmem:[%s3439_s1 + $0x5e0] sm:$0xff] }
  0x52   :  { %648 = vmatmul.mubr.f32.gmra.mrb[22].mxu1 %v159_v53  ;;  %522 = vmatprep.mubr.f32.mxu0 %v171_v54  ;;  %v59_v53 = vld [vmem:[%s3440_s0 + $0x168] sm:$0xff]  ;;  %v2041_v62 = vpack.c.bf16 %v368_v52, %v367_v51  ;;  %v354_v15 = vld [vmem:[%s3439_s1 + $0x558] sm:$0xff]  ;;  %v323_v27 = vld [vmem:[%s3439_s1 + $0x460] sm:$0xff] }
  0x53   :  { %652 = vmatprep.mubr.f32.mxu1 %v173_v55  ;;  %v71_v54 = vld [vmem:[%s3440_s0 + $0x1c8] sm:$0xff]  ;;  %v73_v55 = vld [vmem:[%s3440_s0 + $0x1d8] sm:$0xff]  ;;  %v355_v29 = vld [vmem:[%s3439_s1 + $0x560] sm:$0xff] }
  0x54   :  { %v340_v17 = vld [vmem:[%s3439_s1 + $0x4e8] sm:$0xff]  ;;  %v341_v32 = vld [vmem:[%s3439_s1 + $0x4f0] sm:$0xff]  ;;  %v342_v33 = vld [vmem:[%s3439_s1 + $0x4f8] sm:$0xff] }
  0x55   :  { %523 = vmatmul.mubr.f32.gmra.mrb[24].mxu0 %v170_v56  ;;  %v2007_v56 = vpack.c.bf16 %v318_v44, %v317_v43  ;;  %v372_v20 = vld [vmem:[%s3439_s1 + $0x5e8] sm:$0xff]  ;;  %v373_v35 = vld [vmem:[%s3439_s1 + $0x5f0] sm:$0xff]  ;;  %v374_v36 = vld [vmem:[%s3439_s1 + $0x5f8] sm:$0xff] }
  0x56   :  { %653 = vmatmul.mubr.f32.gmra.mrb[24].mxu1 %v172_v57  ;;  %722 = vmatprep.mubr.f32.mxu0 %v19_v58  ;;  %v2039_v57 = vpack.c.bf16 %v350_v47, %v349_v45  ;;  %v2009_v58 = vpack.c.bf16 %v336_v49, %v335_v48  ;;  %v324_v28 = vld [vmem:[%s3439_s1 + $0x468] sm:$0xff]  ;;  %v325_v43 = vld [vmem:[%s3439_s1 + $0x470] sm:$0xff]  ;;  %v326_v44 = vld [vmem:[%s3439_s1 + $0x478] sm:$0xff]  ;;  %v2053_v45 = vpack.c.bf16 %v374_v36, %v373_v35 }
  0x57   :  { %852 = vmatprep.mubr.f32.mxu1 %v21_v61  ;;  %v351_v61 = vld [vmem:[%s3439_s1 + $0x540] sm:$0xff]  ;;  %v356_v31 = vld [vmem:[%s3439_s1 + $0x568] sm:$0xff]  ;;  %v358_v47 = vld [vmem:[%s3439_s1 + $0x578] sm:$0xff]  ;;  %v2023_v51 = vpack.c.bf16 %v326_v44, %v325_v43 }
  0x58   :  { %v109_v48 = vld [vmem:[%s3440_s0 + $0x2f8] sm:$0xff]  ;;  %v111_v49 = vld [vmem:[%s3440_s0 + $0x308] sm:$0xff]  ;;  %v88_v43 = vld [vmem:[%s3440_s0 + $0x250] sm:$0xff] }
  0x59   :  { %723 = vmatmul.mubr.f32.vlgmr.msra.gmra.mrb[26].mxu0 %v18_v2  ;;  %v70_v2 = vld [vmem:[%s3440_s0 + $0x1c0] sm:$0xff]  ;;  %v125_v52 = vld [vmem:[%s3440_s0 + $0x378] sm:$0xff]  ;;  %v63_v35 = vld [vmem:[%s3440_s0 + $0x188] sm:$0xff] }
  0x5a   :  { %853 = vmatmul.mubr.f32.vlgmr.msra.gmra.mrb[26].mxu1 %v20_v6  ;;  %1996 = vmatpush3.bf16.msra.mxu0 %v1995_v3  ;;  %v369_v3 = vld [vmem:[%s3439_s1 + $0x5d0] sm:$0xff]  ;;  %v75_v36 = vld [vmem:[%s3440_s0 + $0x1e8] sm:$0xff] }
  0x5b   :  { %727 = vmatprep.mubr.f32.mxu0 %v32_v7  ;;  %857 = vmatprep.mubr.f32.mxu1 %v34_v8  ;;  %v84_v6 = vld [vmem:[%s3440_s0 + $0x230] sm:$0xff]  ;;  %v86_v7 = vld [vmem:[%s3440_s0 + $0x240] sm:$0xff]  ;;  %v2011_v8 = vpack.c.bf16 %v320_v60, %v319_v59  ;;  %v135_v59 = vld [vmem:[%s3440_s0 + $0x3c8] sm:$0xff] }
  0x5c   :  { %2028 = vmatpush3.bf16.msra.mxu1 %v2027_v9  ;;  %1998 = vmatprep.subr.bf16.mxu0 %v1997_v10  ;;  %v2043_v9 = vpack.c.bf16 %v352_v63, %v351_v61  ;;  %v2013_v10 = vpack.c.bf16 %v338_v1, %v337_v0  ;;  %v137_v60 = vld [vmem:[%s3440_s0 + $0x3d8] sm:$0xff]  ;;  %v148_v63 = vld [vmem:[%s3440_s0 + $0x430] sm:$0xff]  ;;  %v150_v0 = vld [vmem:[%s3440_s0 + $0x440] sm:$0xff] }
  0x5d   :  { %728 = vmatmul.mubr.f32.gmra.mrb[28].mxu0 %v31_v18  ;;  %2030 = vmatprep.subr.bf16.mxu1 %v2029_v14  ;;  %v2045_v14 = vpack.c.bf16 %v370_v4, %v369_v3  ;;  %v83_v18 = vld [vmem:[%s3440_s0 + $0x228] sm:$0xff]  ;;  %v149_v61 = vld [vmem:[%s3440_s0 + $0x438] sm:$0xff]  ;;  %v162_v1 = vld [vmem:[%s3440_s0 + $0x4a0] sm:$0xff] }
  0x5e   :  { %858 = vmatmul.mubr.f32.gmra.mrb[28].mxu1 %v33_v21  ;;  %732 = vmatprep.mubr.f32.mxu0 %v45_v22  ;;  %v85_v21 = vld [vmem:[%s3440_s0 + $0x238] sm:$0xff]  ;;  %v163_v4 = vld [vmem:[%s3440_s0 + $0x4a8] sm:$0xff] }
  0x5f   :  { %862 = vmatprep.mubr.f32.mxu1 %v47_v23  ;;  %2000 = vmatpush3.bf16.msra.mxu0 %v1999_v24  ;;  %v97_v22 = vld [vmem:[%s3440_s0 + $0x298] sm:$0xff]  ;;  %v99_v23 = vld [vmem:[%s3440_s0 + $0x2a8] sm:$0xff]  ;;  %v2015_v24 = vpack.c.bf16 %v322_v12, %v321_v11 }
  0x60   :  { %2032 = vmatpush3.bf16.msra.mxu1 %v2031_v25  ;;  %2002 = vmatprep.subr.bf16.mxu0 %v2001_v26  ;;  %v2047_v25 = vpack.c.bf16 %v354_v15, %v353_v13  ;;  %v2017_v26 = vpack.c.bf16 %v340_v17, %v339_v16  ;;  %v161_v3 = vld [vmem:[%s3440_s0 + $0x498] sm:$0xff]  ;;  %v376_v11 = vld [vmem:[%s3439_s1 + $0x608] sm:$0xff]  ;;  %v22_v13 = vld [vmem:[%s3440_s0 + $0x40] sm:$0xff] }
  0x61   :  { %733 = vmatmul.mubr.f32.gmra.mrb[30].mxu0 %v44_v34  ;;  %2034 = vmatprep.subr.bf16.mxu1 %v2033_v30  ;;  %v2049_v30 = vpack.c.bf16 %v372_v20, %v371_v19  ;;  %v96_v34 = vld [vmem:[%s3440_s0 + $0x290] sm:$0xff]  ;;  %v25_v12 = vld [vmem:[%s3440_s0 + $0x58] sm:$0xff]  ;;  %v38_v17 = vld [vmem:[%s3440_s0 + $0xc0] sm:$0xff] }
  0x62   :  { %863 = vmatmul.mubr.f32.gmra.mrb[30].mxu1 %v46_v37  ;;  %737 = vmatprep.mubr.f32.mxu0 %v58_v38  ;;  %v98_v37 = vld [vmem:[%s3440_s0 + $0x2a0] sm:$0xff]  ;;  %v24_v15 = vld [vmem:[%s3440_s0 + $0x50] sm:$0xff]  ;;  %v378_v19 = vld [vmem:[%s3439_s1 + $0x618] sm:$0xff] }
  0x63   :  { %867 = vmatprep.mubr.f32.mxu1 %v60_v39  ;;  %2004 = vmatpush3.bf16.msra.mxu0 %v2003_v40  ;;  %v110_v38 = vld [vmem:[%s3440_s0 + $0x300] sm:$0xff]  ;;  %v2019_v39 = vpack.c.bf16 %v324_v28, %v323_v27  ;;  %v112_v40 = vld [vmem:[%s3440_s0 + $0x310] sm:$0xff]  ;;  %v35_v20 = vld [vmem:[%s3440_s0 + $0xa8] sm:$0xff] }
  0x64   :  { %2036 = vmatpush3.bf16.msra.mxu1 %v2035_v41  ;;  %2006 = vmatprep.subr.bf16.mxu0 %v2005_v42  ;;  %v2051_v41 = vpack.c.bf16 %v356_v31, %v355_v29  ;;  %v2021_v42 = vpack.c.bf16 %v342_v33, %v341_v32  ;;  %v36_v16 = vld [vmem:[%s3440_s0 + $0xb0] sm:$0xff]  ;;  %v50_v28 = vld [vmem:[%s3440_s0 + $0x120] sm:$0xff]  ;;  %v382_v33 = vld [vmem:[%s3439_s1 + $0x638] sm:$0xff] }
  0x65   :  { %738 = vmatmul.mubr.f32.gmra.mrb[32].mxu0 %v57_v50  ;;  %2038 = vmatprep.subr.bf16.mxu1 %v2037_v46  ;;  %v357_v46 = vld [vmem:[%s3439_s1 + $0x570] sm:$0xff]  ;;  %v123_v50 = vld [vmem:[%s3440_s0 + $0x368] sm:$0xff]  ;;  %v62_v29 = vld [vmem:[%s3440_s0 + $0x180] sm:$0xff] }
  0x66   :  { %868 = vmatmul.mubr.f32.gmra.mrb[32].mxu1 %v59_v53  ;;  %742 = vmatprep.mubr.f32.mxu0 %v71_v54  ;;  %v2055_v53 = vpack.c.bf16 %v358_v47, %v357_v46  ;;  %v122_v54 = vld [vmem:[%s3440_s0 + $0x360] sm:$0xff]  ;;  %v48_v27 = vld [vmem:[%s3440_s0 + $0x110] sm:$0xff]  ;;  %v386_v47 = vld [vmem:[%s3439_s1 + $0x658] sm:$0xff] }
  0x67   :  { %872 = vmatprep.mubr.f32.mxu1 %v73_v55  ;;  %2008 = vmatpush3.bf16.msra.mxu0 %v2007_v56  ;;  %v124_v55 = vld [vmem:[%s3440_s0 + $0x370] sm:$0xff] }
  0x68   :  { %2040 = vmatpush3.bf16.msra.mxu1 %v2039_v57  ;;  %2010 = vmatprep.subr.bf16.mxu0 %v2009_v58  ;;  %v136_v56 = vld [vmem:[%s3440_s0 + $0x3d0] sm:$0xff]  ;;  %v138_v57 = vld [vmem:[%s3440_s0 + $0x3e0] sm:$0xff]  ;;  %v2100_v58 = vmov 0.0|0.0  }
  0x69   :  { %743 = vmatmul.mubr.f32.gmra.mrb[34].mxu0 %v70_v2  ;;  %2042 = vmatprep.subr.bf16.mxu1 %v2041_v62  ;;  %v151_v62 = vld [vmem:[%s3440_s0 + $0x448] sm:$0xff]  ;;  %v164_v2 = vld [vmem:[%s3440_s0 + $0x4b0] sm:$0xff] }
  0x6a   :  { %873 = vmatmul.mubr.f32.gmra.mrb[34].mxu1 %v72_v5  ;;  %747 = vmatprep.mubr.f32.mxu0 %v84_v6  ;;  %v175_v5 = vld [vmem:[%s3440_s0 + $0x508] sm:$0xff]  ;;  %v177_v6 = vld [vmem:[%s3440_s0 + $0x518] sm:$0xff]  ;;  %v64_v31 = vld [vmem:[%s3440_s0 + $0x190] sm:$0xff] }
  0x6b   :  { %877 = vmatprep.mubr.f32.mxu1 %v86_v7  ;;  %2012 = vmatpush3.bf16.msra.mxu0 %v2011_v8  ;;  %v174_v7 = vld [vmem:[%s3440_s0 + $0x500] sm:$0xff]  ;;  %v176_v8 = vld [vmem:[%s3440_s0 + $0x510] sm:$0xff] }
  0x6c   :  { %2044 = vmatpush3.bf16.msra.mxu1 %v2043_v9  ;;  %2014 = vmatprep.subr.bf16.mxu0 %v2013_v10  ;;  %v23_v9 = vld [vmem:[%s3440_s0 + $0x48] sm:$0xff]  ;;  %v375_v10 = vld [vmem:[%s3439_s1 + $0x600] sm:$0xff]  ;;  %v381_v32 = vld [vmem:[%s3439_s1 + $0x630] sm:$0xff] }
  0x6d   :  { %748 = vmatmul.mubr.f32.gmra.mrb[36].mxu0 %v83_v18  ;;  %2046 = vmatprep.subr.bf16.mxu1 %v2045_v14  ;;  %v2058_v14 = vpack.c.bf16 %v376_v11, %v375_v10  ;;  %v377_v18 = vld [vmem:[%s3439_s1 + $0x610] sm:$0xff]  ;;  %v155_v10 = vld [vmem:[%s3440_s0 + $0x468] sm:$0xff] }
  0x6e   :  { %878 = vmatmul.mubr.f32.gmra.mrb[36].mxu1 %v85_v21  ;;  %752 = vmatprep.mubr.f32.mxu0 %v97_v22  ;;  %v37_v21 = vld [vmem:[%s3440_s0 + $0xb8] sm:$0xff]  ;;  %v385_v46 = vld [vmem:[%s3439_s1 + $0x650] sm:$0xff] }
  0x6f   :  { %882 = vmatprep.mubr.f32.mxu1 %v99_v23  ;;  %2016 = vmatpush3.bf16.msra.mxu0 %v2015_v24  ;;  %v49_v22 = vld [vmem:[%s3440_s0 + $0x118] sm:$0xff]  ;;  %v2061_v23 = vpack.c.bf16 %v378_v19, %v377_v18  ;;  %v51_v24 = vld [vmem:[%s3440_s0 + $0x128] sm:$0xff]  ;;  %v152_v11 = vld [vmem:[%s3440_s0 + $0x450] sm:$0xff] }
  0x70   :  { %2048 = vmatpush3.bf16.msra.mxu1 %v2047_v25  ;;  %2018 = vmatprep.subr.bf16.mxu0 %v2017_v26  ;;  %v379_v25 = vld [vmem:[%s3439_s1 + $0x620] sm:$0xff]  ;;  %v380_v26 = vld [vmem:[%s3439_s1 + $0x628] sm:$0xff]  ;;  %v181_v18 = vld [vmem:[%s3440_s0 + $0x538] sm:$0xff] }
  0x71   :  { %753 = vmatmul.mubr.f32.gmra.mrb[38].mxu0 %v96_v34  ;;  %2050 = vmatprep.subr.bf16.mxu1 %v2049_v30  ;;  %v2064_v30 = vpack.c.bf16 %v380_v26, %v379_v25  ;;  %v61_v34 = vld [vmem:[%s3440_s0 + $0x178] sm:$0xff]  ;;  %v178_v19 = vld [vmem:[%s3440_s0 + $0x520] sm:$0xff]  ;;  %v52_v26 = vld [vmem:[%s3440_s0 + $0x130] sm:$0xff] }
  0x72   :  { %883 = vmatmul.mubr.f32.gmra.mrb[38].mxu1 %v98_v37  ;;  %757 = vmatprep.mubr.f32.mxu0 %v110_v38  ;;  %v2067_v37 = vpack.c.bf16 %v382_v33, %v381_v32  ;;  %v77_v38 = vld [vmem:[%s3440_s0 + $0x1f8] sm:$0xff]  ;;  %v130_v25 = vld [vmem:[%s3440_s0 + $0x3a0] sm:$0xff]  ;;  %v91_v32 = vld [vmem:[%s3440_s0 + $0x268] sm:$0xff] }
  0x73   :  { %887 = vmatprep.mubr.f32.mxu1 %v112_v40  ;;  %2020 = vmatpush3.bf16.msra.mxu0 %v2019_v39  ;;  %v383_v39 = vld [vmem:[%s3439_s1 + $0x640] sm:$0xff]  ;;  %v384_v40 = vld [vmem:[%s3439_s1 + $0x648] sm:$0xff] }
  0x74   :  { %2052 = vmatpush3.bf16.msra.mxu1 %v2051_v41  ;;  %2022 = vmatprep.subr.bf16.mxu0 %v2021_v42  ;;  %v74_v41 = vld [vmem:[%s3440_s0 + $0x1e0] sm:$0xff]  ;;  %v76_v42 = vld [vmem:[%s3440_s0 + $0x1f0] sm:$0xff]  ;;  %v2070_v44 = vpack.c.bf16 %v384_v40, %v383_v39 }
  0x75   :  { %758 = vmatmul.mubr.f32.gmra.mrb[40].mxu0 %v109_v48  ;;  %2054 = vmatprep.subr.bf16.mxu1 %v2053_v45  ;;  %v90_v45 = vld [vmem:[%s3440_s0 + $0x260] sm:$0xff]  ;;  %v87_v48 = vld [vmem:[%s3440_s0 + $0x248] sm:$0xff] }
  0x76   :  { %888 = vmatmul.mubr.f32.gmra.mrb[40].mxu1 %v111_v49  ;;  %762 = vmatprep.mubr.f32.mxu0 %v123_v50  ;;  %v89_v49 = vld [vmem:[%s3440_s0 + $0x258] sm:$0xff]  ;;  %v182_v33 = vld [vmem:[%s3440_s0 + $0x540] sm:$0xff] }
  0x77   :  { %892 = vmatprep.mubr.f32.mxu1 %v125_v52  ;;  %2024 = vmatpush3.bf16.msra.mxu0 %v2023_v51  ;;  %v101_v50 = vld [vmem:[%s3440_s0 + $0x2b8] sm:$0xff]  ;;  %v2073_v51 = vpack.c.bf16 %v386_v47, %v385_v46  ;;  %v103_v52 = vld [vmem:[%s3440_s0 + $0x2c8] sm:$0xff] }
  0x78   :  { %2056 = vmatpush3.bf16.msra.mxu1 %v2055_v53  ;;  %2057 = vmatprep.subr.bf16.mxu0 %v2100_v58  ;;  %v387_v53 = vld [vmem:[%s3439_s1 + $0x660] sm:$0xff] }
  0x79   :  { %763 = vmatmul.mubr.f32.gmra.mrb[42].mxu0 %v122_v54  ;;  %2081 = vmatprep.subr.bf16.mxu1 %v2100_v58  ;;  %v388_v54 = vld [vmem:[%s3439_s1 + $0x668] sm:$0xff] }
  0x7a   :  { %893 = vmatmul.mubr.f32.gmra.mrb[42].mxu1 %v124_v55  ;;  %767 = vmatprep.mubr.f32.mxu0 %v136_v56  ;;  %v100_v55 = vld [vmem:[%s3440_s0 + $0x2b0] sm:$0xff]  ;;  %v102_v56 = vld [vmem:[%s3440_s0 + $0x2c0] sm:$0xff] }
  0x7b   :  { %897 = vmatprep.mubr.f32.mxu1 %v138_v57  ;;  %v114_v57 = vld [vmem:[%s3440_s0 + $0x320] sm:$0xff] }
  0x7d   :  { %768 = vmatmul.mubr.f32.gmra.mrb[44].mxu0 %v135_v59  ;;  %v2076_v59 = vpack.c.bf16 %v388_v54, %v387_v53 }
  0x7e   :  { %898 = vmatmul.mubr.f32.gmra.mrb[44].mxu1 %v137_v60  ;;  %772 = vmatprep.mubr.f32.mxu0 %v149_v61  ;;  %v116_v60 = vld [vmem:[%s3440_s0 + $0x330] sm:$0xff] }
  0x7f   :  { %902 = vmatprep.mubr.f32.mxu1 %v151_v62  ;;  %v389_v61 = vld [vmem:[%s3439_s1 + $0x670] sm:$0xff]  ;;  %v390_v62 = vld [vmem:[%s3439_s1 + $0x678] sm:$0xff] }
  0x81   :  { %773 = vmatmul.mubr.f32.gmra.mrb[46].mxu0 %v148_v63  ;;  %v113_v63 = vld [vmem:[%s3440_s0 + $0x318] sm:$0xff] }
  0x82   :  { %903 = vmatmul.mubr.f32.gmra.mrb[46].mxu1 %v150_v0  ;;  %777 = vmatprep.mubr.f32.mxu0 %v162_v1  ;;  %v115_v0 = vld [vmem:[%s3440_s0 + $0x328] sm:$0xff] }
  0x83   :  { %907 = vmatprep.mubr.f32.mxu1 %v164_v2  ;;  %v127_v1 = vld [vmem:[%s3440_s0 + $0x388] sm:$0xff]  ;;  %v2079_v2 = vpack.c.bf16 %v390_v62, %v389_v61 }
  0x85   :  { %778 = vmatmul.mubr.f32.gmra.mrb[48].mxu0 %v161_v3  ;;  %v129_v3 = vld [vmem:[%s3440_s0 + $0x398] sm:$0xff] }
  0x86   :  { %908 = vmatmul.mubr.f32.gmra.mrb[48].mxu1 %v163_v4  ;;  %782 = vmatprep.mubr.f32.mxu0 %v175_v5  ;;  %v126_v4 = vld [vmem:[%s3440_s0 + $0x380] sm:$0xff]  ;;  %v128_v5 = vld [vmem:[%s3440_s0 + $0x390] sm:$0xff] }
  0x87   :  { %912 = vmatprep.mubr.f32.mxu1 %v177_v6  ;;  %v140_v6 = vld [vmem:[%s3440_s0 + $0x3f0] sm:$0xff] }
  0x89   :  { %783 = vmatmul.mubr.f32.gmra.mrb[50].mxu0 %v174_v7  ;;  %v139_v7 = vld [vmem:[%s3440_s0 + $0x3e8] sm:$0xff] }
  0x8a   :  { %913 = vmatmul.mubr.f32.gmra.mrb[50].mxu1 %v176_v8  ;;  %982 = vmatprep.mubr.f32.mxu0 %v23_v9  ;;  %v141_v8 = vld [vmem:[%s3440_s0 + $0x3f8] sm:$0xff] }
  0x8b   :  { %1112 = vmatprep.mubr.f32.mxu1 %v25_v12  ;;  %v153_v9 = vld [vmem:[%s3440_s0 + $0x458] sm:$0xff]  ;;  %v154_v12 = vld [vmem:[%s3440_s0 + $0x460] sm:$0xff] }
  0x8d   :  { %983 = vmatmul.mubr.f32.vlgmr.msra.gmra.mrb[52].mxu0 %v22_v13  ;;  %v166_v13 = vld [vmem:[%s3440_s0 + $0x4c0] sm:$0xff] }
  0x8e   :  { %1113 = vmatmul.mubr.f32.vlgmr.msra.gmra.mrb[52].mxu1 %v24_v15  ;;  %2059 = vmatpush3.bf16.msra.mxu0 %v2058_v14  ;;  %v165_v15 = vld [vmem:[%s3440_s0 + $0x4b8] sm:$0xff] }
  0x8f   :  { %987 = vmatprep.mubr.f32.mxu0 %v36_v16  ;;  %1117 = vmatprep.mubr.f32.mxu1 %v38_v17  ;;  %v167_v16 = vld [vmem:[%s3440_s0 + $0x4c8] sm:$0xff] }
  0x90   :  { %2089 = vmatpush3.bf16.msra.mxu1 %v2058_v14  ;;  %2060 = vmatprep.subr.bf16.mxu0 %v2100_v58  ;;  %v168_v14 = vld [vmem:[%s3440_s0 + $0x4d0] sm:$0xff]  ;;  %v179_v17 = vld [vmem:[%s3440_s0 + $0x528] sm:$0xff] }
  0x91   :  { %988 = vmatmul.mubr.f32.gmra.mrb[54].mxu0 %v35_v20  ;;  %2082 = vmatprep.subr.bf16.mxu1 %v2100_v58  ;;  %v180_v20 = vld [vmem:[%s3440_s0 + $0x530] sm:$0xff] }
  0x92   :  { %1118 = vmatmul.mubr.f32.gmra.mrb[54].mxu1 %v37_v21  ;;  %992 = vmatprep.mubr.f32.mxu0 %v49_v22  ;;  %v2102_v21 = vmov 0.0   ;;  %v26_v22 = vld [vmem:[%s3440_s0 + $0x60] sm:$0xff] }
  0x93   :  { %1122 = vmatprep.mubr.f32.mxu1 %v51_v24  ;;  %2062 = vmatpush3.bf16.msra.mxu0 %v2061_v23  ;;  %v39_v24 = vld [vmem:[%s3440_s0 + $0xc8] sm:$0xff] }
  0x94   :  { %2090 = vmatpush3.bf16.msra.mxu1 %v2061_v23  ;;  %2063 = vmatprep.subr.bf16.mxu0 %v2100_v58  ;;  %v117_v23 = vld [vmem:[%s3440_s0 + $0x338] sm:$0xff] }
  0x95   :  { %993 = vmatmul.mubr.f32.gmra.mrb[56].mxu0 %v48_v27  ;;  %2083 = vmatprep.subr.bf16.mxu1 %v2100_v58  ;;  %v143_v27 = vld [vmem:[%s3440_s0 + $0x408] sm:$0xff] }
  0x96   :  { %1123 = vmatmul.mubr.f32.gmra.mrb[56].mxu1 %v50_v28  ;;  %997 = vmatprep.mubr.f32.mxu0 %v62_v29  ;;  %v65_v28 = vld [vmem:[%s3440_s0 + $0x198] sm:$0xff]  ;;  %v156_v29 = vld [vmem:[%s3440_s0 + $0x470] sm:$0xff] }
  0x97   :  { %1127 = vmatprep.mubr.f32.mxu1 %v64_v31  ;;  %2065 = vmatpush3.bf16.msra.mxu0 %v2064_v30  ;;  %v169_v31 = vld [vmem:[%s3440_s0 + $0x4d8] sm:$0xff] }
  0x98   :  { %2091 = vmatpush3.bf16.msra.mxu1 %v2064_v30  ;;  %2066 = vmatprep.subr.bf16.mxu0 %v2100_v58  ;;  %v78_v30 = vld [vmem:[%s3440_s0 + $0x200] sm:$0xff] }
  0x99   :  { %998 = vmatmul.mubr.f32.gmra.mrb[58].mxu0 %v61_v34  ;;  %2084 = vmatprep.subr.bf16.mxu1 %v2100_v58  ;;  %v104_v34 = vld [vmem:[%s3440_s0 + $0x2d0] sm:$0xff] }
  0x9a   :  { %1128 = vmatmul.mubr.f32.gmra.mrb[58].mxu1 %v63_v35  ;;  %1002 = vmatprep.mubr.f32.mxu0 %v75_v36  ;;  %v3286_v36 = vld [vmem:[%s3441_s2] ss:$0 sm:$0xff] }
  0x9b   :  { %1132 = vmatprep.mubr.f32.mxu1 %v77_v38  ;;  %2068 = vmatpush3.bf16.msra.mxu0 %v2067_v37 }
  0x9c   :  { %2092 = vmatpush3.bf16.msra.mxu1 %v2067_v37  ;;  %2069 = vmatprep.subr.bf16.mxu0 %v2100_v58 }
  0x9d   :  { %1003 = vmatmul.mubr.f32.gmra.mrb[60].mxu0 %v74_v41  ;;  %2085 = vmatprep.subr.bf16.mxu1 %v2100_v58 }
  0x9e   :  { %1133 = vmatmul.mubr.f32.gmra.mrb[60].mxu1 %v76_v42  ;;  %1007 = vmatprep.mubr.f32.mxu0 %v88_v43 }
  0x9f   :  { %1137 = vmatprep.mubr.f32.mxu1 %v90_v45  ;;  %2071 = vmatpush3.bf16.msra.mxu0 %v2070_v44 }
  0xa0   :  { %2093 = vmatpush3.bf16.msra.mxu1 %v2070_v44  ;;  %2072 = vmatprep.subr.bf16.mxu0 %v2100_v58 }
  0xa1   :  { %1008 = vmatmul.mubr.f32.gmra.mrb[62].mxu0 %v87_v48  ;;  %2086 = vmatprep.subr.bf16.mxu1 %v2100_v58 }
  0xa2   :  { %1138 = vmatmul.mubr.f32.gmra.mrb[62].mxu1 %v89_v49  ;;  %1012 = vmatprep.mubr.f32.mxu0 %v101_v50 }
  0xa3   :  { %1142 = vmatprep.mubr.f32.mxu1 %v103_v52  ;;  %2074 = vmatpush3.bf16.msra.mxu0 %v2073_v51 }
  0xa4   :  { %2094 = vmatpush3.bf16.msra.mxu1 %v2073_v51  ;;  %2075 = vmatprep.subr.bf16.mxu0 %v2100_v58 }
  0xa5   :  { %1013 = vmatmul.mubr.f32.gmra.mrb[64].mxu0 %v100_v55  ;;  %2087 = vmatprep.subr.bf16.mxu1 %v2100_v58 }
  0xa6   :  { %1143 = vmatmul.mubr.f32.gmra.mrb[64].mxu1 %v102_v56  ;;  %1017 = vmatprep.mubr.f32.mxu0 %v114_v57 }
  0xa7   :  { %1147 = vmatprep.mubr.f32.mxu1 %v116_v60  ;;  %2077 = vmatpush3.bf16.msra.mxu0 %v2076_v59 }
  0xa8   :  { %2095 = vmatpush3.bf16.msra.mxu1 %v2076_v59  ;;  %2078 = vmatprep.subr.bf16.mxu0 %v2100_v58 }
  0xa9   :  { %1018 = vmatmul.mubr.f32.gmra.mrb[66].mxu0 %v113_v63  ;;  %2088 = vmatprep.subr.bf16.mxu1 %v2100_v58  ;;  %v142_v58 = vld [vmem:[%s3440_s0 + $0x400] sm:$0xff] }
  0xaa   :  { %1148 = vmatmul.mubr.f32.gmra.mrb[66].mxu1 %v115_v0  ;;  %1022 = vmatprep.mubr.f32.mxu0 %v127_v1 }
  0xab   :  { %1152 = vmatprep.mubr.f32.mxu1 %v129_v3  ;;  %2080 = vmatpush3.bf16.msra.mxu0 %v2079_v2 }
  0xac   :  { %2096 = vmatpush3.bf16.msra.mxu1 %v2079_v2 }
  0xad   :  { %1023 = vmatmul.mubr.f32.gmra.mrb[68].mxu0 %v126_v4 }
  0xae   :  { %1153 = vmatmul.mubr.f32.gmra.mrb[68].mxu1 %v128_v5  ;;  %1027 = vmatprep.mubr.f32.mxu0 %v140_v6 }
  0xaf   :  { %1157 = vmatprep.mubr.f32.mxu1 %v142_v58 }
  0xb1   :  { %1028 = vmatmul.mubr.f32.gmra.mrb[70].mxu0 %v139_v7 }
  0xb2   :  { %1158 = vmatmul.mubr.f32.gmra.mrb[70].mxu1 %v141_v8  ;;  %1032 = vmatprep.mubr.f32.mxu0 %v153_v9 }
  0xb3   :  { %1162 = vmatprep.mubr.f32.mxu1 %v155_v10 }
  0xb5   :  { %1033 = vmatmul.mubr.f32.gmra.mrb[72].mxu0 %v152_v11 }
  0xb6   :  { %1163 = vmatmul.mubr.f32.gmra.mrb[72].mxu1 %v154_v12  ;;  %1037 = vmatprep.mubr.f32.mxu0 %v166_v13 }
  0xb7   :  { %1167 = vmatprep.mubr.f32.mxu1 %v168_v14 }
  0xb9   :  { %1038 = vmatmul.mubr.f32.gmra.mrb[74].mxu0 %v165_v15 }
  0xba   :  { %1168 = vmatmul.mubr.f32.gmra.mrb[74].mxu1 %v167_v16  ;;  %1042 = vmatprep.mubr.f32.mxu0 %v179_v17 }
  0xbb   :  { %1172 = vmatprep.mubr.f32.mxu1 %v181_v18 }
  0xbd   :  { %1043 = vmatmul.mubr.f32.gmra.mrb[76].mxu0 %v178_v19 }
  0xbe   :  { %1173 = vmatmul.mubr.f32.gmra.mrb[76].mxu1 %v180_v20  ;;  %1826 = vmatprep.mubr.msk.f32.mxu0 %vm2101_vm0, %v2102_v21 }
  0xbf   :  { %1847 = vmatprep.mubr.msk.f32.mxu1 %vm2101_vm0, %v2102_v21 }
  0xc1   :  { %1827 = vmatmul.mubr.f32.vlgmr.msra.gmra.mrb[78].mxu0 %v26_v22 }
  0xc2   :  { %1848 = vmatmul.mubr.f32.vlgmr.msra.gmra.mrb[78].mxu1 %v117_v23  ;;  %1829 = vmatprep.mubr.msk.f32.mxu0 %vm2101_vm0, %v2102_v21 }
  0xc3   :  { %1850 = vmatprep.mubr.msk.f32.mxu1 %vm2101_vm0, %v2102_v21 }
  0xc5   :  { %1830 = vmatmul.mubr.f32.gmra.mrb[80].mxu0 %v39_v24 }
  0xc6   :  { %1851 = vmatmul.mubr.f32.gmra.mrb[80].mxu1 %v130_v25  ;;  %1832 = vmatprep.mubr.msk.f32.mxu0 %vm2101_vm0, %v2102_v21 }
  0xc7   :  { %1853 = vmatprep.mubr.msk.f32.mxu1 %vm2101_vm0, %v2102_v21 }
  0xc9   :  { %1833 = vmatmul.mubr.f32.gmra.mrb[82].mxu0 %v52_v26 }
  0xca   :  { %1854 = vmatmul.mubr.f32.gmra.mrb[82].mxu1 %v143_v27  ;;  %1835 = vmatprep.mubr.msk.f32.mxu0 %vm2101_vm0, %v2102_v21 }
  0xcb   :  { %1856 = vmatprep.mubr.msk.f32.mxu1 %vm2101_vm0, %v2102_v21 }
  0xcd   :  { %1836 = vmatmul.mubr.f32.gmra.mrb[84].mxu0 %v65_v28 }
  0xce   :  { %1857 = vmatmul.mubr.f32.gmra.mrb[84].mxu1 %v156_v29  ;;  %1838 = vmatprep.mubr.msk.f32.mxu0 %vm2101_vm0, %v2102_v21 }
  0xcf   :  { %1859 = vmatprep.mubr.msk.f32.mxu1 %vm2101_vm0, %v2102_v21 }
  0xd1   :  { %1839 = vmatmul.mubr.f32.gmra.mrb[86].mxu0 %v78_v30 }
  0xd2   :  { %1860 = vmatmul.mubr.f32.gmra.mrb[86].mxu1 %v169_v31  ;;  %1841 = vmatprep.mubr.msk.f32.mxu0 %vm2101_vm0, %v2102_v21 }
  0xd3   :  { %1862 = vmatprep.mubr.msk.f32.mxu1 %vm2101_vm0, %v2102_v21 }
  0xd5   :  { %1842 = vmatmul.mubr.f32.gmra.mrb[88].mxu0 %v91_v32 }
  0xd6   :  { %1863 = vmatmul.mubr.f32.gmra.mrb[88].mxu1 %v182_v33  ;;  %1844 = vmatprep.mubr.msk.f32.mxu0 %vm2101_vm0, %v2102_v21 }
  0xd9   :  { %1845 = vmatmul.mubr.f32.gmra.mrb[90].mxu0 %v104_v34 }
  0xf8   :  { %v1371_v35 = vpop.f32.mrb[0].mxu0 }
  0xf9   :  { %v1372_v37 = vpop.f32.mrb[1].mxu0  ;;  %v1442_v38 = vpop.f32.mrb[0].mxu1 }
  0xfa   :  { %v1373_v39 = vadd.f32 %v1372_v37, %v1371_v35  ;;  %v1443_v40 = vpop.f32.mrb[1].mxu1 }
  0xfb   :  { %v1444_v41 = vadd.f32 %v1443_v40, %v1442_v38 }
  0xfc   :  { %v465_v42 = vadd.f32 %v1373_v39, %v3286_v36  ;;  %v1374_v43 = vpop.f32.mrb[2].mxu0 }
  0xfd   :  { %v1375_v44 = vpop.f32.mrb[3].mxu0  ;;  %v1445_v45 = vpop.f32.mrb[2].mxu1 }
  0xfe   :  { %v3289_v46 = vadd.f32 %v1444_v41, %v465_v42  ;;  %v1376_v47 = vadd.f32 %v1375_v44, %v1374_v43  ;;  %v1446_v48 = vpop.f32.mrb[3].mxu1 }
  0xff   :  { %v1447_v49 = vadd.f32 %v1446_v48, %v1445_v45 }
 0x100   :  { %v470_v50 = vadd.f32 %v1376_v47, %v3286_v36  ;;  %v1377_v51 = vpop.f32.mrb[4].mxu0 }
 0x101   :  { %v1378_v52 = vpop.f32.mrb[5].mxu0  ;;  %v1448_v53 = vpop.f32.mrb[4].mxu1 }
 0x102   :  { %v3292_v54 = vadd.f32 %v1447_v49, %v470_v50  ;;  %v1379_v55 = vadd.f32 %v1378_v52, %v1377_v51  ;;  %v1449_v56 = vpop.f32.mrb[5].mxu1 }
 0x103   :  { %v1450_v57 = vadd.f32 %v1449_v56, %v1448_v53 }
 0x104   :  { %v475_v59 = vadd.f32 %v1379_v55, %v3286_v36  ;;  %v1380_v60 = vpop.f32.mrb[6].mxu0 }
 0x105   :  { %v1381_v61 = vpop.f32.mrb[7].mxu0  ;;  %v1451_v62 = vpop.f32.mrb[6].mxu1 }
 0x106   :  { %v3295_v63 = vadd.f32 %v1450_v57, %v475_v59  ;;  %v1382_v0 = vadd.f32 %v1381_v61, %v1380_v60  ;;  %v1452_v1 = vpop.f32.mrb[7].mxu1 }
 0x107   :  { %v1453_v2 = vadd.f32 %v1452_v1, %v1451_v62 }
 0x108   :  { %v480_v3 = vadd.f32 %v1382_v0, %v3286_v36  ;;  %v1383_v4 = vpop.f32.mrb[8].mxu0 }
 0x109   :  { %v1384_v5 = vpop.f32.mrb[9].mxu0  ;;  %v1454_v6 = vpop.f32.mrb[8].mxu1 }
 0x10a   :  { %v3298_v58 = vadd.f32 %v1453_v2, %v480_v3  ;;  %v1385_v7 = vadd.f32 %v1384_v5, %v1383_v4  ;;  %v1455_v8 = vpop.f32.mrb[9].mxu1 }
 0x10b   :  { %v1456_v9 = vadd.f32 %v1455_v8, %v1454_v6 }
 0x10c   :  { %v485_v10 = vadd.f32 %v1385_v7, %v3286_v36  ;;  %v1386_v11 = vpop.f32.mrb[10].mxu0 }
 0x10d   :  { %v1387_v12 = vpop.f32.mrb[11].mxu0  ;;  %v1457_v13 = vpop.f32.mrb[10].mxu1 }
 0x10e   :  { %v3301_v14 = vadd.f32 %v1456_v9, %v485_v10  ;;  %v1388_v15 = vadd.f32 %v1387_v12, %v1386_v11  ;;  %v1458_v16 = vpop.f32.mrb[11].mxu1 }
 0x10f   :  { %v1459_v17 = vadd.f32 %v1458_v16, %v1457_v13 }
 0x110   :  { %v490_v18 = vadd.f32 %v1388_v15, %v3286_v36  ;;  %v1389_v19 = vpop.f32.mrb[12].mxu0 }
 0x111   :  { %v1390_v20 = vpop.f32.mrb[13].mxu0  ;;  %v1460_v21 = vpop.f32.mrb[12].mxu1 }
 0x112   :  { %v3304_v22 = vadd.f32 %v1459_v17, %v490_v18  ;;  %v1391_v23 = vadd.f32 %v1390_v20, %v1389_v19  ;;  %v1461_v24 = vpop.f32.mrb[13].mxu1 }
 0x113   :  { %v1462_v25 = vadd.f32 %v1461_v24, %v1460_v21 }
 0x114   :  { %v495_v26 = vadd.f32 %v1391_v23, %v3286_v36  ;;  %v1392_v27 = vpop.f32.mrb[14].mxu0 }
 0x115   :  { %v1393_v28 = vpop.f32.mrb[15].mxu0  ;;  %v1463_v29 = vpop.f32.mrb[14].mxu1 }
 0x116   :  { %v3307_v30 = vadd.f32 %v1462_v25, %v495_v26  ;;  %v1394_v31 = vadd.f32 %v1393_v28, %v1392_v27  ;;  %v1464_v32 = vpop.f32.mrb[15].mxu1 }
 0x117   :  { %v1465_v33 = vadd.f32 %v1464_v32, %v1463_v29 }
 0x118   :  { %v500_v34 = vadd.f32 %v1394_v31, %v3286_v36  ;;  %v1395_v35 = vpop.f32.mrb[16].mxu0 }
 0x119   :  { %v1396_v37 = vpop.f32.mrb[17].mxu0  ;;  %v1466_v38 = vpop.f32.mrb[16].mxu1 }
 0x11a   :  { %v3310_v39 = vadd.f32 %v1465_v33, %v500_v34  ;;  %v1397_v40 = vadd.f32 %v1396_v37, %v1395_v35  ;;  %v1467_v41 = vpop.f32.mrb[17].mxu1 }
 0x11b   :  { %v1468_v42 = vadd.f32 %v1467_v41, %v1466_v38 }
 0x11c   :  { %v505_v43 = vadd.f32 %v1397_v40, %v3286_v36  ;;  %v1398_v44 = vpop.f32.mrb[18].mxu0 }
 0x11d   :  { %v1399_v45 = vpop.f32.mrb[19].mxu0  ;;  %v1469_v47 = vpop.f32.mrb[18].mxu1 }
 0x11e   :  { %v3313_v48 = vadd.f32 %v1468_v42, %v505_v43  ;;  %v1400_v49 = vadd.f32 %v1399_v45, %v1398_v44  ;;  %v1470_v50 = vpop.f32.mrb[19].mxu1 }
 0x11f   :  { %v1471_v51 = vadd.f32 %v1470_v50, %v1469_v47 }
 0x120   :  { %v510_v52 = vadd.f32 %v1400_v49, %v3286_v36  ;;  %v1401_v53 = vpop.f32.mrb[20].mxu0 }
 0x121   :  { %v1402_v55 = vpop.f32.mrb[21].mxu0  ;;  %v1472_v56 = vpop.f32.mrb[20].mxu1 }
 0x122   :  { %v3316_v57 = vadd.f32 %v1471_v51, %v510_v52  ;;  %v1403_v59 = vadd.f32 %v1402_v55, %v1401_v53  ;;  %v1473_v60 = vpop.f32.mrb[21].mxu1 }
 0x123   :  { %v1474_v61 = vadd.f32 %v1473_v60, %v1472_v56 }
 0x124   :  { %v515_v62 = vadd.f32 %v1403_v59, %v3286_v36  ;;  %v1404_v0 = vpop.f32.mrb[22].mxu0 }
 0x125   :  { %v1405_v1 = vpop.f32.mrb[23].mxu0  ;;  %v1475_v2 = vpop.f32.mrb[22].mxu1 }
 0x126   :  { %v3319_v3 = vadd.f32 %v1474_v61, %v515_v62  ;;  %v1406_v4 = vadd.f32 %v1405_v1, %v1404_v0  ;;  %v1476_v5 = vpop.f32.mrb[23].mxu1 }
 0x127   :  { %v1477_v6 = vadd.f32 %v1476_v5, %v1475_v2 }
 0x128   :  { %v520_v7 = vadd.f32 %v1406_v4, %v3286_v36  ;;  %v1407_v8 = vpop.f32.mrb[24].mxu0 }
 0x129   :  { %v1408_v9 = vpop.f32.mrb[25].mxu0  ;;  %v1478_v10 = vpop.f32.mrb[24].mxu1 }
 0x12a   :  { %v3322_v11 = vadd.f32 %v1477_v6, %v520_v7  ;;  %v1409_v12 = vadd.f32 %v1408_v9, %v1407_v8  ;;  %v1479_v13 = vpop.f32.mrb[25].mxu1 }
 0x12b   :  { %v1480_v15 = vadd.f32 %v1479_v13, %v1478_v10 }
 0x12c   :  { %v525_v16 = vadd.f32 %v1409_v12, %v3286_v36  ;;  %v1513_v17 = vpop.f32.mrb[26].mxu0 }
 0x12d   :  { %v1514_v18 = vpop.f32.mrb[27].mxu0  ;;  %v1584_v19 = vpop.f32.mrb[26].mxu1 }
 0x12e   :  { %v3325_v20 = vadd.f32 %v1480_v15, %v525_v16  ;;  %v1515_v21 = vadd.f32 %v1514_v18, %v1513_v17  ;;  %v1585_v23 = vpop.f32.mrb[27].mxu1 }
 0x12f   :  { %v1586_v24 = vadd.f32 %v1585_v23, %v1584_v19 }
 0x130   :  { %v725_v25 = vadd.f32 %v1515_v21, %v3289_v46  ;;  %v1516_v26 = vpop.f32.mrb[28].mxu0 }
 0x131   :  { %v1517_v27 = vpop.f32.mrb[29].mxu0  ;;  %v1587_v28 = vpop.f32.mrb[28].mxu1 }
 0x132   :  { %v3328_v29 = vadd.f32 %v1586_v24, %v725_v25  ;;  %v1518_v31 = vadd.f32 %v1517_v27, %v1516_v26  ;;  %v1588_v32 = vpop.f32.mrb[29].mxu1 }
 0x133   :  { %v1589_v33 = vadd.f32 %v1588_v32, %v1587_v28 }
 0x134   :  { %v730_v36 = vadd.f32 %v1518_v31, %v3292_v54  ;;  %v1519_v34 = vpop.f32.mrb[30].mxu0 }
 0x135   :  { %v1520_v35 = vpop.f32.mrb[31].mxu0  ;;  %v1590_v37 = vpop.f32.mrb[30].mxu1 }
 0x136   :  { %v3331_v38 = vadd.f32 %v1589_v33, %v730_v36  ;;  %v1521_v40 = vadd.f32 %v1520_v35, %v1519_v34  ;;  %v1591_v41 = vpop.f32.mrb[31].mxu1 }
 0x137   :  { %v1592_v42 = vadd.f32 %v1591_v41, %v1590_v37 }
 0x138   :  { %v735_v46 = vadd.f32 %v1521_v40, %v3295_v63  ;;  %v1522_v43 = vpop.f32.mrb[32].mxu0 }
 0x139   :  { %v1523_v44 = vpop.f32.mrb[33].mxu0  ;;  %v1593_v45 = vpop.f32.mrb[32].mxu1 }
 0x13a   :  { %v3334_v47 = vadd.f32 %v1592_v42, %v735_v46  ;;  %v1524_v49 = vadd.f32 %v1523_v44, %v1522_v43  ;;  %v1594_v50 = vpop.f32.mrb[33].mxu1 }
 0x13b   :  { %v1595_v51 = vadd.f32 %v1594_v50, %v1593_v45 }
 0x13c   :  { %v740_v54 = vadd.f32 %v1524_v49, %v3298_v58  ;;  %v1525_v52 = vpop.f32.mrb[34].mxu0 }
 0x13d   :  { %v1526_v53 = vpop.f32.mrb[35].mxu0  ;;  %v1596_v55 = vpop.f32.mrb[34].mxu1 }
 0x13e   :  { %v3337_v56 = vadd.f32 %v1595_v51, %v740_v54  ;;  %v1527_v59 = vadd.f32 %v1526_v53, %v1525_v52  ;;  %v1597_v60 = vpop.f32.mrb[35].mxu1 }
 0x13f   :  { %v1598_v61 = vadd.f32 %v1597_v60, %v1596_v55 }
 0x140   :  { %v745_v63 = vadd.f32 %v1527_v59, %v3301_v14  ;;  %v1528_v62 = vpop.f32.mrb[36].mxu0 }
 0x141   :  { %v1529_v0 = vpop.f32.mrb[37].mxu0  ;;  %v1599_v1 = vpop.f32.mrb[36].mxu1 }
 0x142   :  { %v3340_v2 = vadd.f32 %v1598_v61, %v745_v63  ;;  %v1530_v4 = vadd.f32 %v1529_v0, %v1528_v62  ;;  %v1600_v5 = vpop.f32.mrb[37].mxu1 }
 0x143   :  { %v1601_v6 = vadd.f32 %v1600_v5, %v1599_v1 }
 0x144   :  { %v750_v58 = vadd.f32 %v1530_v4, %v3304_v22  ;;  %v1531_v7 = vpop.f32.mrb[38].mxu0 }
 0x145   :  { %v1532_v8 = vpop.f32.mrb[39].mxu0  ;;  %v1602_v9 = vpop.f32.mrb[38].mxu1 }
 0x146   :  { %v3343_v10 = vadd.f32 %v1601_v6, %v750_v58  ;;  %v1533_v12 = vadd.f32 %v1532_v8, %v1531_v7  ;;  %v1603_v13 = vpop.f32.mrb[39].mxu1 }
 0x147   :  { %v1604_v15 = vadd.f32 %v1603_v13, %v1602_v9 }
 0x148   :  { %v755_v14 = vadd.f32 %v1533_v12, %v3307_v30  ;;  %v1534_v16 = vpop.f32.mrb[40].mxu0 }
 0x149   :  { %v1535_v17 = vpop.f32.mrb[41].mxu0  ;;  %v1605_v18 = vpop.f32.mrb[40].mxu1 }
 0x14a   :  { %v3346_v19 = vadd.f32 %v1604_v15, %v755_v14  ;;  %v1536_v21 = vadd.f32 %v1535_v17, %v1534_v16  ;;  %v1606_v23 = vpop.f32.mrb[41].mxu1 }
 0x14b   :  { %v1607_v24 = vadd.f32 %v1606_v23, %v1605_v18 }
 0x14c   :  { %v760_v22 = vadd.f32 %v1536_v21, %v3310_v39  ;;  %v1537_v25 = vpop.f32.mrb[42].mxu0 }
 0x14d   :  { %v1538_v26 = vpop.f32.mrb[43].mxu0  ;;  %v1608_v27 = vpop.f32.mrb[42].mxu1 }
 0x14e   :  { %v3349_v28 = vadd.f32 %v1607_v24, %v760_v22  ;;  %v1539_v31 = vadd.f32 %v1538_v26, %v1537_v25  ;;  %v1609_v32 = vpop.f32.mrb[43].mxu1 }
 0x14f   :  { %v1610_v33 = vadd.f32 %v1609_v32, %v1608_v27 }
 0x150   :  { %v765_v30 = vadd.f32 %v1539_v31, %v3313_v48  ;;  %v1540_v36 = vpop.f32.mrb[44].mxu0 }
 0x151   :  { %v1541_v34 = vpop.f32.mrb[45].mxu0  ;;  %v1611_v35 = vpop.f32.mrb[44].mxu1 }
 0x152   :  { %v3352_v37 = vadd.f32 %v1610_v33, %v765_v30  ;;  %v1542_v40 = vadd.f32 %v1541_v34, %v1540_v36  ;;  %v1612_v41 = vpop.f32.mrb[45].mxu1 }
 0x153   :  { %v1613_v42 = vadd.f32 %v1612_v41, %v1611_v35 }
 0x154   :  { %v770_v39 = vadd.f32 %v1542_v40, %v3316_v57  ;;  %v1543_v46 = vpop.f32.mrb[46].mxu0 }
 0x155   :  { %v1544_v43 = vpop.f32.mrb[47].mxu0  ;;  %v1614_v44 = vpop.f32.mrb[46].mxu1 }
 0x156   :  { %v3355_v45 = vadd.f32 %v1613_v42, %v770_v39  ;;  %v1545_v49 = vadd.f32 %v1544_v43, %v1543_v46  ;;  %v1615_v50 = vpop.f32.mrb[47].mxu1 }
 0x157   :  { %v1616_v51 = vadd.f32 %v1615_v50, %v1614_v44 }
 0x158   :  { %v775_v48 = vadd.f32 %v1545_v49, %v3319_v3  ;;  %v1546_v54 = vpop.f32.mrb[48].mxu0 }
 0x159   :  { %v1547_v52 = vpop.f32.mrb[49].mxu0  ;;  %v1617_v53 = vpop.f32.mrb[48].mxu1 }
 0x15a   :  { %v3358_v55 = vadd.f32 %v1616_v51, %v775_v48  ;;  %v1548_v59 = vadd.f32 %v1547_v52, %v1546_v54  ;;  %v1618_v60 = vpop.f32.mrb[49].mxu1 }
 0x15b   :  { %v1619_v61 = vadd.f32 %v1618_v60, %v1617_v53 }
 0x15c   :  { %v780_v57 = vadd.f32 %v1548_v59, %v3322_v11  ;;  %v1549_v63 = vpop.f32.mrb[50].mxu0 }
 0x15d   :  { %v1550_v62 = vpop.f32.mrb[51].mxu0  ;;  %v1620_v0 = vpop.f32.mrb[50].mxu1 }
 0x15e   :  { %v3361_v1 = vadd.f32 %v1619_v61, %v780_v57  ;;  %v1551_v4 = vadd.f32 %v1550_v62, %v1549_v63  ;;  %v1621_v5 = vpop.f32.mrb[51].mxu1 }
 0x15f   :  { %v1622_v6 = vadd.f32 %v1621_v5, %v1620_v0 }
 0x160   :  { %v785_v3 = vadd.f32 %v1551_v4, %v3325_v20  ;;  %v1655_v58 = vpop.f32.mrb[52].mxu0 }
 0x161   :  { %v1656_v7 = vpop.f32.mrb[53].mxu0  ;;  %v1726_v8 = vpop.f32.mrb[52].mxu1 }
 0x162   :  { %v3364_v9 = vadd.f32 %v1622_v6, %v785_v3  ;;  %v1657_v12 = vadd.f32 %v1656_v7, %v1655_v58  ;;  %v1727_v13 = vpop.f32.mrb[53].mxu1 }
 0x163   :  { %v1728_v15 = vadd.f32 %v1727_v13, %v1726_v8 }
 0x164   :  { %v985_v11 = vadd.f32 %v1657_v12, %v3328_v29  ;;  %v1658_v14 = vpop.f32.mrb[54].mxu0 }
 0x165   :  { %v1659_v16 = vpop.f32.mrb[55].mxu0  ;;  %v1729_v17 = vpop.f32.mrb[54].mxu1 }
 0x166   :  { %v1660_v18 = vadd.f32 %v1659_v16, %v1658_v14  ;;  %v1730_v21 = vpop.f32.mrb[55].mxu1  ;;  %v3367_v23 = vadd.f32 %v1728_v15, %v985_v11 }
 0x167   :  { %v1731_v24 = vadd.f32 %v1730_v21, %v1729_v17 }
 0x168   :  { %v990_v20 = vadd.f32 %v1660_v18, %v3331_v38  ;;  %v1661_v22 = vpop.f32.mrb[56].mxu0 }
 0x169   :  { %v1662_v25 = vpop.f32.mrb[57].mxu0  ;;  %v1732_v26 = vpop.f32.mrb[56].mxu1 }
 0x16a   :  { %v1663_v27 = vadd.f32 %v1662_v25, %v1661_v22  ;;  %v1733_v31 = vpop.f32.mrb[57].mxu1  ;;  %v3370_v32 = vadd.f32 %v1731_v24, %v990_v20 }
 0x16b   :  { %v1734_v33 = vadd.f32 %v1733_v31, %v1732_v26 }
 0x16c   :  { %v995_v29 = vadd.f32 %v1663_v27, %v3334_v47  ;;  %v1664_v30 = vpop.f32.mrb[58].mxu0 }
 0x16d   :  { %v1665_v36 = vpop.f32.mrb[59].mxu0  ;;  %v1735_v34 = vpop.f32.mrb[58].mxu1 }
 0x16e   :  { %v1666_v35 = vadd.f32 %v1665_v36, %v1664_v30  ;;  %v1736_v40 = vpop.f32.mrb[59].mxu1  ;;  %v3373_v41 = vadd.f32 %v1734_v33, %v995_v29 }
 0x16f   :  { %v1737_v42 = vadd.f32 %v1736_v40, %v1735_v34 }
 0x170   :  { %v1000_v38 = vadd.f32 %v1666_v35, %v3337_v56  ;;  %v1667_v39 = vpop.f32.mrb[60].mxu0 }
 0x171   :  { %v1668_v46 = vpop.f32.mrb[61].mxu0  ;;  %v1738_v43 = vpop.f32.mrb[60].mxu1 }
 0x172   :  { %v1669_v44 = vadd.f32 %v1668_v46, %v1667_v39  ;;  %v1739_v49 = vpop.f32.mrb[61].mxu1  ;;  %v3376_v50 = vadd.f32 %v1737_v42, %v1000_v38 }
 0x173   :  { %v1740_v51 = vadd.f32 %v1739_v49, %v1738_v43 }
 0x174   :  { %v1005_v47 = vadd.f32 %v1669_v44, %v3340_v2  ;;  %v1670_v48 = vpop.f32.mrb[62].mxu0 }
 0x175   :  { %v1671_v54 = vpop.f32.mrb[63].mxu0  ;;  %v1741_v52 = vpop.f32.mrb[62].mxu1 }
 0x176   :  { %v1672_v53 = vadd.f32 %v1671_v54, %v1670_v48  ;;  %v1742_v59 = vpop.f32.mrb[63].mxu1  ;;  %v3379_v60 = vadd.f32 %v1740_v51, %v1005_v47 }
 0x177   :  { %v1743_v61 = vadd.f32 %v1742_v59, %v1741_v52 }
 0x178   :  { %v1010_v56 = vadd.f32 %v1672_v53, %v3343_v10  ;;  %v1673_v57 = vpop.f32.mrb[64].mxu0 }
 0x179   :  { %v1674_v63 = vpop.f32.mrb[65].mxu0  ;;  %v1744_v62 = vpop.f32.mrb[64].mxu1 }
 0x17a   :  { %v1675_v0 = vadd.f32 %v1674_v63, %v1673_v57  ;;  %v1745_v4 = vpop.f32.mrb[65].mxu1  ;;  %v3382_v5 = vadd.f32 %v1743_v61, %v1010_v56 }
 0x17b   :  { %v1746_v6 = vadd.f32 %v1745_v4, %v1744_v62 }
 0x17c   :  { %v1015_v2 = vadd.f32 %v1675_v0, %v3346_v19  ;;  %v1676_v3 = vpop.f32.mrb[66].mxu0 }
 0x17d   :  { %v1677_v58 = vpop.f32.mrb[67].mxu0  ;;  %v1747_v7 = vpop.f32.mrb[66].mxu1 }
 0x17e   :  { %v1678_v8 = vadd.f32 %v1677_v58, %v1676_v3  ;;  %v1748_v12 = vpop.f32.mrb[67].mxu1  ;;  %v3385_v13 = vadd.f32 %v1746_v6, %v1015_v2 }
 0x17f   :  { %v1749_v15 = vadd.f32 %v1748_v12, %v1747_v7 }
 0x180   :  { %v1020_v10 = vadd.f32 %v1678_v8, %v3349_v28  ;;  %v1679_v11 = vpop.f32.mrb[68].mxu0 }
 0x181   :  { %v1680_v14 = vpop.f32.mrb[69].mxu0  ;;  %v1750_v16 = vpop.f32.mrb[68].mxu1 }
 0x182   :  { %v1681_v17 = vadd.f32 %v1680_v14, %v1679_v11  ;;  %v1751_v18 = vpop.f32.mrb[69].mxu1  ;;  %v1150_v21 = vadd.f32 %v1749_v15, %v1020_v10 }
 0x183   :  { %v1752_v24 = vadd.f32 %v1751_v18, %v1750_v16 }
 0x184   :  { %v1025_v20 = vadd.f32 %v1681_v17, %v3352_v37  ;;  %v1682_v19 = vpop.f32.mrb[70].mxu0 }
 0x185   :  { %v1683_v22 = vpop.f32.mrb[71].mxu0  ;;  %v1753_v25 = vpop.f32.mrb[70].mxu1 }
 0x186   :  { %v1684_v26 = vadd.f32 %v1683_v22, %v1682_v19  ;;  %v1754_v27 = vpop.f32.mrb[71].mxu1  ;;  %v1155_v31 = vadd.f32 %v1752_v24, %v1025_v20 }
 0x187   :  { %v1755_v33 = vadd.f32 %v1754_v27, %v1753_v25 }
 0x188   :  { %v1030_v29 = vadd.f32 %v1684_v26, %v3355_v45  ;;  %v1685_v30 = vpop.f32.mrb[72].mxu0 }
 0x189   :  { %v1686_v28 = vpop.f32.mrb[73].mxu0  ;;  %v1756_v36 = vpop.f32.mrb[72].mxu1 }
 0x18a   :  { %v1687_v34 = vadd.f32 %v1686_v28, %v1685_v30  ;;  %v1757_v35 = vpop.f32.mrb[73].mxu1  ;;  %v1160_v40 = vadd.f32 %v1755_v33, %v1030_v29 }
 0x18b   :  { %v1758_v42 = vadd.f32 %v1757_v35, %v1756_v36 }
 0x18c   :  { %v1035_v38 = vadd.f32 %v1687_v34, %v3358_v55  ;;  %v1688_v39 = vpop.f32.mrb[74].mxu0 }
 0x18d   :  { %v1689_v37 = vpop.f32.mrb[75].mxu0  ;;  %v1759_v46 = vpop.f32.mrb[74].mxu1 }
 0x18e   :  { %v1690_v43 = vadd.f32 %v1689_v37, %v1688_v39  ;;  %v1760_v44 = vpop.f32.mrb[75].mxu1  ;;  %v1165_v49 = vadd.f32 %v1758_v42, %v1035_v38 }
 0x18f   :  { %v1761_v51 = vadd.f32 %v1760_v44, %v1759_v46 }
 0x190   :  { %v1040_v47 = vadd.f32 %v1690_v43, %v3361_v1  ;;  %v1691_v48 = vpop.f32.mrb[76].mxu0 }
 0x191   :  { %v1692_v45 = vpop.f32.mrb[77].mxu0  ;;  %v1762_v54 = vpop.f32.mrb[76].mxu1 }
 0x192   :  { %v1693_v52 = vadd.f32 %v1692_v45, %v1691_v48  ;;  %v1763_v53 = vpop.f32.mrb[77].mxu1  ;;  %v1170_v59 = vadd.f32 %v1761_v51, %v1040_v47 }
 0x193   :  { %v1764_v61 = vadd.f32 %v1763_v53, %v1762_v54 }
 0x194   :  { %v1045_v56 = vadd.f32 %v1693_v52, %v3364_v9  ;;  %v1244_v57 = vpop.f32.mrb[78].mxu0 }
 0x195   :  { %v1245_v55 = vadd.f32 %v1244_v57, %v3367_v23  ;;  %v1279_v63 = vpop.f32.mrb[78].mxu1  ;;  %v1828_v62 = vpop.f32.mrb[79].mxu0 }
 0x196   :  { %v1280_v0 = vadd.f32 %v1279_v63, %v1150_v21  ;;  %v1849_v4 = vpop.f32.mrb[79].mxu1  ;;  %v1175_v6 = vadd.f32 %v1764_v61, %v1045_v56 }
 0x197   :  { %v1308_v2 = vmax.f32 %v1245_v55, 0.0 }
 0x198   :  { %v1315_v3 = vmax.f32 %v1280_v0, 0.0  ;;  %v1249_v1 = vpop.f32.mrb[80].mxu0 }
 0x199   :  { %1321 = vst [vmem:[%s3442_s3] sm:$0xff] %v1308_v2  ;;  %v1250_v58 = vadd.f32 %v1249_v1, %v3370_v32  ;;  %v1284_v7 = vpop.f32.mrb[80].mxu1  ;;  %v1831_v8 = vpop.f32.mrb[81].mxu0 }
 0x19a   :  { %1328 = vst [vmem:[%s3442_s3 + $0x38] sm:$0xff] %v1315_v3  ;;  %v1285_v9 = vadd.f32 %v1284_v7, %v1155_v31  ;;  %v1852_v23 = vpop.f32.mrb[81].mxu1 }
 0x19b   :  { %v1309_v12 = vmax.f32 %v1250_v58, 0.0 }
 0x19c   :  { %v1316_v15 = vmax.f32 %v1285_v9, 0.0  ;;  %v1254_v10 = vpop.f32.mrb[82].mxu0 }
 0x19d   :  { %1322 = vst [vmem:[%s3442_s3 + $0x8] sm:$0xff] %v1309_v12  ;;  %v1255_v11 = vadd.f32 %v1254_v10, %v3373_v41  ;;  %v1289_v14 = vpop.f32.mrb[82].mxu1  ;;  %v1834_v16 = vpop.f32.mrb[83].mxu0 }
 0x19e   :  { %1329 = vst [vmem:[%s3442_s3 + $0x40] sm:$0xff] %v1316_v15  ;;  %v1290_v32 = vadd.f32 %v1289_v14, %v1160_v40  ;;  %v1855_v17 = vpop.f32.mrb[83].mxu1 }
 0x19f   :  { %v1310_v18 = vmax.f32 %v1255_v11, 0.0 }
 0x1a0   :  { %v1317_v21 = vmax.f32 %v1290_v32, 0.0  ;;  %v1259_v24 = vpop.f32.mrb[84].mxu0 }
 0x1a1   :  { %1323 = vst [vmem:[%s3442_s3 + $0x10] sm:$0xff] %v1310_v18  ;;  %v1260_v20 = vadd.f32 %v1259_v24, %v3376_v50  ;;  %v1294_v19 = vpop.f32.mrb[84].mxu1  ;;  %v1837_v22 = vpop.f32.mrb[85].mxu0 }
 0x1a2   :  { %1330 = vst [vmem:[%s3442_s3 + $0x48] sm:$0xff] %v1317_v21  ;;  %v1295_v41 = vadd.f32 %v1294_v19, %v1165_v49  ;;  %v1858_v25 = vpop.f32.mrb[85].mxu1 }
 0x1a3   :  { %v1311_v26 = vmax.f32 %v1260_v20, 0.0 }
 0x1a4   :  { %v1318_v27 = vmax.f32 %v1295_v41, 0.0  ;;  %v1264_v31 = vpop.f32.mrb[86].mxu0 }
 0x1a5   :  { %1324 = vst [vmem:[%s3442_s3 + $0x18] sm:$0xff] %v1311_v26  ;;  %v1265_v33 = vadd.f32 %v1264_v31, %v3379_v60  ;;  %v1299_v29 = vpop.f32.mrb[86].mxu1  ;;  %v1840_v30 = vpop.f32.mrb[87].mxu0 }
 0x1a6   :  { %1331 = vst [vmem:[%s3442_s3 + $0x50] sm:$0xff] %v1318_v27  ;;  %v1300_v50 = vadd.f32 %v1299_v29, %v1170_v59  ;;  %v1861_v28 = vpop.f32.mrb[87].mxu1 }
 0x1a7   :  { %v1312_v36 = vmax.f32 %v1265_v33, 0.0 }
 0x1a8   :  { %v1319_v34 = vmax.f32 %v1300_v50, 0.0  ;;  %v1269_v35 = vpop.f32.mrb[88].mxu0 }
 0x1a9   :  { %1325 = vst [vmem:[%s3442_s3 + $0x20] sm:$0xff] %v1312_v36  ;;  %v1270_v40 = vadd.f32 %v1269_v35, %v3382_v5  ;;  %v1304_v42 = vpop.f32.mrb[88].mxu1  ;;  %v1843_v38 = vpop.f32.mrb[89].mxu0 }
 0x1aa   :  { %1332 = vst [vmem:[%s3442_s3 + $0x58] sm:$0xff] %v1319_v34  ;;  %v1305_v60 = vadd.f32 %v1304_v42, %v1175_v6  ;;  %v1864_v39 = vpop.f32.mrb[89].mxu1 }
 0x1ab   :  { %v1313_v37 = vmax.f32 %v1270_v40, 0.0 }
 0x1ac   :  { %v1320_v46 = vmax.f32 %v1305_v60, 0.0  ;;  %v1274_v43 = vpop.f32.mrb[90].mxu0 }
 0x1ad   :  { %1326 = vst [vmem:[%s3442_s3 + $0x28] sm:$0xff] %v1313_v37  ;;  %v1275_v44 = vadd.f32 %v1274_v43, %v3385_v13  ;;  %v1846_v49 = vpop.f32.mrb[91].mxu0 }
 0x1ae   :  { %1333 = vst [vmem:[%s3442_s3 + $0x60] sm:$0xff] %v1320_v46 }
 0x1af   :  { %v1314_v5 = vmax.f32 %v1275_v44, 0.0 }
 0x1b1   :  { %1327 = vst [vmem:[%s3442_s3 + $0x30] sm:$0xff] %v1314_v5 }

// kernel: autoencoder_forward.13
= control target key start
LH: loop header
LB: loop body
LE: loop exit
PB: predicated region body
PF: predicated region fallthrough
CT: control target
= control target key end

     0   :  { %vm45_vm0 = vcmask 523264   ;;  %s539_s1 = inlined_call_operand.vmem [shape: f32[64,128], index: 1, kind: input, shape index: {}]   ;;  %s540_s0 = inlined_call_operand.vmem [shape: f32[128,64], index: 0, kind: input, shape index: {}]   ;;  %s541_s2 = inlined_call_operand.vmem [shape: f32[1,128], index: 2, kind: input, shape index: {}]   ;;  %s542_s3 = inlined_call_operand.vmem [shape: f32[128,128], index: 3, kind: output, shape index: {}]  }
   0x1   :  { %v30_v0 = vld [vmem:[%s539_s1] sm:$0xff]  ;;  %v31_v1 = vld [vmem:[%s539_s1 + $0x8] sm:$0xff]  ;;  %v32_v2 = vld [vmem:[%s539_s1 + $0x10] sm:$0xff] }
   0x2   :  { %v356_v3 = vpack.c.bf16 %v31_v1, %v30_v0  ;;  %v33_v4 = vld [vmem:[%s539_s1 + $0x18] sm:$0xff]  ;;  %v34_v6 = vld [vmem:[%s539_s1 + $0x20] sm:$0xff]  ;;  %v35_v7 = vld [vmem:[%s539_s1 + $0x28] sm:$0xff] }
   0x3   :  { %v360_v5 = vpack.c.bf16 %v33_v4, %v32_v2  ;;  %v14_v8 = vld [vmem:[%s540_s0] sm:$0xff]  ;;  %v364_v10 = vpack.c.bf16 %v35_v7, %v34_v6  ;;  %v36_v11 = vld [vmem:[%s539_s1 + $0x30] sm:$0xff]  ;;  %v37_v12 = vld [vmem:[%s539_s1 + $0x38] sm:$0xff] }
   0x4   :  { %357 = vmatprep.subr.bf16.mxu0 %v356_v3  ;;  %372 = vmatprep.subr.bf16.mxu1 %v356_v3  ;;  %v22_v9 = vld [vmem:[%s540_s0 + $0x40] sm:$0xff]  ;;  %v368_v13 = vpack.c.bf16 %v37_v12, %v36_v11  ;;  %v15_v14 = vld [vmem:[%s540_s0 + $0x8] sm:$0xff]  ;;  %v16_v16 = vld [vmem:[%s540_s0 + $0x10] sm:$0xff] }
   0x5   :  { %359 = vmatpush3.bf16.msra.mxu0 %v356_v3  ;;  %376 = vmatpush3.bf16.msra.mxu1 %v356_v3  ;;  %v23_v15 = vld [vmem:[%s540_s0 + $0x48] sm:$0xff]  ;;  %v24_v17 = vld [vmem:[%s540_s0 + $0x50] sm:$0xff]  ;;  %v17_v18 = vld [vmem:[%s540_s0 + $0x18] sm:$0xff] }
   0x6   :  { %361 = vmatprep.subr.bf16.mxu0 %v360_v5  ;;  %373 = vmatprep.subr.bf16.mxu1 %v360_v5  ;;  %v25_v19 = vld [vmem:[%s540_s0 + $0x58] sm:$0xff]  ;;  %v18_v20 = vld [vmem:[%s540_s0 + $0x20] sm:$0xff]  ;;  %v19_v22 = vld [vmem:[%s540_s0 + $0x28] sm:$0xff] }
   0x7   :  { %332 = vmatprep.mubr.msk.f32.mxu0 %vm45_vm0, %v14_v8  ;;  %344 = vmatprep.mubr.msk.f32.mxu1 %vm45_vm0, %v22_v9  ;;  %v26_v21 = vld [vmem:[%s540_s0 + $0x60] sm:$0xff]  ;;  %v27_v23 = vld [vmem:[%s540_s0 + $0x68] sm:$0xff]  ;;  %v20_v24 = vld [vmem:[%s540_s0 + $0x30] sm:$0xff] }
   0x8   :  { %v28_v25 = vld [vmem:[%s540_s0 + $0x70] sm:$0xff]  ;;  %v21_v26 = vld [vmem:[%s540_s0 + $0x38] sm:$0xff]  ;;  %v275_v28 = vld [vmem:[%s541_s2] ss:$0 sm:$0xff] }
   0x9   :  { %363 = vmatpush3.bf16.msra.mxu0 %v360_v5  ;;  %377 = vmatpush3.bf16.msra.mxu1 %v360_v5  ;;  %v29_v27 = vld [vmem:[%s540_s0 + $0x78] sm:$0xff] }
   0xa   :  { %365 = vmatprep.subr.bf16.mxu0 %v364_v10  ;;  %374 = vmatprep.subr.bf16.mxu1 %v364_v10 }
   0xd   :  { %367 = vmatpush3.bf16.msra.mxu0 %v364_v10  ;;  %378 = vmatpush3.bf16.msra.mxu1 %v364_v10 }
   0xe   :  { %369 = vmatprep.subr.bf16.mxu0 %v368_v13  ;;  %375 = vmatprep.subr.bf16.mxu1 %v368_v13 }
  0x11   :  { %371 = vmatpush3.bf16.msra.mxu0 %v368_v13  ;;  %379 = vmatpush3.bf16.msra.mxu1 %v368_v13 }
  0x14   :  { %333 = vmatmul.mubr.msk.f32.vlgmr.msra.gmra.mrb[0].mxu0 %vm45_vm0, %v15_v14  ;;  %345 = vmatmul.mubr.msk.f32.vlgmr.msra.gmra.mrb[0].mxu1 %vm45_vm0, %v23_v15 }
  0x15   :  { %335 = vmatprep.mubr.msk.f32.mxu0 %vm45_vm0, %v16_v16  ;;  %347 = vmatprep.mubr.msk.f32.mxu1 %vm45_vm0, %v24_v17 }
  0x18   :  { %336 = vmatmul.mubr.msk.f32.gmra.mrb[2].mxu0 %vm45_vm0, %v17_v18  ;;  %348 = vmatmul.mubr.msk.f32.gmra.mrb[2].mxu1 %vm45_vm0, %v25_v19 }
  0x19   :  { %338 = vmatprep.mubr.msk.f32.mxu0 %vm45_vm0, %v18_v20  ;;  %350 = vmatprep.mubr.msk.f32.mxu1 %vm45_vm0, %v26_v21 }
  0x1c   :  { %339 = vmatmul.mubr.msk.f32.gmra.mrb[4].mxu0 %vm45_vm0, %v19_v22  ;;  %351 = vmatmul.mubr.msk.f32.gmra.mrb[4].mxu1 %vm45_vm0, %v27_v23 }
  0x1d   :  { %341 = vmatprep.mubr.msk.f32.mxu0 %vm45_vm0, %v20_v24  ;;  %353 = vmatprep.mubr.msk.f32.mxu1 %vm45_vm0, %v28_v25 }
  0x20   :  { %342 = vmatmul.mubr.msk.f32.gmra.mrb[6].mxu0 %vm45_vm0, %v21_v26  ;;  %354 = vmatmul.mubr.msk.f32.gmra.mrb[6].mxu1 %vm45_vm0, %v29_v27 }
  0xe7   :  { %v334_v29 = vpop.f32.mrb[0].mxu0  ;;  %v346_v30 = vpop.f32.mrb[0].mxu1 }
  0xe8   :  { %v166_v31 = vadd.f32 %v334_v29, %v275_v28  ;;  %v206_v32 = vadd.f32 %v346_v30, %v275_v28  ;;  %v160_v33 = vpop.f32.mrb[1].mxu0  ;;  %v200_v34 = vpop.f32.mrb[1].mxu1 }
  0xe9   :  { %v161_v35 = vadd.f32 %v275_v28, %v160_v33  ;;  %v201_v36 = vadd.f32 %v275_v28, %v200_v34 }
  0xea   :  { %v240_v37 = vmax.f32 %v166_v31, 0.0  ;;  %v248_v38 = vmax.f32 %v206_v32, 0.0 }
  0xeb   :  { %v239_v39 = vmax.f32 %v161_v35, 0.0  ;;  %v247_v40 = vmax.f32 %v201_v36, 0.0  ;;  %v337_v41 = vpop.f32.mrb[2].mxu0  ;;  %v349_v42 = vpop.f32.mrb[2].mxu1 }
  0xec   :  { %256 = vst [vmem:[%s542_s3 + $0x8] sm:$0xff] %v240_v37  ;;  %264 = vst [vmem:[%s542_s3 + $0x48] sm:$0xff] %v248_v38  ;;  %v176_v43 = vadd.f32 %v337_v41, %v275_v28  ;;  %v216_v44 = vadd.f32 %v349_v42, %v275_v28  ;;  %v170_v45 = vpop.f32.mrb[3].mxu0  ;;  %v210_v46 = vpop.f32.mrb[3].mxu1 }
  0xed   :  { %255 = vst [vmem:[%s542_s3] sm:$0xff] %v239_v39  ;;  %263 = vst [vmem:[%s542_s3 + $0x40] sm:$0xff] %v247_v40  ;;  %v171_v47 = vadd.f32 %v275_v28, %v170_v45  ;;  %v211_v48 = vadd.f32 %v275_v28, %v210_v46 }
  0xee   :  { %v242_v49 = vmax.f32 %v176_v43, 0.0  ;;  %v250_v50 = vmax.f32 %v216_v44, 0.0 }
  0xef   :  { %v241_v51 = vmax.f32 %v171_v47, 0.0  ;;  %v249_v52 = vmax.f32 %v211_v48, 0.0  ;;  %v340_v53 = vpop.f32.mrb[4].mxu0  ;;  %v352_v54 = vpop.f32.mrb[4].mxu1 }
  0xf0   :  { %258 = vst [vmem:[%s542_s3 + $0x18] sm:$0xff] %v242_v49  ;;  %266 = vst [vmem:[%s542_s3 + $0x58] sm:$0xff] %v250_v50  ;;  %v186_v55 = vadd.f32 %v340_v53, %v275_v28  ;;  %v226_v56 = vadd.f32 %v352_v54, %v275_v28  ;;  %v180_v57 = vpop.f32.mrb[5].mxu0  ;;  %v220_v58 = vpop.f32.mrb[5].mxu1 }
  0xf1   :  { %257 = vst [vmem:[%s542_s3 + $0x10] sm:$0xff] %v241_v51  ;;  %265 = vst [vmem:[%s542_s3 + $0x50] sm:$0xff] %v249_v52  ;;  %v181_v59 = vadd.f32 %v275_v28, %v180_v57  ;;  %v221_v60 = vadd.f32 %v275_v28, %v220_v58 }
  0xf2   :  { %v244_v61 = vmax.f32 %v186_v55, 0.0  ;;  %v252_v62 = vmax.f32 %v226_v56, 0.0 }
  0xf3   :  { %v243_v63 = vmax.f32 %v181_v59, 0.0  ;;  %v251_v0 = vmax.f32 %v221_v60, 0.0  ;;  %v343_v1 = vpop.f32.mrb[6].mxu0  ;;  %v355_v2 = vpop.f32.mrb[6].mxu1 }
  0xf4   :  { %260 = vst [vmem:[%s542_s3 + $0x28] sm:$0xff] %v244_v61  ;;  %268 = vst [vmem:[%s542_s3 + $0x68] sm:$0xff] %v252_v62  ;;  %v196_v3 = vadd.f32 %v343_v1, %v275_v28  ;;  %v236_v4 = vadd.f32 %v355_v2, %v275_v28  ;;  %v190_v5 = vpop.f32.mrb[7].mxu0  ;;  %v230_v6 = vpop.f32.mrb[7].mxu1 }
  0xf5   :  { %259 = vst [vmem:[%s542_s3 + $0x20] sm:$0xff] %v243_v63  ;;  %267 = vst [vmem:[%s542_s3 + $0x60] sm:$0xff] %v251_v0  ;;  %v191_v7 = vadd.f32 %v275_v28, %v190_v5  ;;  %v231_v8 = vadd.f32 %v275_v28, %v230_v6 }
  0xf6   :  { %v246_v9 = vmax.f32 %v196_v3, 0.0  ;;  %v254_v10 = vmax.f32 %v236_v4, 0.0 }
  0xf7   :  { %v245_v11 = vmax.f32 %v191_v7, 0.0  ;;  %v253_v12 = vmax.f32 %v231_v8, 0.0 }
  0xf8   :  { %262 = vst [vmem:[%s542_s3 + $0x38] sm:$0xff] %v246_v9  ;;  %270 = vst [vmem:[%s542_s3 + $0x78] sm:$0xff] %v254_v10 }
  0xf9   :  { %261 = vst [vmem:[%s542_s3 + $0x30] sm:$0xff] %v245_v11  ;;  %269 = vst [vmem:[%s542_s3 + $0x70] sm:$0xff] %v253_v12 }

// kernel: tile.23
= control target key start
LH: loop header
LB: loop body
LE: loop exit
PB: predicated region body
PF: predicated region fallthrough
CT: control target
= control target key end

     0   :  { %s22_s0 = inlined_call_operand.vmem [shape: f32[8], index: 0, kind: input, shape index: {}]   ;;  %s23_s1 = inlined_call_operand.vmem [shape: f32[4,8], index: 1, kind: output, shape index: {}]  }
   0x1   :  { %v4_v0 = vld [vmem:[%s22_s0] ss:$0 sm:$0xff] }
   0x2   :  { %5 = vst [vmem:[%s23_s1] sm:$0xf] %v4_v0 }

// kernel: tile.24
= control target key start
LH: loop header
LB: loop body
LE: loop exit
PB: predicated region body
PF: predicated region fallthrough
CT: control target
= control target key end

     0   :  { %vm7_vm0 = vcmask 64512   ;;  %s37_s8 = smov 8   ;;  %s38_s9 = smov 16   ;;  %vm13_vm1 = vcmask 261312   ;;  %vm19_vm2 = vcmask 195712   ;;  %vm25_vm3 = vcmask 130112   ;;  %s55_s0 = inlined_call_operand.vmem [shape: f32[4,8], index: 0, kind: input, shape index: {}]   ;;  %s56_s1 = inlined_call_operand.vmem [shape: f32[32], index: 1, kind: output, shape index: {}]  }
   0x1   :  { %v4_v0 = vld [vmem:[%s55_s0] sm:$0xf]  ;;  %s36_s0 = smov 24  }
   0x2   :  { %5 = vst [vmem:[#allocation1] sm:$0xf] %v4_v0 }
   0x9   :  { %v10_v1 = vld [vmem:[#allocation1 + $0x3] sm:$0x1]   ;;  %v22_v2 = vld [vmem:[#allocation1 + $0x1] sm:$0x1]   ;;  %v6_v3 = vld [vmem:[#allocation1] sm:$0x1]  }
   0xa   :  { %11 = vrot.lane.b32.xlu0 %v10_v1, %s36_s0  ;;  %23 = vrot.lane.b32.xlu1 %v22_v2, %s37_s8  ;;  %v16_v4 = vld [vmem:[#allocation1 + $0x2] sm:$0x1]   ;;  %8 = vst.msk [vmem:[#allocation0] sm:$0x1] %vm7_vm0, %v6_v3  }
   0xe   :  { %17 = vrot.lane.b32.xlu0 %v16_v4, %s38_s9 }
  0x7c   :  { %v12_v5 = vpop.permute.xlu0 %11   ;;  %v24_v6 = vpop.permute.xlu1 %23  }
  0x7d   :  { %14 = vst.msk [vmem:[#allocation0] sm:$0x1] %vm13_vm1, %v12_v5  }
  0x80   :  { %v18_v7 = vpop.permute.xlu0 %17  }
  0x81   :  { %20 = vst.msk [vmem:[#allocation0] sm:$0x1] %vm19_vm2, %v18_v7  }
  0x82   :  { %26 = vst.msk [vmem:[#allocation0] sm:$0x1] %vm25_vm3, %v24_v6  }
  0x89   :  { %v30_v8 = vld [vmem:[#allocation0] sm:$0x1] }
  0x8a   :  { %32 = vst [vmem:[%s56_s1] sm:$0x1] %v30_v8 }

// kernel: autoencoder_forward.14
= control target key start
LH: loop header
LB: loop body
LE: loop exit
PB: predicated region body
PF: predicated region fallthrough
CT: control target
= control target key end

     0   :  { %s1677_s12 = smov 0   ;;  %s2213_s0 = inlined_call_operand.vmem [shape: f32[1264,72], index: 0, kind: input, shape index: {}]   ;;  %s2214_s1 = inlined_call_operand.vmem [shape: f32[72,128], index: 1, kind: input, shape index: {}]   ;;  %s2215_s2 = inlined_call_operand.vmem [shape: f32[1,128], index: 2, kind: input, shape index: {}]   ;;  %s2216_s3 = inlined_call_operand.vmem [shape: f32[1264,128], index: 3, kind: output, shape index: {}]  }
   0x1 LB: > { %s1181_s13 = sadd.s32 4294967295, %s1652_s12   ;;  %p1185_p0 = scmp.ge.s32.totalorder %s1652_s12, 1  ;;  %s1652_s12 = sphi %s1677_s12, %s13_s12  }
   0x2   : > { %p138_p1 = scmp.lt.s32.totalorder %s1652_s12, 3 }
   0x4   : > { %p139_p2 = pnand %p1185_p0, %p138_p1 }
   0x5   : > { %v253_v0 = vld [vmem:[%s2214_s1] sm:$0xff] (!%p139_p2)  ;;  %v254_v1 = vld [vmem:[%s2214_s1 + $0x8] sm:$0xff] (!%p139_p2)  ;;  %v255_v2 = vld [vmem:[%s2214_s1 + $0x10] sm:$0xff] (!%p139_p2)  ;;  %v1654_v3 = vmov (!%p139_p2), 0.0|0.0   ;;  %s162_s22 = smul.u32 (!%p139_p2), 79, %s1181_s13  ;;  %vm1655_vm0 = vmmov (!%p139_p2), 0  }
   0x6   : > { %142 = sbr.rel (%p139_p2) target bundleno = 398 (0x18e), region = 32  ;;  %1613 = vmatprep.subr.bf16.mxu0 (!%p139_p2), %v1654_v3  ;;  %v1614_v4 = vpack.c.bf16 (!%p139_p2), %v254_v1, %v253_v0  ;;  %1625 = vmatprep.subr.bf16.mxu1 (!%p139_p2), %v1654_v3  ;;  %v256_v5 = vld [vmem:[%s2214_s1 + $0x18] sm:$0xff] (!%p139_p2)  ;;  %v1656_v6 = vmov (!%p139_p2), 0.0   ;;  %v257_v8 = vld [vmem:[%s2214_s1 + $0x20] sm:$0xff] (!%p139_p2)  ;;  %v258_v9 = vld [vmem:[%s2214_s1 + $0x28] sm:$0xff] (!%p139_p2)  ;;  %vm269_vm1 = vcmask (!%p139_p2), 588800  }
   0x7   : > { %1376 = vmatprep.mubr.msk.f32.mxu0 (!%p139_p2), %vm1655_vm0, %v1656_v6  ;;  %1496 = vmatprep.mubr.msk.f32.mxu1 (!%p139_p2), %vm1655_vm0, %v1656_v6  ;;  %v1617_v7 = vpack.c.bf16 (!%p139_p2), %v256_v5, %v255_v2  ;;  %p163_p3 = scmp.lt.s32.totalorder (!%p139_p2), %s162_s22, 157  ;;  %v1620_v10 = vpack.c.bf16 (!%p139_p2), %v258_v9, %v257_v8  ;;  %v259_v11 = vld [vmem:[%s2214_s1 + $0x30] sm:$0xff] (!%p139_p2)  ;;  %v260_v12 = vld [vmem:[%s2214_s1 + $0x38] sm:$0xff] (!%p139_p2)  ;;  %v261_v14 = vld [vmem:[%s2214_s1 + $0x40] sm:$0xff] (!%p139_p2) }
   0x8   : > { %1615 = vmatpush3.bf16.msra.mxu0 (!%p139_p2), %v1614_v4  ;;  %1630 = vmatpush3.bf16.msra.mxu1 (!%p139_p2), %v1614_v4  ;;  %v1623_v13 = vpack.c.bf16 (!%p139_p2), %v260_v12, %v259_v11 }
   0x9   : > { %1616 = vmatprep.subr.bf16.mxu0 (!%p139_p2), %v1654_v3  ;;  %1626 = vmatprep.subr.bf16.mxu1 (!%p139_p2), %v1654_v3 }
   0xc   : > { %1618 = vmatpush3.bf16.msra.mxu0 (!%p139_p2), %v1617_v7  ;;  %1631 = vmatpush3.bf16.msra.mxu1 (!%p139_p2), %v1617_v7 }
   0xd   : > { %s2218_s22 = smov (!%p163_p3, %s162_s22), 157  ;;  %1619 = vmatprep.subr.bf16.mxu0 %v1654_v3  ;;  %1627 = vmatprep.subr.bf16.mxu1 %v1654_v3 }
   0xe   : > { %s1186_s4 = sshll.u32 %s2218_s22, 3 }
   0xf   : > { %s1721_s7 = scalar_lea.vmem %s2213_s0, %s1186_s4  ;;  %s2052_s15 = scalar_lea.vmem %s2216_s3, %s1186_s4 }
  0x10   : > { %1621 = vmatpush3.bf16.msra.mxu0 %v1620_v10  ;;  %1632 = vmatpush3.bf16.msra.mxu1 %v1620_v10  ;;  %v174_v15 = vld [vmem:[%s1721_s7] sm:$0xff]  ;;  %v175_v17 = vld [vmem:[%s1721_s7 + $0x8] sm:$0xff]  ;;  %v176_v19 = vld [vmem:[%s1721_s7 + $0x10] sm:$0xff] }
  0x11   : > { %1622 = vmatprep.subr.bf16.mxu0 %v1654_v3  ;;  %1628 = vmatprep.subr.bf16.mxu1 %v1654_v3  ;;  %v214_v16 = vld [vmem:[%s1721_s7 + $0x140] sm:$0xff]  ;;  %v215_v18 = vld [vmem:[%s1721_s7 + $0x148] sm:$0xff]  ;;  %v216_v20 = vld [vmem:[%s1721_s7 + $0x150] sm:$0xff] }
  0x12   : > { %v177_v21 = vld [vmem:[%s1721_s7 + $0x18] sm:$0xff]  ;;  %v178_v23 = vld [vmem:[%s1721_s7 + $0x20] sm:$0xff]  ;;  %v179_v25 = vld [vmem:[%s1721_s7 + $0x28] sm:$0xff] }
  0x13   : > { %v217_v22 = vld [vmem:[%s1721_s7 + $0x158] sm:$0xff]  ;;  %v218_v24 = vld [vmem:[%s1721_s7 + $0x160] sm:$0xff]  ;;  %v219_v26 = vld [vmem:[%s1721_s7 + $0x168] sm:$0xff] }
  0x14   : > { %1624 = vmatpush3.bf16.msra.mxu0 %v1623_v13  ;;  %1633 = vmatpush3.bf16.msra.mxu1 %v1623_v13  ;;  %v180_v27 = vld [vmem:[%s1721_s7 + $0x30] sm:$0xff]  ;;  %v181_v29 = vld [vmem:[%s1721_s7 + $0x38] sm:$0xff]  ;;  %v182_v31 = vld [vmem:[%s1721_s7 + $0x40] sm:$0xff] }
  0x15   : > { %1374 = vmatprep.subr.mxu0 %v1656_v6  ;;  %1629 = vmatprep.subr.mxu1 %v1656_v6  ;;  %v220_v28 = vld [vmem:[%s1721_s7 + $0x170] sm:$0xff]  ;;  %v221_v30 = vld [vmem:[%s1721_s7 + $0x178] sm:$0xff]  ;;  %v222_v32 = vld [vmem:[%s1721_s7 + $0x180] sm:$0xff] }
  0x16   : > { %v183_v33 = vld [vmem:[%s1721_s7 + $0x48] sm:$0xff]  ;;  %v184_v35 = vld [vmem:[%s1721_s7 + $0x50] sm:$0xff]  ;;  %v185_v37 = vld [vmem:[%s1721_s7 + $0x58] sm:$0xff] }
  0x17   : > { %v223_v34 = vld [vmem:[%s1721_s7 + $0x188] sm:$0xff]  ;;  %v224_v36 = vld [vmem:[%s1721_s7 + $0x190] sm:$0xff]  ;;  %v225_v38 = vld [vmem:[%s1721_s7 + $0x198] sm:$0xff] }
  0x18   : > { %1375 = vmatpush3.msra.mxu0 %v261_v14  ;;  %1634 = vmatpush3.msra.mxu1 %v261_v14  ;;  %v186_v39 = vld [vmem:[%s1721_s7 + $0x60] sm:$0xff]  ;;  %v187_v41 = vld [vmem:[%s1721_s7 + $0x68] sm:$0xff]  ;;  %v188_v43 = vld [vmem:[%s1721_s7 + $0x70] sm:$0xff] }
  0x19   : > { %1377 = vmatmul.mubr.msk.f32.vlgmr.msra.gmra.mrb[0].mxu0 %vm269_vm1, %v174_v15  ;;  %1497 = vmatmul.mubr.msk.f32.vlgmr.msra.gmra.mrb[0].mxu1 %vm269_vm1, %v214_v16  ;;  %v226_v40 = vld [vmem:[%s1721_s7 + $0x1a0] sm:$0xff]  ;;  %v227_v42 = vld [vmem:[%s1721_s7 + $0x1a8] sm:$0xff]  ;;  %v228_v44 = vld [vmem:[%s1721_s7 + $0x1b0] sm:$0xff] }
  0x1a   : > { %1379 = vmatprep.mubr.msk.f32.mxu0 %vm1655_vm0, %v1656_v6  ;;  %1499 = vmatprep.mubr.msk.f32.mxu1 %vm1655_vm0, %v1656_v6  ;;  %v189_v45 = vld [vmem:[%s1721_s7 + $0x78] sm:$0xff]  ;;  %v190_v47 = vld [vmem:[%s1721_s7 + $0x80] sm:$0xff]  ;;  %v191_v49 = vld [vmem:[%s1721_s7 + $0x88] sm:$0xff] }
  0x1b   : > { %v229_v46 = vld [vmem:[%s1721_s7 + $0x1b8] sm:$0xff]  ;;  %v230_v48 = vld [vmem:[%s1721_s7 + $0x1c0] sm:$0xff]  ;;  %v231_v50 = vld [vmem:[%s1721_s7 + $0x1c8] sm:$0xff] }
  0x1c   : > { %v192_v51 = vld [vmem:[%s1721_s7 + $0x90] sm:$0xff]  ;;  %v193_v53 = vld [vmem:[%s1721_s7 + $0x98] sm:$0xff]  ;;  %v194_v55 = vld [vmem:[%s1721_s7 + $0xa0] sm:$0xff] }
  0x1d   : > { %1380 = vmatmul.mubr.msk.f32.gmra.mrb[2].mxu0 %vm269_vm1, %v175_v17  ;;  %1500 = vmatmul.mubr.msk.f32.gmra.mrb[2].mxu1 %vm269_vm1, %v215_v18  ;;  %v232_v52 = vld [vmem:[%s1721_s7 + $0x1d0] sm:$0xff]  ;;  %v233_v54 = vld [vmem:[%s1721_s7 + $0x1d8] sm:$0xff]  ;;  %v234_v56 = vld [vmem:[%s1721_s7 + $0x1e0] sm:$0xff] }
  0x1e   : > { %1382 = vmatprep.mubr.msk.f32.mxu0 %vm1655_vm0, %v1656_v6  ;;  %1502 = vmatprep.mubr.msk.f32.mxu1 %vm1655_vm0, %v1656_v6  ;;  %v195_v57 = vld [vmem:[%s1721_s7 + $0xa8] sm:$0xff]  ;;  %v196_v59 = vld [vmem:[%s1721_s7 + $0xb0] sm:$0xff]  ;;  %v197_v61 = vld [vmem:[%s1721_s7 + $0xb8] sm:$0xff] }
  0x1f   : > { %v235_v58 = vld [vmem:[%s1721_s7 + $0x1e8] sm:$0xff]  ;;  %v236_v60 = vld [vmem:[%s1721_s7 + $0x1f0] sm:$0xff]  ;;  %v237_v62 = vld [vmem:[%s1721_s7 + $0x1f8] sm:$0xff] }
  0x20   : > { %v198_v63 = vld [vmem:[%s1721_s7 + $0xc0] sm:$0xff]  ;;  %v199_v1 = vld [vmem:[%s1721_s7 + $0xc8] sm:$0xff]  ;;  %v200_v3 = vld [vmem:[%s1721_s7 + $0xd0] sm:$0xff] }
  0x21   : > { %1383 = vmatmul.mubr.msk.f32.gmra.mrb[4].mxu0 %vm269_vm1, %v176_v19  ;;  %1503 = vmatmul.mubr.msk.f32.gmra.mrb[4].mxu1 %vm269_vm1, %v216_v20  ;;  %v238_v0 = vld [vmem:[%s1721_s7 + $0x200] sm:$0xff]  ;;  %v239_v2 = vld [vmem:[%s1721_s7 + $0x208] sm:$0xff]  ;;  %v240_v4 = vld [vmem:[%s1721_s7 + $0x210] sm:$0xff] }
  0x22   : > { %1385 = vmatprep.mubr.msk.f32.mxu0 %vm1655_vm0, %v1656_v6  ;;  %1505 = vmatprep.mubr.msk.f32.mxu1 %vm1655_vm0, %v1656_v6  ;;  %v201_v5 = vld [vmem:[%s1721_s7 + $0xd8] sm:$0xff]  ;;  %v202_v8 = vld [vmem:[%s1721_s7 + $0xe0] sm:$0xff]  ;;  %v203_v10 = vld [vmem:[%s1721_s7 + $0xe8] sm:$0xff] }
  0x23   : > { %v241_v7 = vld [vmem:[%s1721_s7 + $0x218] sm:$0xff]  ;;  %v242_v9 = vld [vmem:[%s1721_s7 + $0x220] sm:$0xff]  ;;  %v243_v11 = vld [vmem:[%s1721_s7 + $0x228] sm:$0xff] }
  0x24   : > { %v204_v12 = vld [vmem:[%s1721_s7 + $0xf0] sm:$0xff]  ;;  %v205_v14 = vld [vmem:[%s1721_s7 + $0xf8] sm:$0xff]  ;;  %v206_v16 = vld [vmem:[%s1721_s7 + $0x100] sm:$0xff] }
  0x25   : > { %1386 = vmatmul.mubr.msk.f32.gmra.mrb[6].mxu0 %vm269_vm1, %v177_v21  ;;  %1506 = vmatmul.mubr.msk.f32.gmra.mrb[6].mxu1 %vm269_vm1, %v217_v22  ;;  %v244_v13 = vld [vmem:[%s1721_s7 + $0x230] sm:$0xff]  ;;  %v245_v15 = vld [vmem:[%s1721_s7 + $0x238] sm:$0xff]  ;;  %v246_v17 = vld [vmem:[%s1721_s7 + $0x240] sm:$0xff] }
  0x26   : > { %1388 = vmatprep.mubr.msk.f32.mxu0 %vm1655_vm0, %v1656_v6  ;;  %1508 = vmatprep.mubr.msk.f32.mxu1 %vm1655_vm0, %v1656_v6  ;;  %v207_v18 = vld [vmem:[%s1721_s7 + $0x108] sm:$0xff]  ;;  %v208_v20 = vld [vmem:[%s1721_s7 + $0x110] sm:$0xff]  ;;  %v209_v22 = vld [vmem:[%s1721_s7 + $0x118] sm:$0xff] }
  0x27   : > { %v247_v19 = vld [vmem:[%s1721_s7 + $0x248] sm:$0xff]  ;;  %v248_v21 = vld [vmem:[%s1721_s7 + $0x250] sm:$0xff] }
  0x29   : > { %1389 = vmatmul.mubr.msk.f32.gmra.mrb[8].mxu0 %vm269_vm1, %v178_v23  ;;  %1509 = vmatmul.mubr.msk.f32.gmra.mrb[8].mxu1 %vm269_vm1, %v218_v24  ;;  %v249_v23 = vld [vmem:[%s1721_s7 + $0x258] sm:$0xff]  ;;  %v210_v24 = vld [vmem:[%s1721_s7 + $0x120] sm:$0xff] }
  0x2a   : > { %1391 = vmatprep.mubr.msk.f32.mxu0 %vm1655_vm0, %v1656_v6  ;;  %1511 = vmatprep.mubr.msk.f32.mxu1 %vm1655_vm0, %v1656_v6 }
  0x2d   : > { %1392 = vmatmul.mubr.msk.f32.gmra.mrb[10].mxu0 %vm269_vm1, %v179_v25  ;;  %1512 = vmatmul.mubr.msk.f32.gmra.mrb[10].mxu1 %vm269_vm1, %v219_v26  ;;  %v250_v25 = vld [vmem:[%s1721_s7 + $0x260] sm:$0xff]  ;;  %v211_v26 = vld [vmem:[%s1721_s7 + $0x128] sm:$0xff] }
  0x2e   : > { %1394 = vmatprep.mubr.msk.f32.mxu0 %vm1655_vm0, %v1656_v6  ;;  %1514 = vmatprep.mubr.msk.f32.mxu1 %vm1655_vm0, %v1656_v6 }
  0x31   : > { %1395 = vmatmul.mubr.msk.f32.gmra.mrb[12].mxu0 %vm269_vm1, %v180_v27  ;;  %1515 = vmatmul.mubr.msk.f32.gmra.mrb[12].mxu1 %vm269_vm1, %v220_v28  ;;  %v251_v27 = vld [vmem:[%s1721_s7 + $0x268] sm:$0xff]  ;;  %v212_v28 = vld [vmem:[%s1721_s7 + $0x130] sm:$0xff] }
  0x32   : > { %1397 = vmatprep.mubr.msk.f32.mxu0 %vm1655_vm0, %v1656_v6  ;;  %1517 = vmatprep.mubr.msk.f32.mxu1 %vm1655_vm0, %v1656_v6 }
  0x35   : > { %1398 = vmatmul.mubr.msk.f32.gmra.mrb[14].mxu0 %vm269_vm1, %v181_v29  ;;  %1518 = vmatmul.mubr.msk.f32.gmra.mrb[14].mxu1 %vm269_vm1, %v221_v30  ;;  %v252_v29 = vld [vmem:[%s1721_s7 + $0x270] sm:$0xff]  ;;  %v213_v30 = vld [vmem:[%s1721_s7 + $0x138] sm:$0xff] }
  0x36   : > { %1400 = vmatprep.mubr.msk.f32.mxu0 %vm1655_vm0, %v1656_v6  ;;  %1520 = vmatprep.mubr.msk.f32.mxu1 %vm1655_vm0, %v1656_v6 }
  0x39   : > { %1401 = vmatmul.mubr.msk.f32.gmra.mrb[16].mxu0 %vm269_vm1, %v182_v31  ;;  %1521 = vmatmul.mubr.msk.f32.gmra.mrb[16].mxu1 %vm269_vm1, %v222_v32  ;;  %v2043_v31 = vld [vmem:[%s2215_s2] ss:$0 sm:$0xff] }
  0x3a   : > { %1403 = vmatprep.mubr.msk.f32.mxu0 %vm1655_vm0, %v1656_v6  ;;  %1523 = vmatprep.mubr.msk.f32.mxu1 %vm1655_vm0, %v1656_v6 }
  0x3d   : > { %1404 = vmatmul.mubr.msk.f32.gmra.mrb[18].mxu0 %vm269_vm1, %v183_v33  ;;  %1524 = vmatmul.mubr.msk.f32.gmra.mrb[18].mxu1 %vm269_vm1, %v223_v34 }
  0x3e   : > { %1406 = vmatprep.mubr.msk.f32.mxu0 %vm1655_vm0, %v1656_v6  ;;  %1526 = vmatprep.mubr.msk.f32.mxu1 %vm1655_vm0, %v1656_v6 }
  0x41   : > { %1407 = vmatmul.mubr.msk.f32.gmra.mrb[20].mxu0 %vm269_vm1, %v184_v35  ;;  %1527 = vmatmul.mubr.msk.f32.gmra.mrb[20].mxu1 %vm269_vm1, %v224_v36 }
  0x42   : > { %1409 = vmatprep.mubr.msk.f32.mxu0 %vm1655_vm0, %v1656_v6  ;;  %1529 = vmatprep.mubr.msk.f32.mxu1 %vm1655_vm0, %v1656_v6 }
  0x45   : > { %1410 = vmatmul.mubr.msk.f32.gmra.mrb[22].mxu0 %vm269_vm1, %v185_v37  ;;  %1530 = vmatmul.mubr.msk.f32.gmra.mrb[22].mxu1 %vm269_vm1, %v225_v38 }
  0x46   : > { %1412 = vmatprep.mubr.msk.f32.mxu0 %vm1655_vm0, %v1656_v6  ;;  %1532 = vmatprep.mubr.msk.f32.mxu1 %vm1655_vm0, %v1656_v6 }
  0x49   : > { %1413 = vmatmul.mubr.msk.f32.gmra.mrb[24].mxu0 %vm269_vm1, %v186_v39  ;;  %1533 = vmatmul.mubr.msk.f32.gmra.mrb[24].mxu1 %vm269_vm1, %v226_v40 }
  0x4a   : > { %1415 = vmatprep.mubr.msk.f32.mxu0 %vm1655_vm0, %v1656_v6  ;;  %1535 = vmatprep.mubr.msk.f32.mxu1 %vm1655_vm0, %v1656_v6 }
  0x4d   : > { %1416 = vmatmul.mubr.msk.f32.gmra.mrb[26].mxu0 %vm269_vm1, %v187_v41  ;;  %1536 = vmatmul.mubr.msk.f32.gmra.mrb[26].mxu1 %vm269_vm1, %v227_v42 }
  0x4e   : > { %1418 = vmatprep.mubr.msk.f32.mxu0 %vm1655_vm0, %v1656_v6  ;;  %1538 = vmatprep.mubr.msk.f32.mxu1 %vm1655_vm0, %v1656_v6 }
  0x51   : > { %1419 = vmatmul.mubr.msk.f32.gmra.mrb[28].mxu0 %vm269_vm1, %v188_v43  ;;  %1539 = vmatmul.mubr.msk.f32.gmra.mrb[28].mxu1 %vm269_vm1, %v228_v44 }
  0x52   : > { %1421 = vmatprep.mubr.msk.f32.mxu0 %vm1655_vm0, %v1656_v6  ;;  %1541 = vmatprep.mubr.msk.f32.mxu1 %vm1655_vm0, %v1656_v6 }
  0x55   : > { %1422 = vmatmul.mubr.msk.f32.gmra.mrb[30].mxu0 %vm269_vm1, %v189_v45  ;;  %1542 = vmatmul.mubr.msk.f32.gmra.mrb[30].mxu1 %vm269_vm1, %v229_v46 }
  0x56   : > { %1424 = vmatprep.mubr.msk.f32.mxu0 %vm1655_vm0, %v1656_v6  ;;  %1544 = vmatprep.mubr.msk.f32.mxu1 %vm1655_vm0, %v1656_v6 }
  0x59   : > { %1425 = vmatmul.mubr.msk.f32.gmra.mrb[32].mxu0 %vm269_vm1, %v190_v47  ;;  %1545 = vmatmul.mubr.msk.f32.gmra.mrb[32].mxu1 %vm269_vm1, %v230_v48 }
  0x5a   : > { %1427 = vmatprep.mubr.msk.f32.mxu0 %vm1655_vm0, %v1656_v6  ;;  %1547 = vmatprep.mubr.msk.f32.mxu1 %vm1655_vm0, %v1656_v6 }
  0x5d   : > { %1428 = vmatmul.mubr.msk.f32.gmra.mrb[34].mxu0 %vm269_vm1, %v191_v49  ;;  %1548 = vmatmul.mubr.msk.f32.gmra.mrb[34].mxu1 %vm269_vm1, %v231_v50 }
  0x5e   : > { %1430 = vmatprep.mubr.msk.f32.mxu0 %vm1655_vm0, %v1656_v6  ;;  %1550 = vmatprep.mubr.msk.f32.mxu1 %vm1655_vm0, %v1656_v6 }
  0x61   : > { %1431 = vmatmul.mubr.msk.f32.gmra.mrb[36].mxu0 %vm269_vm1, %v192_v51  ;;  %1551 = vmatmul.mubr.msk.f32.gmra.mrb[36].mxu1 %vm269_vm1, %v232_v52 }
  0x62   : > { %1433 = vmatprep.mubr.msk.f32.mxu0 %vm1655_vm0, %v1656_v6  ;;  %1553 = vmatprep.mubr.msk.f32.mxu1 %vm1655_vm0, %v1656_v6 }
  0x65   : > { %1434 = vmatmul.mubr.msk.f32.gmra.mrb[38].mxu0 %vm269_vm1, %v193_v53  ;;  %1554 = vmatmul.mubr.msk.f32.gmra.mrb[38].mxu1 %vm269_vm1, %v233_v54 }
  0x66   : > { %1436 = vmatprep.mubr.msk.f32.mxu0 %vm1655_vm0, %v1656_v6  ;;  %1556 = vmatprep.mubr.msk.f32.mxu1 %vm1655_vm0, %v1656_v6 }
  0x69   : > { %1437 = vmatmul.mubr.msk.f32.gmra.mrb[40].mxu0 %vm269_vm1, %v194_v55  ;;  %1557 = vmatmul.mubr.msk.f32.gmra.mrb[40].mxu1 %vm269_vm1, %v234_v56 }
  0x6a   : > { %1439 = vmatprep.mubr.msk.f32.mxu0 %vm1655_vm0, %v1656_v6  ;;  %1559 = vmatprep.mubr.msk.f32.mxu1 %vm1655_vm0, %v1656_v6 }
  0x6d   : > { %1440 = vmatmul.mubr.msk.f32.gmra.mrb[42].mxu0 %vm269_vm1, %v195_v57  ;;  %1560 = vmatmul.mubr.msk.f32.gmra.mrb[42].mxu1 %vm269_vm1, %v235_v58 }
  0x6e   : > { %1442 = vmatprep.mubr.msk.f32.mxu0 %vm1655_vm0, %v1656_v6  ;;  %1562 = vmatprep.mubr.msk.f32.mxu1 %vm1655_vm0, %v1656_v6 }
  0x71   : > { %1443 = vmatmul.mubr.msk.f32.gmra.mrb[44].mxu0 %vm269_vm1, %v196_v59  ;;  %1563 = vmatmul.mubr.msk.f32.gmra.mrb[44].mxu1 %vm269_vm1, %v236_v60 }
  0x72   : > { %1445 = vmatprep.mubr.msk.f32.mxu0 %vm1655_vm0, %v1656_v6  ;;  %1565 = vmatprep.mubr.msk.f32.mxu1 %vm1655_vm0, %v1656_v6 }
  0x75   : > { %1446 = vmatmul.mubr.msk.f32.gmra.mrb[46].mxu0 %vm269_vm1, %v197_v61  ;;  %1566 = vmatmul.mubr.msk.f32.gmra.mrb[46].mxu1 %vm269_vm1, %v237_v62 }
  0x76   : > { %1448 = vmatprep.mubr.msk.f32.mxu0 %vm1655_vm0, %v1656_v6  ;;  %1568 = vmatprep.mubr.msk.f32.mxu1 %vm1655_vm0, %v1656_v6 }
  0x79   : > { %1449 = vmatmul.mubr.msk.f32.gmra.mrb[48].mxu0 %vm269_vm1, %v198_v63  ;;  %1569 = vmatmul.mubr.msk.f32.gmra.mrb[48].mxu1 %vm269_vm1, %v238_v0 }
  0x7a   : > { %1451 = vmatprep.mubr.msk.f32.mxu0 %vm1655_vm0, %v1656_v6  ;;  %1571 = vmatprep.mubr.msk.f32.mxu1 %vm1655_vm0, %v1656_v6 }
  0x7d   : > { %1452 = vmatmul.mubr.msk.f32.gmra.mrb[50].mxu0 %vm269_vm1, %v199_v1  ;;  %1572 = vmatmul.mubr.msk.f32.gmra.mrb[50].mxu1 %vm269_vm1, %v239_v2 }
  0x7e   : > { %1454 = vmatprep.mubr.msk.f32.mxu0 %vm1655_vm0, %v1656_v6  ;;  %1574 = vmatprep.mubr.msk.f32.mxu1 %vm1655_vm0, %v1656_v6 }
  0x81   : > { %1455 = vmatmul.mubr.msk.f32.gmra.mrb[52].mxu0 %vm269_vm1, %v200_v3  ;;  %1575 = vmatmul.mubr.msk.f32.gmra.mrb[52].mxu1 %vm269_vm1, %v240_v4 }
  0x82   : > { %1457 = vmatprep.mubr.msk.f32.mxu0 %vm1655_vm0, %v1656_v6  ;;  %1577 = vmatprep.mubr.msk.f32.mxu1 %vm1655_vm0, %v1656_v6 }
  0x85   : > { %1458 = vmatmul.mubr.msk.f32.gmra.mrb[54].mxu0 %vm269_vm1, %v201_v5  ;;  %1578 = vmatmul.mubr.msk.f32.gmra.mrb[54].mxu1 %vm269_vm1, %v241_v7 }
  0x86   : > { %1460 = vmatprep.mubr.msk.f32.mxu0 %vm1655_vm0, %v1656_v6  ;;  %1580 = vmatprep.mubr.msk.f32.mxu1 %vm1655_vm0, %v1656_v6 }
  0x89   : > { %1461 = vmatmul.mubr.msk.f32.gmra.mrb[56].mxu0 %vm269_vm1, %v202_v8  ;;  %1581 = vmatmul.mubr.msk.f32.gmra.mrb[56].mxu1 %vm269_vm1, %v242_v9 }
  0x8a   : > { %1463 = vmatprep.mubr.msk.f32.mxu0 %vm1655_vm0, %v1656_v6  ;;  %1583 = vmatprep.mubr.msk.f32.mxu1 %vm1655_vm0, %v1656_v6 }
  0x8d   : > { %1464 = vmatmul.mubr.msk.f32.gmra.mrb[58].mxu0 %vm269_vm1, %v203_v10  ;;  %1584 = vmatmul.mubr.msk.f32.gmra.mrb[58].mxu1 %vm269_vm1, %v243_v11 }
  0x8e   : > { %1466 = vmatprep.mubr.msk.f32.mxu0 %vm1655_vm0, %v1656_v6  ;;  %1586 = vmatprep.mubr.msk.f32.mxu1 %vm1655_vm0, %v1656_v6 }
  0x91   : > { %1467 = vmatmul.mubr.msk.f32.gmra.mrb[60].mxu0 %vm269_vm1, %v204_v12  ;;  %1587 = vmatmul.mubr.msk.f32.gmra.mrb[60].mxu1 %vm269_vm1, %v244_v13 }
  0x92   : > { %1469 = vmatprep.mubr.msk.f32.mxu0 %vm1655_vm0, %v1656_v6  ;;  %1589 = vmatprep.mubr.msk.f32.mxu1 %vm1655_vm0, %v1656_v6 }
  0x95   : > { %1470 = vmatmul.mubr.msk.f32.gmra.mrb[62].mxu0 %vm269_vm1, %v205_v14  ;;  %1590 = vmatmul.mubr.msk.f32.gmra.mrb[62].mxu1 %vm269_vm1, %v245_v15 }
  0x96   : > { %1472 = vmatprep.mubr.msk.f32.mxu0 %vm1655_vm0, %v1656_v6  ;;  %1592 = vmatprep.mubr.msk.f32.mxu1 %vm1655_vm0, %v1656_v6 }
  0x99   : > { %1473 = vmatmul.mubr.msk.f32.gmra.mrb[64].mxu0 %vm269_vm1, %v206_v16  ;;  %1593 = vmatmul.mubr.msk.f32.gmra.mrb[64].mxu1 %vm269_vm1, %v246_v17 }
  0x9a   : > { %1475 = vmatprep.mubr.msk.f32.mxu0 %vm1655_vm0, %v1656_v6  ;;  %1595 = vmatprep.mubr.msk.f32.mxu1 %vm1655_vm0, %v1656_v6 }
  0x9d   : > { %1476 = vmatmul.mubr.msk.f32.gmra.mrb[66].mxu0 %vm269_vm1, %v207_v18  ;;  %1596 = vmatmul.mubr.msk.f32.gmra.mrb[66].mxu1 %vm269_vm1, %v247_v19 }
  0x9e   : > { %1478 = vmatprep.mubr.msk.f32.mxu0 %vm1655_vm0, %v1656_v6  ;;  %1598 = vmatprep.mubr.msk.f32.mxu1 %vm1655_vm0, %v1656_v6 }
  0xa1   : > { %1479 = vmatmul.mubr.msk.f32.gmra.mrb[68].mxu0 %vm269_vm1, %v208_v20  ;;  %1599 = vmatmul.mubr.msk.f32.gmra.mrb[68].mxu1 %vm269_vm1, %v248_v21 }
  0xa2   : > { %1481 = vmatprep.mubr.msk.f32.mxu0 %vm1655_vm0, %v1656_v6  ;;  %1601 = vmatprep.mubr.msk.f32.mxu1 %vm1655_vm0, %v1656_v6 }
  0xa5   : > { %1482 = vmatmul.mubr.msk.f32.gmra.mrb[70].mxu0 %vm269_vm1, %v209_v22  ;;  %1602 = vmatmul.mubr.msk.f32.gmra.mrb[70].mxu1 %vm269_vm1, %v249_v23 }
  0xa6   : > { %1484 = vmatprep.mubr.msk.f32.mxu0 %vm1655_vm0, %v1656_v6  ;;  %1604 = vmatprep.mubr.msk.f32.mxu1 %vm1655_vm0, %v1656_v6 }
  0xa9   : > { %1485 = vmatmul.mubr.msk.f32.gmra.mrb[72].mxu0 %vm269_vm1, %v210_v24  ;;  %1605 = vmatmul.mubr.msk.f32.gmra.mrb[72].mxu1 %vm269_vm1, %v250_v25 }
  0xaa   : > { %1487 = vmatprep.mubr.msk.f32.mxu0 %vm1655_vm0, %v1656_v6  ;;  %1607 = vmatprep.mubr.msk.f32.mxu1 %vm1655_vm0, %v1656_v6 }
  0xad   : > { %1488 = vmatmul.mubr.msk.f32.gmra.mrb[74].mxu0 %vm269_vm1, %v211_v26  ;;  %1608 = vmatmul.mubr.msk.f32.gmra.mrb[74].mxu1 %vm269_vm1, %v251_v27 }
  0xae   : > { %1490 = vmatprep.mubr.msk.f32.mxu0 %vm1655_vm0, %v1656_v6  ;;  %1610 = vmatprep.mubr.msk.f32.mxu1 %vm1655_vm0, %v1656_v6 }
  0xb1   : > { %1491 = vmatmul.mubr.msk.f32.gmra.mrb[76].mxu0 %vm269_vm1, %v212_v28  ;;  %1611 = vmatmul.mubr.msk.f32.gmra.mrb[76].mxu1 %vm269_vm1, %v252_v29 }
  0xb2   : > { %1493 = vmatprep.mubr.msk.f32.mxu0 %vm1655_vm0, %v1656_v6 }
  0xb5   : > { %1494 = vmatmul.mubr.msk.f32.gmra.mrb[78].mxu0 %vm269_vm1, %v213_v30 }
  0xec   : > { %v573_v32 = vpop.f32.mrb[0].mxu0  ;;  %v773_v33 = vpop.f32.mrb[0].mxu1 }
  0xed   : > { %v574_v34 = vadd.f32 %v2043_v31, %v573_v32  ;;  %v1378_v35 = vpop.f32.mrb[1].mxu0  ;;  %v774_v36 = vadd.f32 %v2043_v31, %v773_v33  ;;  %v1498_v37 = vpop.f32.mrb[1].mxu1 }
  0xef   : > { %v967_v6 = vmax.f32 %v574_v34, 0.0  ;;  %v1007_v38 = vmax.f32 %v774_v36, 0.0 }
  0xf0   : > { %v578_v39 = vpop.f32.mrb[2].mxu0  ;;  %v778_v40 = vpop.f32.mrb[2].mxu1 }
  0xf1   : > { %1046 = vst [vmem:[%s2052_s15] sm:$0xff] %v967_v6  ;;  %1086 = vst [vmem:[%s2052_s15 + $0x140] sm:$0xff] %v1007_v38  ;;  %v579_v41 = vadd.f32 %v2043_v31, %v578_v39  ;;  %v1381_v42 = vpop.f32.mrb[3].mxu0  ;;  %v779_v43 = vadd.f32 %v2043_v31, %v778_v40  ;;  %v1501_v44 = vpop.f32.mrb[3].mxu1 }
  0xf3   : > { %v968_v45 = vmax.f32 %v579_v41, 0.0  ;;  %v1008_v46 = vmax.f32 %v779_v43, 0.0 }
  0xf4   : > { %v583_v47 = vpop.f32.mrb[4].mxu0  ;;  %v783_v48 = vpop.f32.mrb[4].mxu1 }
  0xf5   : > { %1047 = vst [vmem:[%s2052_s15 + $0x8] sm:$0xff] %v968_v45  ;;  %1087 = vst [vmem:[%s2052_s15 + $0x148] sm:$0xff] %v1008_v46  ;;  %v584_v49 = vadd.f32 %v2043_v31, %v583_v47  ;;  %v1384_v50 = vpop.f32.mrb[5].mxu0  ;;  %v784_v51 = vadd.f32 %v2043_v31, %v783_v48  ;;  %v1504_v52 = vpop.f32.mrb[5].mxu1 }
  0xf7   : > { %v969_v53 = vmax.f32 %v584_v49, 0.0  ;;  %v1009_v54 = vmax.f32 %v784_v51, 0.0 }
  0xf8   : > { %v588_v55 = vpop.f32.mrb[6].mxu0  ;;  %v788_v56 = vpop.f32.mrb[6].mxu1 }
  0xf9   : > { %1048 = vst [vmem:[%s2052_s15 + $0x10] sm:$0xff] %v969_v53  ;;  %1088 = vst [vmem:[%s2052_s15 + $0x150] sm:$0xff] %v1009_v54  ;;  %v589_v57 = vadd.f32 %v2043_v31, %v588_v55  ;;  %v1387_v58 = vpop.f32.mrb[7].mxu0  ;;  %v789_v59 = vadd.f32 %v2043_v31, %v788_v56  ;;  %v1507_v60 = vpop.f32.mrb[7].mxu1 }
  0xfb   : > { %v970_v61 = vmax.f32 %v589_v57, 0.0  ;;  %v1010_v62 = vmax.f32 %v789_v59, 0.0 }
  0xfc   : > { %v593_v63 = vpop.f32.mrb[8].mxu0  ;;  %v793_v0 = vpop.f32.mrb[8].mxu1 }
  0xfd   : > { %1049 = vst [vmem:[%s2052_s15 + $0x18] sm:$0xff] %v970_v61  ;;  %1089 = vst [vmem:[%s2052_s15 + $0x158] sm:$0xff] %v1010_v62  ;;  %v594_v1 = vadd.f32 %v2043_v31, %v593_v63  ;;  %v1390_v2 = vpop.f32.mrb[9].mxu0  ;;  %v794_v3 = vadd.f32 %v2043_v31, %v793_v0  ;;  %v1510_v4 = vpop.f32.mrb[9].mxu1 }
  0xff   : > { %v971_v5 = vmax.f32 %v594_v1, 0.0  ;;  %v1011_v7 = vmax.f32 %v794_v3, 0.0 }
 0x100   : > { %v598_v8 = vpop.f32.mrb[10].mxu0  ;;  %v798_v9 = vpop.f32.mrb[10].mxu1 }
 0x101   : > { %1050 = vst [vmem:[%s2052_s15 + $0x20] sm:$0xff] %v971_v5  ;;  %1090 = vst [vmem:[%s2052_s15 + $0x160] sm:$0xff] %v1011_v7  ;;  %v599_v10 = vadd.f32 %v2043_v31, %v598_v8  ;;  %v1393_v11 = vpop.f32.mrb[11].mxu0  ;;  %v799_v12 = vadd.f32 %v2043_v31, %v798_v9  ;;  %v1513_v13 = vpop.f32.mrb[11].mxu1 }
 0x103   : > { %v972_v14 = vmax.f32 %v599_v10, 0.0  ;;  %v1012_v15 = vmax.f32 %v799_v12, 0.0 }
 0x104   : > { %v603_v16 = vpop.f32.mrb[12].mxu0  ;;  %v803_v17 = vpop.f32.mrb[12].mxu1 }
 0x105   : > { %1051 = vst [vmem:[%s2052_s15 + $0x28] sm:$0xff] %v972_v14  ;;  %1091 = vst [vmem:[%s2052_s15 + $0x168] sm:$0xff] %v1012_v15  ;;  %v604_v18 = vadd.f32 %v2043_v31, %v603_v16  ;;  %v1396_v19 = vpop.f32.mrb[13].mxu0  ;;  %v804_v20 = vadd.f32 %v2043_v31, %v803_v17  ;;  %v1516_v21 = vpop.f32.mrb[13].mxu1 }
 0x107   : > { %v973_v22 = vmax.f32 %v604_v18, 0.0  ;;  %v1013_v23 = vmax.f32 %v804_v20, 0.0 }
 0x108   : > { %v608_v24 = vpop.f32.mrb[14].mxu0  ;;  %v808_v25 = vpop.f32.mrb[14].mxu1 }
 0x109   : > { %1052 = vst [vmem:[%s2052_s15 + $0x30] sm:$0xff] %v973_v22  ;;  %1092 = vst [vmem:[%s2052_s15 + $0x170] sm:$0xff] %v1013_v23  ;;  %v609_v26 = vadd.f32 %v2043_v31, %v608_v24  ;;  %v1399_v27 = vpop.f32.mrb[15].mxu0  ;;  %v809_v28 = vadd.f32 %v2043_v31, %v808_v25  ;;  %v1519_v29 = vpop.f32.mrb[15].mxu1 }
 0x10b   : > { %v974_v30 = vmax.f32 %v609_v26, 0.0  ;;  %v1014_v32 = vmax.f32 %v809_v28, 0.0 }
 0x10c   : > { %v613_v33 = vpop.f32.mrb[16].mxu0  ;;  %v813_v34 = vpop.f32.mrb[16].mxu1 }
 0x10d   : > { %1053 = vst [vmem:[%s2052_s15 + $0x38] sm:$0xff] %v974_v30  ;;  %1093 = vst [vmem:[%s2052_s15 + $0x178] sm:$0xff] %v1014_v32  ;;  %v614_v35 = vadd.f32 %v2043_v31, %v613_v33  ;;  %v1402_v36 = vpop.f32.mrb[17].mxu0  ;;  %v814_v37 = vadd.f32 %v2043_v31, %v813_v34  ;;  %v1522_v6 = vpop.f32.mrb[17].mxu1 }
 0x10f   : > { %v975_v38 = vmax.f32 %v614_v35, 0.0  ;;  %v1015_v39 = vmax.f32 %v814_v37, 0.0 }
 0x110   : > { %v618_v40 = vpop.f32.mrb[18].mxu0  ;;  %v818_v41 = vpop.f32.mrb[18].mxu1 }
 0x111   : > { %1054 = vst [vmem:[%s2052_s15 + $0x40] sm:$0xff] %v975_v38  ;;  %1094 = vst [vmem:[%s2052_s15 + $0x180] sm:$0xff] %v1015_v39  ;;  %v619_v42 = vadd.f32 %v2043_v31, %v618_v40  ;;  %v1405_v43 = vpop.f32.mrb[19].mxu0  ;;  %v819_v44 = vadd.f32 %v2043_v31, %v818_v41  ;;  %v1525_v45 = vpop.f32.mrb[19].mxu1 }
 0x113   : > { %v976_v46 = vmax.f32 %v619_v42, 0.0  ;;  %v1016_v47 = vmax.f32 %v819_v44, 0.0 }
 0x114   : > { %v623_v48 = vpop.f32.mrb[20].mxu0  ;;  %v823_v49 = vpop.f32.mrb[20].mxu1 }
 0x115   : > { %1055 = vst [vmem:[%s2052_s15 + $0x48] sm:$0xff] %v976_v46  ;;  %1095 = vst [vmem:[%s2052_s15 + $0x188] sm:$0xff] %v1016_v47  ;;  %v624_v50 = vadd.f32 %v2043_v31, %v623_v48  ;;  %v1408_v51 = vpop.f32.mrb[21].mxu0  ;;  %v824_v52 = vadd.f32 %v2043_v31, %v823_v49  ;;  %v1528_v53 = vpop.f32.mrb[21].mxu1 }
 0x117   : > { %v977_v54 = vmax.f32 %v624_v50, 0.0  ;;  %v1017_v55 = vmax.f32 %v824_v52, 0.0 }
 0x118   : > { %v628_v56 = vpop.f32.mrb[22].mxu0  ;;  %v828_v57 = vpop.f32.mrb[22].mxu1 }
 0x119   : > { %1056 = vst [vmem:[%s2052_s15 + $0x50] sm:$0xff] %v977_v54  ;;  %1096 = vst [vmem:[%s2052_s15 + $0x190] sm:$0xff] %v1017_v55  ;;  %v629_v58 = vadd.f32 %v2043_v31, %v628_v56  ;;  %v1411_v59 = vpop.f32.mrb[23].mxu0  ;;  %v829_v60 = vadd.f32 %v2043_v31, %v828_v57  ;;  %v1531_v61 = vpop.f32.mrb[23].mxu1 }
 0x11b   : > { %v978_v62 = vmax.f32 %v629_v58, 0.0  ;;  %v1018_v63 = vmax.f32 %v829_v60, 0.0 }
 0x11c   : > { %v633_v0 = vpop.f32.mrb[24].mxu0  ;;  %v833_v1 = vpop.f32.mrb[24].mxu1 }
 0x11d   : > { %1057 = vst [vmem:[%s2052_s15 + $0x58] sm:$0xff] %v978_v62  ;;  %1097 = vst [vmem:[%s2052_s15 + $0x198] sm:$0xff] %v1018_v63  ;;  %v634_v2 = vadd.f32 %v2043_v31, %v633_v0  ;;  %v1414_v3 = vpop.f32.mrb[25].mxu0  ;;  %v834_v4 = vadd.f32 %v2043_v31, %v833_v1  ;;  %v1534_v5 = vpop.f32.mrb[25].mxu1 }
 0x11f   : > { %v979_v7 = vmax.f32 %v634_v2, 0.0  ;;  %v1019_v8 = vmax.f32 %v834_v4, 0.0 }
 0x120   : > { %v638_v9 = vpop.f32.mrb[26].mxu0  ;;  %v838_v10 = vpop.f32.mrb[26].mxu1 }
 0x121   : > { %1058 = vst [vmem:[%s2052_s15 + $0x60] sm:$0xff] %v979_v7  ;;  %1098 = vst [vmem:[%s2052_s15 + $0x1a0] sm:$0xff] %v1019_v8  ;;  %v639_v11 = vadd.f32 %v2043_v31, %v638_v9  ;;  %v1417_v12 = vpop.f32.mrb[27].mxu0  ;;  %v839_v13 = vadd.f32 %v2043_v31, %v838_v10  ;;  %v1537_v14 = vpop.f32.mrb[27].mxu1 }
 0x123   : > { %v980_v15 = vmax.f32 %v639_v11, 0.0  ;;  %v1020_v16 = vmax.f32 %v839_v13, 0.0 }
 0x124   : > { %v643_v17 = vpop.f32.mrb[28].mxu0  ;;  %v843_v18 = vpop.f32.mrb[28].mxu1 }
 0x125   : > { %1059 = vst [vmem:[%s2052_s15 + $0x68] sm:$0xff] %v980_v15  ;;  %1099 = vst [vmem:[%s2052_s15 + $0x1a8] sm:$0xff] %v1020_v16  ;;  %v644_v19 = vadd.f32 %v2043_v31, %v643_v17  ;;  %v1420_v20 = vpop.f32.mrb[29].mxu0  ;;  %v844_v21 = vadd.f32 %v2043_v31, %v843_v18  ;;  %v1540_v22 = vpop.f32.mrb[29].mxu1 }
 0x127   : > { %v981_v23 = vmax.f32 %v644_v19, 0.0  ;;  %v1021_v24 = vmax.f32 %v844_v21, 0.0 }
 0x128   : > { %v648_v25 = vpop.f32.mrb[30].mxu0  ;;  %v848_v26 = vpop.f32.mrb[30].mxu1 }
 0x129   : > { %1060 = vst [vmem:[%s2052_s15 + $0x70] sm:$0xff] %v981_v23  ;;  %1100 = vst [vmem:[%s2052_s15 + $0x1b0] sm:$0xff] %v1021_v24  ;;  %v649_v27 = vadd.f32 %v2043_v31, %v648_v25  ;;  %v1423_v28 = vpop.f32.mrb[31].mxu0  ;;  %v849_v29 = vadd.f32 %v2043_v31, %v848_v26  ;;  %v1543_v30 = vpop.f32.mrb[31].mxu1 }
 0x12b   : > { %v982_v32 = vmax.f32 %v649_v27, 0.0  ;;  %v1022_v33 = vmax.f32 %v849_v29, 0.0 }
 0x12c   : > { %v653_v34 = vpop.f32.mrb[32].mxu0  ;;  %v853_v35 = vpop.f32.mrb[32].mxu1 }
 0x12d   : > { %1061 = vst [vmem:[%s2052_s15 + $0x78] sm:$0xff] %v982_v32  ;;  %1101 = vst [vmem:[%s2052_s15 + $0x1b8] sm:$0xff] %v1022_v33  ;;  %v654_v36 = vadd.f32 %v2043_v31, %v653_v34  ;;  %v1426_v37 = vpop.f32.mrb[33].mxu0  ;;  %v854_v6 = vadd.f32 %v2043_v31, %v853_v35  ;;  %v1546_v38 = vpop.f32.mrb[33].mxu1 }
 0x12f   : > { %v983_v39 = vmax.f32 %v654_v36, 0.0  ;;  %v1023_v40 = vmax.f32 %v854_v6, 0.0 }
 0x130   : > { %v658_v41 = vpop.f32.mrb[34].mxu0  ;;  %v858_v42 = vpop.f32.mrb[34].mxu1 }
 0x131   : > { %1062 = vst [vmem:[%s2052_s15 + $0x80] sm:$0xff] %v983_v39  ;;  %1102 = vst [vmem:[%s2052_s15 + $0x1c0] sm:$0xff] %v1023_v40  ;;  %v659_v43 = vadd.f32 %v2043_v31, %v658_v41  ;;  %v1429_v44 = vpop.f32.mrb[35].mxu0  ;;  %v859_v45 = vadd.f32 %v2043_v31, %v858_v42  ;;  %v1549_v46 = vpop.f32.mrb[35].mxu1 }
 0x133   : > { %v984_v47 = vmax.f32 %v659_v43, 0.0  ;;  %v1024_v48 = vmax.f32 %v859_v45, 0.0 }
 0x134   : > { %v663_v49 = vpop.f32.mrb[36].mxu0  ;;  %v863_v50 = vpop.f32.mrb[36].mxu1 }
 0x135   : > { %1063 = vst [vmem:[%s2052_s15 + $0x88] sm:$0xff] %v984_v47  ;;  %1103 = vst [vmem:[%s2052_s15 + $0x1c8] sm:$0xff] %v1024_v48  ;;  %v664_v51 = vadd.f32 %v2043_v31, %v663_v49  ;;  %v1432_v52 = vpop.f32.mrb[37].mxu0  ;;  %v864_v53 = vadd.f32 %v2043_v31, %v863_v50  ;;  %v1552_v54 = vpop.f32.mrb[37].mxu1 }
 0x137   : > { %v985_v55 = vmax.f32 %v664_v51, 0.0  ;;  %v1025_v56 = vmax.f32 %v864_v53, 0.0 }
 0x138   : > { %v668_v57 = vpop.f32.mrb[38].mxu0  ;;  %v868_v58 = vpop.f32.mrb[38].mxu1 }
 0x139   : > { %1064 = vst [vmem:[%s2052_s15 + $0x90] sm:$0xff] %v985_v55  ;;  %1104 = vst [vmem:[%s2052_s15 + $0x1d0] sm:$0xff] %v1025_v56  ;;  %v669_v59 = vadd.f32 %v2043_v31, %v668_v57  ;;  %v1435_v60 = vpop.f32.mrb[39].mxu0  ;;  %v869_v61 = vadd.f32 %v2043_v31, %v868_v58  ;;  %v1555_v62 = vpop.f32.mrb[39].mxu1 }
 0x13b   : > { %v986_v63 = vmax.f32 %v669_v59, 0.0  ;;  %v1026_v0 = vmax.f32 %v869_v61, 0.0 }
 0x13c   : > { %v673_v1 = vpop.f32.mrb[40].mxu0  ;;  %v873_v2 = vpop.f32.mrb[40].mxu1 }
 0x13d   : > { %1065 = vst [vmem:[%s2052_s15 + $0x98] sm:$0xff] %v986_v63  ;;  %1105 = vst [vmem:[%s2052_s15 + $0x1d8] sm:$0xff] %v1026_v0  ;;  %v674_v3 = vadd.f32 %v2043_v31, %v673_v1  ;;  %v1438_v4 = vpop.f32.mrb[41].mxu0  ;;  %v874_v5 = vadd.f32 %v2043_v31, %v873_v2  ;;  %v1558_v7 = vpop.f32.mrb[41].mxu1 }
 0x13f   : > { %v987_v8 = vmax.f32 %v674_v3, 0.0  ;;  %v1027_v9 = vmax.f32 %v874_v5, 0.0 }
 0x140   : > { %v678_v10 = vpop.f32.mrb[42].mxu0  ;;  %v878_v11 = vpop.f32.mrb[42].mxu1 }
 0x141   : > { %1066 = vst [vmem:[%s2052_s15 + $0xa0] sm:$0xff] %v987_v8  ;;  %1106 = vst [vmem:[%s2052_s15 + $0x1e0] sm:$0xff] %v1027_v9  ;;  %v679_v12 = vadd.f32 %v2043_v31, %v678_v10  ;;  %v1441_v13 = vpop.f32.mrb[43].mxu0  ;;  %v879_v14 = vadd.f32 %v2043_v31, %v878_v11  ;;  %v1561_v15 = vpop.f32.mrb[43].mxu1 }
 0x143   : > { %v988_v16 = vmax.f32 %v679_v12, 0.0  ;;  %v1028_v17 = vmax.f32 %v879_v14, 0.0 }
 0x144   : > { %v683_v18 = vpop.f32.mrb[44].mxu0  ;;  %v883_v19 = vpop.f32.mrb[44].mxu1 }
 0x145   : > { %1067 = vst [vmem:[%s2052_s15 + $0xa8] sm:$0xff] %v988_v16  ;;  %1107 = vst [vmem:[%s2052_s15 + $0x1e8] sm:$0xff] %v1028_v17  ;;  %v684_v20 = vadd.f32 %v2043_v31, %v683_v18  ;;  %v1444_v21 = vpop.f32.mrb[45].mxu0  ;;  %v884_v22 = vadd.f32 %v2043_v31, %v883_v19  ;;  %v1564_v23 = vpop.f32.mrb[45].mxu1 }
 0x147   : > { %v989_v24 = vmax.f32 %v684_v20, 0.0  ;;  %v1029_v25 = vmax.f32 %v884_v22, 0.0 }
 0x148   : > { %v688_v26 = vpop.f32.mrb[46].mxu0  ;;  %v888_v27 = vpop.f32.mrb[46].mxu1 }
 0x149   : > { %1068 = vst [vmem:[%s2052_s15 + $0xb0] sm:$0xff] %v989_v24  ;;  %1108 = vst [vmem:[%s2052_s15 + $0x1f0] sm:$0xff] %v1029_v25  ;;  %v689_v28 = vadd.f32 %v2043_v31, %v688_v26  ;;  %v1447_v29 = vpop.f32.mrb[47].mxu0  ;;  %v889_v30 = vadd.f32 %v2043_v31, %v888_v27  ;;  %v1567_v32 = vpop.f32.mrb[47].mxu1 }
 0x14b   : > { %v990_v33 = vmax.f32 %v689_v28, 0.0  ;;  %v1030_v34 = vmax.f32 %v889_v30, 0.0 }
 0x14c   : > { %v693_v35 = vpop.f32.mrb[48].mxu0  ;;  %v893_v36 = vpop.f32.mrb[48].mxu1 }
 0x14d   : > { %1069 = vst [vmem:[%s2052_s15 + $0xb8] sm:$0xff] %v990_v33  ;;  %1109 = vst [vmem:[%s2052_s15 + $0x1f8] sm:$0xff] %v1030_v34  ;;  %v694_v37 = vadd.f32 %v2043_v31, %v693_v35  ;;  %v1450_v6 = vpop.f32.mrb[49].mxu0  ;;  %v894_v38 = vadd.f32 %v2043_v31, %v893_v36  ;;  %v1570_v39 = vpop.f32.mrb[49].mxu1 }
 0x14f   : > { %v991_v40 = vmax.f32 %v694_v37, 0.0  ;;  %v1031_v41 = vmax.f32 %v894_v38, 0.0 }
 0x150   : > { %v698_v42 = vpop.f32.mrb[50].mxu0  ;;  %v898_v43 = vpop.f32.mrb[50].mxu1 }
 0x151   : > { %1070 = vst [vmem:[%s2052_s15 + $0xc0] sm:$0xff] %v991_v40  ;;  %1110 = vst [vmem:[%s2052_s15 + $0x200] sm:$0xff] %v1031_v41  ;;  %v699_v44 = vadd.f32 %v2043_v31, %v698_v42  ;;  %v1453_v45 = vpop.f32.mrb[51].mxu0  ;;  %v899_v46 = vadd.f32 %v2043_v31, %v898_v43  ;;  %v1573_v47 = vpop.f32.mrb[51].mxu1 }
 0x153   : > { %v992_v48 = vmax.f32 %v699_v44, 0.0  ;;  %v1032_v49 = vmax.f32 %v899_v46, 0.0 }
 0x154   : > { %v703_v50 = vpop.f32.mrb[52].mxu0  ;;  %v903_v51 = vpop.f32.mrb[52].mxu1 }
 0x155   : > { %1071 = vst [vmem:[%s2052_s15 + $0xc8] sm:$0xff] %v992_v48  ;;  %1111 = vst [vmem:[%s2052_s15 + $0x208] sm:$0xff] %v1032_v49  ;;  %v704_v52 = vadd.f32 %v2043_v31, %v703_v50  ;;  %v1456_v53 = vpop.f32.mrb[53].mxu0  ;;  %v904_v54 = vadd.f32 %v2043_v31, %v903_v51  ;;  %v1576_v55 = vpop.f32.mrb[53].mxu1 }
 0x157   : > { %v993_v56 = vmax.f32 %v704_v52, 0.0  ;;  %v1033_v57 = vmax.f32 %v904_v54, 0.0 }
 0x158   : > { %v708_v58 = vpop.f32.mrb[54].mxu0  ;;  %v908_v59 = vpop.f32.mrb[54].mxu1 }
 0x159   : > { %1072 = vst [vmem:[%s2052_s15 + $0xd0] sm:$0xff] %v993_v56  ;;  %1112 = vst [vmem:[%s2052_s15 + $0x210] sm:$0xff] %v1033_v57  ;;  %v709_v60 = vadd.f32 %v2043_v31, %v708_v58  ;;  %v1459_v61 = vpop.f32.mrb[55].mxu0  ;;  %v909_v62 = vadd.f32 %v2043_v31, %v908_v59  ;;  %v1579_v63 = vpop.f32.mrb[55].mxu1 }
 0x15b   : > { %v994_v0 = vmax.f32 %v709_v60, 0.0  ;;  %v1034_v1 = vmax.f32 %v909_v62, 0.0 }
 0x15c   : > { %v713_v2 = vpop.f32.mrb[56].mxu0  ;;  %v913_v3 = vpop.f32.mrb[56].mxu1 }
 0x15d   : > { %1073 = vst [vmem:[%s2052_s15 + $0xd8] sm:$0xff] %v994_v0  ;;  %1113 = vst [vmem:[%s2052_s15 + $0x218] sm:$0xff] %v1034_v1  ;;  %v714_v4 = vadd.f32 %v2043_v31, %v713_v2  ;;  %v1462_v5 = vpop.f32.mrb[57].mxu0  ;;  %v914_v7 = vadd.f32 %v2043_v31, %v913_v3  ;;  %v1582_v8 = vpop.f32.mrb[57].mxu1 }
 0x15f   : > { %v995_v9 = vmax.f32 %v714_v4, 0.0  ;;  %v1035_v10 = vmax.f32 %v914_v7, 0.0 }
 0x160   : > { %v718_v11 = vpop.f32.mrb[58].mxu0  ;;  %v918_v12 = vpop.f32.mrb[58].mxu1 }
 0x161   : > { %1074 = vst [vmem:[%s2052_s15 + $0xe0] sm:$0xff] %v995_v9  ;;  %1114 = vst [vmem:[%s2052_s15 + $0x220] sm:$0xff] %v1035_v10  ;;  %v719_v13 = vadd.f32 %v2043_v31, %v718_v11  ;;  %v1465_v14 = vpop.f32.mrb[59].mxu0  ;;  %v919_v15 = vadd.f32 %v2043_v31, %v918_v12  ;;  %v1585_v16 = vpop.f32.mrb[59].mxu1 }
 0x163   : > { %v996_v17 = vmax.f32 %v719_v13, 0.0  ;;  %v1036_v18 = vmax.f32 %v919_v15, 0.0 }
 0x164   : > { %v723_v19 = vpop.f32.mrb[60].mxu0  ;;  %v923_v20 = vpop.f32.mrb[60].mxu1 }
 0x165   : > { %1075 = vst [vmem:[%s2052_s15 + $0xe8] sm:$0xff] %v996_v17  ;;  %1115 = vst [vmem:[%s2052_s15 + $0x228] sm:$0xff] %v1036_v18  ;;  %v724_v21 = vadd.f32 %v2043_v31, %v723_v19  ;;  %v1468_v22 = vpop.f32.mrb[61].mxu0  ;;  %v924_v23 = vadd.f32 %v2043_v31, %v923_v20  ;;  %v1588_v24 = vpop.f32.mrb[61].mxu1 }
 0x167   : > { %v997_v25 = vmax.f32 %v724_v21, 0.0  ;;  %v1037_v26 = vmax.f32 %v924_v23, 0.0 }
 0x168   : > { %v728_v27 = vpop.f32.mrb[62].mxu0  ;;  %v928_v28 = vpop.f32.mrb[62].mxu1 }
 0x169   : > { %1076 = vst [vmem:[%s2052_s15 + $0xf0] sm:$0xff] %v997_v25  ;;  %1116 = vst [vmem:[%s2052_s15 + $0x230] sm:$0xff] %v1037_v26  ;;  %v729_v29 = vadd.f32 %v2043_v31, %v728_v27  ;;  %v1471_v30 = vpop.f32.mrb[63].mxu0  ;;  %v929_v32 = vadd.f32 %v2043_v31, %v928_v28  ;;  %v1591_v33 = vpop.f32.mrb[63].mxu1 }
 0x16b   : > { %v998_v34 = vmax.f32 %v729_v29, 0.0  ;;  %v1038_v35 = vmax.f32 %v929_v32, 0.0 }
 0x16c   : > { %v733_v36 = vpop.f32.mrb[64].mxu0  ;;  %v933_v37 = vpop.f32.mrb[64].mxu1 }
 0x16d   : > { %1077 = vst [vmem:[%s2052_s15 + $0xf8] sm:$0xff] %v998_v34  ;;  %1117 = vst [vmem:[%s2052_s15 + $0x238] sm:$0xff] %v1038_v35  ;;  %v734_v6 = vadd.f32 %v2043_v31, %v733_v36  ;;  %v1474_v38 = vpop.f32.mrb[65].mxu0  ;;  %v934_v39 = vadd.f32 %v2043_v31, %v933_v37  ;;  %v1594_v40 = vpop.f32.mrb[65].mxu1 }
 0x16f   : > { %v999_v41 = vmax.f32 %v734_v6, 0.0  ;;  %v1039_v42 = vmax.f32 %v934_v39, 0.0 }
 0x170   : > { %v738_v43 = vpop.f32.mrb[66].mxu0  ;;  %v938_v44 = vpop.f32.mrb[66].mxu1 }
 0x171   : > { %1078 = vst [vmem:[%s2052_s15 + $0x100] sm:$0xff] %v999_v41  ;;  %1118 = vst [vmem:[%s2052_s15 + $0x240] sm:$0xff] %v1039_v42  ;;  %v739_v45 = vadd.f32 %v2043_v31, %v738_v43  ;;  %v1477_v46 = vpop.f32.mrb[67].mxu0  ;;  %v939_v47 = vadd.f32 %v2043_v31, %v938_v44  ;;  %v1597_v48 = vpop.f32.mrb[67].mxu1 }
 0x173   : > { %v1000_v49 = vmax.f32 %v739_v45, 0.0  ;;  %v1040_v50 = vmax.f32 %v939_v47, 0.0 }
 0x174   : > { %v743_v51 = vpop.f32.mrb[68].mxu0  ;;  %v943_v52 = vpop.f32.mrb[68].mxu1 }
 0x175   : > { %1079 = vst [vmem:[%s2052_s15 + $0x108] sm:$0xff] %v1000_v49  ;;  %1119 = vst [vmem:[%s2052_s15 + $0x248] sm:$0xff] %v1040_v50  ;;  %v744_v53 = vadd.f32 %v2043_v31, %v743_v51  ;;  %v1480_v54 = vpop.f32.mrb[69].mxu0  ;;  %v944_v55 = vadd.f32 %v2043_v31, %v943_v52  ;;  %v1600_v56 = vpop.f32.mrb[69].mxu1 }
 0x177   : > { %v1001_v57 = vmax.f32 %v744_v53, 0.0  ;;  %v1041_v58 = vmax.f32 %v944_v55, 0.0 }
 0x178   : > { %v748_v59 = vpop.f32.mrb[70].mxu0  ;;  %v948_v60 = vpop.f32.mrb[70].mxu1 }
 0x179   : > { %1080 = vst [vmem:[%s2052_s15 + $0x110] sm:$0xff] %v1001_v57  ;;  %1120 = vst [vmem:[%s2052_s15 + $0x250] sm:$0xff] %v1041_v58  ;;  %v749_v61 = vadd.f32 %v2043_v31, %v748_v59  ;;  %v1483_v62 = vpop.f32.mrb[71].mxu0  ;;  %v949_v63 = vadd.f32 %v2043_v31, %v948_v60  ;;  %v1603_v0 = vpop.f32.mrb[71].mxu1 }
 0x17b   : > { %v1002_v1 = vmax.f32 %v749_v61, 0.0  ;;  %v1042_v2 = vmax.f32 %v949_v63, 0.0 }
 0x17c   : > { %v753_v3 = vpop.f32.mrb[72].mxu0  ;;  %v953_v4 = vpop.f32.mrb[72].mxu1 }
 0x17d   : > { %1081 = vst [vmem:[%s2052_s15 + $0x118] sm:$0xff] %v1002_v1  ;;  %1121 = vst [vmem:[%s2052_s15 + $0x258] sm:$0xff] %v1042_v2  ;;  %v754_v5 = vadd.f32 %v2043_v31, %v753_v3  ;;  %v1486_v7 = vpop.f32.mrb[73].mxu0  ;;  %v954_v8 = vadd.f32 %v2043_v31, %v953_v4  ;;  %v1606_v9 = vpop.f32.mrb[73].mxu1 }
 0x17f   : > { %v1003_v10 = vmax.f32 %v754_v5, 0.0  ;;  %v1043_v11 = vmax.f32 %v954_v8, 0.0 }
 0x180   : > { %v758_v12 = vpop.f32.mrb[74].mxu0  ;;  %v958_v13 = vpop.f32.mrb[74].mxu1 }
 0x181   : > { %1082 = vst [vmem:[%s2052_s15 + $0x120] sm:$0xff] %v1003_v10  ;;  %1122 = vst [vmem:[%s2052_s15 + $0x260] sm:$0xff] %v1043_v11  ;;  %v759_v14 = vadd.f32 %v2043_v31, %v758_v12  ;;  %v1489_v15 = vpop.f32.mrb[75].mxu0  ;;  %v959_v16 = vadd.f32 %v2043_v31, %v958_v13  ;;  %v1609_v17 = vpop.f32.mrb[75].mxu1 }
 0x183   : > { %v1004_v18 = vmax.f32 %v759_v14, 0.0  ;;  %v1044_v19 = vmax.f32 %v959_v16, 0.0 }
 0x184   : > { %v763_v20 = vpop.f32.mrb[76].mxu0  ;;  %v963_v21 = vpop.f32.mrb[76].mxu1 }
 0x185   : > { %1083 = vst [vmem:[%s2052_s15 + $0x128] sm:$0xff] %v1004_v18  ;;  %1123 = vst [vmem:[%s2052_s15 + $0x268] sm:$0xff] %v1044_v19  ;;  %v764_v22 = vadd.f32 %v2043_v31, %v763_v20  ;;  %v1492_v23 = vpop.f32.mrb[77].mxu0  ;;  %v964_v24 = vadd.f32 %v2043_v31, %v963_v21  ;;  %v1612_v25 = vpop.f32.mrb[77].mxu1 }
 0x187   : > { %v1005_v26 = vmax.f32 %v764_v22, 0.0  ;;  %v1045_v27 = vmax.f32 %v964_v24, 0.0 }
 0x188   : > { %v768_v28 = vpop.f32.mrb[78].mxu0 }
 0x189   : > { %1084 = vst [vmem:[%s2052_s15 + $0x130] sm:$0xff] %v1005_v26  ;;  %1124 = vst [vmem:[%s2052_s15 + $0x270] sm:$0xff] %v1045_v27  ;;  %v769_v29 = vadd.f32 %v2043_v31, %v768_v28  ;;  %v1495_v30 = vpop.f32.mrb[79].mxu0 }
 0x18b   : > { %v1006_v32 = vmax.f32 %v769_v29, 0.0 }
 0x18d   : > { %1085 = vst [vmem:[%s2052_s15 + $0x138] sm:$0xff] %v1006_v32 }
 0x18e PF: > { %s13_s12 = sadd.s32 1, %s1652_s12  }
 0x18f   : > { %p10_p4 = scmp.ge.s32.totalorder %s13_s12, 4  }
 0x191   :  { %12 = sbr.rel (!%p10_p4) target bundleno = 1 (0x1), region = 62 }

// kernel: autoencoder_forward.15
= control target key start
LH: loop header
LB: loop body
LE: loop exit
PB: predicated region body
PF: predicated region fallthrough
CT: control target
= control target key end

     0   :  { %s3323_s12 = smov 0   ;;  %s5164_s0 = inlined_call_operand.vmem [shape: f32[5040,32], index: 0, kind: input, shape index: {}]   ;;  %s5165_s1 = inlined_call_operand.vmem [shape: f32[32,128], index: 1, kind: input, shape index: {}]   ;;  %s5166_s2 = inlined_call_operand.vmem [shape: f32[1,128], index: 2, kind: input, shape index: {}]   ;;  %s5167_s3 = inlined_call_operand.vmem [shape: f32[5040,128], index: 3, kind: output, shape index: {}]  }
   0x1 LB: > { %s2302_s13 = sadd.s32 4294967295, %s3298_s12   ;;  %p2306_p0 = scmp.ge.s32.totalorder %s3298_s12, 1  ;;  %s3298_s12 = sphi %s3323_s12, %s13_s12  }
   0x2   : > { %p138_p1 = scmp.lt.s32.totalorder %s3298_s12, 7 }
   0x4   : > { %p139_p2 = pnand %p2306_p0, %p138_p1 }
   0x5   : > { %v279_v0 = vld [vmem:[%s5165_s1] sm:$0xff] (!%p139_p2)  ;;  %v280_v1 = vld [vmem:[%s5165_s1 + $0x8] sm:$0xff] (!%p139_p2)  ;;  %v281_v2 = vld [vmem:[%s5165_s1 + $0x10] sm:$0xff] (!%p139_p2)  ;;  %v3300_v3 = vmov (!%p139_p2), 0.0|0.0   ;;  %s162_s22 = smul.u32 (!%p139_p2), 105, %s2302_s13  ;;  %vm3301_vm0 = vmmov (!%p139_p2), 0  }
   0x6   : > { %142 = sbr.rel (%p139_p2) target bundleno = 523 (0x20b), region = 32  ;;  %2849 = vmatprep.subr.bf16.mxu0 (!%p139_p2), %v3300_v3  ;;  %2855 = vmatprep.subr.bf16.mxu1 (!%p139_p2), %v3300_v3  ;;  %v2850_v4 = vpack.c.bf16 (!%p139_p2), %v280_v1, %v279_v0  ;;  %v282_v5 = vld [vmem:[%s5165_s1 + $0x18] sm:$0xff] (!%p139_p2)  ;;  %v3302_v6 = vmov (!%p139_p2), 0.0   ;;  %vm290_vm1 = vcmask (!%p139_p2), 261120  }
   0x7   : > { %2534 = vmatprep.mubr.msk.f32.mxu0 (!%p139_p2), %vm3301_vm0, %v3302_v6  ;;  %2693 = vmatprep.mubr.msk.f32.mxu1 (!%p139_p2), %vm3301_vm0, %v3302_v6  ;;  %v2853_v7 = vpack.c.bf16 (!%p139_p2), %v282_v5, %v281_v2  ;;  %p163_p3 = scmp.lt.s32.totalorder (!%p139_p2), %s162_s22, 629 }
   0x8   : > { %2851 = vmatpush3.bf16.msra.mxu0 (!%p139_p2), %v2850_v4  ;;  %2857 = vmatpush3.bf16.msra.mxu1 (!%p139_p2), %v2850_v4 }
   0x9   : > { %2852 = vmatprep.subr.bf16.mxu0 (!%p139_p2), %v3300_v3  ;;  %2856 = vmatprep.subr.bf16.mxu1 (!%p139_p2), %v3300_v3 }
   0xc   : > { %2854 = vmatpush3.bf16.msra.mxu0 (!%p139_p2), %v2853_v7  ;;  %2858 = vmatpush3.bf16.msra.mxu1 (!%p139_p2), %v2853_v7 }
   0xd   : > { %s5169_s22 = smov (!%p163_p3, %s162_s22), 629 }
   0xe   : > { %s2307_s23 = sshll.u32 %s5169_s22, 3 }
   0xf   : > { %s3355_s26 = scalar_lea.vmem %s5164_s0, %s2307_s23  ;;  %s3863_s4 = scalar_lea.vmem %s5167_s3, %s2307_s23 }
  0x10   : > { %v174_v8 = vld [vmem:[%s3355_s26] sm:$0xff]  ;;  %v227_v9 = vld [vmem:[%s3355_s26 + $0x1a8] sm:$0xff]  ;;  %v228_v11 = vld [vmem:[%s3355_s26 + $0x1b0] sm:$0xff] }
  0x11   : > { %2535 = vmatmul.mubr.msk.f32.vlgmr.msra.gmra.mrb[0].mxu0 %vm290_vm1, %v174_v8  ;;  %2694 = vmatmul.mubr.msk.f32.vlgmr.msra.gmra.mrb[0].mxu1 %vm290_vm1, %v227_v9  ;;  %v175_v10 = vld [vmem:[%s3355_s26 + $0x8] sm:$0xff]  ;;  %v176_v12 = vld [vmem:[%s3355_s26 + $0x10] sm:$0xff]  ;;  %v229_v13 = vld [vmem:[%s3355_s26 + $0x1b8] sm:$0xff] }
  0x12   : > { %2537 = vmatprep.mubr.msk.f32.mxu0 %vm3301_vm0, %v3302_v6  ;;  %2696 = vmatprep.mubr.msk.f32.mxu1 %vm3301_vm0, %v3302_v6  ;;  %v177_v14 = vld [vmem:[%s3355_s26 + $0x18] sm:$0xff]  ;;  %v230_v15 = vld [vmem:[%s3355_s26 + $0x1c0] sm:$0xff]  ;;  %v231_v17 = vld [vmem:[%s3355_s26 + $0x1c8] sm:$0xff] }
  0x13   : > { %v178_v16 = vld [vmem:[%s3355_s26 + $0x20] sm:$0xff]  ;;  %v179_v18 = vld [vmem:[%s3355_s26 + $0x28] sm:$0xff]  ;;  %v232_v19 = vld [vmem:[%s3355_s26 + $0x1d0] sm:$0xff] }
  0x14   : > { %v180_v20 = vld [vmem:[%s3355_s26 + $0x30] sm:$0xff]  ;;  %v233_v21 = vld [vmem:[%s3355_s26 + $0x1d8] sm:$0xff]  ;;  %v234_v23 = vld [vmem:[%s3355_s26 + $0x1e0] sm:$0xff] }
  0x15   : > { %2538 = vmatmul.mubr.msk.f32.gmra.mrb[2].mxu0 %vm290_vm1, %v175_v10  ;;  %2697 = vmatmul.mubr.msk.f32.gmra.mrb[2].mxu1 %vm290_vm1, %v228_v11  ;;  %v181_v22 = vld [vmem:[%s3355_s26 + $0x38] sm:$0xff]  ;;  %v182_v24 = vld [vmem:[%s3355_s26 + $0x40] sm:$0xff]  ;;  %v235_v25 = vld [vmem:[%s3355_s26 + $0x1e8] sm:$0xff] }
  0x16   : > { %2540 = vmatprep.mubr.msk.f32.mxu0 %vm3301_vm0, %v3302_v6  ;;  %2699 = vmatprep.mubr.msk.f32.mxu1 %vm3301_vm0, %v3302_v6  ;;  %v183_v26 = vld [vmem:[%s3355_s26 + $0x48] sm:$0xff]  ;;  %v236_v27 = vld [vmem:[%s3355_s26 + $0x1f0] sm:$0xff]  ;;  %v237_v29 = vld [vmem:[%s3355_s26 + $0x1f8] sm:$0xff] }
  0x17   : > { %v184_v28 = vld [vmem:[%s3355_s26 + $0x50] sm:$0xff]  ;;  %v185_v30 = vld [vmem:[%s3355_s26 + $0x58] sm:$0xff]  ;;  %v238_v31 = vld [vmem:[%s3355_s26 + $0x200] sm:$0xff] }
  0x18   : > { %v186_v32 = vld [vmem:[%s3355_s26 + $0x60] sm:$0xff]  ;;  %v239_v33 = vld [vmem:[%s3355_s26 + $0x208] sm:$0xff]  ;;  %v240_v35 = vld [vmem:[%s3355_s26 + $0x210] sm:$0xff] }
  0x19   : > { %2541 = vmatmul.mubr.msk.f32.gmra.mrb[4].mxu0 %vm290_vm1, %v176_v12  ;;  %2700 = vmatmul.mubr.msk.f32.gmra.mrb[4].mxu1 %vm290_vm1, %v229_v13  ;;  %v187_v34 = vld [vmem:[%s3355_s26 + $0x68] sm:$0xff]  ;;  %v188_v36 = vld [vmem:[%s3355_s26 + $0x70] sm:$0xff]  ;;  %v241_v37 = vld [vmem:[%s3355_s26 + $0x218] sm:$0xff] }
  0x1a   : > { %2543 = vmatprep.mubr.msk.f32.mxu0 %vm3301_vm0, %v3302_v6  ;;  %2702 = vmatprep.mubr.msk.f32.mxu1 %vm3301_vm0, %v3302_v6  ;;  %v189_v38 = vld [vmem:[%s3355_s26 + $0x78] sm:$0xff]  ;;  %v242_v39 = vld [vmem:[%s3355_s26 + $0x220] sm:$0xff]  ;;  %v243_v41 = vld [vmem:[%s3355_s26 + $0x228] sm:$0xff] }
  0x1b   : > { %v190_v40 = vld [vmem:[%s3355_s26 + $0x80] sm:$0xff]  ;;  %v191_v42 = vld [vmem:[%s3355_s26 + $0x88] sm:$0xff]  ;;  %v244_v43 = vld [vmem:[%s3355_s26 + $0x230] sm:$0xff] }
  0x1c   : > { %v192_v44 = vld [vmem:[%s3355_s26 + $0x90] sm:$0xff]  ;;  %v245_v45 = vld [vmem:[%s3355_s26 + $0x238] sm:$0xff]  ;;  %v246_v47 = vld [vmem:[%s3355_s26 + $0x240] sm:$0xff] }
  0x1d   : > { %2544 = vmatmul.mubr.msk.f32.gmra.mrb[6].mxu0 %vm290_vm1, %v177_v14  ;;  %2703 = vmatmul.mubr.msk.f32.gmra.mrb[6].mxu1 %vm290_vm1, %v230_v15  ;;  %v193_v46 = vld [vmem:[%s3355_s26 + $0x98] sm:$0xff]  ;;  %v194_v48 = vld [vmem:[%s3355_s26 + $0xa0] sm:$0xff]  ;;  %v247_v49 = vld [vmem:[%s3355_s26 + $0x248] sm:$0xff] }
  0x1e   : > { %2546 = vmatprep.mubr.msk.f32.mxu0 %vm3301_vm0, %v3302_v6  ;;  %2705 = vmatprep.mubr.msk.f32.mxu1 %vm3301_vm0, %v3302_v6  ;;  %v195_v50 = vld [vmem:[%s3355_s26 + $0xa8] sm:$0xff]  ;;  %v248_v51 = vld [vmem:[%s3355_s26 + $0x250] sm:$0xff]  ;;  %v249_v53 = vld [vmem:[%s3355_s26 + $0x258] sm:$0xff] }
  0x1f   : > { %v196_v52 = vld [vmem:[%s3355_s26 + $0xb0] sm:$0xff]  ;;  %v197_v54 = vld [vmem:[%s3355_s26 + $0xb8] sm:$0xff]  ;;  %v250_v55 = vld [vmem:[%s3355_s26 + $0x260] sm:$0xff] }
  0x20   : > { %v198_v56 = vld [vmem:[%s3355_s26 + $0xc0] sm:$0xff]  ;;  %v251_v57 = vld [vmem:[%s3355_s26 + $0x268] sm:$0xff]  ;;  %v252_v59 = vld [vmem:[%s3355_s26 + $0x270] sm:$0xff] }
  0x21   : > { %2547 = vmatmul.mubr.msk.f32.gmra.mrb[8].mxu0 %vm290_vm1, %v178_v16  ;;  %2706 = vmatmul.mubr.msk.f32.gmra.mrb[8].mxu1 %vm290_vm1, %v231_v17  ;;  %v199_v58 = vld [vmem:[%s3355_s26 + $0xc8] sm:$0xff]  ;;  %v200_v60 = vld [vmem:[%s3355_s26 + $0xd0] sm:$0xff]  ;;  %v253_v61 = vld [vmem:[%s3355_s26 + $0x278] sm:$0xff] }
  0x22   : > { %2549 = vmatprep.mubr.msk.f32.mxu0 %vm3301_vm0, %v3302_v6  ;;  %2708 = vmatprep.mubr.msk.f32.mxu1 %vm3301_vm0, %v3302_v6  ;;  %v201_v62 = vld [vmem:[%s3355_s26 + $0xd8] sm:$0xff]  ;;  %v254_v63 = vld [vmem:[%s3355_s26 + $0x280] sm:$0xff]  ;;  %v255_v1 = vld [vmem:[%s3355_s26 + $0x288] sm:$0xff] }
  0x23   : > { %v202_v0 = vld [vmem:[%s3355_s26 + $0xe0] sm:$0xff]  ;;  %v203_v2 = vld [vmem:[%s3355_s26 + $0xe8] sm:$0xff]  ;;  %v256_v3 = vld [vmem:[%s3355_s26 + $0x290] sm:$0xff] }
  0x24   : > { %v204_v4 = vld [vmem:[%s3355_s26 + $0xf0] sm:$0xff]  ;;  %v257_v5 = vld [vmem:[%s3355_s26 + $0x298] sm:$0xff]  ;;  %v258_v8 = vld [vmem:[%s3355_s26 + $0x2a0] sm:$0xff] }
  0x25   : > { %2550 = vmatmul.mubr.msk.f32.gmra.mrb[10].mxu0 %vm290_vm1, %v179_v18  ;;  %2709 = vmatmul.mubr.msk.f32.gmra.mrb[10].mxu1 %vm290_vm1, %v232_v19  ;;  %v205_v7 = vld [vmem:[%s3355_s26 + $0xf8] sm:$0xff]  ;;  %v206_v9 = vld [vmem:[%s3355_s26 + $0x100] sm:$0xff]  ;;  %v259_v10 = vld [vmem:[%s3355_s26 + $0x2a8] sm:$0xff] }
  0x26   : > { %2552 = vmatprep.mubr.msk.f32.mxu0 %vm3301_vm0, %v3302_v6  ;;  %2711 = vmatprep.mubr.msk.f32.mxu1 %vm3301_vm0, %v3302_v6  ;;  %v207_v11 = vld [vmem:[%s3355_s26 + $0x108] sm:$0xff]  ;;  %v260_v12 = vld [vmem:[%s3355_s26 + $0x2b0] sm:$0xff]  ;;  %v261_v14 = vld [vmem:[%s3355_s26 + $0x2b8] sm:$0xff] }
  0x27   : > { %v208_v13 = vld [vmem:[%s3355_s26 + $0x110] sm:$0xff]  ;;  %v209_v15 = vld [vmem:[%s3355_s26 + $0x118] sm:$0xff]  ;;  %v262_v16 = vld [vmem:[%s3355_s26 + $0x2c0] sm:$0xff] }
  0x28   : > { %v210_v17 = vld [vmem:[%s3355_s26 + $0x120] sm:$0xff]  ;;  %v263_v18 = vld [vmem:[%s3355_s26 + $0x2c8] sm:$0xff] }
  0x29   : > { %2553 = vmatmul.mubr.msk.f32.gmra.mrb[12].mxu0 %vm290_vm1, %v180_v20  ;;  %2712 = vmatmul.mubr.msk.f32.gmra.mrb[12].mxu1 %vm290_vm1, %v233_v21  ;;  %v211_v19 = vld [vmem:[%s3355_s26 + $0x128] sm:$0xff]  ;;  %v264_v20 = vld [vmem:[%s3355_s26 + $0x2d0] sm:$0xff] }
  0x2a   : > { %2555 = vmatprep.mubr.msk.f32.mxu0 %vm3301_vm0, %v3302_v6  ;;  %2714 = vmatprep.mubr.msk.f32.mxu1 %vm3301_vm0, %v3302_v6  ;;  %v212_v21 = vld [vmem:[%s3355_s26 + $0x130] sm:$0xff] }
  0x2d   : > { %2556 = vmatmul.mubr.msk.f32.gmra.mrb[14].mxu0 %vm290_vm1, %v181_v22  ;;  %2715 = vmatmul.mubr.msk.f32.gmra.mrb[14].mxu1 %vm290_vm1, %v234_v23  ;;  %v265_v22 = vld [vmem:[%s3355_s26 + $0x2d8] sm:$0xff] }
  0x2e   : > { %2558 = vmatprep.mubr.msk.f32.mxu0 %vm3301_vm0, %v3302_v6  ;;  %2717 = vmatprep.mubr.msk.f32.mxu1 %vm3301_vm0, %v3302_v6  ;;  %v213_v23 = vld [vmem:[%s3355_s26 + $0x138] sm:$0xff] }
  0x31   : > { %2559 = vmatmul.mubr.msk.f32.gmra.mrb[16].mxu0 %vm290_vm1, %v182_v24  ;;  %2718 = vmatmul.mubr.msk.f32.gmra.mrb[16].mxu1 %vm290_vm1, %v235_v25  ;;  %v266_v24 = vld [vmem:[%s3355_s26 + $0x2e0] sm:$0xff] }
  0x32   : > { %2561 = vmatprep.mubr.msk.f32.mxu0 %vm3301_vm0, %v3302_v6  ;;  %2720 = vmatprep.mubr.msk.f32.mxu1 %vm3301_vm0, %v3302_v6  ;;  %v214_v25 = vld [vmem:[%s3355_s26 + $0x140] sm:$0xff] }
  0x35   : > { %2562 = vmatmul.mubr.msk.f32.gmra.mrb[18].mxu0 %vm290_vm1, %v183_v26  ;;  %2721 = vmatmul.mubr.msk.f32.gmra.mrb[18].mxu1 %vm290_vm1, %v236_v27  ;;  %v267_v26 = vld [vmem:[%s3355_s26 + $0x2e8] sm:$0xff] }
  0x36   : > { %2564 = vmatprep.mubr.msk.f32.mxu0 %vm3301_vm0, %v3302_v6  ;;  %2723 = vmatprep.mubr.msk.f32.mxu1 %vm3301_vm0, %v3302_v6  ;;  %v215_v27 = vld [vmem:[%s3355_s26 + $0x148] sm:$0xff] }
  0x39   : > { %2565 = vmatmul.mubr.msk.f32.gmra.mrb[20].mxu0 %vm290_vm1, %v184_v28  ;;  %2724 = vmatmul.mubr.msk.f32.gmra.mrb[20].mxu1 %vm290_vm1, %v237_v29  ;;  %v268_v28 = vld [vmem:[%s3355_s26 + $0x2f0] sm:$0xff] }
  0x3a   : > { %2567 = vmatprep.mubr.msk.f32.mxu0 %vm3301_vm0, %v3302_v6  ;;  %2726 = vmatprep.mubr.msk.f32.mxu1 %vm3301_vm0, %v3302_v6  ;;  %v216_v29 = vld [vmem:[%s3355_s26 + $0x150] sm:$0xff] }
  0x3d   : > { %2568 = vmatmul.mubr.msk.f32.gmra.mrb[22].mxu0 %vm290_vm1, %v185_v30  ;;  %2727 = vmatmul.mubr.msk.f32.gmra.mrb[22].mxu1 %vm290_vm1, %v238_v31  ;;  %v269_v30 = vld [vmem:[%s3355_s26 + $0x2f8] sm:$0xff] }
  0x3e   : > { %2570 = vmatprep.mubr.msk.f32.mxu0 %vm3301_vm0, %v3302_v6  ;;  %2729 = vmatprep.mubr.msk.f32.mxu1 %vm3301_vm0, %v3302_v6  ;;  %v217_v31 = vld [vmem:[%s3355_s26 + $0x158] sm:$0xff] }
  0x41   : > { %2571 = vmatmul.mubr.msk.f32.gmra.mrb[24].mxu0 %vm290_vm1, %v186_v32  ;;  %2730 = vmatmul.mubr.msk.f32.gmra.mrb[24].mxu1 %vm290_vm1, %v239_v33  ;;  %v270_v32 = vld [vmem:[%s3355_s26 + $0x300] sm:$0xff] }
  0x42   : > { %2573 = vmatprep.mubr.msk.f32.mxu0 %vm3301_vm0, %v3302_v6  ;;  %2732 = vmatprep.mubr.msk.f32.mxu1 %vm3301_vm0, %v3302_v6  ;;  %v218_v33 = vld [vmem:[%s3355_s26 + $0x160] sm:$0xff] }
  0x45   : > { %2574 = vmatmul.mubr.msk.f32.gmra.mrb[26].mxu0 %vm290_vm1, %v187_v34  ;;  %2733 = vmatmul.mubr.msk.f32.gmra.mrb[26].mxu1 %vm290_vm1, %v240_v35  ;;  %v271_v34 = vld [vmem:[%s3355_s26 + $0x308] sm:$0xff] }
  0x46   : > { %2576 = vmatprep.mubr.msk.f32.mxu0 %vm3301_vm0, %v3302_v6  ;;  %2735 = vmatprep.mubr.msk.f32.mxu1 %vm3301_vm0, %v3302_v6  ;;  %v219_v35 = vld [vmem:[%s3355_s26 + $0x168] sm:$0xff] }
  0x49   : > { %2577 = vmatmul.mubr.msk.f32.gmra.mrb[28].mxu0 %vm290_vm1, %v188_v36  ;;  %2736 = vmatmul.mubr.msk.f32.gmra.mrb[28].mxu1 %vm290_vm1, %v241_v37  ;;  %v272_v36 = vld [vmem:[%s3355_s26 + $0x310] sm:$0xff] }
  0x4a   : > { %2579 = vmatprep.mubr.msk.f32.mxu0 %vm3301_vm0, %v3302_v6  ;;  %2738 = vmatprep.mubr.msk.f32.mxu1 %vm3301_vm0, %v3302_v6  ;;  %v220_v37 = vld [vmem:[%s3355_s26 + $0x170] sm:$0xff] }
  0x4d   : > { %2580 = vmatmul.mubr.msk.f32.gmra.mrb[30].mxu0 %vm290_vm1, %v189_v38  ;;  %2739 = vmatmul.mubr.msk.f32.gmra.mrb[30].mxu1 %vm290_vm1, %v242_v39  ;;  %v273_v38 = vld [vmem:[%s3355_s26 + $0x318] sm:$0xff] }
  0x4e   : > { %2582 = vmatprep.mubr.msk.f32.mxu0 %vm3301_vm0, %v3302_v6  ;;  %2741 = vmatprep.mubr.msk.f32.mxu1 %vm3301_vm0, %v3302_v6  ;;  %v221_v39 = vld [vmem:[%s3355_s26 + $0x178] sm:$0xff] }
  0x51   : > { %2583 = vmatmul.mubr.msk.f32.gmra.mrb[32].mxu0 %vm290_vm1, %v190_v40  ;;  %2742 = vmatmul.mubr.msk.f32.gmra.mrb[32].mxu1 %vm290_vm1, %v243_v41  ;;  %v274_v40 = vld [vmem:[%s3355_s26 + $0x320] sm:$0xff] }
  0x52   : > { %2585 = vmatprep.mubr.msk.f32.mxu0 %vm3301_vm0, %v3302_v6  ;;  %2744 = vmatprep.mubr.msk.f32.mxu1 %vm3301_vm0, %v3302_v6  ;;  %v222_v41 = vld [vmem:[%s3355_s26 + $0x180] sm:$0xff] }
  0x55   : > { %2586 = vmatmul.mubr.msk.f32.gmra.mrb[34].mxu0 %vm290_vm1, %v191_v42  ;;  %2745 = vmatmul.mubr.msk.f32.gmra.mrb[34].mxu1 %vm290_vm1, %v244_v43  ;;  %v275_v42 = vld [vmem:[%s3355_s26 + $0x328] sm:$0xff] }
  0x56   : > { %2588 = vmatprep.mubr.msk.f32.mxu0 %vm3301_vm0, %v3302_v6  ;;  %2747 = vmatprep.mubr.msk.f32.mxu1 %vm3301_vm0, %v3302_v6  ;;  %v223_v43 = vld [vmem:[%s3355_s26 + $0x188] sm:$0xff] }
  0x59   : > { %2589 = vmatmul.mubr.msk.f32.gmra.mrb[36].mxu0 %vm290_vm1, %v192_v44  ;;  %2748 = vmatmul.mubr.msk.f32.gmra.mrb[36].mxu1 %vm290_vm1, %v245_v45  ;;  %v276_v44 = vld [vmem:[%s3355_s26 + $0x330] sm:$0xff] }
  0x5a   : > { %2591 = vmatprep.mubr.msk.f32.mxu0 %vm3301_vm0, %v3302_v6  ;;  %2750 = vmatprep.mubr.msk.f32.mxu1 %vm3301_vm0, %v3302_v6  ;;  %v224_v45 = vld [vmem:[%s3355_s26 + $0x190] sm:$0xff] }
  0x5d   : > { %2592 = vmatmul.mubr.msk.f32.gmra.mrb[38].mxu0 %vm290_vm1, %v193_v46  ;;  %2751 = vmatmul.mubr.msk.f32.gmra.mrb[38].mxu1 %vm290_vm1, %v246_v47  ;;  %v277_v46 = vld [vmem:[%s3355_s26 + $0x338] sm:$0xff] }
  0x5e   : > { %2594 = vmatprep.mubr.msk.f32.mxu0 %vm3301_vm0, %v3302_v6  ;;  %2753 = vmatprep.mubr.msk.f32.mxu1 %vm3301_vm0, %v3302_v6  ;;  %v225_v47 = vld [vmem:[%s3355_s26 + $0x198] sm:$0xff] }
  0x61   : > { %2595 = vmatmul.mubr.msk.f32.gmra.mrb[40].mxu0 %vm290_vm1, %v194_v48  ;;  %2754 = vmatmul.mubr.msk.f32.gmra.mrb[40].mxu1 %vm290_vm1, %v247_v49  ;;  %v278_v48 = vld [vmem:[%s3355_s26 + $0x340] sm:$0xff] }
  0x62   : > { %2597 = vmatprep.mubr.msk.f32.mxu0 %vm3301_vm0, %v3302_v6  ;;  %2756 = vmatprep.mubr.msk.f32.mxu1 %vm3301_vm0, %v3302_v6  ;;  %v226_v49 = vld [vmem:[%s3355_s26 + $0x1a0] sm:$0xff] }
  0x65   : > { %2598 = vmatmul.mubr.msk.f32.gmra.mrb[42].mxu0 %vm290_vm1, %v195_v50  ;;  %2757 = vmatmul.mubr.msk.f32.gmra.mrb[42].mxu1 %vm290_vm1, %v248_v51  ;;  %v3776_v50 = vld [vmem:[%s5166_s2] ss:$0 sm:$0xff] }
  0x66   : > { %2600 = vmatprep.mubr.msk.f32.mxu0 %vm3301_vm0, %v3302_v6  ;;  %2759 = vmatprep.mubr.msk.f32.mxu1 %vm3301_vm0, %v3302_v6 }
  0x69   : > { %2601 = vmatmul.mubr.msk.f32.gmra.mrb[44].mxu0 %vm290_vm1, %v196_v52  ;;  %2760 = vmatmul.mubr.msk.f32.gmra.mrb[44].mxu1 %vm290_vm1, %v249_v53 }
  0x6a   : > { %2603 = vmatprep.mubr.msk.f32.mxu0 %vm3301_vm0, %v3302_v6  ;;  %2762 = vmatprep.mubr.msk.f32.mxu1 %vm3301_vm0, %v3302_v6 }
  0x6d   : > { %2604 = vmatmul.mubr.msk.f32.gmra.mrb[46].mxu0 %vm290_vm1, %v197_v54  ;;  %2763 = vmatmul.mubr.msk.f32.gmra.mrb[46].mxu1 %vm290_vm1, %v250_v55 }
  0x6e   : > { %2606 = vmatprep.mubr.msk.f32.mxu0 %vm3301_vm0, %v3302_v6  ;;  %2765 = vmatprep.mubr.msk.f32.mxu1 %vm3301_vm0, %v3302_v6 }
  0x71   : > { %2607 = vmatmul.mubr.msk.f32.gmra.mrb[48].mxu0 %vm290_vm1, %v198_v56  ;;  %2766 = vmatmul.mubr.msk.f32.gmra.mrb[48].mxu1 %vm290_vm1, %v251_v57 }
  0x72   : > { %2609 = vmatprep.mubr.msk.f32.mxu0 %vm3301_vm0, %v3302_v6  ;;  %2768 = vmatprep.mubr.msk.f32.mxu1 %vm3301_vm0, %v3302_v6 }
  0x75   : > { %2610 = vmatmul.mubr.msk.f32.gmra.mrb[50].mxu0 %vm290_vm1, %v199_v58  ;;  %2769 = vmatmul.mubr.msk.f32.gmra.mrb[50].mxu1 %vm290_vm1, %v252_v59 }
  0x76   : > { %2612 = vmatprep.mubr.msk.f32.mxu0 %vm3301_vm0, %v3302_v6  ;;  %2771 = vmatprep.mubr.msk.f32.mxu1 %vm3301_vm0, %v3302_v6 }
  0x79   : > { %2613 = vmatmul.mubr.msk.f32.gmra.mrb[52].mxu0 %vm290_vm1, %v200_v60  ;;  %2772 = vmatmul.mubr.msk.f32.gmra.mrb[52].mxu1 %vm290_vm1, %v253_v61 }
  0x7a   : > { %2615 = vmatprep.mubr.msk.f32.mxu0 %vm3301_vm0, %v3302_v6  ;;  %2774 = vmatprep.mubr.msk.f32.mxu1 %vm3301_vm0, %v3302_v6 }
  0x7d   : > { %2616 = vmatmul.mubr.msk.f32.gmra.mrb[54].mxu0 %vm290_vm1, %v201_v62  ;;  %2775 = vmatmul.mubr.msk.f32.gmra.mrb[54].mxu1 %vm290_vm1, %v254_v63 }
  0x7e   : > { %2618 = vmatprep.mubr.msk.f32.mxu0 %vm3301_vm0, %v3302_v6  ;;  %2777 = vmatprep.mubr.msk.f32.mxu1 %vm3301_vm0, %v3302_v6 }
  0x81   : > { %2619 = vmatmul.mubr.msk.f32.gmra.mrb[56].mxu0 %vm290_vm1, %v202_v0  ;;  %2778 = vmatmul.mubr.msk.f32.gmra.mrb[56].mxu1 %vm290_vm1, %v255_v1 }
  0x82   : > { %2621 = vmatprep.mubr.msk.f32.mxu0 %vm3301_vm0, %v3302_v6  ;;  %2780 = vmatprep.mubr.msk.f32.mxu1 %vm3301_vm0, %v3302_v6 }
  0x85   : > { %2622 = vmatmul.mubr.msk.f32.gmra.mrb[58].mxu0 %vm290_vm1, %v203_v2  ;;  %2781 = vmatmul.mubr.msk.f32.gmra.mrb[58].mxu1 %vm290_vm1, %v256_v3 }
  0x86   : > { %2624 = vmatprep.mubr.msk.f32.mxu0 %vm3301_vm0, %v3302_v6  ;;  %2783 = vmatprep.mubr.msk.f32.mxu1 %vm3301_vm0, %v3302_v6 }
  0x89   : > { %2625 = vmatmul.mubr.msk.f32.gmra.mrb[60].mxu0 %vm290_vm1, %v204_v4  ;;  %2784 = vmatmul.mubr.msk.f32.gmra.mrb[60].mxu1 %vm290_vm1, %v257_v5 }
  0x8a   : > { %2627 = vmatprep.mubr.msk.f32.mxu0 %vm3301_vm0, %v3302_v6  ;;  %2786 = vmatprep.mubr.msk.f32.mxu1 %vm3301_vm0, %v3302_v6 }
  0x8d   : > { %2628 = vmatmul.mubr.msk.f32.gmra.mrb[62].mxu0 %vm290_vm1, %v205_v7  ;;  %2787 = vmatmul.mubr.msk.f32.gmra.mrb[62].mxu1 %vm290_vm1, %v258_v8 }
  0x8e   : > { %2630 = vmatprep.mubr.msk.f32.mxu0 %vm3301_vm0, %v3302_v6  ;;  %2789 = vmatprep.mubr.msk.f32.mxu1 %vm3301_vm0, %v3302_v6 }
  0x91   : > { %2631 = vmatmul.mubr.msk.f32.gmra.mrb[64].mxu0 %vm290_vm1, %v206_v9  ;;  %2790 = vmatmul.mubr.msk.f32.gmra.mrb[64].mxu1 %vm290_vm1, %v259_v10 }
  0x92   : > { %2633 = vmatprep.mubr.msk.f32.mxu0 %vm3301_vm0, %v3302_v6  ;;  %2792 = vmatprep.mubr.msk.f32.mxu1 %vm3301_vm0, %v3302_v6 }
  0x95   : > { %2634 = vmatmul.mubr.msk.f32.gmra.mrb[66].mxu0 %vm290_vm1, %v207_v11  ;;  %2793 = vmatmul.mubr.msk.f32.gmra.mrb[66].mxu1 %vm290_vm1, %v260_v12 }
  0x96   : > { %2636 = vmatprep.mubr.msk.f32.mxu0 %vm3301_vm0, %v3302_v6  ;;  %2795 = vmatprep.mubr.msk.f32.mxu1 %vm3301_vm0, %v3302_v6 }
  0x99   : > { %2637 = vmatmul.mubr.msk.f32.gmra.mrb[68].mxu0 %vm290_vm1, %v208_v13  ;;  %2796 = vmatmul.mubr.msk.f32.gmra.mrb[68].mxu1 %vm290_vm1, %v261_v14 }
  0x9a   : > { %2639 = vmatprep.mubr.msk.f32.mxu0 %vm3301_vm0, %v3302_v6  ;;  %2798 = vmatprep.mubr.msk.f32.mxu1 %vm3301_vm0, %v3302_v6 }
  0x9d   : > { %2640 = vmatmul.mubr.msk.f32.gmra.mrb[70].mxu0 %vm290_vm1, %v209_v15  ;;  %2799 = vmatmul.mubr.msk.f32.gmra.mrb[70].mxu1 %vm290_vm1, %v262_v16 }
  0x9e   : > { %2642 = vmatprep.mubr.msk.f32.mxu0 %vm3301_vm0, %v3302_v6  ;;  %2801 = vmatprep.mubr.msk.f32.mxu1 %vm3301_vm0, %v3302_v6 }
  0xa1   : > { %2643 = vmatmul.mubr.msk.f32.gmra.mrb[72].mxu0 %vm290_vm1, %v210_v17  ;;  %2802 = vmatmul.mubr.msk.f32.gmra.mrb[72].mxu1 %vm290_vm1, %v263_v18 }
  0xa2   : > { %2645 = vmatprep.mubr.msk.f32.mxu0 %vm3301_vm0, %v3302_v6  ;;  %2804 = vmatprep.mubr.msk.f32.mxu1 %vm3301_vm0, %v3302_v6 }
  0xa5   : > { %2646 = vmatmul.mubr.msk.f32.gmra.mrb[74].mxu0 %vm290_vm1, %v211_v19  ;;  %2805 = vmatmul.mubr.msk.f32.gmra.mrb[74].mxu1 %vm290_vm1, %v264_v20 }
  0xa6   : > { %2648 = vmatprep.mubr.msk.f32.mxu0 %vm3301_vm0, %v3302_v6  ;;  %2807 = vmatprep.mubr.msk.f32.mxu1 %vm3301_vm0, %v3302_v6 }
  0xa9   : > { %2649 = vmatmul.mubr.msk.f32.gmra.mrb[76].mxu0 %vm290_vm1, %v212_v21  ;;  %2808 = vmatmul.mubr.msk.f32.gmra.mrb[76].mxu1 %vm290_vm1, %v265_v22 }
  0xaa   : > { %2651 = vmatprep.mubr.msk.f32.mxu0 %vm3301_vm0, %v3302_v6  ;;  %2810 = vmatprep.mubr.msk.f32.mxu1 %vm3301_vm0, %v3302_v6 }
  0xad   : > { %2652 = vmatmul.mubr.msk.f32.gmra.mrb[78].mxu0 %vm290_vm1, %v213_v23  ;;  %2811 = vmatmul.mubr.msk.f32.gmra.mrb[78].mxu1 %vm290_vm1, %v266_v24 }
  0xae   : > { %2654 = vmatprep.mubr.msk.f32.mxu0 %vm3301_vm0, %v3302_v6  ;;  %2813 = vmatprep.mubr.msk.f32.mxu1 %vm3301_vm0, %v3302_v6 }
  0xb1   : > { %2655 = vmatmul.mubr.msk.f32.gmra.mrb[80].mxu0 %vm290_vm1, %v214_v25  ;;  %2814 = vmatmul.mubr.msk.f32.gmra.mrb[80].mxu1 %vm290_vm1, %v267_v26 }
  0xb2   : > { %2657 = vmatprep.mubr.msk.f32.mxu0 %vm3301_vm0, %v3302_v6  ;;  %2816 = vmatprep.mubr.msk.f32.mxu1 %vm3301_vm0, %v3302_v6 }
  0xb5   : > { %2658 = vmatmul.mubr.msk.f32.gmra.mrb[82].mxu0 %vm290_vm1, %v215_v27  ;;  %2817 = vmatmul.mubr.msk.f32.gmra.mrb[82].mxu1 %vm290_vm1, %v268_v28 }
  0xb6   : > { %2660 = vmatprep.mubr.msk.f32.mxu0 %vm3301_vm0, %v3302_v6  ;;  %2819 = vmatprep.mubr.msk.f32.mxu1 %vm3301_vm0, %v3302_v6 }
  0xb9   : > { %2661 = vmatmul.mubr.msk.f32.gmra.mrb[84].mxu0 %vm290_vm1, %v216_v29  ;;  %2820 = vmatmul.mubr.msk.f32.gmra.mrb[84].mxu1 %vm290_vm1, %v269_v30 }
  0xba   : > { %2663 = vmatprep.mubr.msk.f32.mxu0 %vm3301_vm0, %v3302_v6  ;;  %2822 = vmatprep.mubr.msk.f32.mxu1 %vm3301_vm0, %v3302_v6 }
  0xbd   : > { %2664 = vmatmul.mubr.msk.f32.gmra.mrb[86].mxu0 %vm290_vm1, %v217_v31  ;;  %2823 = vmatmul.mubr.msk.f32.gmra.mrb[86].mxu1 %vm290_vm1, %v270_v32 }
  0xbe   : > { %2666 = vmatprep.mubr.msk.f32.mxu0 %vm3301_vm0, %v3302_v6  ;;  %2825 = vmatprep.mubr.msk.f32.mxu1 %vm3301_vm0, %v3302_v6 }
  0xc1   : > { %2667 = vmatmul.mubr.msk.f32.gmra.mrb[88].mxu0 %vm290_vm1, %v218_v33  ;;  %2826 = vmatmul.mubr.msk.f32.gmra.mrb[88].mxu1 %vm290_vm1, %v271_v34 }
  0xc2   : > { %2669 = vmatprep.mubr.msk.f32.mxu0 %vm3301_vm0, %v3302_v6  ;;  %2828 = vmatprep.mubr.msk.f32.mxu1 %vm3301_vm0, %v3302_v6 }
  0xc5   : > { %2670 = vmatmul.mubr.msk.f32.gmra.mrb[90].mxu0 %vm290_vm1, %v219_v35  ;;  %2829 = vmatmul.mubr.msk.f32.gmra.mrb[90].mxu1 %vm290_vm1, %v272_v36 }
  0xc6   : > { %2672 = vmatprep.mubr.msk.f32.mxu0 %vm3301_vm0, %v3302_v6  ;;  %2831 = vmatprep.mubr.msk.f32.mxu1 %vm3301_vm0, %v3302_v6 }
  0xc9   : > { %2673 = vmatmul.mubr.msk.f32.gmra.mrb[92].mxu0 %vm290_vm1, %v220_v37  ;;  %2832 = vmatmul.mubr.msk.f32.gmra.mrb[92].mxu1 %vm290_vm1, %v273_v38 }
  0xca   : > { %2675 = vmatprep.mubr.msk.f32.mxu0 %vm3301_vm0, %v3302_v6  ;;  %2834 = vmatprep.mubr.msk.f32.mxu1 %vm3301_vm0, %v3302_v6 }
  0xcd   : > { %2676 = vmatmul.mubr.msk.f32.gmra.mrb[94].mxu0 %vm290_vm1, %v221_v39  ;;  %2835 = vmatmul.mubr.msk.f32.gmra.mrb[94].mxu1 %vm290_vm1, %v274_v40 }
  0xce   : > { %2678 = vmatprep.mubr.msk.f32.mxu0 %vm3301_vm0, %v3302_v6  ;;  %2837 = vmatprep.mubr.msk.f32.mxu1 %vm3301_vm0, %v3302_v6 }
  0xd1   : > { %2679 = vmatmul.mubr.msk.f32.gmra.mrb[96].mxu0 %vm290_vm1, %v222_v41  ;;  %2838 = vmatmul.mubr.msk.f32.gmra.mrb[96].mxu1 %vm290_vm1, %v275_v42 }
  0xd2   : > { %2681 = vmatprep.mubr.msk.f32.mxu0 %vm3301_vm0, %v3302_v6  ;;  %2840 = vmatprep.mubr.msk.f32.mxu1 %vm3301_vm0, %v3302_v6 }
  0xd5   : > { %2682 = vmatmul.mubr.msk.f32.gmra.mrb[98].mxu0 %vm290_vm1, %v223_v43  ;;  %2841 = vmatmul.mubr.msk.f32.gmra.mrb[98].mxu1 %vm290_vm1, %v276_v44 }
  0xd6   : > { %2684 = vmatprep.mubr.msk.f32.mxu0 %vm3301_vm0, %v3302_v6  ;;  %2843 = vmatprep.mubr.msk.f32.mxu1 %vm3301_vm0, %v3302_v6 }
  0xd9   : > { %2685 = vmatmul.mubr.msk.f32.gmra.mrb[100].mxu0 %vm290_vm1, %v224_v45  ;;  %2844 = vmatmul.mubr.msk.f32.gmra.mrb[100].mxu1 %vm290_vm1, %v277_v46 }
  0xda   : > { %2687 = vmatprep.mubr.msk.f32.mxu0 %vm3301_vm0, %v3302_v6  ;;  %2846 = vmatprep.mubr.msk.f32.mxu1 %vm3301_vm0, %v3302_v6 }
  0xdd   : > { %2688 = vmatmul.mubr.msk.f32.gmra.mrb[102].mxu0 %vm290_vm1, %v225_v47  ;;  %2847 = vmatmul.mubr.msk.f32.gmra.mrb[102].mxu1 %vm290_vm1, %v278_v48 }
  0xde   : > { %2690 = vmatprep.mubr.msk.f32.mxu0 %vm3301_vm0, %v3302_v6 }
  0xe1   : > { %2691 = vmatmul.mubr.msk.f32.gmra.mrb[104].mxu0 %vm290_vm1, %v226_v49 }
  0xe4   : > { %v672_v51 = vpop.f32.mrb[0].mxu0  ;;  %v937_v52 = vpop.f32.mrb[0].mxu1 }
  0xe5   : > { %v3779_v53 = vadd.f32 %v3776_v50, %v672_v51  ;;  %v3782_v54 = vadd.f32 %v3776_v50, %v937_v52  ;;  %v2536_v55 = vpop.f32.mrb[1].mxu0  ;;  %v2695_v56 = vpop.f32.mrb[1].mxu1 }
  0xe7   : > { %v1196_v6 = vand.u32 2147483647, %v3779_v53  ;;  %v1249_v57 = vand.u32 2147483647, %v3782_v54  ;;  %vm1616_vm2 = vcmp.ge.f32.partialorder %v3779_v53, 0.0  ;;  %vm1669_vm3 = vcmp.ge.f32.partialorder %v3782_v54, 0.0 }
  0xe8   : > { %v677_v58 = vpop.f32.mrb[2].mxu0  ;;  %v942_v59 = vpop.f32.mrb[2].mxu1 }
  0xe9   : > { %v1301_v60 = vsub.f32 0.0, %v1196_v6  ;;  %v1354_v61 = vsub.f32 0.0, %v1249_v57  ;;  %v3787_v62 = vadd.f32 %v3776_v50, %v677_v58  ;;  %v3790_v63 = vadd.f32 %v3776_v50, %v942_v59  ;;  %v2539_v0 = vpop.f32.mrb[3].mxu0  ;;  %v2698_v1 = vpop.f32.mrb[3].mxu1 }
  0xeb   : > { %v1406_v2 = vmul.f32 1.442695, %v1301_v60  ;;  %v1512_v3 = vmul.f32 1.442695, %v1354_v61  ;;  %v1197_v4 = vand.u32 2147483647, %v3787_v62 }
  0xec   : > { %v1250_v5 = vand.u32 2147483647, %v3790_v63  ;;  %v682_v7 = vpop.f32.mrb[4].mxu0  ;;  %v947_v8 = vpop.f32.mrb[4].mxu1  ;;  %vm1617_vm4 = vcmp.ge.f32.partialorder %v3787_v62, 0.0  ;;  %vm1670_vm5 = vcmp.ge.f32.partialorder %v3790_v63, 0.0 }
  0xed   : > { %2870 = vpow2.f32 %v1406_v2  ;;  %v1302_v9 = vsub.f32 0.0, %v1197_v4  ;;  %v3795_v10 = vadd.f32 %v3776_v50, %v682_v7  ;;  %v3798_v11 = vadd.f32 %v3776_v50, %v947_v8  ;;  %v2542_v12 = vpop.f32.mrb[5].mxu0  ;;  %v2701_v13 = vpop.f32.mrb[5].mxu1 }
  0xee   : > { %2872 = vpow2.f32 %v1512_v3  ;;  %v1355_v14 = vsub.f32 0.0, %v1250_v5 }
  0xef   : > { %v1408_v15 = vmul.f32 1.442695, %v1302_v9  ;;  %v1198_v16 = vand.u32 2147483647, %v3795_v10  ;;  %v1251_v18 = vand.u32 2147483647, %v3798_v11 }
  0xf0   : > { %v1514_v17 = vmul.f32 1.442695, %v1355_v14  ;;  %v687_v19 = vpop.f32.mrb[6].mxu0  ;;  %v952_v20 = vpop.f32.mrb[6].mxu1  ;;  %vm1618_vm6 = vcmp.ge.f32.partialorder %v3795_v10, 0.0  ;;  %vm1671_vm7 = vcmp.ge.f32.partialorder %v3798_v11, 0.0 }
  0xf1   : > { %2874 = vpow2.f32 %v1408_v15  ;;  %v1303_v21 = vsub.f32 0.0, %v1198_v16  ;;  %v3803_v22 = vadd.f32 %v3776_v50, %v687_v19  ;;  %v3806_v23 = vadd.f32 %v3776_v50, %v952_v20  ;;  %v2545_v24 = vpop.f32.mrb[7].mxu0  ;;  %v2704_v25 = vpop.f32.mrb[7].mxu1 }
  0xf2   : > { %2876 = vpow2.f32 %v1514_v17  ;;  %v1356_v26 = vsub.f32 0.0, %v1251_v18 }
  0xf3   : > { %v1410_v27 = vmul.f32 1.442695, %v1303_v21  ;;  %v1199_v28 = vand.u32 2147483647, %v3803_v22  ;;  %v1252_v30 = vand.u32 2147483647, %v3806_v23 }
  0xf4   : > { %v1516_v29 = vmul.f32 1.442695, %v1356_v26  ;;  %v692_v31 = vpop.f32.mrb[8].mxu0  ;;  %v957_v32 = vpop.f32.mrb[8].mxu1  ;;  %vm1619_vm8 = vcmp.ge.f32.partialorder %v3803_v22, 0.0  ;;  %vm1672_vm9 = vcmp.ge.f32.partialorder %v3806_v23, 0.0 }
  0xf5   : > { %2878 = vpow2.f32 %v1410_v27  ;;  %v1304_v33 = vsub.f32 0.0, %v1199_v28  ;;  %v3811_v34 = vadd.f32 %v3776_v50, %v692_v31  ;;  %v3814_v35 = vadd.f32 %v3776_v50, %v957_v32  ;;  %v2548_v36 = vpop.f32.mrb[9].mxu0  ;;  %v2707_v37 = vpop.f32.mrb[9].mxu1 }
  0xf6   : > { %2880 = vpow2.f32 %v1516_v29  ;;  %v1357_v38 = vsub.f32 0.0, %v1252_v30 }
  0xf7   : > { %v2871_v39 = vpop.eup %2870  ;;  %v1412_v40 = vmul.f32 1.442695, %v1304_v33  ;;  %v1200_v41 = vand.u32 2147483647, %v3811_v34  ;;  %v1253_v45 = vand.u32 2147483647, %v3814_v35 }
  0xf8   : > { %v2873_v42 = vpop.eup %2872  ;;  %v1826_v43 = vadd.f32 1.0, %v2871_v39  ;;  %v1518_v44 = vmul.f32 1.442695, %v1357_v38  ;;  %v697_v48 = vpop.f32.mrb[10].mxu0  ;;  %v1721_v28 = vsel %vm1616_vm2, 1.0, %v2871_v39  ;;  %vm1620_vm10 = vcmp.ge.f32.partialorder %v3811_v34, 0.0 }
  0xf9   : > { %v1879_v46 = vadd.f32 1.0, %v2873_v42  ;;  %2882 = vpow2.f32 %v1412_v40  ;;  %v1305_v47 = vsub.f32 0.0, %v1200_v41  ;;  %v962_v49 = vpop.f32.mrb[10].mxu1  ;;  %v1358_v51 = vsub.f32 0.0, %v1253_v45  ;;  %v2551_v56 = vpop.f32.mrb[11].mxu0 }
  0xfa   : > { %2884 = vrcp.f32 %v1826_v43  ;;  %v3819_v52 = vadd.f32 %v3776_v50, %v697_v48  ;;  %v3822_v55 = vadd.f32 %v3776_v50, %v962_v49  ;;  %v2710_v6 = vpop.f32.mrb[11].mxu1  ;;  %v1774_v33 = vsel %vm1669_vm3, 1.0, %v2873_v42 }
  0xfb   : > { %v3824_v57 = vpop.eup %2874  ;;  %2886 = vrcp.f32 %v1879_v46  ;;  %v1414_v58 = vmul.f32 1.442695, %v1305_v47  ;;  %v1520_v61 = vmul.f32 1.442695, %v1358_v51  ;;  %vm1673_vm11 = vcmp.ge.f32.partialorder %v3814_v35, 0.0 }
  0xfc   : > { %v3826_v59 = vpop.eup %2876  ;;  %v1827_v60 = vadd.f32 1.0, %v3824_v57  ;;  %2888 = vpow2.f32 %v1518_v44  ;;  %v702_v0 = vpop.f32.mrb[12].mxu0  ;;  %v1201_v3 = vand.u32 2147483647, %v3819_v52  ;;  %v1254_v7 = vand.u32 2147483647, %v3822_v55 }
  0xfd   : > { %v967_v1 = vpop.f32.mrb[12].mxu1  ;;  %v1880_v2 = vadd.f32 1.0, %v3826_v59  ;;  %2890 = vpow2.f32 %v1414_v58  ;;  %v2554_v4 = vpop.f32.mrb[13].mxu0  ;;  %v3836_v12 = vadd.f32 %v3776_v50, %v702_v0  ;;  %v1722_v48 = vsel %vm1617_vm4, 1.0, %v3824_v57 }
  0xfe   : > { %v2713_v5 = vpop.f32.mrb[13].mxu1  ;;  %2892 = vrcp.f32 %v1827_v60  ;;  %v1306_v9 = vsub.f32 0.0, %v1201_v3  ;;  %v3839_v13 = vadd.f32 %v3776_v50, %v967_v1  ;;  %v1359_v16 = vsub.f32 0.0, %v1254_v7 }
  0xff   : > { %v3833_v8 = vpop.eup %2878  ;;  %2894 = vrcp.f32 %v1880_v2  ;;  %v1202_v21 = vand.u32 2147483647, %v3836_v12  ;;  %v1775_v6 = vsel %vm1670_vm5, 1.0, %v3826_v59  ;;  %vm1621_vm12 = vcmp.ge.f32.partialorder %v3819_v52, 0.0 }
 0x100   : > { %v3841_v14 = vpop.eup %2880  ;;  %v1828_v15 = vadd.f32 1.0, %v3833_v8  ;;  %2896 = vpow2.f32 %v1520_v61  ;;  %v707_v17 = vpop.f32.mrb[14].mxu0  ;;  %v1416_v20 = vmul.f32 1.442695, %v1306_v9  ;;  %v1522_v24 = vmul.f32 1.442695, %v1359_v16 }
 0x101   : > { %v972_v18 = vpop.f32.mrb[14].mxu1  ;;  %v1881_v19 = vadd.f32 1.0, %v3841_v14  ;;  %v1255_v25 = vand.u32 2147483647, %v3839_v13  ;;  %v2557_v26 = vpop.f32.mrb[15].mxu0  ;;  %v1307_v29 = vsub.f32 0.0, %v1202_v21  ;;  %v3856_v30 = vadd.f32 %v3776_v50, %v707_v17 }
 0x102   : > { %2898 = vrcp.f32 %v1828_v15  ;;  %v2716_v31 = vpop.f32.mrb[15].mxu1  ;;  %v3886_v60 = vadd.f32 %v3776_v50, %v972_v18  ;;  %v1723_v16 = vsel %vm1618_vm6, 1.0, %v3833_v8  ;;  %v1776_v26 = vsel %vm1671_vm7, 1.0, %v3841_v14 }
 0x103   : > { %v3850_v27 = vpop.eup %2882  ;;  %2900 = vrcp.f32 %v1881_v19  ;;  %v1360_v36 = vsub.f32 0.0, %v1255_v25  ;;  %v1418_v41 = vmul.f32 1.442695, %v1307_v29  ;;  %v1203_v43 = vand.u32 2147483647, %v3856_v30 }
 0x104   : > { %v2885_v32 = vpop.eup %2884  ;;  %v1829_v53 = vadd.f32 1.0, %v3850_v27  ;;  %2902 = vpow2.f32 %v1416_v20  ;;  %v712_v37 = vpop.f32.mrb[16].mxu0  ;;  %v1256_v5 = vand.u32 2147483647, %v3886_v60  ;;  %v1724_v11 = vsel %vm1619_vm8, 1.0, %v3850_v27 }
 0x105   : > { %v977_v38 = vpop.f32.mrb[16].mxu1  ;;  %v2887_v39 = vpop.eup %2886  ;;  %v1932_v40 = vmul.f32 %v2885_v32, %v1721_v28  ;;  %2904 = vpow2.f32 %v1522_v24  ;;  %v1524_v46 = vmul.f32 1.442695, %v1360_v36  ;;  %v1308_v51 = vsub.f32 0.0, %v1203_v43 }
 0x106   : > { %v2560_v44 = vpop.f32.mrb[17].mxu0  ;;  %v2719_v45 = vpop.f32.mrb[17].mxu1  ;;  %v2038_v42 = vmul.f32 %v2887_v39, %v1774_v33  ;;  %2906 = vrcp.f32 %v1829_v53  ;;  %v3889_v2 = vadd.f32 %v3776_v50, %v712_v37  ;;  %v1361_v17 = vsub.f32 0.0, %v1256_v5 }
 0x107   : > { %v3870_v54 = vpop.eup %2888  ;;  %2141 = vst [vmem:[%s3863_s4] sm:$0xff] %v1932_v40  ;;  %2908 = vpow2.f32 %v1418_v41  ;;  %v1420_v1 = vmul.f32 1.442695, %v1308_v51  ;;  %v3904_v18 = vadd.f32 %v3776_v50, %v977_v38  ;;  %vm1674_vm13 = vcmp.ge.f32.partialorder %v3822_v55, 0.0 }
 0x108   : > { %v3873_v47 = vpop.eup %2890  ;;  %v1882_v49 = vadd.f32 1.0, %v3870_v54  ;;  %2194 = vst [vmem:[%s3863_s4 + $0x1a8] sm:$0xff] %v2038_v42  ;;  %2910 = vpow2.f32 %v1524_v46  ;;  %v717_v61 = vpop.f32.mrb[18].mxu0  ;;  %v1204_v9 = vand.u32 2147483647, %v3889_v2  ;;  %vm1622_vm14 = vcmp.ge.f32.partialorder %v3836_v12, 0.0 }
 0x109   : > { %v2893_v56 = vpop.eup %2892  ;;  %v1830_v58 = vadd.f32 1.0, %v3873_v47  ;;  %v982_v62 = vpop.f32.mrb[18].mxu1  ;;  %v3907_v19 = vadd.f32 %v3776_v50, %v717_v61  ;;  %v1526_v32 = vmul.f32 1.442695, %v1361_v17  ;;  %v1257_v33 = vand.u32 2147483647, %v3904_v18 }
 0x10a   : > { %v2895_v57 = vpop.eup %2894  ;;  %v1934_v0 = vmul.f32 %v2893_v56, %v1722_v48  ;;  %2912 = vrcp.f32 %v1882_v49  ;;  %v2563_v3 = vpop.f32.mrb[19].mxu0  ;;  %v1309_v10 = vsub.f32 0.0, %v1204_v9  ;;  %v3927_v41 = vadd.f32 %v3776_v50, %v982_v62 }
 0x10b   : > { %v2722_v63 = vpop.f32.mrb[19].mxu1  ;;  %v3891_v59 = vpop.eup %2896  ;;  %v2040_v4 = vmul.f32 %v2895_v57, %v1775_v6  ;;  %2914 = vrcp.f32 %v1830_v58  ;;  %v1205_v37 = vand.u32 2147483647, %v3907_v19  ;;  %v1362_v40 = vsub.f32 0.0, %v1257_v33 }
 0x10c   : > { %2142 = vst [vmem:[%s3863_s4 + $0x8] sm:$0xff] %v1934_v0  ;;  %v1883_v7 = vadd.f32 1.0, %v3891_v59  ;;  %2916 = vpow2.f32 %v1420_v1  ;;  %v2899_v15 = vpop.eup %2898  ;;  %v722_v20 = vpop.f32.mrb[20].mxu0  ;;  %v1422_v36 = vmul.f32 1.442695, %v1309_v10  ;;  %v1777_v6 = vsel %vm1672_vm9, 1.0, %v3870_v54 }
 0x10d   : > { %2195 = vst [vmem:[%s3863_s4 + $0x1b0] sm:$0xff] %v2040_v4  ;;  %v987_v21 = vpop.f32.mrb[20].mxu1  ;;  %v2901_v24 = vpop.eup %2900  ;;  %v1936_v25 = vmul.f32 %v2899_v15, %v1723_v16  ;;  %v1310_v27 = vsub.f32 0.0, %v1205_v37  ;;  %v1528_v51 = vmul.f32 1.442695, %v1362_v40  ;;  %v1725_v0 = vsel %vm1620_vm10, 1.0, %v3873_v47 }
 0x10e   : > { %2918 = vrcp.f32 %v1883_v7  ;;  %v2566_v8 = vpop.f32.mrb[21].mxu0  ;;  %v2725_v28 = vpop.f32.mrb[21].mxu1  ;;  %v2042_v31 = vmul.f32 %v2901_v24, %v1776_v26  ;;  %v1258_v1 = vand.u32 2147483647, %v3927_v41  ;;  %v3942_v54 = vadd.f32 %v3776_v50, %v722_v20 }
 0x10f   : > { %v3912_v29 = vpop.eup %2902  ;;  %2143 = vst [vmem:[%s3863_s4 + $0x10] sm:$0xff] %v1936_v25  ;;  %2920 = vpow2.f32 %v1526_v32  ;;  %v1424_v61 = vmul.f32 1.442695, %v1310_v27  ;;  %v3945_v5 = vadd.f32 %v3776_v50, %v987_v21  ;;  %v1778_v16 = vsel %vm1673_vm11, 1.0, %v3891_v59 }
 0x110   : > { %v3916_v53 = vpop.eup %2904  ;;  %v1831_v14 = vadd.f32 1.0, %v3912_v29  ;;  %2196 = vst [vmem:[%s3863_s4 + $0x1b8] sm:$0xff] %v2042_v31  ;;  %v727_v43 = vpop.f32.mrb[22].mxu0  ;;  %v1363_v47 = vsub.f32 0.0, %v1258_v1  ;;  %v1206_v17 = vand.u32 2147483647, %v3942_v54 }
 0x111   : > { %v2907_v38 = vpop.eup %2906  ;;  %v1884_v39 = vadd.f32 1.0, %v3916_v53  ;;  %v992_v44 = vpop.f32.mrb[22].mxu1  ;;  %v1259_v20 = vand.u32 2147483647, %v3945_v5  ;;  %vm1675_vm15 = vcmp.ge.f32.partialorder %v3839_v13, 0.0  ;;  %v3960_v28 = vadd.f32 %v3776_v50, %v727_v43 }
 0x112   : > { %v2909_v45 = vpop.eup %2908  ;;  %v1938_v22 = vmul.f32 %v2907_v38, %v1724_v11  ;;  %2922 = vrcp.f32 %v1831_v14  ;;  %v2569_v42 = vpop.f32.mrb[23].mxu0  ;;  %v1530_v24 = vmul.f32 1.442695, %v1363_v47  ;;  %v1311_v10 = vsub.f32 0.0, %v1206_v17 }
 0x113   : > { %v2728_v46 = vpop.f32.mrb[23].mxu1  ;;  %v2911_v48 = vpop.eup %2910  ;;  %2924 = vrcp.f32 %v1884_v39  ;;  %v1832_v49 = vadd.f32 1.0, %v2909_v45  ;;  %v1364_v8 = vsub.f32 0.0, %v1259_v20  ;;  %v3963_v35 = vadd.f32 %v3776_v50, %v992_v44 }
 0x114   : > { %v2913_v56 = vpop.eup %2912  ;;  %2144 = vst [vmem:[%s3863_s4 + $0x18] sm:$0xff] %v1938_v22  ;;  %v1885_v58 = vadd.f32 1.0, %v2911_v48  ;;  %2926 = vpow2.f32 %v1422_v36  ;;  %v732_v3 = vpop.f32.mrb[24].mxu0  ;;  %v1726_v33 = vsel %vm1621_vm12, 1.0, %v3912_v29  ;;  %v1779_v11 = vsel %vm1674_vm13, 1.0, %v3916_v53 }
 0x115   : > { %v2915_v62 = vpop.eup %2914  ;;  %v2044_v57 = vmul.f32 %v2913_v56, %v1777_v6  ;;  %2928 = vrcp.f32 %v1832_v49  ;;  %v997_v63 = vpop.f32.mrb[24].mxu1  ;;  %v3975_v14 = vadd.f32 %v3776_v50, %v732_v3  ;;  %v1727_v37 = vsel %vm1622_vm14, 1.0, %v2909_v45 }
 0x116   : > { %v3939_v4 = vpop.eup %2916  ;;  %v1940_v23 = vmul.f32 %v2915_v62, %v1725_v0  ;;  %2930 = vrcp.f32 %v1885_v58  ;;  %v2572_v7 = vpop.f32.mrb[25].mxu0  ;;  %v1426_v39 = vmul.f32 1.442695, %v1311_v10  ;;  %v1532_v40 = vmul.f32 1.442695, %v1364_v8 }
 0x117   : > { %v2731_v9 = vpop.f32.mrb[25].mxu1  ;;  %2197 = vst [vmem:[%s3863_s4 + $0x1c0] sm:$0xff] %v2044_v57  ;;  %v1833_v34 = vadd.f32 1.0, %v3939_v4  ;;  %2932 = vpow2.f32 %v1528_v51  ;;  %v1780_v29 = vsel %vm1675_vm15, 1.0, %v2911_v48  ;;  %v1207_v55 = vand.u32 2147483647, %v3960_v28 }
 0x118   : > { %v2919_v15 = vpop.eup %2918  ;;  %2145 = vst [vmem:[%s3863_s4 + $0x20] sm:$0xff] %v1940_v23  ;;  %2934 = vpow2.f32 %v1424_v61  ;;  %v737_v25 = vpop.f32.mrb[26].mxu0  ;;  %v1260_v53 = vand.u32 2147483647, %v3963_v35  ;;  %v1208_v45 = vand.u32 2147483647, %v3975_v14  ;;  %v3990_v27 = vadd.f32 %v3776_v50, %v997_v63 }
 0x119   : > { %v2046_v21 = vmul.f32 %v2919_v15, %v1778_v16  ;;  %2936 = vrcp.f32 %v1833_v34  ;;  %v3957_v26 = vpop.f32.mrb[26].mxu1  ;;  %v2575_v59 = vpop.f32.mrb[27].mxu0  ;;  %v1312_v49 = vsub.f32 0.0, %v1207_v55  ;;  %v3995_v51 = vadd.f32 %v3776_v50, %v737_v25 }
 0x11a   : > { %v2734_v31 = vpop.f32.mrb[27].mxu1  ;;  %v3965_v32 = vpop.eup %2920  ;;  %2938 = vpow2.f32 %v1530_v24  ;;  %v1365_v61 = vsub.f32 0.0, %v1260_v53  ;;  %v1313_v62 = vsub.f32 0.0, %v1208_v45  ;;  %vm1623_vm0 = vcmp.ge.f32.partialorder %v3856_v30, 0.0 }
 0x11b   : > { %2198 = vst [vmem:[%s3863_s4 + $0x1c8] sm:$0xff] %v2046_v21  ;;  %v1886_v38 = vadd.f32 1.0, %v3965_v32  ;;  %v1428_v1 = vmul.f32 1.442695, %v1312_v49  ;;  %v1728_v15 = vsel %vm1623_vm0, 1.0, %v3939_v4  ;;  %vm1676_vm1 = vcmp.ge.f32.partialorder %v3886_v60, 0.0 }
 0x11c   : > { %v2923_v36 = vpop.eup %2922  ;;  %v3984_v44 = vpop.f32.mrb[28].mxu0  ;;  %v1534_v9 = vmul.f32 1.442695, %v1365_v61  ;;  %v1430_v34 = vmul.f32 1.442695, %v1313_v62  ;;  %v4017_v4 = vadd.f32 %v3776_v50, %v3957_v26  ;;  %vm1624_vm2 = vcmp.ge.f32.partialorder %v3889_v2, 0.0 }
 0x11d   : > { %v2925_v43 = vpop.eup %2924  ;;  %v1942_v52 = vmul.f32 %v2923_v36, %v1726_v33  ;;  %2940 = vrcp.f32 %v1886_v38  ;;  %v1007_v42 = vpop.f32.mrb[28].mxu1  ;;  %v1261_v17 = vand.u32 2147483647, %v3990_v27  ;;  %v1209_v30 = vand.u32 2147483647, %v3995_v51 }
 0x11e   : > { %v3986_v22 = vpop.eup %2926  ;;  %v2048_v12 = vmul.f32 %v2925_v43, %v1779_v11  ;;  %v2578_v46 = vpop.f32.mrb[29].mxu0  ;;  %2942 = vpow2.f32 %v1426_v39  ;;  %v1781_v60 = vsel %vm1676_vm1, 1.0, %v3965_v32  ;;  %v1262_v26 = vand.u32 2147483647, %v4017_v4 }
 0x11f   : > { %v2929_v13 = vpop.eup %2928  ;;  %2146 = vst [vmem:[%s3863_s4 + $0x28] sm:$0xff] %v1942_v52  ;;  %v1834_v48 = vadd.f32 1.0, %v3986_v22  ;;  %v2737_v56 = vpop.f32.mrb[29].mxu1  ;;  %2944 = vpow2.f32 %v1532_v40  ;;  %v1366_v10 = vsub.f32 0.0, %v1261_v17  ;;  %v1314_v33 = vsub.f32 0.0, %v1209_v30 }
 0x120   : > { %v2931_v6 = vpop.eup %2930  ;;  %2199 = vst [vmem:[%s3863_s4 + $0x1d0] sm:$0xff] %v2048_v12  ;;  %v1944_v58 = vmul.f32 %v2929_v13, %v1727_v37  ;;  %v747_v3 = vpop.f32.mrb[30].mxu0  ;;  %v4030_v40 = vadd.f32 %v3776_v50, %v3984_v44  ;;  %v4033_v43 = vadd.f32 %v3776_v50, %v1007_v42  ;;  %v1367_v32 = vsub.f32 0.0, %v1262_v26 }
 0x121   : > { %v3998_v57 = vpop.eup %2932  ;;  %v2050_v0 = vmul.f32 %v2931_v6, %v1780_v29  ;;  %2946 = vrcp.f32 %v1834_v48  ;;  %v4000_v63 = vpop.f32.mrb[30].mxu1  ;;  %v1536_v37 = vmul.f32 1.442695, %v1366_v10  ;;  %v1432_v39 = vmul.f32 1.442695, %v1314_v33 }
 0x122   : > { %v4002_v23 = vpop.eup %2934  ;;  %2147 = vst [vmem:[%s3863_s4 + $0x30] sm:$0xff] %v1944_v58  ;;  %v1887_v7 = vadd.f32 1.0, %v3998_v57  ;;  %2948 = vpow2.f32 %v1428_v1  ;;  %v2581_v20 = vpop.f32.mrb[31].mxu0  ;;  %v4038_v55 = vadd.f32 %v3776_v50, %v747_v3  ;;  %vm1677_vm3 = vcmp.ge.f32.partialorder %v3904_v18, 0.0 }
 0x123   : > { %v2937_v47 = vpop.eup %2936  ;;  %2200 = vst [vmem:[%s3863_s4 + $0x1d8] sm:$0xff] %v2050_v0  ;;  %v1835_v16 = vadd.f32 1.0, %v4002_v23  ;;  %v2740_v21 = vpop.f32.mrb[31].mxu1  ;;  %v1210_v42 = vand.u32 2147483647, %v4030_v40  ;;  %v1729_v49 = vsel %vm1624_vm2, 1.0, %v3986_v22  ;;  %v4076_v18 = vadd.f32 %v3776_v50, %v4000_v63 }
 0x124   : > { %v1946_v24 = vmul.f32 %v2937_v47, %v1728_v15  ;;  %2950 = vrcp.f32 %v1887_v7  ;;  %v4012_v25 = vpop.eup %2938  ;;  %v4019_v8 = vpop.f32.mrb[32].mxu0  ;;  %vm1625_vm4 = vcmp.ge.f32.partialorder %v3907_v19, 0.0  ;;  %v1538_v6 = vmul.f32 1.442695, %v1367_v32 }
 0x125   : > { %2952 = vrcp.f32 %v1835_v16  ;;  %v4021_v59 = vpop.f32.mrb[32].mxu1  ;;  %v1888_v31 = vadd.f32 1.0, %v4012_v25  ;;  %v2584_v11 = vpop.f32.mrb[33].mxu0  ;;  %v1315_v61 = vsub.f32 0.0, %v1210_v42  ;;  %v1263_v62 = vand.u32 2147483647, %v4033_v43 }
 0x126   : > { %2148 = vst [vmem:[%s3863_s4 + $0x38] sm:$0xff] %v1946_v24  ;;  %2954 = vpow2.f32 %v1534_v9  ;;  %v2743_v36 = vpop.f32.mrb[33].mxu1  ;;  %vm1678_vm5 = vcmp.ge.f32.partialorder %v3927_v41, 0.0  ;;  %vm1626_vm6 = vcmp.ge.f32.partialorder %v3942_v54, 0.0  ;;  %v1211_v2 = vand.u32 2147483647, %v4038_v55 }
 0x127   : > { %2956 = vpow2.f32 %v1430_v34  ;;  %v2941_v38 = vpop.eup %2940  ;;  %v1782_v7 = vsel %vm1677_vm3, 1.0, %v3998_v57  ;;  %vm1679_vm7 = vcmp.ge.f32.partialorder %v3945_v5, 0.0  ;;  %v1434_v34 = vmul.f32 1.442695, %v1315_v61 }
 0x128   : > { %2958 = vrcp.f32 %v1888_v31  ;;  %v4035_v52 = vpop.eup %2942  ;;  %v2052_v29 = vmul.f32 %v2941_v38, %v1781_v60  ;;  %v4040_v53 = vpop.f32.mrb[34].mxu0  ;;  %v1730_v20 = vsel %vm1625_vm4, 1.0, %v4002_v23  ;;  %v1368_v21 = vsub.f32 0.0, %v1263_v62 }
 0x129   : > { %2960 = vpow2.f32 %v1536_v37  ;;  %v4042_v12 = vpop.f32.mrb[34].mxu1  ;;  %v4044_v45 = vpop.eup %2944  ;;  %v1836_v44 = vadd.f32 1.0, %v4035_v52  ;;  %v1316_v30 = vsub.f32 0.0, %v1211_v2  ;;  %v4082_v10 = vadd.f32 %v3776_v50, %v4019_v8 }
 0x12a   : > { %2962 = vpow2.f32 %v1432_v39  ;;  %v2587_v46 = vpop.f32.mrb[35].mxu0  ;;  %v2746_v13 = vpop.f32.mrb[35].mxu1  ;;  %2201 = vst [vmem:[%s3863_s4 + $0x1e0] sm:$0xff] %v2052_v29  ;;  %v1889_v56 = vadd.f32 1.0, %v4044_v45  ;;  %vm1627_vm8 = vcmp.ge.f32.partialorder %v3960_v28, 0.0  ;;  %v1783_v8 = vsel %vm1678_vm5, 1.0, %v4012_v25 }
 0x12b   : > { %v2947_v48 = vpop.eup %2946  ;;  %2964 = vrcp.f32 %v1836_v44  ;;  %v1540_v23 = vmul.f32 1.442695, %v1368_v21  ;;  %v1264_v60 = vand.u32 2147483647, %v4076_v18  ;;  %v4101_v37 = vadd.f32 %v3776_v50, %v4021_v59 }
 0x12c   : > { %v1948_v58 = vmul.f32 %v2947_v48, %v1729_v49  ;;  %v4056_v0 = vpop.eup %2948  ;;  %2966 = vrcp.f32 %v1889_v56  ;;  %v4061_v22 = vpop.f32.mrb[36].mxu0  ;;  %vm1680_vm9 = vcmp.ge.f32.partialorder %v3963_v35, 0.0  ;;  %v1212_v39 = vand.u32 2147483647, %v4082_v10 }
 0x12d   : > { %v4063_v1 = vpop.f32.mrb[36].mxu1  ;;  %v1837_v9 = vadd.f32 1.0, %v4056_v0  ;;  %2968 = vpow2.f32 %v1538_v6  ;;  %v2590_v47 = vpop.f32.mrb[37].mxu0  ;;  %v1436_v44 = vmul.f32 1.442695, %v1316_v30  ;;  %v1369_v42 = vsub.f32 0.0, %v1264_v60 }
 0x12e   : > { %v2951_v3 = vpop.eup %2950  ;;  %2149 = vst [vmem:[%s3863_s4 + $0x40] sm:$0xff] %v1948_v58  ;;  %v2749_v15 = vpop.f32.mrb[37].mxu1  ;;  %vm1628_vm10 = vcmp.ge.f32.partialorder %v3975_v14, 0.0  ;;  %v1317_v46 = vsub.f32 0.0, %v1212_v39  ;;  %v1731_v56 = vsel %vm1626_vm6, 1.0, %v4035_v52  ;;  %v4128_v47 = vadd.f32 %v3776_v50, %v4040_v53 }
 0x12f   : > { %v2953_v16 = vpop.eup %2952  ;;  %v2054_v17 = vmul.f32 %v2951_v3, %v1782_v7  ;;  %2970 = vrcp.f32 %v1837_v9  ;;  %v1542_v6 = vmul.f32 1.442695, %v1369_v42  ;;  %v1265_v58 = vand.u32 2147483647, %v4101_v37 }
 0x130   : > { %v4078_v57 = vpop.eup %2954  ;;  %v1950_v24 = vmul.f32 %v2953_v16, %v1730_v20  ;;  %2972 = vpow2.f32 %v1434_v34  ;;  %v4089_v63 = vpop.f32.mrb[38].mxu0  ;;  %v1784_v3 = vsel %vm1679_vm7, 1.0, %v4044_v45  ;;  %v1438_v7 = vmul.f32 1.442695, %v1317_v46 }
 0x131   : > { %v4084_v31 = vpop.eup %2956  ;;  %2202 = vst [vmem:[%s3863_s4 + $0x1e8] sm:$0xff] %v2054_v17  ;;  %v1890_v19 = vadd.f32 1.0, %v4078_v57  ;;  %v4091_v33 = vpop.f32.mrb[38].mxu1  ;;  %v1370_v52 = vsub.f32 0.0, %v1265_v58  ;;  %vm1681_vm11 = vcmp.ge.f32.partialorder %v3990_v27, 0.0  ;;  %v4135_v5 = vadd.f32 %v3776_v50, %v4042_v12 }
 0x132   : > { %v2959_v11 = vpop.eup %2958  ;;  %2150 = vst [vmem:[%s3863_s4 + $0x48] sm:$0xff] %v1950_v24  ;;  %v1838_v36 = vadd.f32 1.0, %v4084_v31  ;;  %v2593_v29 = vpop.f32.mrb[39].mxu0  ;;  %v1732_v53 = vsel %vm1627_vm8, 1.0, %v4056_v0  ;;  %v1213_v21 = vand.u32 2147483647, %v4128_v47  ;;  %v4164_v39 = vadd.f32 %v3776_v50, %v4063_v1 }
 0x133   : > { %v4103_v26 = vpop.eup %2960  ;;  %v2056_v38 = vmul.f32 %v2959_v11, %v1783_v8  ;;  %2974 = vrcp.f32 %v1890_v19  ;;  %v2752_v41 = vpop.f32.mrb[39].mxu1  ;;  %v1544_v20 = vmul.f32 1.442695, %v1370_v52  ;;  %vm1629_vm12 = vcmp.ge.f32.partialorder %v3995_v51, 0.0 }
 0x134   : > { %v4107_v25 = vpop.eup %2962  ;;  %2976 = vrcp.f32 %v1838_v36  ;;  %v1891_v32 = vadd.f32 1.0, %v4103_v26  ;;  %v4113_v13 = vpop.f32.mrb[40].mxu0  ;;  %v1266_v19 = vand.u32 2147483647, %v4135_v5  ;;  %v1785_v28 = vsel %vm1680_vm9, 1.0, %v4078_v57 }
 0x135   : > { %2203 = vst [vmem:[%s3863_s4 + $0x1f0] sm:$0xff] %v2056_v38  ;;  %v1839_v59 = vadd.f32 1.0, %v4107_v25  ;;  %2978 = vpow2.f32 %v1540_v23  ;;  %v4115_v48 = vpop.f32.mrb[40].mxu1  ;;  %v2965_v49 = vpop.eup %2964  ;;  %v1318_v11 = vsub.f32 0.0, %v1213_v21  ;;  %v1733_v36 = vsel %vm1628_vm10, 1.0, %v4084_v31 }
 0x136   : > { %2980 = vrcp.f32 %v1891_v32  ;;  %v2596_v61 = vpop.f32.mrb[41].mxu0  ;;  %v2967_v62 = vpop.eup %2966  ;;  %v1952_v2 = vmul.f32 %v2965_v49, %v1731_v56  ;;  %v1371_v60 = vsub.f32 0.0, %v1266_v19  ;;  %v4160_v38 = vadd.f32 %v3776_v50, %v4061_v22 }
 0x137   : > { %2982 = vrcp.f32 %v1839_v59  ;;  %v2755_v9 = vpop.f32.mrb[41].mxu1  ;;  %v4124_v34 = vpop.eup %2968  ;;  %v2058_v54 = vmul.f32 %v2967_v62, %v1784_v3  ;;  %v1440_v32 = vmul.f32 1.442695, %v1318_v11  ;;  %v4172_v14 = vadd.f32 %v3776_v50, %v4089_v63 }
 0x138   : > { %2984 = vpow2.f32 %v1436_v44  ;;  %2151 = vst [vmem:[%s3863_s4 + $0x50] sm:$0xff] %v1952_v2  ;;  %v1892_v15 = vadd.f32 1.0, %v4124_v34  ;;  %v4137_v45 = vpop.f32.mrb[42].mxu0  ;;  %v4139_v16 = vpop.f32.mrb[42].mxu1  ;;  %v1786_v42 = vsel %vm1681_vm11, 1.0, %v4103_v26  ;;  %v1734_v56 = vsel %vm1629_vm12, 1.0, %v4107_v25 }
 0x139   : > { %2986 = vpow2.f32 %v1542_v6  ;;  %v2971_v17 = vpop.eup %2970  ;;  %2204 = vst [vmem:[%s3863_s4 + $0x1f8] sm:$0xff] %v2058_v54  ;;  %v2599_v24 = vpop.f32.mrb[43].mxu0  ;;  %v1546_v59 = vmul.f32 1.442695, %v1371_v60  ;;  %v1214_v46 = vand.u32 2147483647, %v4160_v38  ;;  %v4189_v26 = vadd.f32 %v3776_v50, %v4091_v33 }
 0x13a   : > { %2988 = vpow2.f32 %v1438_v7  ;;  %v4146_v30 = vpop.eup %2972  ;;  %v1954_v12 = vmul.f32 %v2971_v17, %v1732_v53  ;;  %v2758_v23 = vpop.f32.mrb[43].mxu1  ;;  %v1267_v6 = vand.u32 2147483647, %v4164_v39  ;;  %v1215_v7 = vand.u32 2147483647, %v4172_v14 }
 0x13b   : > { %2990 = vrcp.f32 %v1892_v15  ;;  %v1840_v0 = vadd.f32 1.0, %v4146_v30  ;;  %v1319_v27 = vsub.f32 0.0, %v1214_v46  ;;  %vm1682_vm13 = vcmp.ge.f32.partialorder %v4017_v4, 0.0 }
 0x13c   : > { %2992 = vpow2.f32 %v1544_v20  ;;  %2152 = vst [vmem:[%s3863_s4 + $0x58] sm:$0xff] %v1954_v12  ;;  %v4166_v35 = vpop.f32.mrb[44].mxu0  ;;  %v4168_v57 = vpop.f32.mrb[44].mxu1  ;;  %v1372_v3 = vsub.f32 0.0, %v1267_v6  ;;  %vm1630_vm14 = vcmp.ge.f32.partialorder %v4030_v40, 0.0  ;;  %vm1683_vm15 = vcmp.ge.f32.partialorder %v4033_v43, 0.0 }
 0x13d   : > { %v2975_v8 = vpop.eup %2974  ;;  %2994 = vrcp.f32 %v1840_v0  ;;  %v2602_v22 = vpop.f32.mrb[45].mxu0  ;;  %vm1631_vm0 = vcmp.ge.f32.partialorder %v4038_v55, 0.0  ;;  %v1442_v17 = vmul.f32 1.442695, %v1319_v27  ;;  %v1320_v53 = vsub.f32 0.0, %v1215_v7 }
 0x13e   : > { %v2977_v29 = vpop.eup %2976  ;;  %v2060_v41 = vmul.f32 %v2975_v8, %v1785_v28  ;;  %v2761_v31 = vpop.f32.mrb[45].mxu1  ;;  %2996 = vpow2.f32 %v1440_v32  ;;  %v1787_v21 = vsel %vm1682_vm13, 1.0, %v4124_v34  ;;  %v1268_v24 = vand.u32 2147483647, %v4189_v26  ;;  %v4228_v32 = vld [vmem:[%s5166_s2] ss:$0 sm:$0xff] }
 0x13f   : > { %v4174_v44 = vpop.eup %2978  ;;  %v1956_v1 = vmul.f32 %v2977_v29, %v1733_v36  ;;  %2998 = vpow2.f32 %v1546_v59  ;;  %vm1684_vm1 = vcmp.ge.f32.partialorder %v4076_v18, 0.0  ;;  %v1548_v0 = vmul.f32 1.442695, %v1372_v3 }
 0x140   : > { %v2981_v49 = vpop.eup %2980  ;;  %2205 = vst [vmem:[%s3863_s4 + $0x200] sm:$0xff] %v2060_v41  ;;  %v1893_v63 = vadd.f32 1.0, %v4174_v44  ;;  %v4191_v62 = vpop.f32.mrb[46].mxu0  ;;  %v1444_v36 = vmul.f32 1.442695, %v1320_v53  ;;  %v1373_v60 = vsub.f32 0.0, %v1268_v24  ;;  %v4232_v22 = vadd.f32 %v4228_v32, %v4113_v13 }
 0x141   : > { %v2983_v58 = vpop.eup %2982  ;;  %2153 = vst [vmem:[%s3863_s4 + $0x60] sm:$0xff] %v1956_v1  ;;  %v2062_v61 = vmul.f32 %v2981_v49, %v1786_v42  ;;  %v4193_v51 = vpop.f32.mrb[46].mxu1  ;;  %v1735_v41 = vsel %vm1630_vm14, 1.0, %v4146_v30  ;;  %v4236_v31 = vadd.f32 %v4228_v32, %v4115_v48  ;;  %v4240_v40 = vadd.f32 %v4228_v32, %v4137_v45 }
 0x142   : > { %v4195_v25 = vpop.eup %2984  ;;  %v1958_v2 = vmul.f32 %v2983_v58, %v1734_v56  ;;  %3000 = vrcp.f32 %v1893_v63  ;;  %v2605_v9 = vpop.f32.mrb[47].mxu0  ;;  %v1550_v42 = vmul.f32 1.442695, %v1373_v60  ;;  %v1216_v13 = vand.u32 2147483647, %v4232_v22 }
 0x143   : > { %v2764_v54 = vpop.f32.mrb[47].mxu1  ;;  %v4198_v52 = vpop.eup %2986  ;;  %2206 = vst [vmem:[%s3863_s4 + $0x208] sm:$0xff] %v2062_v61  ;;  %v1841_v50 = vadd.f32 1.0, %v4195_v25  ;;  %v1269_v49 = vand.u32 2147483647, %v4236_v31  ;;  %v4252_v48 = vadd.f32 %v4228_v32, %v4139_v16  ;;  %v1788_v45 = vsel %vm1683_vm15, 1.0, %v4174_v44 }
 0x144   : > { %v4205_v33 = vpop.eup %2988  ;;  %2154 = vst [vmem:[%s3863_s4 + $0x68] sm:$0xff] %v1958_v2  ;;  %v1894_v15 = vadd.f32 1.0, %v4198_v52  ;;  %v4213_v12 = vpop.f32.mrb[48].mxu0  ;;  %vm1632_vm2 = vcmp.ge.f32.partialorder %v4082_v10, 0.0  ;;  %v1736_v16 = vsel %vm1631_vm0, 1.0, %v4195_v25  ;;  %v1321_v2 = vsub.f32 0.0, %v1216_v13 }
 0x145   : > { %v2991_v20 = vpop.eup %2990  ;;  %3002 = vrcp.f32 %v1841_v50  ;;  %v1842_v4 = vadd.f32 1.0, %v4205_v33  ;;  %v4215_v19 = vpop.f32.mrb[48].mxu1  ;;  %v1374_v43 = vsub.f32 0.0, %v1269_v49  ;;  %v1217_v44 = vand.u32 2147483647, %v4240_v40 }
 0x146   : > { %v4217_v23 = vpop.eup %2992  ;;  %v2064_v28 = vmul.f32 %v2991_v20, %v1787_v21  ;;  %3004 = vrcp.f32 %v1894_v15  ;;  %v2608_v11 = vpop.f32.mrb[49].mxu0  ;;  %v1789_v54 = vsel %vm1684_vm1, 1.0, %v4198_v52  ;;  %v1446_v55 = vmul.f32 1.442695, %v1321_v2 }
 0x147   : > { %v2767_v8 = vpop.f32.mrb[49].mxu1  ;;  %3006 = vrcp.f32 %v1842_v4  ;;  %v1895_v34 = vadd.f32 1.0, %v4217_v23  ;;  %v2995_v29 = vpop.eup %2994  ;;  %v1270_v25 = vand.u32 2147483647, %v4252_v48  ;;  %v1552_v53 = vmul.f32 1.442695, %v1374_v43 }
 0x148   : > { %2207 = vst [vmem:[%s3863_s4 + $0x210] sm:$0xff] %v2064_v28  ;;  %3008 = vpow2.f32 %v1442_v17  ;;  %v1960_v1 = vmul.f32 %v2995_v29, %v1735_v41  ;;  %v4242_v30 = vpop.f32.mrb[50].mxu0  ;;  %v4244_v59 = vpop.f32.mrb[50].mxu1  ;;  %v1737_v17 = vsel %vm1632_vm2, 1.0, %v4205_v33  ;;  %v1322_v20 = vsub.f32 0.0, %v1217_v44 }
 0x149   : > { %3010 = vrcp.f32 %v1895_v34  ;;  %v4246_v46 = vpop.eup %2996  ;;  %v2611_v56 = vpop.f32.mrb[51].mxu0  ;;  %v4281_v21 = vadd.f32 %v4228_v32, %v4166_v35  ;;  %v1375_v24 = vsub.f32 0.0, %v1270_v25  ;;  %v4285_v28 = vadd.f32 %v4228_v32, %v4168_v57 }
 0x14a   : > { %3012 = vpow2.f32 %v1548_v0  ;;  %v4254_v63 = vpop.eup %2998  ;;  %2155 = vst [vmem:[%s3863_s4 + $0x70] sm:$0xff] %v1960_v1  ;;  %v1843_v6 = vadd.f32 1.0, %v4246_v46  ;;  %v2770_v58 = vpop.f32.mrb[51].mxu1  ;;  %v1448_v33 = vmul.f32 1.442695, %v1322_v20  ;;  %vm1685_vm3 = vcmp.ge.f32.partialorder %v4101_v37, 0.0 }
 0x14b   : > { %3014 = vpow2.f32 %v1444_v36  ;;  %v1896_v27 = vadd.f32 1.0, %v4254_v63  ;;  %v1218_v11 = vand.u32 2147483647, %v4281_v21  ;;  %v1554_v57 = vmul.f32 1.442695, %v1375_v24 }
 0x14c   : > { %v3001_v61 = vpop.eup %3000  ;;  %3016 = vpow2.f32 %v1550_v42  ;;  %v4267_v7 = vpop.f32.mrb[52].mxu0  ;;  %v1271_v60 = vand.u32 2147483647, %v4285_v28  ;;  %v1790_v1 = vsel %vm1685_vm3, 1.0, %v4217_v23  ;;  %vm1633_vm4 = vcmp.ge.f32.partialorder %v4128_v47, 0.0 }
 0x14d   : > { %v2066_v3 = vmul.f32 %v3001_v61, %v1788_v45  ;;  %3018 = vrcp.f32 %v1843_v6  ;;  %v4269_v9 = vpop.f32.mrb[52].mxu1  ;;  %v2614_v50 = vpop.f32.mrb[53].mxu0  ;;  %v1323_v13 = vsub.f32 0.0, %v1218_v11  ;;  %vm1686_vm5 = vcmp.ge.f32.partialorder %v4135_v5, 0.0 }
 0x14e   : > { %3020 = vrcp.f32 %v1896_v27  ;;  %v2773_v18 = vpop.f32.mrb[53].mxu1  ;;  %v1376_v37 = vsub.f32 0.0, %v1271_v60  ;;  %vm1634_vm6 = vcmp.ge.f32.partialorder %v4160_v38, 0.0  ;;  %v1738_v47 = vsel %vm1633_vm4, 1.0, %v4246_v46 }
 0x14f   : > { %v3003_v15 = vpop.eup %3002  ;;  %2208 = vst [vmem:[%s3863_s4 + $0x218] sm:$0xff] %v2066_v3  ;;  %3022 = vpow2.f32 %v1446_v55  ;;  %v1450_v2 = vmul.f32 1.442695, %v1323_v13  ;;  %v4320_v3 = vadd.f32 %v4228_v32, %v4191_v62  ;;  %v4325_v50 = vadd.f32 %v4228_v32, %v4193_v51 }
 0x150   : > { %v3005_v52 = vpop.eup %3004  ;;  %v1962_v4 = vmul.f32 %v3003_v15, %v1736_v16  ;;  %3024 = vpow2.f32 %v1552_v53  ;;  %v4288_v8 = vpop.f32.mrb[54].mxu0  ;;  %v1556_v25 = vmul.f32 1.442695, %v1376_v37  ;;  %vm1687_vm7 = vcmp.ge.f32.partialorder %v4164_v39, 0.0 }
 0x151   : > { %v3007_v0 = vpop.eup %3006  ;;  %v2068_v10 = vmul.f32 %v3005_v52, %v1789_v54  ;;  %v4290_v35 = vpop.f32.mrb[54].mxu1  ;;  %3026 = vpow2.f32 %v1448_v33  ;;  %v1219_v62 = vand.u32 2147483647, %v4320_v3  ;;  %v1272_v20 = vand.u32 2147483647, %v4325_v50 }
 0x152   : > { %v4292_v34 = vpop.eup %3008  ;;  %2156 = vst [vmem:[%s3863_s4 + $0x78] sm:$0xff] %v1962_v4  ;;  %v1964_v36 = vmul.f32 %v3007_v0, %v1737_v17  ;;  %v2617_v29 = vpop.f32.mrb[55].mxu0  ;;  %3028 = vpow2.f32 %v1554_v57  ;;  %v1791_v17 = vsel %vm1686_vm5, 1.0, %v4254_v63  ;;  %v4342_v63 = vadd.f32 %v4228_v32, %v4213_v12 }
 0x153   : > { %v3011_v41 = vpop.eup %3010  ;;  %2209 = vst [vmem:[%s3863_s4 + $0x220] sm:$0xff] %v2068_v10  ;;  %v1844_v42 = vadd.f32 1.0, %v4292_v34  ;;  %v2776_v49 = vpop.f32.mrb[55].mxu1  ;;  %v1324_v5 = vsub.f32 0.0, %v1219_v62  ;;  %v4346_v4 = vadd.f32 %v4228_v32, %v4215_v19  ;;  %vm1635_vm8 = vcmp.ge.f32.partialorder %v4172_v14, 0.0 }
 0x154   : > { %v4300_v56 = vpop.eup %3012  ;;  %2157 = vst [vmem:[%s3863_s4 + $0x80] sm:$0xff] %v1964_v36  ;;  %v2070_v45 = vmul.f32 %v3011_v41, %v1790_v1  ;;  %v4309_v58 = vpop.f32.mrb[56].mxu0  ;;  %v1377_v11 = vsub.f32 0.0, %v1272_v20  ;;  %vm1688_vm9 = vcmp.ge.f32.partialorder %v4189_v26, 0.0  ;;  %v1220_v57 = vand.u32 2147483647, %v4342_v63 }
 0x155   : > { %v4304_v6 = vpop.eup %3014  ;;  %3030 = vrcp.f32 %v1844_v42  ;;  %v1897_v23 = vadd.f32 1.0, %v4300_v56  ;;  %v4311_v61 = vpop.f32.mrb[56].mxu1  ;;  %v1452_v36 = vmul.f32 1.442695, %v1324_v5  ;;  %v1739_v60 = vsel %vm1634_vm6, 1.0, %v4292_v34 }
 0x156   : > { %v4313_v16 = vpop.eup %3016  ;;  %2210 = vst [vmem:[%s3863_s4 + $0x228] sm:$0xff] %v2070_v45  ;;  %v1845_v27 = vadd.f32 1.0, %v4304_v6  ;;  %v2620_v43 = vpop.f32.mrb[57].mxu0  ;;  %vm1636_vm10 = vcmp.ge.f32.partialorder %v4232_v22, 0.0  ;;  %vm1689_vm11 = vcmp.ge.f32.partialorder %v4236_v31, 0.0  ;;  %v1325_v49 = vsub.f32 0.0, %v1220_v57 }
 0x157   : > { %v2779_v44 = vpop.f32.mrb[57].mxu1  ;;  %v3019_v54 = vpop.eup %3018  ;;  %3032 = vrcp.f32 %v1897_v23  ;;  %v1898_v55 = vadd.f32 1.0, %v4313_v16  ;;  %v1273_v29 = vand.u32 2147483647, %v4346_v4  ;;  %v1558_v13 = vmul.f32 1.442695, %v1377_v11 }
 0x158   : > { %v3021_v46 = vpop.eup %3020  ;;  %v1966_v15 = vmul.f32 %v3019_v54, %v1738_v47  ;;  %3034 = vrcp.f32 %v1845_v27  ;;  %v4333_v18 = vpop.f32.mrb[58].mxu0  ;;  %v1792_v37 = vsel %vm1687_vm7, 1.0, %v4300_v56  ;;  %v1740_v43 = vsel %vm1635_vm8, 1.0, %v4304_v6 }
 0x159   : > { %v2072_v53 = vmul.f32 %v3021_v46, %v1791_v17  ;;  %3036 = vrcp.f32 %v1898_v55  ;;  %v4335_v51 = vpop.f32.mrb[58].mxu1  ;;  %v4337_v52 = vpop.eup %3022  ;;  %v1378_v47 = vsub.f32 0.0, %v1273_v29  ;;  %v1454_v44 = vmul.f32 1.442695, %v1325_v49 }
 0x15a   : > { %2158 = vst [vmem:[%s3863_s4 + $0x88] sm:$0xff] %v1966_v15  ;;  %3038 = vpow2.f32 %v1450_v2  ;;  %v2623_v24 = vpop.f32.mrb[59].mxu0  ;;  %v2782_v0 = vpop.f32.mrb[59].mxu1  ;;  %v1846_v33 = vadd.f32 1.0, %v4337_v52  ;;  %v4380_v39 = vadd.f32 %v4228_v32, %v4242_v30  ;;  %v4384_v56 = vadd.f32 %v4228_v32, %v4244_v59 }
 0x15b   : > { %v4348_v10 = vpop.eup %3024  ;;  %2211 = vst [vmem:[%s3863_s4 + $0x230] sm:$0xff] %v2072_v53  ;;  %3040 = vpow2.f32 %v1556_v25  ;;  %v1560_v55 = vmul.f32 1.442695, %v1378_v47  ;;  %v1793_v15 = vsel %vm1688_vm9, 1.0, %v4313_v16  ;;  %v4396_v30 = vadd.f32 %v4228_v32, %v4267_v7 }
 0x15c   : > { %v1899_v12 = vadd.f32 1.0, %v4348_v10  ;;  %v4356_v19 = vpop.eup %3026  ;;  %3042 = vrcp.f32 %v1846_v33  ;;  %v4364_v41 = vpop.f32.mrb[60].mxu0  ;;  %v1221_v20 = vand.u32 2147483647, %v4380_v39  ;;  %v4401_v5 = vadd.f32 %v4228_v32, %v4269_v9 }
 0x15d   : > { %v4366_v1 = vpop.eup %3028  ;;  %v1847_v42 = vadd.f32 1.0, %v4356_v19  ;;  %v4369_v45 = vpop.f32.mrb[60].mxu1  ;;  %vm1637_vm12 = vcmp.ge.f32.partialorder %v4240_v40, 0.0  ;;  %v1274_v7 = vand.u32 2147483647, %v4384_v56  ;;  %vm1690_vm13 = vcmp.ge.f32.partialorder %v4252_v48, 0.0 }
 0x15e   : > { %3044 = vrcp.f32 %v1899_v12  ;;  %v2626_v38 = vpop.f32.mrb[61].mxu0  ;;  %v1900_v23 = vadd.f32 1.0, %v4366_v1  ;;  %v2785_v27 = vpop.f32.mrb[61].mxu1  ;;  %v1326_v33 = vsub.f32 0.0, %v1221_v20  ;;  %v1222_v9 = vand.u32 2147483647, %v4396_v30 }
 0x15f   : > { %v3031_v34 = vpop.eup %3030  ;;  %3046 = vpow2.f32 %v1452_v36  ;;  %v1741_v12 = vsel %vm1636_vm10, 1.0, %v4337_v52  ;;  %v1794_v36 = vsel %vm1689_vm11, 1.0, %v4348_v10  ;;  %v1742_v31 = vsel %vm1637_vm12, 1.0, %v4356_v19 }
 0x160   : > { %v1968_v2 = vmul.f32 %v3031_v34, %v1739_v60  ;;  %3048 = vrcp.f32 %v1847_v42  ;;  %v4386_v25 = vpop.f32.mrb[62].mxu0  ;;  %v4388_v46 = vpop.f32.mrb[62].mxu1  ;;  %v1379_v60 = vsub.f32 0.0, %v1274_v7  ;;  %v1456_v49 = vmul.f32 1.442695, %v1326_v33 }
 0x161   : > { %v3033_v54 = vpop.eup %3032  ;;  %3050 = vrcp.f32 %v1900_v23  ;;  %v2629_v59 = vpop.f32.mrb[63].mxu0  ;;  %v1327_v38 = vsub.f32 0.0, %v1222_v9  ;;  %v1275_v34 = vand.u32 2147483647, %v4401_v5  ;;  %v1795_v40 = vsel %vm1690_vm13, 1.0, %v4366_v1 }
 0x162   : > { %v3035_v14 = vpop.eup %3034  ;;  %2159 = vst [vmem:[%s3863_s4 + $0x90] sm:$0xff] %v1968_v2  ;;  %v2074_v6 = vmul.f32 %v3033_v54, %v1792_v37  ;;  %3052 = vpow2.f32 %v1558_v13  ;;  %v2788_v17 = vpop.f32.mrb[63].mxu1  ;;  %v1562_v10 = vmul.f32 1.442695, %v1379_v60  ;;  %v4448_v48 = vadd.f32 %v4228_v32, %v4290_v35 }
 0x163   : > { %v3037_v62 = vpop.eup %3036  ;;  %v1970_v53 = vmul.f32 %v3035_v14, %v1740_v43  ;;  %3054 = vpow2.f32 %v1454_v44  ;;  %v1458_v27 = vmul.f32 1.442695, %v1327_v38  ;;  %v1380_v2 = vsub.f32 0.0, %v1275_v34 }
 0x164   : > { %v4403_v26 = vpop.eup %3038  ;;  %2212 = vst [vmem:[%s3863_s4 + $0x238] sm:$0xff] %v2074_v6  ;;  %v2076_v16 = vmul.f32 %v3037_v62, %v1793_v15  ;;  %3056 = vpow2.f32 %v1560_v55  ;;  %v4414_v11 = vpop.f32.mrb[64].mxu0  ;;  %v4443_v55 = vadd.f32 %v4228_v32, %v4288_v8  ;;  %vm1638_vm14 = vcmp.ge.f32.partialorder %v4281_v21, 0.0 }
 0x165   : > { %v4408_v24 = vpop.eup %3040  ;;  %2160 = vst [vmem:[%s3863_s4 + $0x98] sm:$0xff] %v1970_v53  ;;  %v1848_v0 = vadd.f32 1.0, %v4403_v26  ;;  %v4424_v29 = vpop.f32.mrb[64].mxu1  ;;  %v1564_v17 = vmul.f32 1.442695, %v1380_v2  ;;  %vm1691_vm15 = vcmp.ge.f32.partialorder %v4285_v28, 0.0 }
 0x166   : > { %2213 = vst [vmem:[%s3863_s4 + $0x240] sm:$0xff] %v2076_v16  ;;  %v1901_v57 = vadd.f32 1.0, %v4408_v24  ;;  %v2632_v42 = vpop.f32.mrb[65].mxu0  ;;  %v3043_v13 = vpop.eup %3042  ;;  %v1223_v53 = vand.u32 2147483647, %v4443_v55  ;;  %vm1639_vm0 = vcmp.ge.f32.partialorder %v4320_v3, 0.0 }
 0x167   : > { %3058 = vrcp.f32 %v1848_v0  ;;  %v2791_v37 = vpop.f32.mrb[65].mxu1  ;;  %v1972_v52 = vmul.f32 %v3043_v13, %v1741_v12  ;;  %v1276_v16 = vand.u32 2147483647, %v4448_v48  ;;  %vm1692_vm1 = vcmp.ge.f32.partialorder %v4325_v50, 0.0 }
 0x168   : > { %v3045_v22 = vpop.eup %3044  ;;  %3060 = vrcp.f32 %v1901_v57  ;;  %v4432_v43 = vpop.f32.mrb[66].mxu0  ;;  %v1328_v9 = vsub.f32 0.0, %v1223_v53  ;;  %v4473_v13 = vadd.f32 %v4228_v32, %v4309_v58  ;;  %v1743_v34 = vsel %vm1638_vm14, 1.0, %v4403_v26 }
 0x169   : > { %v4430_v23 = vpop.eup %3046  ;;  %v2078_v47 = vmul.f32 %v3045_v22, %v1794_v36  ;;  %3062 = vpow2.f32 %v1456_v49  ;;  %v4434_v44 = vpop.f32.mrb[66].mxu1  ;;  %2161 = vst [vmem:[%s3863_s4 + $0xa0] sm:$0xff] %v1972_v52  ;;  %v1381_v60 = vsub.f32 0.0, %v1276_v16  ;;  %v4477_v49 = vadd.f32 %v4228_v32, %v4311_v61 }
 0x16a   : > { %v3049_v54 = vpop.eup %3048  ;;  %v1849_v19 = vadd.f32 1.0, %v4430_v23  ;;  %3064 = vpow2.f32 %v1562_v10  ;;  %v2635_v14 = vpop.f32.mrb[67].mxu0  ;;  %v1460_v42 = vmul.f32 1.442695, %v1328_v9  ;;  %v4484_v22 = vadd.f32 %v4228_v32, %v4333_v18 }
 0x16b   : > { %v2794_v6 = vpop.f32.mrb[67].mxu1  ;;  %v3051_v15 = vpop.eup %3050  ;;  %2214 = vst [vmem:[%s3863_s4 + $0x248] sm:$0xff] %v2078_v47  ;;  %v1974_v59 = vmul.f32 %v3049_v54, %v1742_v31  ;;  %3066 = vpow2.f32 %v1458_v27  ;;  %v1566_v37 = vmul.f32 1.442695, %v1381_v60  ;;  %v1796_v61 = vsel %vm1691_vm15, 1.0, %v4408_v24 }
 0x16c   : > { %v4450_v1 = vpop.eup %3052  ;;  %v2080_v62 = vmul.f32 %v3051_v15, %v1795_v40  ;;  %3068 = vrcp.f32 %v1849_v19  ;;  %v4459_v7 = vpop.f32.mrb[68].mxu0  ;;  %v1224_v21 = vand.u32 2147483647, %v4473_v13  ;;  %vm1640_vm2 = vcmp.ge.f32.partialorder %v4342_v63, 0.0 }
 0x16d   : > { %v4453_v8 = vpop.eup %3054  ;;  %2162 = vst [vmem:[%s3863_s4 + $0xa8] sm:$0xff] %v1974_v59  ;;  %v1902_v20 = vadd.f32 1.0, %v4450_v1  ;;  %3070 = vpow2.f32 %v1564_v17  ;;  %v4461_v35 = vpop.f32.mrb[68].mxu1  ;;  %v1277_v2 = vand.u32 2147483647, %v4477_v49  ;;  %v4505_v19 = vadd.f32 %v4228_v32, %v4335_v51 }
 0x16e   : > { %v4463_v0 = vpop.eup %3056  ;;  %2215 = vst [vmem:[%s3863_s4 + $0x250] sm:$0xff] %v2080_v62  ;;  %v1850_v33 = vadd.f32 1.0, %v4453_v8  ;;  %v2638_v12 = vpop.f32.mrb[69].mxu0  ;;  %v1329_v24 = vsub.f32 0.0, %v1224_v21  ;;  %v1225_v40 = vand.u32 2147483647, %v4484_v22  ;;  %v4542_v63 = vadd.f32 %v4228_v32, %v4369_v45 }
 0x16f   : > { %v2797_v36 = vpop.f32.mrb[69].mxu1  ;;  %3072 = vrcp.f32 %v1902_v20  ;;  %v1903_v57 = vadd.f32 1.0, %v4463_v0  ;;  %vm1693_vm3 = vcmp.ge.f32.partialorder %v4346_v4, 0.0  ;;  %vm1641_vm4 = vcmp.ge.f32.partialorder %v4380_v39, 0.0 }
 0x170   : > { %3074 = vrcp.f32 %v1850_v33  ;;  %v4486_v52 = vpop.f32.mrb[70].mxu0  ;;  %v4488_v58 = vpop.f32.mrb[70].mxu1  ;;  %v1382_v15 = vsub.f32 0.0, %v1277_v2  ;;  %v1744_v51 = vsel %vm1639_vm0, 1.0, %v4430_v23  ;;  %v1462_v20 = vmul.f32 1.442695, %v1329_v24 }
 0x171   : > { %v3059_v38 = vpop.eup %3058  ;;  %3076 = vrcp.f32 %v1903_v57  ;;  %v2641_v26 = vpop.f32.mrb[71].mxu0  ;;  %v1330_v57 = vsub.f32 0.0, %v1225_v40  ;;  %v1797_v60 = vsel %vm1692_vm1, 1.0, %v4450_v1  ;;  %v1278_v23 = vand.u32 2147483647, %v4505_v19 }
 0x172   : > { %v3061_v31 = vpop.eup %3060  ;;  %v1976_v10 = vmul.f32 %v3059_v38, %v1743_v34  ;;  %3078 = vpow2.f32 %v1460_v42  ;;  %v2800_v47 = vpop.f32.mrb[71].mxu1  ;;  %v1568_v36 = vmul.f32 1.442695, %v1382_v15  ;;  %v1745_v38 = vsel %vm1640_vm2, 1.0, %v4453_v8 }
 0x173   : > { %v4494_v27 = vpop.eup %3062  ;;  %v2082_v18 = vmul.f32 %v3061_v31, %v1796_v61  ;;  %3080 = vpow2.f32 %v1566_v37  ;;  %v1464_v34 = vmul.f32 1.442695, %v1330_v57  ;;  %v4534_v37 = vadd.f32 %v4228_v32, %v4364_v41 }
 0x174   : > { %v4498_v54 = vpop.eup %3064  ;;  %2163 = vst [vmem:[%s3863_s4 + $0xb0] sm:$0xff] %v1976_v10  ;;  %v1851_v28 = vadd.f32 1.0, %v4494_v27  ;;  %v4513_v59 = vpop.f32.mrb[72].mxu0  ;;  %v1383_v61 = vsub.f32 0.0, %v1278_v23  ;;  %v1798_v41 = vsel %vm1693_vm3, 1.0, %v4463_v0  ;;  %vm1694_vm5 = vcmp.ge.f32.partialorder %v4384_v56, 0.0 }
 0x175   : > { %v4507_v14 = vpop.eup %3066  ;;  %2216 = vst [vmem:[%s3863_s4 + $0x258] sm:$0xff] %v2082_v18  ;;  %v1904_v6 = vadd.f32 1.0, %v4498_v54  ;;  %v4515_v17 = vpop.f32.mrb[72].mxu1  ;;  %v1226_v18 = vand.u32 2147483647, %v4534_v37  ;;  %vm1642_vm6 = vcmp.ge.f32.partialorder %v4396_v30, 0.0 }
 0x176   : > { %v3069_v62 = vpop.eup %3068  ;;  %3082 = vrcp.f32 %v1851_v28  ;;  %v1852_v53 = vadd.f32 1.0, %v4507_v14  ;;  %v2644_v16 = vpop.f32.mrb[73].mxu0  ;;  %v1570_v24 = vmul.f32 1.442695, %v1383_v61  ;;  %v1279_v45 = vand.u32 2147483647, %v4542_v63 }
 0x177   : > { %v2803_v33 = vpop.f32.mrb[73].mxu1  ;;  %v4521_v9 = vpop.eup %3070  ;;  %v1978_v12 = vmul.f32 %v3069_v62, %v1744_v51  ;;  %3084 = vrcp.f32 %v1904_v6  ;;  %v1331_v0 = vsub.f32 0.0, %v1226_v18  ;;  %v1746_v62 = vsel %vm1641_vm4, 1.0, %v4494_v27 }
 0x178   : > { %3086 = vrcp.f32 %v1852_v53  ;;  %v1905_v3 = vadd.f32 1.0, %v4521_v9  ;;  %v4536_v50 = vpop.f32.mrb[74].mxu0  ;;  %v4538_v1 = vpop.f32.mrb[74].mxu1  ;;  %v1384_v53 = vsub.f32 0.0, %v1279_v45  ;;  %v4577_v27 = vadd.f32 %v4228_v32, %v4414_v11 }
 0x179   : > { %v3073_v42 = vpop.eup %3072  ;;  %2164 = vst [vmem:[%s3863_s4 + $0xb8] sm:$0xff] %v1978_v12  ;;  %3088 = vpow2.f32 %v1462_v20  ;;  %v2647_v8 = vpop.f32.mrb[75].mxu0  ;;  %v1466_v33 = vmul.f32 1.442695, %v1331_v0  ;;  %v4569_v12 = vadd.f32 %v4228_v32, %v4386_v25  ;;  %v1799_v25 = vsel %vm1694_vm5, 1.0, %v4498_v54 }
 0x17a   : > { %v3075_v31 = vpop.eup %3074  ;;  %v2084_v10 = vmul.f32 %v3073_v42, %v1797_v60  ;;  %3090 = vrcp.f32 %v1905_v3  ;;  %v2806_v21 = vpop.f32.mrb[75].mxu1  ;;  %v1572_v39 = vmul.f32 1.442695, %v1384_v53  ;;  %v4581_v60 = vadd.f32 %v4228_v32, %v4424_v29 }
 0x17b   : > { %v3077_v26 = vpop.eup %3076  ;;  %v1980_v47 = vmul.f32 %v3075_v31, %v1745_v38  ;;  %3092 = vpow2.f32 %v1568_v36  ;;  %v4573_v36 = vadd.f32 %v4228_v32, %v4388_v46  ;;  %v1227_v46 = vand.u32 2147483647, %v4569_v12 }
 0x17c   : > { %v4548_v2 = vpop.eup %3078  ;;  %2217 = vst [vmem:[%s3863_s4 + $0x260] sm:$0xff] %v2084_v10  ;;  %v2086_v28 = vmul.f32 %v3077_v26, %v1798_v41  ;;  %3094 = vpow2.f32 %v1464_v34  ;;  %v4558_v6 = vpop.f32.mrb[76].mxu0  ;;  %v1747_v29 = vsel %vm1642_vm6, 1.0, %v4507_v14  ;;  %vm1695_vm7 = vcmp.ge.f32.partialorder %v4401_v5, 0.0 }
 0x17d   : > { %v4552_v40 = vpop.eup %3080  ;;  %2165 = vst [vmem:[%s3863_s4 + $0xc0] sm:$0xff] %v1980_v47  ;;  %v1853_v4 = vadd.f32 1.0, %v4548_v2  ;;  %v4560_v15 = vpop.f32.mrb[76].mxu1  ;;  %3096 = vpow2.f32 %v1570_v24  ;;  %v1280_v31 = vand.u32 2147483647, %v4573_v36  ;;  %v1332_v8 = vsub.f32 0.0, %v1227_v46 }
 0x17e   : > { %2218 = vst [vmem:[%s3863_s4 + $0x268] sm:$0xff] %v2086_v28  ;;  %v1906_v51 = vadd.f32 1.0, %v4552_v40  ;;  %v2650_v20 = vpop.f32.mrb[77].mxu0  ;;  %v2809_v16 = vpop.f32.mrb[77].mxu1  ;;  %v1228_v21 = vand.u32 2147483647, %v4577_v27  ;;  %v4635_v46 = vadd.f32 %v4228_v32, %v4459_v7 }
 0x17f   : > { %3098 = vrcp.f32 %v1853_v4  ;;  %v1800_v30 = vsel %vm1695_vm7, 1.0, %v4521_v9  ;;  %v1385_v47 = vsub.f32 0.0, %v1280_v31  ;;  %v1281_v41 = vand.u32 2147483647, %v4581_v60 }
 0x180   : > { %v3083_v57 = vpop.eup %3082  ;;  %3100 = vrcp.f32 %v1906_v51  ;;  %v4587_v42 = vpop.f32.mrb[78].mxu0  ;;  %vm1643_vm8 = vcmp.ge.f32.partialorder %v4443_v55, 0.0  ;;  %v1468_v5 = vmul.f32 1.442695, %v1332_v8  ;;  %v1333_v24 = vsub.f32 0.0, %v1228_v21 }
 0x181   : > { %v3085_v3 = vpop.eup %3084  ;;  %v1982_v23 = vmul.f32 %v3083_v57, %v1746_v62  ;;  %3102 = vpow2.f32 %v1466_v33  ;;  %v4589_v38 = vpop.f32.mrb[78].mxu1  ;;  %vm1696_vm9 = vcmp.ge.f32.partialorder %v4448_v48, 0.0  ;;  %v1574_v62 = vmul.f32 1.442695, %v1385_v47 }
 0x182   : > { %v3087_v11 = vpop.eup %3086  ;;  %v2088_v34 = vmul.f32 %v3085_v3, %v1799_v25  ;;  %3104 = vpow2.f32 %v1572_v39  ;;  %v2653_v56 = vpop.f32.mrb[79].mxu0  ;;  %v1748_v20 = vsel %vm1643_vm8, 1.0, %v4548_v2  ;;  %v1470_v16 = vmul.f32 1.442695, %v1333_v24 }
 0x183   : > { %v2812_v54 = vpop.f32.mrb[79].mxu1  ;;  %v4595_v10 = vpop.eup %3088  ;;  %2166 = vst [vmem:[%s3863_s4 + $0xc8] sm:$0xff] %v1982_v23  ;;  %v1984_v61 = vmul.f32 %v3087_v11, %v1747_v29  ;;  %v1386_v57 = vsub.f32 0.0, %v1281_v41  ;;  %v4623_v39 = vadd.f32 %v4228_v32, %v4432_v43  ;;  %v4627_v3 = vadd.f32 %v4228_v32, %v4434_v44 }
 0x184   : > { %v3091_v26 = vpop.eup %3090  ;;  %2219 = vst [vmem:[%s3863_s4 + $0x270] sm:$0xff] %v2088_v34  ;;  %v1854_v14 = vadd.f32 1.0, %v4595_v10  ;;  %v4608_v45 = vpop.f32.mrb[80].mxu0  ;;  %v1801_v2 = vsel %vm1696_vm9, 1.0, %v4552_v40  ;;  %vm1644_vm10 = vcmp.ge.f32.partialorder %v4473_v13, 0.0  ;;  %vm1697_vm11 = vcmp.ge.f32.partialorder %v4477_v49, 0.0 }
 0x185   : > { %v4604_v18 = vpop.eup %3092  ;;  %2167 = vst [vmem:[%s3863_s4 + $0xd0] sm:$0xff] %v1984_v61  ;;  %v2090_v28 = vmul.f32 %v3091_v26, %v1800_v30  ;;  %v4610_v4 = vpop.f32.mrb[80].mxu1  ;;  %v1576_v29 = vmul.f32 1.442695, %v1386_v57  ;;  %v1229_v48 = vand.u32 2147483647, %v4623_v39 }
 0x186   : > { %v4612_v0 = vpop.eup %3094  ;;  %3106 = vrcp.f32 %v1854_v14  ;;  %v1907_v9 = vadd.f32 1.0, %v4604_v18  ;;  %v2656_v51 = vpop.f32.mrb[81].mxu0  ;;  %v1282_v7 = vand.u32 2147483647, %v4627_v3  ;;  %vm1645_vm12 = vcmp.ge.f32.partialorder %v4484_v22, 0.0 }
 0x187   : > { %v2815_v53 = vpop.f32.mrb[81].mxu1  ;;  %2220 = vst [vmem:[%s3863_s4 + $0x278] sm:$0xff] %v2090_v28  ;;  %v1855_v55 = vadd.f32 1.0, %v4612_v0  ;;  %3108 = vpow2.f32 %v1468_v5  ;;  %v4619_v33 = vpop.eup %3096  ;;  %v1334_v21 = vsub.f32 0.0, %v1229_v48  ;;  %vm1698_vm13 = vcmp.ge.f32.partialorder %v4505_v19, 0.0 }
 0x188   : > { %3110 = vrcp.f32 %v1907_v9  ;;  %v1908_v25 = vadd.f32 1.0, %v4619_v33  ;;  %v4637_v11 = vpop.f32.mrb[82].mxu0  ;;  %v4639_v43 = vpop.f32.mrb[82].mxu1  ;;  %v1387_v30 = vsub.f32 0.0, %v1282_v7  ;;  %v1230_v28 = vand.u32 2147483647, %v4635_v46 }
 0x189   : > { %v3099_v23 = vpop.eup %3098  ;;  %3112 = vrcp.f32 %v1855_v55  ;;  %v2659_v40 = vpop.f32.mrb[83].mxu0  ;;  %v1472_v41 = vmul.f32 1.442695, %v1334_v21  ;;  %v1749_v24 = vsel %vm1644_vm10, 1.0, %v4595_v10  ;;  %v4669_v55 = vadd.f32 %v4228_v32, %v4486_v52 }
 0x18a   : > { %v3101_v34 = vpop.eup %3100  ;;  %v1986_v44 = vmul.f32 %v3099_v23, %v1748_v20  ;;  %3114 = vpow2.f32 %v1574_v62  ;;  %v2818_v31 = vpop.f32.mrb[83].mxu1  ;;  %v1578_v9 = vmul.f32 1.442695, %v1387_v30  ;;  %v4665_v62 = vadd.f32 %v4228_v32, %v4461_v35 }
 0x18b   : > { %v4642_v56 = vpop.eup %3102  ;;  %v2092_v54 = vmul.f32 %v3101_v34, %v1801_v2  ;;  %3116 = vrcp.f32 %v1908_v25  ;;  %v1335_v20 = vsub.f32 0.0, %v1230_v28  ;;  %vm1646_vm14 = vcmp.ge.f32.partialorder %v4534_v37, 0.0 }
 0x18c   : > { %v4646_v61 = vpop.eup %3104  ;;  %2168 = vst [vmem:[%s3863_s4 + $0xd8] sm:$0xff] %v1986_v44  ;;  %v1856_v8 = vadd.f32 1.0, %v4642_v56  ;;  %3118 = vpow2.f32 %v1470_v16  ;;  %v4654_v14 = vpop.f32.mrb[84].mxu0  ;;  %v4673_v16 = vadd.f32 %v4228_v32, %v4488_v58  ;;  %v1283_v35 = vand.u32 2147483647, %v4665_v62 }
 0x18d   : > { %2221 = vst [vmem:[%s3863_s4 + $0x280] sm:$0xff] %v2092_v54  ;;  %v1909_v26 = vadd.f32 1.0, %v4646_v61  ;;  %3120 = vpow2.f32 %v1576_v29  ;;  %v4656_v47 = vpop.f32.mrb[84].mxu1  ;;  %v2662_v5 = vpop.f32.mrb[85].mxu0  ;;  %v1802_v52 = vsel %vm1697_vm11, 1.0, %v4604_v18  ;;  %v1750_v48 = vsel %vm1645_vm12, 1.0, %v4612_v0 }
 0x18e   : > { %3122 = vrcp.f32 %v1856_v8  ;;  %v2821_v51 = vpop.f32.mrb[85].mxu1  ;;  %v1474_v25 = vmul.f32 1.442695, %v1335_v20  ;;  %v1231_v34 = vand.u32 2147483647, %v4669_v55  ;;  %v1388_v40 = vsub.f32 0.0, %v1283_v35 }
 0x18f   : > { %3124 = vrcp.f32 %v1909_v26  ;;  %v1284_v31 = vand.u32 2147483647, %v4673_v16  ;;  %vm1699_vm15 = vcmp.ge.f32.partialorder %v4542_v63, 0.0  ;;  %v1803_v22 = vsel %vm1698_vm13, 1.0, %v4619_v33 }
 0x190   : > { %v3107_v53 = vpop.eup %3106  ;;  %3126 = vpow2.f32 %v1472_v41  ;;  %v4679_v57 = vpop.f32.mrb[86].mxu0  ;;  %v1336_v8 = vsub.f32 0.0, %v1231_v34  ;;  %v1580_v26 = vmul.f32 1.442695, %v1388_v40  ;;  %vm1647_vm0 = vcmp.ge.f32.partialorder %v4569_v12, 0.0 }
 0x191   : > { %v4675_v13 = vpop.eup %3108  ;;  %v1988_v10 = vmul.f32 %v3107_v53, %v1749_v24  ;;  %3128 = vpow2.f32 %v1578_v9  ;;  %v4681_v23 = vpop.f32.mrb[86].mxu1  ;;  %v1389_v24 = vsub.f32 0.0, %v1284_v31  ;;  %v4711_v19 = vadd.f32 %v4228_v32, %v4513_v59 }
 0x192   : > { %v3111_v2 = vpop.eup %3110  ;;  %v1857_v58 = vadd.f32 1.0, %v4675_v13  ;;  %v2665_v54 = vpop.f32.mrb[87].mxu0  ;;  %v1476_v20 = vmul.f32 1.442695, %v1336_v8  ;;  %v1804_v34 = vsel %vm1699_vm15, 1.0, %v4646_v61  ;;  %vm1700_vm1 = vcmp.ge.f32.partialorder %v4573_v36, 0.0 }
 0x193   : > { %v3113_v44 = vpop.eup %3112  ;;  %2169 = vst [vmem:[%s3863_s4 + $0xe0] sm:$0xff] %v1988_v10  ;;  %v2094_v29 = vmul.f32 %v3111_v2, %v1802_v52  ;;  %v2824_v49 = vpop.f32.mrb[87].mxu1  ;;  %v4718_v10 = vadd.f32 %v4228_v32, %v4515_v17  ;;  %v1751_v2 = vsel %vm1646_vm14, 1.0, %v4642_v56  ;;  %v1582_v52 = vmul.f32 1.442695, %v1389_v24 }
 0x194   : > { %v4693_v18 = vpop.eup %3114  ;;  %v1990_v7 = vmul.f32 %v3113_v44, %v1750_v48  ;;  %3130 = vrcp.f32 %v1857_v58  ;;  %v4701_v30 = vpop.f32.mrb[88].mxu0  ;;  %v1232_v32 = vand.u32 2147483647, %v4711_v19  ;;  %vm1648_vm2 = vcmp.ge.f32.partialorder %v4577_v27, 0.0 }
 0x195   : > { %v3117_v21 = vpop.eup %3116  ;;  %2222 = vst [vmem:[%s3863_s4 + $0x288] sm:$0xff] %v2094_v29  ;;  %v1910_v0 = vadd.f32 1.0, %v4693_v18  ;;  %3132 = vpow2.f32 %v1474_v25  ;;  %v4703_v41 = vpop.f32.mrb[88].mxu1  ;;  %v1285_v29 = vand.u32 2147483647, %v4718_v10  ;;  %v1752_v54 = vsel %vm1647_vm0, 1.0, %v4675_v13 }
 0x196   : > { %v4705_v28 = vpop.eup %3118  ;;  %2170 = vst [vmem:[%s3863_s4 + $0xe8] sm:$0xff] %v1990_v7  ;;  %v2096_v5 = vmul.f32 %v3117_v21, %v1803_v22  ;;  %v2668_v33 = vpop.f32.mrb[89].mxu0  ;;  %v1337_v31 = vsub.f32 0.0, %v1232_v32  ;;  %v4750_v21 = vld [vmem:[%s5166_s2] ss:$0 sm:$0xff]  ;;  %vm1701_vm3 = vcmp.ge.f32.partialorder %v4581_v60, 0.0 }
 0x197   : > { %v2827_v9 = vpop.f32.mrb[89].mxu1  ;;  %v4713_v51 = vpop.eup %3120  ;;  %3134 = vrcp.f32 %v1910_v0  ;;  %v1858_v53 = vadd.f32 1.0, %v4705_v28  ;;  %v1390_v7 = vsub.f32 0.0, %v1285_v29  ;;  %v4754_v22 = vadd.f32 %v4750_v21, %v4536_v50 }
 0x198   : > { %v3123_v35 = vpop.eup %3122  ;;  %2223 = vst [vmem:[%s3863_s4 + $0x290] sm:$0xff] %v2096_v5  ;;  %v1911_v59 = vadd.f32 1.0, %v4713_v51  ;;  %3136 = vpow2.f32 %v1580_v26  ;;  %v4729_v17 = vpop.f32.mrb[90].mxu0  ;;  %v1478_v8 = vmul.f32 1.442695, %v1337_v31  ;;  %v4758_v0 = vadd.f32 %v4750_v21, %v4538_v1 }
 0x199   : > { %v3125_v58 = vpop.eup %3124  ;;  %v1992_v25 = vmul.f32 %v3123_v35, %v1751_v2  ;;  %3138 = vrcp.f32 %v1858_v53  ;;  %v4731_v44 = vpop.f32.mrb[90].mxu1  ;;  %v1584_v5 = vmul.f32 1.442695, %v1390_v7  ;;  %v4766_v24 = vadd.f32 %v4750_v21, %v4558_v6 }
 0x19a   : > { %v4733_v37 = vpop.eup %3126  ;;  %v2098_v56 = vmul.f32 %v3125_v58, %v1804_v34  ;;  %3140 = vrcp.f32 %v1911_v59  ;;  %v2671_v48 = vpop.f32.mrb[91].mxu0  ;;  %v4770_v50 = vadd.f32 %v4750_v21, %v4560_v15  ;;  %vm1649_vm4 = vcmp.ge.f32.partialorder %v4623_v39, 0.0 }
 0x19b   : > { %v2830_v40 = vpop.f32.mrb[91].mxu1  ;;  %v4737_v63 = vpop.eup %3128  ;;  %2171 = vst [vmem:[%s3863_s4 + $0xf0] sm:$0xff] %v1992_v25  ;;  %v1859_v61 = vadd.f32 1.0, %v4733_v37  ;;  %3142 = vpow2.f32 %v1476_v20  ;;  %v1233_v20 = vand.u32 2147483647, %v4754_v22  ;;  %v1805_v15 = vsel %vm1700_vm1, 1.0, %v4693_v18 }
 0x19c   : > { %2224 = vst [vmem:[%s3863_s4 + $0x298] sm:$0xff] %v2098_v56  ;;  %v1912_v49 = vadd.f32 1.0, %v4737_v63  ;;  %3144 = vpow2.f32 %v1582_v52  ;;  %v4760_v12 = vpop.f32.mrb[92].mxu0  ;;  %v4762_v13 = vpop.f32.mrb[92].mxu1  ;;  %v1286_v6 = vand.u32 2147483647, %v4758_v0 }
 0x19d   : > { %3146 = vrcp.f32 %v1859_v61  ;;  %v2674_v33 = vpop.f32.mrb[93].mxu0  ;;  %v2833_v9 = vpop.f32.mrb[93].mxu1  ;;  %vm1702_vm5 = vcmp.ge.f32.partialorder %v4627_v3, 0.0  ;;  %v1338_v59 = vsub.f32 0.0, %v1233_v20  ;;  %v1234_v52 = vand.u32 2147483647, %v4766_v24 }
 0x19e   : > { %v3131_v26 = vpop.eup %3130  ;;  %3148 = vrcp.f32 %v1912_v49  ;;  %v1391_v32 = vsub.f32 0.0, %v1286_v6  ;;  %v1287_v56 = vand.u32 2147483647, %v4770_v50  ;;  %v1753_v18 = vsel %vm1648_vm2, 1.0, %v4705_v28 }
 0x19f   : > { %v4772_v1 = vpop.eup %3132  ;;  %v1994_v53 = vmul.f32 %v3131_v26, %v1752_v54  ;;  %3150 = vpow2.f32 %v1478_v8  ;;  %v1480_v61 = vmul.f32 1.442695, %v1338_v59  ;;  %v1339_v31 = vsub.f32 0.0, %v1234_v52 }
 0x1a0   : > { %v1860_v35 = vadd.f32 1.0, %v4772_v1  ;;  %3152 = vpow2.f32 %v1584_v5  ;;  %v4785_v58 = vpop.f32.mrb[94].mxu0  ;;  %v4790_v29 = vpop.f32.mrb[94].mxu1  ;;  %v1806_v8 = vsel %vm1701_vm3, 1.0, %v4713_v51  ;;  %v1586_v26 = vmul.f32 1.442695, %v1391_v32 }
 0x1a1   : > { %v3135_v2 = vpop.eup %3134  ;;  %2172 = vst [vmem:[%s3863_s4 + $0xf8] sm:$0xff] %v1994_v53  ;;  %v2677_v48 = vpop.f32.mrb[95].mxu0  ;;  %v1392_v5 = vsub.f32 0.0, %v1287_v56  ;;  %vm1650_vm6 = vcmp.ge.f32.partialorder %v4635_v46, 0.0  ;;  %v4805_v28 = vadd.f32 %v4750_v21, %v4587_v42  ;;  %v1754_v60 = vsel %vm1649_vm4, 1.0, %v4733_v37 }
 0x1a2   : > { %v4787_v25 = vpop.eup %3136  ;;  %v2100_v34 = vmul.f32 %v3135_v2, %v1805_v15  ;;  %3154 = vrcp.f32 %v1860_v35  ;;  %v2836_v54 = vpop.f32.mrb[95].mxu1  ;;  %v1482_v35 = vmul.f32 1.442695, %v1339_v31  ;;  %v1807_v39 = vsel %vm1702_vm5, 1.0, %v4737_v63 }
 0x1a3   : > { %v3139_v36 = vpop.eup %3138  ;;  %v1913_v40 = vadd.f32 1.0, %v4787_v25  ;;  %v1588_v59 = vmul.f32 1.442695, %v1392_v5  ;;  %v1235_v52 = vand.u32 2147483647, %v4805_v28  ;;  %v4826_v37 = vadd.f32 %v4750_v21, %v4589_v38 }
 0x1a4   : > { %v3141_v49 = vpop.eup %3140  ;;  %2225 = vst [vmem:[%s3863_s4 + $0x2a0] sm:$0xff] %v2100_v34  ;;  %v1996_v7 = vmul.f32 %v3139_v36, %v1753_v18  ;;  %v4807_v9 = vpop.f32.mrb[96].mxu0  ;;  %v4832_v18 = vadd.f32 %v4750_v21, %v4608_v45  ;;  %vm1703_vm7 = vcmp.ge.f32.partialorder %v4665_v62, 0.0  ;;  %vm1651_vm8 = vcmp.ge.f32.partialorder %v4669_v55, 0.0 }
 0x1a5   : > { %v4800_v33 = vpop.eup %3142  ;;  %v2102_v27 = vmul.f32 %v3141_v49, %v1806_v8  ;;  %3156 = vrcp.f32 %v1913_v40  ;;  %v4809_v53 = vpop.f32.mrb[96].mxu1  ;;  %v1340_v36 = vsub.f32 0.0, %v1235_v52  ;;  %v1288_v63 = vand.u32 2147483647, %v4826_v37 }
 0x1a6   : > { %v4811_v20 = vpop.eup %3144  ;;  %2173 = vst [vmem:[%s3863_s4 + $0x100] sm:$0xff] %v1996_v7  ;;  %v1861_v51 = vadd.f32 1.0, %v4800_v33  ;;  %3158 = vpow2.f32 %v1480_v61  ;;  %v2680_v6 = vpop.f32.mrb[97].mxu0  ;;  %v1755_v8 = vsel %vm1650_vm6, 1.0, %v4772_v1  ;;  %v1236_v5 = vand.u32 2147483647, %v4832_v18 }
 0x1a7   : > { %v2839_v2 = vpop.f32.mrb[97].mxu1  ;;  %v3147_v15 = vpop.eup %3146  ;;  %2226 = vst [vmem:[%s3863_s4 + $0x2a8] sm:$0xff] %v2102_v27  ;;  %v1914_v42 = vadd.f32 1.0, %v4811_v20  ;;  %3160 = vpow2.f32 %v1586_v26  ;;  %v1484_v49 = vmul.f32 1.442695, %v1340_v36  ;;  %v1393_v26 = vsub.f32 0.0, %v1288_v63 }
 0x1a8   : > { %v3149_v34 = vpop.eup %3148  ;;  %v1998_v32 = vmul.f32 %v3147_v15, %v1754_v60  ;;  %3162 = vrcp.f32 %v1861_v51  ;;  %v4834_v40 = vpop.f32.mrb[98].mxu0  ;;  %vm1704_vm9 = vcmp.ge.f32.partialorder %v4673_v16, 0.0  ;;  %v4854_v60 = vadd.f32 %v4750_v21, %v4610_v4 }
 0x1a9   : > { %v4828_v56 = vpop.eup %3150  ;;  %v2104_v48 = vmul.f32 %v3149_v34, %v1807_v39  ;;  %3164 = vrcp.f32 %v1914_v42  ;;  %v4836_v61 = vpop.f32.mrb[98].mxu1  ;;  %v1590_v46 = vmul.f32 1.442695, %v1393_v26  ;;  %v1341_v1 = vsub.f32 0.0, %v1236_v5 }
 0x1aa   : > { %v4838_v3 = vpop.eup %3152  ;;  %2174 = vst [vmem:[%s3863_s4 + $0x108] sm:$0xff] %v1998_v32  ;;  %v1862_v38 = vadd.f32 1.0, %v4828_v56  ;;  %3166 = vpow2.f32 %v1482_v35  ;;  %v2683_v31 = vpop.f32.mrb[99].mxu0  ;;  %v4862_v6 = vadd.f32 %v4750_v21, %v4637_v11  ;;  %v1808_v4 = vsel %vm1703_vm7, 1.0, %v4787_v25 }
 0x1ab   : > { %v2842_v54 = vpop.f32.mrb[99].mxu1  ;;  %2227 = vst [vmem:[%s3863_s4 + $0x2b0] sm:$0xff] %v2104_v48  ;;  %v1915_v45 = vadd.f32 1.0, %v4838_v3  ;;  %3168 = vpow2.f32 %v1588_v59  ;;  %vm1652_vm10 = vcmp.ge.f32.partialorder %v4711_v19, 0.0  ;;  %v1289_v59 = vand.u32 2147483647, %v4854_v60 }
 0x1ac   : > { %v3155_v7 = vpop.eup %3154  ;;  %3170 = vrcp.f32 %v1862_v38  ;;  %v4856_v51 = vpop.f32.mrb[100].mxu0  ;;  %v4872_v52 = vadd.f32 %v4750_v21, %v4639_v43  ;;  %v1486_v32 = vmul.f32 1.442695, %v1341_v1  ;;  %v1237_v39 = vand.u32 2147483647, %v4862_v6 }
 0x1ad   : > { %v2000_v27 = vmul.f32 %v3155_v7, %v1755_v8  ;;  %3172 = vrcp.f32 %v1915_v45  ;;  %v4858_v35 = vpop.f32.mrb[100].mxu1  ;;  %v2686_v2 = vpop.f32.mrb[101].mxu0  ;;  %v1756_v62 = vsel %vm1651_vm8, 1.0, %v4800_v33  ;;  %v1809_v25 = vsel %vm1704_vm9, 1.0, %v4811_v20 }
 0x1ae   : > { %3174 = vpow2.f32 %v1484_v49  ;;  %v2845_v15 = vpop.f32.mrb[101].mxu1  ;;  %v1394_v36 = vsub.f32 0.0, %v1289_v59  ;;  %v1342_v45 = vsub.f32 0.0, %v1237_v39  ;;  %v4894_v55 = vadd.f32 %v4750_v21, %v4654_v14 }
 0x1af   : > { %v3157_v42 = vpop.eup %3156  ;;  %2175 = vst [vmem:[%s3863_s4 + $0x110] sm:$0xff] %v2000_v27  ;;  %3176 = vpow2.f32 %v1590_v46  ;;  %v1290_v8 = vand.u32 2147483647, %v4872_v52  ;;  %vm1705_vm11 = vcmp.ge.f32.partialorder %v4718_v10, 0.0  ;;  %vm1653_vm12 = vcmp.ge.f32.partialorder %v4754_v22, 0.0 }
 0x1b0   : > { %v4874_v34 = vpop.eup %3158  ;;  %v2106_v11 = vmul.f32 %v3157_v42, %v1808_v4  ;;  %v4886_v38 = vpop.f32.mrb[102].mxu0  ;;  %3178 = vpow2.f32 %v1486_v32  ;;  %v1592_v7 = vmul.f32 1.442695, %v1394_v36  ;;  %v1488_v27 = vmul.f32 1.442695, %v1342_v45 }
 0x1b1   : > { %v4877_v48 = vpop.eup %3160  ;;  %v1863_v43 = vadd.f32 1.0, %v4874_v34  ;;  %v4888_v63 = vpop.f32.mrb[102].mxu1  ;;  %v1395_v1 = vsub.f32 0.0, %v1290_v8  ;;  %v1757_v42 = vsel %vm1652_vm10, 1.0, %v4828_v56  ;;  %v1238_v59 = vand.u32 2147483647, %v4894_v55 }
 0x1b2   : > { %v3163_v31 = vpop.eup %3162  ;;  %2228 = vst [vmem:[%s3863_s4 + $0x2b8] sm:$0xff] %v2106_v11  ;;  %v1916_v54 = vadd.f32 1.0, %v4877_v48  ;;  %v2689_v16 = vpop.f32.mrb[103].mxu0  ;;  %v4920_v36 = vadd.f32 %v4750_v21, %v4656_v47  ;;  %vm1706_vm13 = vcmp.ge.f32.partialorder %v4758_v0, 0.0  ;;  %v4927_v10 = vadd.f32 %v4750_v21, %v4679_v57 }
 0x1b3   : > { %v2848_v33 = vpop.f32.mrb[103].mxu1  ;;  %v3165_v20 = vpop.eup %3164  ;;  %v2002_v49 = vmul.f32 %v3163_v31, %v1756_v62  ;;  %3180 = vrcp.f32 %v1863_v43  ;;  %v1810_v62 = vsel %vm1705_vm11, 1.0, %v4838_v3  ;;  %v1343_v56 = vsub.f32 0.0, %v1238_v59 }
 0x1b4   : > { %v4897_v26 = vpop.eup %3166  ;;  %v2108_v5 = vmul.f32 %v3165_v20, %v1809_v25  ;;  %3182 = vrcp.f32 %v1916_v54  ;;  %v4905_v2 = vpop.f32.mrb[104].mxu0  ;;  %v1594_v25 = vmul.f32 1.442695, %v1395_v1  ;;  %vm1654_vm14 = vcmp.ge.f32.partialorder %v4766_v24, 0.0 }
 0x1b5   : > { %v4900_v46 = vpop.eup %3168  ;;  %2176 = vst [vmem:[%s3863_s4 + $0x118] sm:$0xff] %v2002_v49  ;;  %v1864_v14 = vadd.f32 1.0, %v4897_v26  ;;  %3184 = vpow2.f32 %v1592_v7  ;;  %v2692_v11 = vpop.f32.mrb[105].mxu0  ;;  %v1490_v54 = vmul.f32 1.442695, %v1343_v56  ;;  %v4936_v47 = vadd.f32 %v4750_v21, %v4681_v23 }
 0x1b6   : > { %v3171_v15 = vpop.eup %3170  ;;  %2229 = vst [vmem:[%s3863_s4 + $0x2c0] sm:$0xff] %v2108_v5  ;;  %v1917_v4 = vadd.f32 1.0, %v4900_v46  ;;  %3186 = vpow2.f32 %v1488_v27  ;;  %v1291_v45 = vand.u32 2147483647, %v4920_v36  ;;  %vm1707_vm15 = vcmp.ge.f32.partialorder %v4770_v50, 0.0 }
 0x1b7   : > { %v3173_v32 = vpop.eup %3172  ;;  %v2004_v39 = vmul.f32 %v3171_v15, %v1757_v42  ;;  %3188 = vrcp.f32 %v1864_v14  ;;  %v1239_v57 = vand.u32 2147483647, %v4927_v10  ;;  %vm1655_vm0 = vcmp.ge.f32.partialorder %v4805_v28, 0.0 }
 0x1b8   : > { %v4916_v43 = vpop.eup %3174  ;;  %v2110_v19 = vmul.f32 %v3173_v32, %v1810_v62  ;;  %3190 = vrcp.f32 %v1917_v4  ;;  %v1396_v20 = vsub.f32 0.0, %v1291_v45  ;;  %v1292_v49 = vand.u32 2147483647, %v4936_v47 }
 0x1b9   : > { %2177 = vst [vmem:[%s3863_s4 + $0x120] sm:$0xff] %v2004_v39  ;;  %v1865_v31 = vadd.f32 1.0, %v4916_v43  ;;  %3192 = vpow2.f32 %v1594_v25  ;;  %v4929_v3 = vpop.eup %3176  ;;  %v1758_v23 = vsel %vm1653_vm12, 1.0, %v4874_v34  ;;  %v1344_v5 = vsub.f32 0.0, %v1239_v57 }
 0x1ba   : > { %2230 = vst [vmem:[%s3863_s4 + $0x2c8] sm:$0xff] %v2110_v19  ;;  %v1918_v16 = vadd.f32 1.0, %v4929_v3  ;;  %v4941_v33 = vpop.eup %3178  ;;  %v1811_v1 = vsel %vm1706_vm13, 1.0, %v4877_v48  ;;  %v1596_v15 = vmul.f32 1.442695, %v1396_v20  ;;  %v1397_v42 = vsub.f32 0.0, %v1292_v49 }
 0x1bb   : > { %3194 = vrcp.f32 %v1865_v31  ;;  %v1866_v8 = vadd.f32 1.0, %v4941_v33  ;;  %v1492_v22 = vmul.f32 1.442695, %v1344_v5  ;;  %v4956_v34 = vadd.f32 %v4750_v21, %v4701_v30 }
 0x1bc   : > { %3196 = vpow2.f32 %v1490_v54  ;;  %vm1708_vm1 = vcmp.ge.f32.partialorder %v4826_v37, 0.0  ;;  %v1598_v48 = vmul.f32 1.442695, %v1397_v42  ;;  %v1759_v39 = vsel %vm1654_vm14, 1.0, %v4897_v26 }
 0x1bd   : > { %v3181_v7 = vpop.eup %3180  ;;  %3198 = vrcp.f32 %v1918_v16  ;;  %v1240_v30 = vand.u32 2147483647, %v4956_v34  ;;  %v1812_v56 = vsel %vm1707_vm15, 1.0, %v4900_v46  ;;  %v4974_v31 = vadd.f32 %v4750_v21, %v4703_v41 }
 0x1be   : > { %v3183_v27 = vpop.eup %3182  ;;  %v2006_v14 = vmul.f32 %v3181_v7, %v1758_v23  ;;  %3200 = vrcp.f32 %v1866_v8  ;;  %v4980_v45 = vadd.f32 %v4750_v21, %v4729_v17  ;;  %vm1656_vm2 = vcmp.ge.f32.partialorder %v4832_v18, 0.0 }
 0x1bf   : > { %v4952_v4 = vpop.eup %3184  ;;  %v2112_v59 = vmul.f32 %v3183_v27, %v1811_v1  ;;  %3202 = vpow2.f32 %v1596_v15  ;;  %v1345_v26 = vsub.f32 0.0, %v1240_v30  ;;  %v1293_v46 = vand.u32 2147483647, %v4974_v31 }
 0x1c0   : > { %v4958_v11 = vpop.eup %3186  ;;  %2178 = vst [vmem:[%s3863_s4 + $0x128] sm:$0xff] %v2006_v14  ;;  %v1919_v0 = vadd.f32 1.0, %v4952_v4  ;;  %3204 = vpow2.f32 %v1492_v22  ;;  %v1760_v41 = vsel %vm1655_vm0, 1.0, %v4916_v43  ;;  %vm1709_vm3 = vcmp.ge.f32.partialorder %v4854_v60, 0.0 }
 0x1c1   : > { %v3189_v32 = vpop.eup %3188  ;;  %2231 = vst [vmem:[%s3863_s4 + $0x2d0] sm:$0xff] %v2112_v59  ;;  %v1867_v62 = vadd.f32 1.0, %v4958_v11  ;;  %v1494_v57 = vmul.f32 1.442695, %v1345_v26  ;;  %v1241_v17 = vand.u32 2147483647, %v4980_v45  ;;  %v4996_v23 = vadd.f32 %v4750_v21, %v4731_v44 }
 0x1c2   : > { %v3191_v25 = vpop.eup %3190  ;;  %v2008_v19 = vmul.f32 %v3189_v32, %v1759_v39  ;;  %3206 = vrcp.f32 %v1919_v0  ;;  %v1398_v7 = vsub.f32 0.0, %v1293_v46  ;;  %v1813_v28 = vsel %vm1708_vm1, 1.0, %v4929_v3 }
 0x1c3   : > { %v4976_v54 = vpop.eup %3192  ;;  %v2114_v24 = vmul.f32 %v3191_v25, %v1812_v56  ;;  %3208 = vrcp.f32 %v1867_v62  ;;  %v1346_v5 = vsub.f32 0.0, %v1241_v17  ;;  %v1761_v14 = vsel %vm1656_vm2, 1.0, %v4941_v33 }
 0x1c4   : > { %2179 = vst [vmem:[%s3863_s4 + $0x130] sm:$0xff] %v2008_v19  ;;  %v1920_v50 = vadd.f32 1.0, %v4976_v54  ;;  %3210 = vpow2.f32 %v1598_v48  ;;  %v1600_v1 = vmul.f32 1.442695, %v1398_v7  ;;  %v1294_v44 = vand.u32 2147483647, %v4996_v23 }
 0x1c5   : > { %v3195_v16 = vpop.eup %3194  ;;  %2232 = vst [vmem:[%s3863_s4 + $0x2d8] sm:$0xff] %v2114_v24  ;;  %v1496_v42 = vmul.f32 1.442695, %v1346_v5  ;;  %v5009_v37 = vadd.f32 %v4750_v21, %v4760_v12  ;;  %v5013_v3 = vadd.f32 %v4750_v21, %v4762_v13  ;;  %v5020_v22 = vadd.f32 %v4750_v21, %v4785_v58 }
 0x1c6   : > { %v4992_v20 = vpop.eup %3196  ;;  %v2010_v49 = vmul.f32 %v3195_v16, %v1760_v41  ;;  %3212 = vrcp.f32 %v1920_v50  ;;  %v1399_v33 = vsub.f32 0.0, %v1294_v44  ;;  %vm1657_vm4 = vcmp.ge.f32.partialorder %v4862_v6, 0.0 }
 0x1c7   : > { %v3199_v8 = vpop.eup %3198  ;;  %v1868_v43 = vadd.f32 1.0, %v4992_v20  ;;  %3214 = vpow2.f32 %v1494_v57  ;;  %v1242_v48 = vand.u32 2147483647, %v5009_v37  ;;  %v1814_v32 = vsel %vm1709_vm3, 1.0, %v4952_v4 }
 0x1c8   : > { %2180 = vst [vmem:[%s3863_s4 + $0x138] sm:$0xff] %v2010_v49  ;;  %v2116_v27 = vmul.f32 %v3199_v8, %v1813_v28  ;;  %v3201_v15 = vpop.eup %3200  ;;  %v1762_v39 = vsel %vm1657_vm4, 1.0, %v4958_v11  ;;  %v1602_v58 = vmul.f32 1.442695, %v1399_v33  ;;  %v1295_v19 = vand.u32 2147483647, %v5013_v3 }
 0x1c9   : > { %3216 = vrcp.f32 %v1868_v43  ;;  %v5015_v59 = vpop.eup %3202  ;;  %v2012_v18 = vmul.f32 %v3201_v15, %v1761_v14  ;;  %v1347_v6 = vsub.f32 0.0, %v1242_v48  ;;  %v1243_v26 = vand.u32 2147483647, %v5020_v22 }
 0x1ca   : > { %2233 = vst [vmem:[%s3863_s4 + $0x2e0] sm:$0xff] %v2116_v27  ;;  %3218 = vpow2.f32 %v1600_v1  ;;  %v3205_v0 = vpop.eup %3204  ;;  %v1921_v12 = vadd.f32 1.0, %v5015_v59  ;;  %vm1710_vm5 = vcmp.ge.f32.partialorder %v4872_v52, 0.0  ;;  %v1400_v46 = vsub.f32 0.0, %v1295_v19 }
 0x1cb   : > { %3220 = vpow2.f32 %v1496_v42  ;;  %2181 = vst [vmem:[%s3863_s4 + $0x140] sm:$0xff] %v2012_v18  ;;  %v1869_v62 = vadd.f32 1.0, %v3205_v0  ;;  %v1498_v4 = vmul.f32 1.442695, %v1347_v6  ;;  %v1815_v50 = vsel %vm1710_vm5, 1.0, %v4976_v54 }
 0x1cc   : > { %v3207_v13 = vpop.eup %3206  ;;  %3222 = vrcp.f32 %v1921_v12  ;;  %v1348_v16 = vsub.f32 0.0, %v1243_v26  ;;  %v5041_v41 = vadd.f32 %v4750_v21, %v4790_v29  ;;  %v5047_v52 = vadd.f32 %v4750_v21, %v4807_v9 }
 0x1cd   : > { %v3209_v30 = vpop.eup %3208  ;;  %v2118_v25 = vmul.f32 %v3207_v13, %v1814_v32  ;;  %3224 = vrcp.f32 %v1869_v62  ;;  %v5051_v49 = vadd.f32 %v4750_v21, %v4809_v53  ;;  %vm1658_vm6 = vcmp.ge.f32.partialorder %v4894_v55, 0.0 }
 0x1ce   : > { %v5031_v56 = vpop.eup %3210  ;;  %v2014_v24 = vmul.f32 %v3209_v30, %v1762_v39  ;;  %3226 = vpow2.f32 %v1602_v58  ;;  %v1604_v7 = vmul.f32 1.442695, %v1400_v46  ;;  %v1763_v8 = vsel %vm1658_vm6, 1.0, %v4992_v20 }
 0x1cf   : > { %2234 = vst [vmem:[%s3863_s4 + $0x2e8] sm:$0xff] %v2118_v25  ;;  %v1922_v60 = vadd.f32 1.0, %v5031_v56  ;;  %vm1711_vm7 = vcmp.ge.f32.partialorder %v4920_v36, 0.0  ;;  %v1500_v28 = vmul.f32 1.442695, %v1348_v16  ;;  %vm1659_vm8 = vcmp.ge.f32.partialorder %v4927_v10, 0.0 }
 0x1d0   : > { %v3213_v11 = vpop.eup %3212  ;;  %2182 = vst [vmem:[%s3863_s4 + $0x148] sm:$0xff] %v2014_v24  ;;  %v1296_v9 = vand.u32 2147483647, %v5041_v41  ;;  %v1244_v55 = vand.u32 2147483647, %v5047_v52  ;;  %v1816_v36 = vsel %vm1711_vm7, 1.0, %v5015_v59  ;;  %v5072_v13 = vadd.f32 %v4750_v21, %v4834_v40 }
 0x1d1   : > { %v5043_v57 = vpop.eup %3214  ;;  %v2120_v17 = vmul.f32 %v3213_v11, %v1815_v50  ;;  %3228 = vrcp.f32 %v1922_v60  ;;  %v1297_v5 = vand.u32 2147483647, %v5051_v49  ;;  %v1764_v42 = vsel %vm1659_vm8, 1.0, %v3205_v0 }
 0x1d2   : > { %v1870_v54 = vadd.f32 1.0, %v5043_v57  ;;  %3230 = vpow2.f32 %v1498_v4  ;;  %v1401_v20 = vsub.f32 0.0, %v1296_v9  ;;  %v1349_v44 = vsub.f32 0.0, %v1244_v55 }
 0x1d3   : > { %v3217_v29 = vpop.eup %3216  ;;  %2235 = vst [vmem:[%s3863_s4 + $0x2f0] sm:$0xff] %v2120_v17  ;;  %v1402_v33 = vsub.f32 0.0, %v1297_v5  ;;  %v5078_v0 = vadd.f32 %v4750_v21, %v4836_v61  ;;  %vm1712_vm9 = vcmp.ge.f32.partialorder %v4936_v47, 0.0  ;;  %v1245_v58 = vand.u32 2147483647, %v5072_v13 }
 0x1d4   : > { %v5059_v43 = vpop.eup %3218  ;;  %v2016_v53 = vmul.f32 %v3217_v29, %v1763_v8  ;;  %3232 = vrcp.f32 %v1870_v54  ;;  %v1606_v18 = vmul.f32 1.442695, %v1401_v20  ;;  %v1502_v48 = vmul.f32 1.442695, %v1349_v44 }
 0x1d5   : > { %v5063_v27 = vpop.eup %3220  ;;  %v1923_v14 = vadd.f32 1.0, %v5059_v43  ;;  %3234 = vpow2.f32 %v1604_v7  ;;  %v1608_v39 = vmul.f32 1.442695, %v1402_v33  ;;  %v1817_v40 = vsel %vm1712_vm9, 1.0, %v5031_v56 }
 0x1d6   : > { %2183 = vst [vmem:[%s3863_s4 + $0x150] sm:$0xff] %v2016_v53  ;;  %v1871_v1 = vadd.f32 1.0, %v5063_v27  ;;  %3236 = vpow2.f32 %v1500_v28  ;;  %v3223_v15 = vpop.eup %3222  ;;  %vm1660_vm10 = vcmp.ge.f32.partialorder %v4956_v34, 0.0  ;;  %v1298_v25 = vand.u32 2147483647, %v5078_v0 }
 0x1d7   : > { %3238 = vrcp.f32 %v1923_v14  ;;  %v3225_v12 = vpop.eup %3224  ;;  %v2122_v10 = vmul.f32 %v3223_v15, %v1816_v36  ;;  %v1350_v47 = vsub.f32 0.0, %v1245_v58  ;;  %v5092_v19 = vadd.f32 %v4750_v21, %v4856_v51 }
 0x1d8   : > { %3240 = vrcp.f32 %v1871_v1  ;;  %v5074_v59 = vpop.eup %3226  ;;  %v2018_v32 = vmul.f32 %v3225_v12, %v1764_v42  ;;  %vm1713_vm11 = vcmp.ge.f32.partialorder %v4974_v31, 0.0  ;;  %v1403_v26 = vsub.f32 0.0, %v1298_v25 }
 0x1d9   : > { %3242 = vpow2.f32 %v1606_v18  ;;  %2236 = vst [vmem:[%s3863_s4 + $0x2f8] sm:$0xff] %v2122_v10  ;;  %v1924_v62 = vadd.f32 1.0, %v5074_v59  ;;  %v5098_v34 = vadd.f32 %v4750_v21, %v4858_v35  ;;  %v1765_v60 = vsel %vm1660_vm10, 1.0, %v5043_v57 }
 0x1da   : > { %3244 = vpow2.f32 %v1502_v48  ;;  %2184 = vst [vmem:[%s3863_s4 + $0x158] sm:$0xff] %v2018_v32  ;;  %v1504_v4 = vmul.f32 1.442695, %v1350_v47  ;;  %v1246_v11 = vand.u32 2147483647, %v5092_v19  ;;  %v5105_v51 = vadd.f32 %v4750_v21, %v4886_v38 }
 0x1db   : > { %v3229_v30 = vpop.eup %3228  ;;  %3246 = vpow2.f32 %v1608_v39  ;;  %v1610_v16 = vmul.f32 1.442695, %v1403_v26  ;;  %v1299_v17 = vand.u32 2147483647, %v5098_v34  ;;  %vm1661_vm12 = vcmp.ge.f32.partialorder %v4980_v45, 0.0 }
 0x1dc   : > { %v5088_v61 = vpop.eup %3230  ;;  %v2124_v6 = vmul.f32 %v3229_v30, %v1817_v40  ;;  %3248 = vrcp.f32 %v1924_v62  ;;  %v1351_v57 = vsub.f32 0.0, %v1246_v11  ;;  %v1818_v38 = vsel %vm1713_vm11, 1.0, %v5059_v43 }
 0x1dd   : > { %v1872_v24 = vadd.f32 1.0, %v5088_v61  ;;  %v1404_v8 = vsub.f32 0.0, %v1299_v17  ;;  %v1766_v53 = vsel %vm1661_vm12, 1.0, %v5063_v27  ;;  %v1247_v20 = vand.u32 2147483647, %v5105_v51 }
 0x1de   : > { %v3233_v56 = vpop.eup %3232  ;;  %2237 = vst [vmem:[%s3863_s4 + $0x300] sm:$0xff] %v2124_v6  ;;  %v1506_v45 = vmul.f32 1.442695, %v1351_v57  ;;  %vm1714_vm13 = vcmp.ge.f32.partialorder %v4996_v23, 0.0  ;;  %v5124_v18 = vadd.f32 %v4750_v21, %v4888_v63  ;;  %v5128_v10 = vadd.f32 %v4750_v21, %v4905_v2 }
 0x1df   : > { %v3235_v50 = vpop.eup %3234  ;;  %v2020_v46 = vmul.f32 %v3233_v56, %v1765_v60  ;;  %3250 = vrcp.f32 %v1872_v24  ;;  %v1612_v14 = vmul.f32 1.442695, %v1404_v8  ;;  %v1352_v27 = vsub.f32 0.0, %v1247_v20 }
 0x1e0   : > { %v5108_v35 = vpop.eup %3236  ;;  %v1925_v54 = vadd.f32 1.0, %v3235_v50  ;;  %3252 = vpow2.f32 %v1504_v4  ;;  %v1819_v15 = vsel %vm1714_vm13, 1.0, %v5074_v59  ;;  %vm1662_vm14 = vcmp.ge.f32.partialorder %v5009_v37, 0.0 }
 0x1e1   : > { %v3239_v7 = vpop.eup %3238  ;;  %2185 = vst [vmem:[%s3863_s4 + $0x160] sm:$0xff] %v2020_v46  ;;  %v1873_v29 = vadd.f32 1.0, %v5108_v35  ;;  %3254 = vpow2.f32 %v1610_v16  ;;  %v1508_v12 = vmul.f32 1.442695, %v1352_v27  ;;  %v1300_v23 = vand.u32 2147483647, %v5124_v18 }
 0x1e2   : > { %v3241_v28 = vpop.eup %3240  ;;  %v2126_v9 = vmul.f32 %v3239_v7, %v1818_v38  ;;  %3256 = vrcp.f32 %v1925_v54  ;;  %v1767_v59 = vsel %vm1662_vm14, 1.0, %v5088_v61  ;;  %v1248_v63 = vand.u32 2147483647, %v5128_v10 }
 0x1e3   : > { %v3243_v55 = vpop.eup %3242  ;;  %v2022_v5 = vmul.f32 %v3241_v28, %v1766_v53  ;;  %3258 = vrcp.f32 %v1873_v29  ;;  %v1405_v62 = vsub.f32 0.0, %v1300_v23  ;;  %vm1715_vm15 = vcmp.ge.f32.partialorder %v5013_v3, 0.0 }
 0x1e4   : > { %v3245_v31 = vpop.eup %3244  ;;  %2238 = vst [vmem:[%s3863_s4 + $0x308] sm:$0xff] %v2126_v9  ;;  %v1926_v43 = vadd.f32 1.0, %v3243_v55  ;;  %3260 = vpow2.f32 %v1506_v45  ;;  %v1353_v2 = vsub.f32 0.0, %v1248_v63  ;;  %v1820_v30 = vsel %vm1715_vm15, 1.0, %v3235_v50 }
 0x1e5   : > { %v3247_v36 = vpop.eup %3246  ;;  %2186 = vst [vmem:[%s3863_s4 + $0x168] sm:$0xff] %v2022_v5  ;;  %v1874_v1 = vadd.f32 1.0, %v3245_v31  ;;  %3262 = vpow2.f32 %v1612_v14  ;;  %vm1663_vm0 = vcmp.ge.f32.partialorder %v5020_v22, 0.0  ;;  %v1614_v25 = vmul.f32 1.442695, %v1405_v62 }
 0x1e6   : > { %v3249_v44 = vpop.eup %3248  ;;  %3264 = vrcp.f32 %v1926_v43  ;;  %v1927_v42 = vadd.f32 1.0, %v3247_v36  ;;  %v1768_v47 = vsel %vm1663_vm0, 1.0, %v5108_v35  ;;  %v1510_v24 = vmul.f32 1.442695, %v1353_v2 }
 0x1e7   : > { %v2128_v33 = vmul.f32 %v3249_v44, %v1819_v15  ;;  %3266 = vrcp.f32 %v1874_v1  ;;  %vm1716_vm1 = vcmp.ge.f32.partialorder %v5041_v41, 0.0  ;;  %vm1664_vm2 = vcmp.ge.f32.partialorder %v5047_v52, 0.0 }
 0x1e8   : > { %3268 = vrcp.f32 %v1927_v42  ;;  %v1821_v22 = vsel %vm1716_vm1, 1.0, %v3243_v55  ;;  %v1769_v16 = vsel %vm1664_vm2, 1.0, %v3245_v31  ;;  %vm1717_vm3 = vcmp.ge.f32.partialorder %v5051_v49, 0.0 }
 0x1e9   : > { %v3251_v48 = vpop.eup %3250  ;;  %2239 = vst [vmem:[%s3863_s4 + $0x310] sm:$0xff] %v2128_v33  ;;  %3270 = vpow2.f32 %v1508_v12  ;;  %v1822_v35 = vsel %vm1717_vm3, 1.0, %v3247_v36  ;;  %vm1665_vm4 = vcmp.ge.f32.partialorder %v5072_v13, 0.0  ;;  %vm1718_vm5 = vcmp.ge.f32.partialorder %v5078_v0, 0.0 }
 0x1ea   : > { %v3253_v32 = vpop.eup %3252  ;;  %v2024_v39 = vmul.f32 %v3251_v48, %v1767_v59  ;;  %vm1666_vm6 = vcmp.ge.f32.partialorder %v5092_v19, 0.0  ;;  %vm1719_vm7 = vcmp.ge.f32.partialorder %v5098_v34, 0.0  ;;  %vm1667_vm8 = vcmp.ge.f32.partialorder %v5105_v51, 0.0 }
 0x1eb   : > { %v3255_v58 = vpop.eup %3254  ;;  %v1875_v21 = vadd.f32 1.0, %v3253_v32  ;;  %v1770_v38 = vsel %vm1665_vm4, 1.0, %v3253_v32  ;;  %vm1720_vm9 = vcmp.ge.f32.partialorder %v5124_v18, 0.0  ;;  %vm1668_vm10 = vcmp.ge.f32.partialorder %v5128_v10, 0.0 }
 0x1ec   : > { %v3257_v37 = vpop.eup %3256  ;;  %2187 = vst [vmem:[%s3863_s4 + $0x170] sm:$0xff] %v2024_v39  ;;  %v1928_v40 = vadd.f32 1.0, %v3255_v58  ;;  %v1823_v8 = vsel %vm1718_vm5, 1.0, %v3255_v58 }
 0x1ed   : > { %v3259_v61 = vpop.eup %3258  ;;  %v2130_v6 = vmul.f32 %v3257_v37, %v1820_v30  ;;  %3272 = vrcp.f32 %v1875_v21 }
 0x1ee   : > { %v3261_v26 = vpop.eup %3260  ;;  %v2026_v56 = vmul.f32 %v3259_v61, %v1768_v47  ;;  %3274 = vrcp.f32 %v1928_v40 }
 0x1ef   : > { %v3263_v3 = vpop.eup %3262  ;;  %2240 = vst [vmem:[%s3863_s4 + $0x318] sm:$0xff] %v2130_v6  ;;  %v1876_v60 = vadd.f32 1.0, %v3261_v26  ;;  %3276 = vpow2.f32 %v1614_v25  ;;  %v1771_v13 = vsel %vm1666_vm6, 1.0, %v3261_v26 }
 0x1f0   : > { %v3265_v4 = vpop.eup %3264  ;;  %2188 = vst [vmem:[%s3863_s4 + $0x178] sm:$0xff] %v2026_v56  ;;  %v1929_v11 = vadd.f32 1.0, %v3263_v3  ;;  %3278 = vpow2.f32 %v1510_v24  ;;  %v1824_v20 = vsel %vm1719_vm7, 1.0, %v3263_v3 }
 0x1f1   : > { %v3267_v50 = vpop.eup %3266  ;;  %v2132_v46 = vmul.f32 %v3265_v4, %v1821_v22  ;;  %3280 = vrcp.f32 %v1876_v60 }
 0x1f2   : > { %v3269_v17 = vpop.eup %3268  ;;  %v2028_v41 = vmul.f32 %v3267_v50, %v1769_v16  ;;  %3282 = vrcp.f32 %v1929_v11 }
 0x1f3   : > { %v3271_v54 = vpop.eup %3270  ;;  %2241 = vst [vmem:[%s3863_s4 + $0x320] sm:$0xff] %v2132_v46  ;;  %v2134_v57 = vmul.f32 %v3269_v17, %v1822_v35 }
 0x1f4   : > { %2189 = vst [vmem:[%s3863_s4 + $0x180] sm:$0xff] %v2028_v41  ;;  %v1877_v7 = vadd.f32 1.0, %v3271_v54  ;;  %v1772_v43 = vsel %vm1667_vm8, 1.0, %v3271_v54 }
 0x1f5   : > { %2242 = vst [vmem:[%s3863_s4 + $0x328] sm:$0xff] %v2134_v57 }
 0x1f6   : > { %3284 = vrcp.f32 %v1877_v7 }
 0x1f7   : > { %v3273_v52 = vpop.eup %3272 }
 0x1f8   : > { %v3275_v49 = vpop.eup %3274  ;;  %v2030_v29 = vmul.f32 %v3273_v52, %v1770_v38 }
 0x1f9   : > { %v3277_v28 = vpop.eup %3276  ;;  %v2136_v9 = vmul.f32 %v3275_v49, %v1823_v8 }
 0x1fa   : > { %v3279_v53 = vpop.eup %3278  ;;  %2190 = vst [vmem:[%s3863_s4 + $0x188] sm:$0xff] %v2030_v29  ;;  %v1930_v45 = vadd.f32 1.0, %v3277_v28  ;;  %v1825_v1 = vsel %vm1720_vm9, 1.0, %v3277_v28 }
 0x1fb   : > { %v3281_v55 = vpop.eup %3280  ;;  %2243 = vst [vmem:[%s3863_s4 + $0x330] sm:$0xff] %v2136_v9  ;;  %v1878_v5 = vadd.f32 1.0, %v3279_v53  ;;  %v1773_v15 = vsel %vm1668_vm10, 1.0, %v3279_v53 }
 0x1fc   : > { %v3283_v0 = vpop.eup %3282  ;;  %v2032_v14 = vmul.f32 %v3281_v55, %v1771_v13  ;;  %3286 = vrcp.f32 %v1930_v45 }
 0x1fd   : > { %v2138_v31 = vmul.f32 %v3283_v0, %v1824_v20  ;;  %3288 = vrcp.f32 %v1878_v5 }
 0x1fe   : > { %2191 = vst [vmem:[%s3863_s4 + $0x190] sm:$0xff] %v2032_v14 }
 0x1ff   : > { %2244 = vst [vmem:[%s3863_s4 + $0x338] sm:$0xff] %v2138_v31 }
 0x200   : > { %v3285_v19 = vpop.eup %3284 }
 0x201   : > { %v2034_v36 = vmul.f32 %v3285_v19, %v1772_v43 }
 0x203   : > { %2192 = vst [vmem:[%s3863_s4 + $0x198] sm:$0xff] %v2034_v36 }
 0x206   : > { %v3287_v34 = vpop.eup %3286 }
 0x207   : > { %v3289_v27 = vpop.eup %3288  ;;  %v2140_v44 = vmul.f32 %v3287_v34, %v1825_v1 }
 0x208   : > { %v2036_v42 = vmul.f32 %v3289_v27, %v1773_v15 }
 0x209   : > { %2245 = vst [vmem:[%s3863_s4 + $0x340] sm:$0xff] %v2140_v44 }
 0x20a   : > { %2193 = vst [vmem:[%s3863_s4 + $0x1a0] sm:$0xff] %v2036_v42 }
 0x20b PF: > { %s13_s12 = sadd.s32 1, %s3298_s12  }
 0x20c   : > { %p10_p4 = scmp.ge.s32.totalorder %s13_s12, 8  }
 0x20e   :  { %12 = sbr.rel (!%p10_p4) target bundleno = 1 (0x1), region = 62 }

</bundles_post_ra>
